<compile_context>
chip_gen: v7x
topology: tpu7x:2x2x1
jax: 0.10.0
libtpu: 0.0.40
codegen_flags: <defaults>
</compile_context>

<pallas_src>
import functools
import math

import jax
import jax.numpy as jnp
from jax.experimental import pallas as pl
from jax.experimental.pallas import tpu as pltpu

_MIB = 1024 * 1024


# ----------------------------------------------------------------------------
# Small helpers
# ----------------------------------------------------------------------------
def _round_up(x, m):
    return ((x + m - 1) // m) * m


def _vmem_limit(working_set_bytes):
    """Scoped-VMEM budget: proven-safe 32 MiB floor, raised only when the working set
    needs it; clamped so we never request absurd amounts (fallbacks handle rejects)."""
    return int(min(max(32 * _MIB, working_set_bytes + 8 * _MIB), 100 * _MIB))


def _pick_tile(dim, max_tile):
    """Lane-aligned tile (multiple of 128) that divides the 128-padded dim.
    Prefers multiples of 256 (v6e/v7x MXU is 2x256^2) when that costs < 2x tile size."""
    padded = _round_up(dim, 128)
    chunks = padded // 128
    best, best256 = 1, 0
    for d in range(1, chunks + 1):
        if chunks % d == 0 and d * 128 <= max_tile:
            best = d
            if (d * 128) % 256 == 0:
                best256 = d
    if best256 and 2 * best256 >= best:
        best = best256
    return best * 128, padded


def _pick_tm(m, max_tm):
    """Row tile: big for im2col-style matmuls, shrunk to the batch for the classifier."""
    if m >= max_tm:
        return max_tm, _round_up(m, max_tm)
    tm = _round_up(m, 16)  # bf16-friendly sublane multiple
    return tm, tm


# ----------------------------------------------------------------------------
# Pallas matmul + bias (+ optional ReLU):  out = act(x @ w + b)
#   x, w are bf16; f32 accumulation directly in the resident output block.
# ----------------------------------------------------------------------------
def _matmul_bias_kernel(x_ref, w_ref, b_ref, o_ref, *, relu, single_k):
    if single_k:
        r = jnp.dot(x_ref[...], w_ref[...], preferred_element_type=jnp.float32)
        r = r + b_ref[...]
        if relu:
            r = jnp.maximum(r, 0.0)
        o_ref[...] = r
    else:
        k = pl.program_id(2)

        @pl.when(k == 0)
        def _():
            o_ref[...] = jnp.zeros_like(o_ref)

        o_ref[...] += jnp.dot(
            x_ref[...], w_ref[...], preferred_element_type=jnp.float32
        )

        @pl.when(k == pl.num_programs(2) - 1)
        def _():
            r = o_ref[...] + b_ref[...]
            if relu:
                r = jnp.maximum(r, 0.0)
            o_ref[...] = r


def linear_pallas(x, w, b, relu=False, *, max_tm=512, max_tn=1024, max_tk=4096,
                  weight_buffers=3):
    """x: (M, K), w: (K, N) [bf16 preferred], b: (N,) -> (M, N) f32 on the MXU."""
    M, K = x.shape
    K2, N = w.shape
    assert K == K2

    tm, Mp = _pick_tm(M, max_tm)
    tn, Np = _pick_tile(N, max_tn)
    tk, Kp = _pick_tile(K, max_tk)
    nk = Kp // tk

    xb = x.astype(jnp.bfloat16)
    wb = w if w.dtype == jnp.bfloat16 else w.astype(jnp.bfloat16)
    if (Mp, Kp) != (M, K):
        xb = jnp.pad(xb, ((0, Mp - M), (0, Kp - K)))
    if (Kp, Np) != (K, N):  # only the tiny final head hits this at classifier shapes
        wb = jnp.pad(wb, ((0, Kp - K), (0, Np - N)))
    bp = b.astype(jnp.float32)
    if Np != N:
        bp = jnp.pad(bp, (0, Np - N))
    bp = bp.reshape(1, Np)

    def run(buffers):
        if buffers > 2:
            w_spec = pl.BlockSpec((tk, tn), lambda i, j, k: (k, j),
                                  pipeline_mode=pl.Buffered(buffers))
        else:
            w_spec = pl.BlockSpec((tk, tn), lambda i, j, k: (k, j))
        working = (buffers * tk * tn * 2          # bf16 weight blocks (deep-buffered)
                   + 2 * tm * tk * 2              # bf16 x blocks
                   + 2 * tm * tn * 4              # f32 resident output blocks
                   + 2 * tn * 4)                  # bias
        return pl.pallas_call(
            functools.partial(_matmul_bias_kernel, relu=relu, single_k=(nk == 1)),
            out_shape=jax.ShapeDtypeStruct((Mp, Np), jnp.float32),
            grid_spec=pltpu.PrefetchScalarGridSpec(
                num_scalar_prefetch=0,
                grid=(Mp // tm, Np // tn, nk),
                in_specs=[
                    pl.BlockSpec((tm, tk), lambda i, j, k: (i, k)),
                    w_spec,
                    pl.BlockSpec((1, tn), lambda i, j, k: (0, j)),  # k-invariant -> resident
                ],
                out_specs=pl.BlockSpec((tm, tn), lambda i, j, k: (i, j)),
            ),
            compiler_params=pltpu.CompilerParams(
                dimension_semantics=("parallel", "parallel", "arbitrary"),
                vmem_limit_bytes=_vmem_limit(working),
            ),
        )(xb, wb, bp)

    n_weight_blocks = (Np // tn) * nk
    buffers = weight_buffers if n_weight_blocks >= weight_buffers else 2
    if buffers > 2:
        try:
            out = run(buffers)   # triple-buffered weight streaming (fc1/fc2 hot path)
        except Exception:
            out = run(2)         # conservative fallback: default double buffering
    else:
        out = run(2)

    if (Mp, Np) != (M, N):
        out = out[:M, :N]
    return out


# ----------------------------------------------------------------------------
# Fused 3x3 "same" conv + bias + ReLU (no im2col in HBM)
# ----------------------------------------------------------------------------
def _conv3x3_kernel(x_ref, w_ref, b_ref, o_ref, *, w_pitch):
    """x_ref: (1, Lp, Cin) bf16 flattened zero-padded image (row pitch = w_pitch).
    w_ref: (9, Cin, Cout) bf16 (tap-major).  o_ref: (1, Lg, Cout) bf16, Lg = H*w_pitch
    (2 discarded pad-column outputs per image row)."""
    lg = o_ref.shape[1]
    acc = None
    for dy in range(3):
        for dx in range(3):
            off = dy * w_pitch + dx
            lhs = x_ref[0, off:off + lg, :]                     # shifted row window
            p = jnp.dot(lhs, w_ref[dy * 3 + dx],
                        preferred_element_type=jnp.float32)     # MXU, f32 accumulate
            acc = p if acc is None else acc + p
    r = jnp.maximum(acc + b_ref[...], 0.0)
    o_ref[0] = r.astype(o_ref.dtype)


def _conv3x3_relu_fused(x, w, b):
    """x: (N,H,W,Cin) float, w: (9,Cin,Cout) bf16, b: (Cout,) -> (N,H,W,Cout) bf16."""
    N, H, W, Cin = x.shape
    Cout = w.shape[2]
    wp = W + 2
    cpad = max(8 - Cin, 0)            # first layer: Cin 3 -> 8 (even, packed-bf16 friendly)
    cin = Cin + cpad
    lp = (H + 3) * wp                 # 1 top + 2 bottom pad rows keep the last discarded
    lg = H * wp                       #   row's taps in-bounds without special-casing

    xb = jnp.pad(x.astype(jnp.bfloat16), ((0, 0), (1, 2), (1, 1), (0, cpad)))
    xf = xb.reshape(N, lp, cin)
    wk = jnp.pad(w, ((0, 0), (0, cpad), (0, 0))) if cpad else w
    bp = b.astype(jnp.float32).reshape(1, Cout)

    working = (2 * lp * cin * 2 + 2 * 9 * cin * Cout * 2 + 2 * lg * Cout * 2
               + 4 * lg * Cout * 4 + 2 * Cout * 4)

    y = pl.pallas_call(
        functools.partial(_conv3x3_kernel, w_pitch=wp),
        out_shape=jax.ShapeDtypeStruct((N, lg, Cout), jnp.bfloat16),
        grid_spec=pltpu.PrefetchScalarGridSpec(
            num_scalar_prefetch=0,
            grid=(N,),
            in_specs=[
                pl.BlockSpec((1, lp, cin), lambda n: (n, 0, 0)),
                pl.BlockSpec((9, cin, Cout), lambda n: (0, 0, 0)),  # grid-invariant weight
                pl.BlockSpec((1, Cout), lambda n: (0, 0)),
            ],
            out_specs=pl.BlockSpec((1, lg, Cout), lambda n: (n, 0, 0)),
        ),
        compiler_params=pltpu.CompilerParams(
            dimension_semantics=("parallel",),
            vmem_limit_bytes=_vmem_limit(working),
        ),
    )(xf, wk, bp)
    # Drop the 2 pad-column outputs per image row; XLA fuses this slice into the next
    # layer's pad/reshape, so each conv output is written/read only once in HBM.
    return y.reshape(N, H, wp, Cout)[:, :, :W, :]


def _conv3x3_relu_im2col(x, w, b):
    """Fallback (previously-validated path): bf16 im2col + Pallas matmul, fused bias+ReLU."""
    N, H, W, Cin = x.shape
    Cout = w.shape[2]
    xp = jnp.pad(x.astype(jnp.bfloat16), ((0, 0), (1, 1), (1, 1), (0, 0)))
    patches = jnp.concatenate(
        [xp[:, dy:dy + H, dx:dx + W, :] for dy in range(3) for dx in range(3)], axis=-1)
    xm = patches.reshape(N * H * W, 9 * Cin)
    y = linear_pallas(xm, w.reshape(9 * Cin, Cout), b, relu=True)
    return y.reshape(N, H, W, Cout).astype(jnp.bfloat16)


def conv3x3_relu(x, w, b):
    try:
        return _conv3x3_relu_fused(x, w, b)
    except Exception:
        # Conservative Pallas fallback if this layer's shape hits a Mosaic lowering gap.
        return _conv3x3_relu_im2col(x, w, b)


# ----------------------------------------------------------------------------
# MaxPool2d(kernel=2, stride=2): bf16, tiled over output rows.
# Input viewed as (N, H, W/2, 2*C) so the W-direction pair lives on the lane axis.
# ----------------------------------------------------------------------------
def _maxpool_kernel(x_ref, o_ref, *, C, TH):
    a = x_ref[0]                                     # (2*TH, W2, 2C)
    a = a.reshape(TH, 2, a.shape[1], a.shape[2])     # split leading (untiled) dim only
    m = jnp.maximum(a[:, 0], a[:, 1])                # max over the 2 rows
    o_ref[0] = jnp.maximum(m[..., :C], m[..., C:])   # max over the 2 columns


def maxpool2x2(x):
    N, H, W, C = x.shape
    H2, W2 = H // 2, W // 2
    xr = x.reshape(N, H, W2, 2 * C)                  # pure view
    blk_row_bytes = 2 * W2 * 2 * C * x.dtype.itemsize    # input bytes per output row
    max_rows = max(1, (4 * _MIB) // max(blk_row_bytes, 1))
    TH = 1
    for d in range(1, H2 + 1):
        if H2 % d == 0 and d <= max_rows:
            TH = d
    working = 2 * (2 * TH * W2 * 2 * C + TH * W2 * C) * x.dtype.itemsize
    return pl.pallas_call(
        functools.partial(_maxpool_kernel, C=C, TH=TH),
        out_shape=jax.ShapeDtypeStruct((N, H2, W2, C), x.dtype),
        grid=(N, H2 // TH),
        in_specs=[pl.BlockSpec((1, 2 * TH, W2, 2 * C), lambda n, h: (n, h, 0, 0))],
        out_specs=pl.BlockSpec((1, TH, W2, C), lambda n, h: (n, h, 0, 0)),
        compiler_params=pltpu.CompilerParams(
            dimension_semantics=("parallel", "parallel"),
            vmem_limit_bytes=_vmem_limit(working),
        ),
    )(xr)


# ----------------------------------------------------------------------------
# AdaptiveAvgPool2d((7,7)) — tiny reduction (<=49 bins per channel), plain JAX glue
# ----------------------------------------------------------------------------
def adaptive_avg_pool2d(x, out_hw=(7, 7)):
    N, H, W, C = x.shape
    OH, OW = out_hw
    xf = x.astype(jnp.float32)
    if (H, W) == (OH, OW):
        return xf
    rows = []
    for i in range(OH):
        hs, he = (i * H) // OH, -(-((i + 1) * H) // OH)
        cols = []
        for j in range(OW):
            ws, we = (j * W) // OW, -(-((j + 1) * W) // OW)
            cols.append(jnp.mean(xf[:, hs:he, ws:we, :], axis=(1, 2)))
        rows.append(jnp.stack(cols, axis=1))
    return jnp.stack(rows, axis=1)  # (N, OH, OW, C)


# ----------------------------------------------------------------------------
# Deterministic synthetic VGG16 parameters.
# Conv weights are (9, Cin, Cout) bf16 (tap-major); fc1's rows are pre-permuted from
# torch's NCHW-flatten order to NHWC order so the runtime transpose is eliminated.
# ----------------------------------------------------------------------------
_VGG16_CFG = [64, 64, "M", 128, 128, "M", 256, 256, 256, "M",
              512, 512, 512, "M", 512, 512, 512, "M"]


def init_vgg16_params(key, num_classes):
    # TODO(synk): synthetic weights; the real module loads pretrained IMAGENET1K_V1 VGG16.
    params = {"features": [], "classifier": []}
    cin = 3
    for v in _VGG16_CFG:
        if v == "M":
            params["features"].append("M")
            continue
        key, k1, k2 = jax.random.split(key, 3)
        fan_in = 9 * cin
        w = jax.random.normal(k1, (3, 3, cin, v), jnp.float32) / math.sqrt(fan_in)
        b = jax.random.normal(k2, (v,), jnp.float32) * 0.01
        params["features"].append((w.reshape(9, cin, v).astype(jnp.bfloat16), b))
        cin = v

    dims = [(512 * 7 * 7, 4096), (4096, 4096), (4096, num_classes)]
    for li, (din, dout) in enumerate(dims):
        key, k1, k2 = jax.random.split(key, 3)
        w = jax.random.normal(k1, (din, dout), jnp.float32) / math.sqrt(din)
        if li == 0:
            # Fold torch's NCHW flatten into fc1: permute rows (c,h,w) -> (h,w,c) so the
            # NHWC activation is flattened directly (keeps channels lane-dense into fc1).
            w = w.reshape(512, 7, 7, dout).transpose(1, 2, 0, 3).reshape(din, dout)
        b = jax.random.normal(k2, (dout,), jnp.float32) * 0.01
        params["classifier"].append((w.astype(jnp.bfloat16), b))
    return params


# ----------------------------------------------------------------------------
# Full forward pass (SketchClassifier.forward == VGG16 forward with replaced head)
# ----------------------------------------------------------------------------
def sketch_classifier_forward(x_nchw, params):
    x = jnp.transpose(x_nchw, (0, 2, 3, 1))          # NCHW -> NHWC once at the boundary

    # features: conv3x3+ReLU blocks with 2x2 max pools (bf16 activations throughout)
    for layer in params["features"]:
        if isinstance(layer, str) and layer == "M":
            x = maxpool2x2(x)
        else:
            w, b = layer
            x = conv3x3_relu(x, w, b)

    # avgpool + flatten (fc1 rows pre-permuted, so NHWC flatten matches torch semantics)
    x = adaptive_avg_pool2d(x, (7, 7))
    n = x.shape[0]
    x = x.reshape(n, -1)                              # (N, 7*7*512)

    # classifier: Linear-ReLU-Dropout-Linear-ReLU-Dropout-Linear
    (w1, b1), (w2, b2), (w3, b3) = params["classifier"]
    x = linear_pallas(x, w1, b1, relu=True)
    # TODO(synk): nn.Dropout treated as identity (inference/eval semantics).
    x = linear_pallas(x, w2, b2, relu=True)
    x = linear_pallas(x, w3, b3, relu=False)
    return x


if __name__ == "__main__":
    key = jax.random.PRNGKey(0)
    kx, kp = jax.random.split(key)

    num_classes = 10
    # Small example input consistent with the module's NCHW 3-channel image input.
    x = jax.random.normal(kx, (2, 3, 32, 32), jnp.float32)
    params = init_vgg16_params(kp, num_classes)

    out = sketch_classifier_forward(x, params)
    out = jax.block_until_ready(out)
    assert out.shape == (2, num_classes) and out.dtype == jnp.float32

    print("KERNEL_OK")
</pallas_src>

<mosaic_0001>
module attributes {stable_mosaic.version = 11 : i64} {
  func.func @_conv3x3_kernel(%arg0: i32, %arg1: memref<1x1190x8xbf16, #tpu.memory_space<vmem>>, %arg2: memref<9x8x64xbf16, #tpu.memory_space<vmem>>, %arg3: memref<1x64xf32, #tpu.memory_space<vmem>>, %arg4: memref<1x1088x64xbf16, #tpu.memory_space<vmem>>) attributes {dimension_semantics = [#tpu.dimension_semantics<parallel>], iteration_bounds = array<i64: 2>, scalar_prefetch = 0 : i64, scratch_operands = 0 : i64, tpu.core_type = #tpu.core_type<tc>, window_params = [{transform_indices = @transform_0, window_bounds = array<i64: 1, 1190, 8>}, {pipeline_mode = #tpu.pipeline_mode<synchronous>, transform_indices = @transform_1, window_bounds = array<i64: 9, 8, 64>}, {pipeline_mode = #tpu.pipeline_mode<synchronous>, transform_indices = @transform_2, window_bounds = array<i64: 1, 64>}, {transform_indices = @transform_3, window_bounds = array<i64: 1, 1088, 64>}]} {
    %c0 = arith.constant 0 : index
    %c0_0 = arith.constant 0 : index
    %c0_1 = arith.constant 0 : index
    %0 = vector.load %arg1[%c0, %c0_0, %c0_1] : memref<1x1190x8xbf16, #tpu.memory_space<vmem>>, vector<1x1088x8xbf16>
    %1 = vector.shape_cast %0 : vector<1x1088x8xbf16> to vector<1088x8xbf16>
    %c0_2 = arith.constant 0 : index
    %c0_3 = arith.constant 0 : index
    %c0_4 = arith.constant 0 : index
    %2 = vector.load %arg2[%c0_2, %c0_3, %c0_4] : memref<9x8x64xbf16, #tpu.memory_space<vmem>>, vector<1x8x64xbf16>
    %3 = vector.shape_cast %2 : vector<1x8x64xbf16> to vector<8x64xbf16>
    %cst = arith.constant dense<0.000000e+00> : vector<1088x64xf32>
    %4 = tpu.matmul %1, %3, %cst {dimension_numbers = #tpu.dot_dimension_numbers<[1], [0], [0], [1], [0, 0, 1, 1], [], []>} : vector<1088x8xbf16>, vector<8x64xbf16>, vector<1088x64xf32> -> vector<1088x64xf32>
    %c0_5 = arith.constant 0 : index
    %c1 = arith.constant 1 : index
    %c0_6 = arith.constant 0 : index
    %5 = vector.load %arg1[%c0_5, %c1, %c0_6] : memref<1x1190x8xbf16, #tpu.memory_space<vmem>>, vector<1x1088x8xbf16>
    %6 = vector.shape_cast %5 : vector<1x1088x8xbf16> to vector<1088x8xbf16>
    %c1_7 = arith.constant 1 : index
    %c0_8 = arith.constant 0 : index
    %c0_9 = arith.constant 0 : index
    %7 = vector.load %arg2[%c1_7, %c0_8, %c0_9] : memref<9x8x64xbf16, #tpu.memory_space<vmem>>, vector<1x8x64xbf16>
    %8 = vector.shape_cast %7 : vector<1x8x64xbf16> to vector<8x64xbf16>
    %cst_10 = arith.constant dense<0.000000e+00> : vector<1088x64xf32>
    %9 = tpu.matmul %6, %8, %cst_10 {dimension_numbers = #tpu.dot_dimension_numbers<[1], [0], [0], [1], [0, 0, 1, 1], [], []>} : vector<1088x8xbf16>, vector<8x64xbf16>, vector<1088x64xf32> -> vector<1088x64xf32>
    %10 = arith.addf %4, %9 : vector<1088x64xf32>
    %c0_11 = arith.constant 0 : index
    %c2 = arith.constant 2 : index
    %c0_12 = arith.constant 0 : index
    %11 = vector.load %arg1[%c0_11, %c2, %c0_12] : memref<1x1190x8xbf16, #tpu.memory_space<vmem>>, vector<1x1088x8xbf16>
    %12 = vector.shape_cast %11 : vector<1x1088x8xbf16> to vector<1088x8xbf16>
    %c2_13 = arith.constant 2 : index
    %c0_14 = arith.constant 0 : index
    %c0_15 = arith.constant 0 : index
    %13 = vector.load %arg2[%c2_13, %c0_14, %c0_15] : memref<9x8x64xbf16, #tpu.memory_space<vmem>>, vector<1x8x64xbf16>
    %14 = vector.shape_cast %13 : vector<1x8x64xbf16> to vector<8x64xbf16>
    %cst_16 = arith.constant dense<0.000000e+00> : vector<1088x64xf32>
    %15 = tpu.matmul %12, %14, %cst_16 {dimension_numbers = #tpu.dot_dimension_numbers<[1], [0], [0], [1], [0, 0, 1, 1], [], []>} : vector<1088x8xbf16>, vector<8x64xbf16>, vector<1088x64xf32> -> vector<1088x64xf32>
    %16 = arith.addf %10, %15 : vector<1088x64xf32>
    %c0_17 = arith.constant 0 : index
    %c34 = arith.constant 34 : index
    %c0_18 = arith.constant 0 : index
    %17 = vector.load %arg1[%c0_17, %c34, %c0_18] : memref<1x1190x8xbf16, #tpu.memory_space<vmem>>, vector<1x1088x8xbf16>
    %18 = vector.shape_cast %17 : vector<1x1088x8xbf16> to vector<1088x8xbf16>
    %c3 = arith.constant 3 : index
    %c0_19 = arith.constant 0 : index
    %c0_20 = arith.constant 0 : index
    %19 = vector.load %arg2[%c3, %c0_19, %c0_20] : memref<9x8x64xbf16, #tpu.memory_space<vmem>>, vector<1x8x64xbf16>
    %20 = vector.shape_cast %19 : vector<1x8x64xbf16> to vector<8x64xbf16>
    %cst_21 = arith.constant dense<0.000000e+00> : vector<1088x64xf32>
    %21 = tpu.matmul %18, %20, %cst_21 {dimension_numbers = #tpu.dot_dimension_numbers<[1], [0], [0], [1], [0, 0, 1, 1], [], []>} : vector<1088x8xbf16>, vector<8x64xbf16>, vector<1088x64xf32> -> vector<1088x64xf32>
    %22 = arith.addf %16, %21 : vector<1088x64xf32>
    %c0_22 = arith.constant 0 : index
    %c35 = arith.constant 35 : index
    %c0_23 = arith.constant 0 : index
    %23 = vector.load %arg1[%c0_22, %c35, %c0_23] : memref<1x1190x8xbf16, #tpu.memory_space<vmem>>, vector<1x1088x8xbf16>
    %24 = vector.shape_cast %23 : vector<1x1088x8xbf16> to vector<1088x8xbf16>
    %c4 = arith.constant 4 : index
    %c0_24 = arith.constant 0 : index
    %c0_25 = arith.constant 0 : index
    %25 = vector.load %arg2[%c4, %c0_24, %c0_25] : memref<9x8x64xbf16, #tpu.memory_space<vmem>>, vector<1x8x64xbf16>
    %26 = vector.shape_cast %25 : vector<1x8x64xbf16> to vector<8x64xbf16>
    %cst_26 = arith.constant dense<0.000000e+00> : vector<1088x64xf32>
    %27 = tpu.matmul %24, %26, %cst_26 {dimension_numbers = #tpu.dot_dimension_numbers<[1], [0], [0], [1], [0, 0, 1, 1], [], []>} : vector<1088x8xbf16>, vector<8x64xbf16>, vector<1088x64xf32> -> vector<1088x64xf32>
    %28 = arith.addf %22, %27 : vector<1088x64xf32>
    %c0_27 = arith.constant 0 : index
    %c36 = arith.constant 36 : index
    %c0_28 = arith.constant 0 : index
    %29 = vector.load %arg1[%c0_27, %c36, %c0_28] : memref<1x1190x8xbf16, #tpu.memory_space<vmem>>, vector<1x1088x8xbf16>
    %30 = vector.shape_cast %29 : vector<1x1088x8xbf16> to vector<1088x8xbf16>
    %c5 = arith.constant 5 : index
    %c0_29 = arith.constant 0 : index
    %c0_30 = arith.constant 0 : index
    %31 = vector.load %arg2[%c5, %c0_29, %c0_30] : memref<9x8x64xbf16, #tpu.memory_space<vmem>>, vector<1x8x64xbf16>
    %32 = vector.shape_cast %31 : vector<1x8x64xbf16> to vector<8x64xbf16>
    %cst_31 = arith.constant dense<0.000000e+00> : vector<1088x64xf32>
    %33 = tpu.matmul %30, %32, %cst_31 {dimension_numbers = #tpu.dot_dimension_numbers<[1], [0], [0], [1], [0, 0, 1, 1], [], []>} : vector<1088x8xbf16>, vector<8x64xbf16>, vector<1088x64xf32> -> vector<1088x64xf32>
    %34 = arith.addf %28, %33 : vector<1088x64xf32>
    %c0_32 = arith.constant 0 : index
    %c68 = arith.constant 68 : index
    %c0_33 = arith.constant 0 : index
    %35 = vector.load %arg1[%c0_32, %c68, %c0_33] : memref<1x1190x8xbf16, #tpu.memory_space<vmem>>, vector<1x1088x8xbf16>
    %36 = vector.shape_cast %35 : vector<1x1088x8xbf16> to vector<1088x8xbf16>
    %c6 = arith.constant 6 : index
    %c0_34 = arith.constant 0 : index
    %c0_35 = arith.constant 0 : index
    %37 = vector.load %arg2[%c6, %c0_34, %c0_35] : memref<9x8x64xbf16, #tpu.memory_space<vmem>>, vector<1x8x64xbf16>
    %38 = vector.shape_cast %37 : vector<1x8x64xbf16> to vector<8x64xbf16>
    %cst_36 = arith.constant dense<0.000000e+00> : vector<1088x64xf32>
    %39 = tpu.matmul %36, %38, %cst_36 {dimension_numbers = #tpu.dot_dimension_numbers<[1], [0], [0], [1], [0, 0, 1, 1], [], []>} : vector<1088x8xbf16>, vector<8x64xbf16>, vector<1088x64xf32> -> vector<1088x64xf32>
    %40 = arith.addf %34, %39 : vector<1088x64xf32>
    %c0_37 = arith.constant 0 : index
    %c69 = arith.constant 69 : index
    %c0_38 = arith.constant 0 : index
    %41 = vector.load %arg1[%c0_37, %c69, %c0_38] : memref<1x1190x8xbf16, #tpu.memory_space<vmem>>, vector<1x1088x8xbf16>
    %42 = vector.shape_cast %41 : vector<1x1088x8xbf16> to vector<1088x8xbf16>
    %c7 = arith.constant 7 : index
    %c0_39 = arith.constant 0 : index
    %c0_40 = arith.constant 0 : index
    %43 = vector.load %arg2[%c7, %c0_39, %c0_40] : memref<9x8x64xbf16, #tpu.memory_space<vmem>>, vector<1x8x64xbf16>
    %44 = vector.shape_cast %43 : vector<1x8x64xbf16> to vector<8x64xbf16>
    %cst_41 = arith.constant dense<0.000000e+00> : vector<1088x64xf32>
    %45 = tpu.matmul %42, %44, %cst_41 {dimension_numbers = #tpu.dot_dimension_numbers<[1], [0], [0], [1], [0, 0, 1, 1], [], []>} : vector<1088x8xbf16>, vector<8x64xbf16>, vector<1088x64xf32> -> vector<1088x64xf32>
    %46 = arith.addf %40, %45 : vector<1088x64xf32>
    %c0_42 = arith.constant 0 : index
    %c70 = arith.constant 70 : index
    %c0_43 = arith.constant 0 : index
    %47 = vector.load %arg1[%c0_42, %c70, %c0_43] : memref<1x1190x8xbf16, #tpu.memory_space<vmem>>, vector<1x1088x8xbf16>
    %48 = vector.shape_cast %47 : vector<1x1088x8xbf16> to vector<1088x8xbf16>
    %c8 = arith.constant 8 : index
    %c0_44 = arith.constant 0 : index
    %c0_45 = arith.constant 0 : index
    %49 = vector.load %arg2[%c8, %c0_44, %c0_45] : memref<9x8x64xbf16, #tpu.memory_space<vmem>>, vector<1x8x64xbf16>
    %50 = vector.shape_cast %49 : vector<1x8x64xbf16> to vector<8x64xbf16>
    %cst_46 = arith.constant dense<0.000000e+00> : vector<1088x64xf32>
    %51 = tpu.matmul %48, %50, %cst_46 {dimension_numbers = #tpu.dot_dimension_numbers<[1], [0], [0], [1], [0, 0, 1, 1], [], []>} : vector<1088x8xbf16>, vector<8x64xbf16>, vector<1088x64xf32> -> vector<1088x64xf32>
    %52 = arith.addf %46, %51 : vector<1088x64xf32>
    %c0_47 = arith.constant 0 : index
    %c0_48 = arith.constant 0 : index
    %53 = vector.load %arg3[%c0_47, %c0_48] : memref<1x64xf32, #tpu.memory_space<vmem>>, vector<1x64xf32>
    %54 = vector.broadcast %53 : vector<1x64xf32> to vector<1088x64xf32>
    %55 = arith.addf %52, %54 : vector<1088x64xf32>
    %cst_49 = arith.constant 0.000000e+00 : f32
    %56 = vector.broadcast %cst_49 : f32 to vector<1088x64xf32>
    %57 = arith.maximumf %55, %56 : vector<1088x64xf32>
    %58 = arith.truncf %57 : vector<1088x64xf32> to vector<1088x64xbf16>
    %c0_50 = arith.constant 0 : index
    %c0_51 = arith.constant 0 : index
    %c0_52 = arith.constant 0 : index
    %59 = vector.load %arg4[%c0_50, %c0_51, %c0_52] : memref<1x1088x64xbf16, #tpu.memory_space<vmem>>, vector<1x1088x64xbf16>
    %60 = vector.shape_cast %59 : vector<1x1088x64xbf16> to vector<1088x64xbf16>
    %61 = vector.shape_cast %58 : vector<1088x64xbf16> to vector<1x1088x64xbf16>
    tpu.vector_store %arg4[%c0_50, %c0_51, %c0_52], %61 {strides = array<i32>} : memref<1x1088x64xbf16, #tpu.memory_space<vmem>>, vector<1x1088x64xbf16>,
    return
  }
  func.func @transform_0(%arg0: i32) -> (i32, i32, i32) {
    %c0_i32 = arith.constant 0 : i32
    %c0_i32_0 = arith.constant 0 : i32
    %c0_i32_1 = arith.constant 0 : i32
    return %arg0, %c0_i32, %c0_i32_0 : i32, i32, i32
  }
  func.func @transform_1(%arg0: i32) -> (i32, i32, i32) {
    %c0_i32 = arith.constant 0 : i32
    %c0_i32_0 = arith.constant 0 : i32
    %c0_i32_1 = arith.constant 0 : i32
    %c0_i32_2 = arith.constant 0 : i32
    return %c0_i32, %c0_i32_0, %c0_i32_1 : i32, i32, i32
  }
  func.func @transform_2(%arg0: i32) -> (i32, i32) {
    %c0_i32 = arith.constant 0 : i32
    %c0_i32_0 = arith.constant 0 : i32
    %c0_i32_1 = arith.constant 0 : i32
    return %c0_i32, %c0_i32_0 : i32, i32
  }
  func.func @transform_3(%arg0: i32) -> (i32, i32, i32) {
    %c0_i32 = arith.constant 0 : i32
    %c0_i32_0 = arith.constant 0 : i32
    %c0_i32_1 = arith.constant 0 : i32
    return %arg0, %c0_i32, %c0_i32_0 : i32, i32, i32
  }
}

module attributes {stable_mosaic.version = 11 : i64} {
  func.func @_matmul_bias_kernel(%arg0: i32, %arg1: i32, %arg2: i32, %arg3: memref<512x128xbf16, #tpu.memory_space<vmem>>, %arg4: memref<128x128xbf16, #tpu.memory_space<vmem>>, %arg5: memref<1x128xf32, #tpu.memory_space<vmem>>, %arg6: memref<512x128xf32, #tpu.memory_space<vmem>>) attributes {dimension_semantics = [#tpu.dimension_semantics<parallel>, #tpu.dimension_semantics<parallel>, #tpu.dimension_semantics<arbitrary>], iteration_bounds = array<i64: 4, 1, 1>, scalar_prefetch = 0 : i64, scratch_operands = 0 : i64, tpu.core_type = #tpu.core_type<tc>, window_params = [{transform_indices = @transform_0, window_bounds = array<i64: 512, 128>}, {transform_indices = @transform_1, window_bounds = array<i64: 128, 128>}, {transform_indices = @transform_2, window_bounds = array<i64: 1, 128>}, {transform_indices = @transform_3, window_bounds = array<i64: 512, 128>}]} {
    %c0 = arith.constant 0 : index
    %c0_0 = arith.constant 0 : index
    %0 = vector.load %arg3[%c0, %c0_0] : memref<512x128xbf16, #tpu.memory_space<vmem>>, vector<512x128xbf16>
    %c0_1 = arith.constant 0 : index
    %c0_2 = arith.constant 0 : index
    %1 = vector.load %arg4[%c0_1, %c0_2] : memref<128x128xbf16, #tpu.memory_space<vmem>>, vector<128x128xbf16>
    %cst = arith.constant dense<0.000000e+00> : vector<512x128xf32>
    %2 = tpu.matmul %0, %1, %cst {dimension_numbers = #tpu.dot_dimension_numbers<[1], [0], [0], [1], [0, 0, 1, 1], [], []>} : vector<512x128xbf16>, vector<128x128xbf16>, vector<512x128xf32> -> vector<512x128xf32>
    %c0_3 = arith.constant 0 : index
    %c0_4 = arith.constant 0 : index
    %3 = vector.load %arg5[%c0_3, %c0_4] : memref<1x128xf32, #tpu.memory_space<vmem>>, vector<1x128xf32>
    %4 = vector.broadcast %3 : vector<1x128xf32> to vector<512x128xf32>
    %5 = arith.addf %2, %4 : vector<512x128xf32>
    %cst_5 = arith.constant 0.000000e+00 : f32
    %6 = vector.broadcast %cst_5 : f32 to vector<512x128xf32>
    %7 = arith.maximumf %5, %6 : vector<512x128xf32>
    %c0_6 = arith.constant 0 : index
    %c0_7 = arith.constant 0 : index
    %8 = vector.load %arg6[%c0_6, %c0_7] : memref<512x128xf32, #tpu.memory_space<vmem>>, vector<512x128xf32>
    tpu.vector_store %arg6[%c0_6, %c0_7], %7 {strides = array<i32>} : memref<512x128xf32, #tpu.memory_space<vmem>>, vector<512x128xf32>,
    return
  }
  func.func @transform_0(%arg0: i32, %arg1: i32, %arg2: i32) -> (i32, i32) {
    %c0_i32 = arith.constant 0 : i32
    return %arg0, %arg2 : i32, i32
  }
  func.func @transform_1(%arg0: i32, %arg1: i32, %arg2: i32) -> (i32, i32) {
    %c0_i32 = arith.constant 0 : i32
    return %arg2, %arg1 : i32, i32
  }
  func.func @transform_2(%arg0: i32, %arg1: i32, %arg2: i32) -> (i32, i32) {
    %c0_i32 = arith.constant 0 : i32
    %c0_i32_0 = arith.constant 0 : i32
    return %c0_i32, %arg1 : i32, i32
  }
  func.func @transform_3(%arg0: i32, %arg1: i32, %arg2: i32) -> (i32, i32) {
    %c0_i32 = arith.constant 0 : i32
    return %arg0, %arg1 : i32, i32
  }
}

</mosaic_0001>

<bundles_post_ra>
// kernel: tpu_custom_call.1
= control target key start
LH: loop header
LB: loop body
LE: loop exit
PB: predicated region body
PF: predicated region fallthrough
CT: control target
= control target key end

     0   :  { %s17706_s12 = smov 0   ;;  %s20651_s0 = inlined_call_operand.vmem [shape: bf16[2,1190,8], index: 0, kind: input, shape index: {}]   ;;  %s20652_s1 = inlined_call_operand.vmem [shape: bf16[9,8,64], index: 1, kind: input, shape index: {}]   ;;  %s20653_s2 = inlined_call_operand.vmem [shape: f32[1,64], index: 2, kind: input, shape index: {}]   ;;  %s20654_s3 = inlined_call_operand.vmem [shape: bf16[2,1088,64], index: 3, kind: output, shape index: {}]  }
   0x1 LB: > { %s13085_s13 = sadd.s32 4294967295, %s17684_s12   ;;  %p13089_p0 = scmp.ge.s32.totalorder %s17684_s12, 1  ;;  %s17684_s12 = sphi %s17706_s12, %s13_s12  }
   0x2   : > { %p137_p1 = scmp.lt.s32.totalorder %s17684_s12, 3 }
   0x4   : > { %p138_p2 = pnand %p13089_p0, %p137_p1 }
   0x6   : > { %141 = sbr.rel (%p138_p2) target bundleno = 1473 (0x5c1), region = 32 }
   0xd   : > { %v13092_v0 = vld [vmem:[%s20652_s1 + $0x4] sm:$0xf]  ;;  %vm1409_vm0 = vcmask 1043456   ;;  %v13506_v1 = vld [vmem:[%s20652_s1 + $0x10] sm:$0xf]  ;;  %p161_p3 = scmp.lt.s32.totalorder %s13085_s13, 1 }
   0xe   : > { %17152 = vmatprep.subr.msk.bf16.mxu1 %vm1409_vm0, %v13092_v0  ;;  %17156 = vmatprep.subr.msk.bf16.mxu0 %vm1409_vm0, %v13506_v1  ;;  %v1411_v2 = vsel %vm1409_vm0, %v13092_v0, 0  ;;  %v17724_v3 = vsel %vm1409_vm0, %v13506_v1, 0  ;;  %v308_v4 = vld [vmem:[%s20652_s1] sm:$0xf]  ;;  %v13576_v5 = vld [vmem:[%s20652_s1 + $0x14] sm:$0xf] }
   0xf   : > { %20709 = vst [vmem:[#allocation2_spill] sm:$0xff] %v17724_v3  ;;  %14821 = vmatpush3.bf16.msra.mxu1 %v1411_v2  ;;  %15373 = vmatpush3.bf16.msra.mxu0 %v17724_v3  ;;  %s20858_s13 = smov (!%p161_p3, %s13085_s13), 1  ;;  %vm655_vm1 = vsmask.f32 7424  ;;  %vm1204_vm2 = vcmask 64512   ;;  %v2127_v6 = vsel %vm1409_vm0, %v308_v4, 0 }
  0x10   : > { %17153 = vmatprep.subr.msk.bf16.mxu1 %vm1409_vm0, %v308_v4  ;;  %s17162_s22 = smul.u32 596, %s20858_s13  ;;  %17158 = vmatprep.subr.msk.bf16.mxu0 %vm1409_vm0, %v13576_v5  ;;  %vm5315_vm3 = vsmask.f32 6400  ;;  %v17751_v12 = vsel %vm1409_vm0, %v13576_v5, 0  ;;  %vm6862_vm4 = vcmask 1045504   ;;  %vm2712_vm5 = vcmask 1046528  }
  0x11   : > { %vm9465_vm6 = vsmask.f32 5376  ;;  %vm11012_vm7 = vcmask 1044480   ;;  %vm12893_vm8 = vcmask 519168   ;;  %s17163_s15 = smul.u32 544, %s20858_s13 }
  0x12   : > { %s17741_s25 = scalar_lea.vmem %s20651_s0, %s17162_s22 }
  0x13   : > { %v172_v7 = vld [vmem:[%s17741_s25] sm:$0xf]  ;;  %v173_v8 = vld [vmem:[%s17741_s25 + $0x4] sm:$0xf]  ;;  %v17173_v10 = vld [vmem:[%s17741_s25 + $0x8] sm:$0xff]   ;;  %s20092_s17 = scalar_lea.vmem %s20654_s3, %s17163_s15 }
  0x14   : > { %v17746_v9 = vcombine.low %v172_v7, %v173_v8  ;;  %v3770_v11 = vld [vmem:[%s17741_s25 + $0x10] sm:$0xe]  ;;  %v3771_v13 = vld [vmem:[%s17741_s25 + $0x14] sm:$0xf]  ;;  %v664_v16 = vshll.u32 %v17173_v10, 16  ;;  %v668_v17 = vshrl.u32 %v17173_v10, 16 }
  0x15   : > { %v17175_v18 = vld [vmem:[%s17741_s25 + $0x18] sm:$0xff]   ;;  %v17176_v19 = vld [vmem:[%s17741_s25 + $0x10] sm:$0xff]   ;;  %v17758_v20 = vcombine.low %v3770_v11, %v3771_v13  ;;  %v17177_v28 = vld [vmem:[%s17741_s25 + $0x20] sm:$0xff]  }
  0x16   : > { %v657_v14 = vshrl.u32 %v17746_v9, 16  ;;  %v659_v15 = vshll.u32 %v17746_v9, 16  ;;  %v666_v22 = vrot.slane %v664_v16, 1  ;;  %v5325_v23 = vshrl.u32 %v17175_v18, 16  ;;  %v17178_v33 = vld [vmem:[%s17741_s25 + $0x18] sm:$0xff]   ;;  %v17179_v34 = vld [vmem:[%s17741_s25 + $0x28] sm:$0xff]  }
  0x17   : > { %20710 = vst [vmem:[#allocation3_spill] sm:$0xff] %v17758_v20  ;;  %v5328_v24 = vshll.u32 %v17175_v18, 16  ;;  %v5317_v25 = vshrl.u32 %v17758_v20, 16  ;;  %v5320_v26 = vshll.u32 %v17758_v20, 16  ;;  %v672_v27 = vshll.u32 %v17176_v19, 16  ;;  %v17180_v47 = vld [vmem:[%s17741_s25 + $0x20] sm:$0xff]  }
  0x18   : > { %v661_v21 = vrot.slane %v659_v15, 1  ;;  %v670_v30 = vor.u32 %v668_v17, %v666_v22  ;;  %v5327_v31 = vrot.slane %v5325_v23, 1  ;;  %v5334_v38 = vshrl.u32 %v17177_v28, 16  ;;  %v17181_v48 = vld [vmem:[%s17741_s25 + $0x30] sm:$0xff]   ;;  %v17182_v53 = vld [vmem:[%s17741_s25 + $0x28] sm:$0xff]   ;;  %v17183_v58 = vld [vmem:[%s17741_s25 + $0x38] sm:$0xff]  }
  0x19   : > { %v5330_v32 = vrot.slane %v5328_v24, 2  ;;  %v5319_v35 = vrot.slane %v5317_v25, 1  ;;  %v5322_v36 = vrot.slane %v5320_v26, 2  ;;  %v674_v37 = vrot.slane %v672_v27, 1  ;;  %v17184_v63 = vld [vmem:[%s17741_s25 + $0x30] sm:$0xff]   ;;  %v17185_v15 = vld [vmem:[%s17741_s25 + $0x40] sm:$0xff]  }
  0x1a   : > { %v662_v29 = vor.u32 %v661_v21, %v657_v14  ;;  %v5337_v41 = vshll.u32 %v17177_v28, 16  ;;  %v676_v42 = vshrl.u32 %v17176_v19, 16  ;;  %v5336_v45 = vrot.slane %v5334_v38, 1  ;;  %v17186_v25 = vld [vmem:[%s17741_s25 + $0x38] sm:$0xff]   ;;  %v17188_v38 = vld [vmem:[%s17741_s25 + $0x40] sm:$0xff]  }
  0x1b   : > { %v5331_v40 = vor.u32 %v5330_v32, %v5327_v31  ;;  %v5323_v43 = vor.u32 %v5322_v36, %v5319_v35  ;;  %v675_v44 = vsel %vm655_vm1, %v670_v30, %v674_v37  ;;  %v680_v46 = vshll.u32 %v17178_v33, 16 }
  0x1c   : > { %v667_v39 = vsel %vm655_vm1, %v662_v29, %v666_v22  ;;  %v5339_v49 = vrot.slane %v5337_v41, 2  ;;  %v678_v50 = vor.u32 %v676_v42, %v674_v37  ;;  %v5343_v51 = vshrl.u32 %v17179_v34, 16 }
  0x1d   : > { %14822 = vmatprep.mubr.msk.bf16.mxu1 %vm1204_vm2, %v667_v39  ;;  %v5346_v52 = vshll.u32 %v17179_v34, 16  ;;  %v5332_v54 = vsel %vm5315_vm3, %v5323_v43, %v5331_v40  ;;  %v682_v55 = vrot.slane %v680_v46, 1  ;;  %v684_v56 = vshrl.u32 %v17178_v33, 16  ;;  %v17187_v33 = vld [vmem:[%s17741_s25 + $0x48] sm:$0xff]   ;;  %v17189_v46 = vld [vmem:[%s17741_s25 + $0x50] sm:$0xff]  }
  0x1e   : > { %14823 = vmatmul.mubr.msk.bf16.vlgmr.msra.gmra.mrb[0].mxu1 %vm1204_vm2, %v675_v44  ;;  %v688_v57 = vshll.u32 %v17180_v47, 16  ;;  %15374 = vmatprep.mubr.msk.bf16.mxu0 %vm1204_vm2, %v5332_v54  ;;  %v5340_v59 = vor.u32 %v5339_v49, %v5336_v45  ;;  %v5345_v60 = vrot.slane %v5343_v51, 1  ;;  %v5352_v62 = vshrl.u32 %v17181_v48, 16 }
  0x1f   : > { %14959 = vmatpush3.bf16.msra.mxu1 %v2127_v6  ;;  %v5348_v61 = vrot.slane %v5346_v52, 2  ;;  %v683_v0 = vsel %vm655_vm1, %v678_v50, %v682_v55  ;;  %v686_v1 = vor.u32 %v684_v56, %v682_v55  ;;  %v5355_v4 = vshll.u32 %v17181_v48, 16  ;;  %v17191_v55 = vld [vmem:[%s17741_s25 + $0x58] sm:$0xff]  }
  0x20   : > { %v690_v2 = vrot.slane %v688_v57, 1  ;;  %v5341_v5 = vsel %vm5315_vm3, %v5331_v40, %v5340_v59  ;;  %14826 = vmatprep.mubr.msk.bf16.mxu1 %vm1204_vm2, %v683_v0  ;;  %v5354_v7 = vrot.slane %v5352_v62, 1  ;;  %v692_v8 = vshrl.u32 %v17180_v47, 16  ;;  %v17190_v47 = vld [vmem:[%s17741_s25 + $0x48] sm:$0xff]  }
  0x21   : > { %v5349_v6 = vor.u32 %v5348_v61, %v5345_v60  ;;  %15375 = vmatmul.mubr.msk.bf16.vlgmr.msra.gmra.mrb[0].mxu0 %vm1204_vm2, %v5341_v5  ;;  %v5357_v11 = vrot.slane %v5355_v4, 2  ;;  %v696_v13 = vshll.u32 %v17182_v53, 16  ;;  %v5361_v14 = vshrl.u32 %v17183_v58, 16 }
  0x22   : > { %v691_v10 = vsel %vm655_vm1, %v686_v1, %v690_v2  ;;  %15511 = vmatpush3.bf16.msra.mxu0 %v17751_v12  ;;  %v694_v17 = vor.u32 %v692_v8, %v690_v2  ;;  %v5364_v18 = vshll.u32 %v17183_v58, 16  ;;  %v700_v19 = vshrl.u32 %v17182_v53, 16  ;;  %v17193_v2 = vld [vmem:[%s17741_s25 + $0x60] sm:$0xff]  }
  0x23   : > { %v5350_v16 = vsel %vm5315_vm3, %v5340_v59, %v5349_v6  ;;  %v5358_v21 = vor.u32 %v5357_v11, %v5354_v7  ;;  %v698_v22 = vrot.slane %v696_v13, 1  ;;  %v5363_v23 = vrot.slane %v5361_v14, 1  ;;  %v17194_v13 = vld [vmem:[%s17741_s25 + $0x58] sm:$0xff]  }
  0x24   : > { %15378 = vmatprep.mubr.msk.bf16.mxu0 %vm1204_vm2, %v5350_v16  ;;  %v704_v24 = vshll.u32 %v17184_v63, 16  ;;  %v5366_v26 = vrot.slane %v5364_v18, 2  ;;  %v5370_v27 = vshrl.u32 %v17185_v15, 16  ;;  %v5373_v28 = vshll.u32 %v17185_v15, 16  ;;  %v17195_v18 = vld [vmem:[%s17741_s25 + $0x68] sm:$0xff]  }
  0x25   : > { %v708_v12 = vshrl.u32 %v17184_v63, 16  ;;  %v5359_v29 = vsel %vm5315_vm3, %v5349_v6, %v5358_v21  ;;  %v699_v30 = vsel %vm655_vm1, %v694_v17, %v698_v22  ;;  %v702_v31 = vor.u32 %v700_v19, %v698_v22  ;;  %v17192_v63 = vld [vmem:[%s17741_s25 + $0x50] sm:$0xff]  }
  0x26   : > { %14827 = vmatmul.mubr.msk.bf16.gmra.mrb[4].mxu1 %vm1204_vm2, %v691_v10  ;;  %v706_v32 = vrot.slane %v704_v24, 1  ;;  %v5367_v34 = vor.u32 %v5366_v26, %v5363_v23  ;;  %v5372_v35 = vrot.slane %v5370_v27, 1  ;;  %v5375_v36 = vrot.slane %v5373_v28, 2  ;;  %v17196_v28 = vld [vmem:[%s17741_s25 + $0x60] sm:$0xff]  }
  0x27   : > { %14830 = vmatprep.mubr.msk.bf16.mxu1 %vm1204_vm2, %v699_v30  ;;  %v712_v37 = vshll.u32 %v17186_v25, 16  ;;  %v5379_v40 = vshrl.u32 %v17187_v33, 16  ;;  %v5382_v41 = vshll.u32 %v17187_v33, 16  ;;  %v716_v45 = vshrl.u32 %v17186_v25, 16 }
  0x28   : > { %v710_v39 = vor.u32 %v708_v12, %v706_v32  ;;  %v5368_v42 = vsel %vm5315_vm3, %v5358_v21, %v5367_v34  ;;  %v707_v43 = vsel %vm655_vm1, %v702_v31, %v706_v32  ;;  %v720_v50 = vshll.u32 %v17188_v38, 16  ;;  %v17197_v12 = vld [vmem:[%s17741_s25 + $0x70] sm:$0xff]   ;;  %v17198_v31 = vld [vmem:[%s17741_s25 + $0x68] sm:$0xff]  }
  0x29   : > { %v714_v44 = vrot.slane %v712_v37, 1  ;;  %15379 = vmatmul.mubr.msk.bf16.gmra.mrb[4].mxu0 %vm1204_vm2, %v5359_v29  ;;  %v5381_v48 = vrot.slane %v5379_v40, 1  ;;  %v5384_v49 = vrot.slane %v5382_v41, 2  ;;  %v724_v51 = vshrl.u32 %v17188_v38, 16  ;;  %v17199_v40 = vld [vmem:[%s17741_s25 + $0x78] sm:$0xff]  }
  0x2a   : > { %15382 = vmatprep.mubr.msk.bf16.mxu0 %vm1204_vm2, %v5368_v42  ;;  %v5376_v52 = vor.u32 %v5375_v36, %v5372_v35  ;;  %v5388_v54 = vshrl.u32 %v17189_v46, 16  ;;  %v722_v57 = vrot.slane %v720_v50, 1  ;;  %v5391_v58 = vshll.u32 %v17189_v46, 16  ;;  %v17201_v50 = vld [vmem:[%s17741_s25 + $0x80] sm:$0xff]  }
  0x2b   : > { %v715_v53 = vsel %vm655_vm1, %v710_v39, %v714_v44  ;;  %v5385_v56 = vor.u32 %v5384_v49, %v5381_v48  ;;  %v728_v59 = vshll.u32 %v17190_v47, 16  ;;  %v5397_v61 = vshrl.u32 %v17191_v55, 16  ;;  %v17200_v49 = vld [vmem:[%s17741_s25 + $0x70] sm:$0xff]  }
  0x2c   : > { %v5390_v60 = vrot.slane %v5388_v54, 1  ;;  %v5400_v62 = vshll.u32 %v17191_v55, 16  ;;  %v718_v0 = vor.u32 %v716_v45, %v714_v44  ;;  %v5393_v1 = vrot.slane %v5391_v58, 2 }
  0x2d   : > { %v5377_v4 = vsel %vm5315_vm3, %v5367_v34, %v5376_v52  ;;  %v726_v5 = vor.u32 %v724_v51, %v722_v57  ;;  %v730_v6 = vrot.slane %v728_v59, 1  ;;  %v5386_v7 = vsel %vm5315_vm3, %v5376_v52, %v5385_v56 }
  0x2e   : > { %14831 = vmatmul.mubr.msk.bf16.gmra.mrb[8].mxu1 %vm1204_vm2, %v707_v43  ;;  %v5399_v8 = vrot.slane %v5397_v61, 1  ;;  %v5402_v10 = vrot.slane %v5400_v62, 2  ;;  %v736_v11 = vshll.u32 %v17192_v63, 16  ;;  %v723_v14 = vsel %vm655_vm1, %v718_v0, %v722_v57  ;;  %v17202_v62 = vld [vmem:[%s17741_s25 + $0x78] sm:$0xff]  }
  0x2f   : > { %14834 = vmatprep.mubr.msk.bf16.mxu1 %vm1204_vm2, %v715_v53  ;;  %v5394_v15 = vor.u32 %v5393_v1, %v5390_v60  ;;  %v732_v16 = vshrl.u32 %v17190_v47, 16  ;;  %v5406_v17 = vshrl.u32 %v17193_v2, 16  ;;  %v731_v19 = vsel %vm655_vm1, %v726_v5, %v730_v6 }
  0x30   : > { %v5409_v21 = vshll.u32 %v17193_v2, 16  ;;  %v740_v22 = vshrl.u32 %v17192_v63, 16  ;;  %v744_v23 = vshll.u32 %v17194_v13, 16  ;;  %v5403_v24 = vor.u32 %v5402_v10, %v5399_v8 }
  0x31   : > { %15383 = vmatmul.mubr.msk.bf16.gmra.mrb[8].mxu0 %vm1204_vm2, %v5377_v4  ;;  %v5415_v25 = vshrl.u32 %v17195_v18, 16  ;;  %v5418_v26 = vshll.u32 %v17195_v18, 16  ;;  %v738_v27 = vrot.slane %v736_v11, 1  ;;  %v734_v29 = vor.u32 %v732_v16, %v730_v6  ;;  %v17203_v4 = vld [vmem:[%s17741_s25 + $0x88] sm:$0xff]  }
  0x32   : > { %15386 = vmatprep.mubr.msk.bf16.mxu0 %vm1204_vm2, %v5386_v7  ;;  %v5408_v30 = vrot.slane %v5406_v17, 1  ;;  %v5395_v32 = vsel %vm5315_vm3, %v5385_v56, %v5394_v15  ;;  %v5411_v33 = vrot.slane %v5409_v21, 2  ;;  %v746_v35 = vrot.slane %v744_v23, 1  ;;  %v17205_v23 = vld [vmem:[%s17741_s25 + $0x90] sm:$0xff]  }
  0x33   : > { %v742_v34 = vor.u32 %v740_v22, %v738_v27  ;;  %v5404_v36 = vsel %vm5315_vm3, %v5394_v15, %v5403_v24  ;;  %v5417_v37 = vrot.slane %v5415_v25, 1  ;;  %v5420_v38 = vrot.slane %v5418_v26, 2  ;;  %v17204_v22 = vld [vmem:[%s17741_s25 + $0x80] sm:$0xff]  }
  0x34   : > { %v748_v39 = vshrl.u32 %v17194_v13, 16  ;;  %v752_v41 = vshll.u32 %v17196_v28, 16  ;;  %v5424_v42 = vshrl.u32 %v17197_v12, 16  ;;  %v739_v43 = vsel %vm655_vm1, %v734_v29, %v738_v27 }
  0x35   : > { %v5427_v44 = vshll.u32 %v17197_v12, 16  ;;  %v760_v45 = vshll.u32 %v17198_v31, 16  ;;  %v5412_v46 = vor.u32 %v5411_v33, %v5408_v30  ;;  %v747_v47 = vsel %vm655_vm1, %v742_v34, %v746_v35 }
  0x36   : > { %14835 = vmatmul.mubr.msk.bf16.gmra.mrb[12].mxu1 %vm1204_vm2, %v723_v14  ;;  %v756_v48 = vshrl.u32 %v17196_v28, 16  ;;  %v5421_v51 = vor.u32 %v5420_v38, %v5417_v37  ;;  %v5433_v52 = vshrl.u32 %v17199_v40, 16  ;;  %v5436_v53 = vshll.u32 %v17199_v40, 16  ;;  %v17207_v28 = vld [vmem:[%s17741_s25 + $0x98] sm:$0xff]  }
  0x37   : > { %14838 = vmatprep.mubr.msk.bf16.mxu1 %vm1204_vm2, %v731_v19  ;;  %v754_v54 = vrot.slane %v752_v41, 1  ;;  %v5426_v55 = vrot.slane %v5424_v42, 1  ;;  %v750_v56 = vor.u32 %v748_v39, %v746_v35  ;;  %v5429_v57 = vrot.slane %v5427_v44, 2 }
  0x38   : > { %v762_v58 = vrot.slane %v760_v45, 1  ;;  %v5413_v59 = vsel %vm5315_vm3, %v5403_v24, %v5412_v46  ;;  %v768_v61 = vshll.u32 %v17200_v49, 16  ;;  %v5422_v63 = vsel %vm5315_vm3, %v5412_v46, %v5421_v51  ;;  %v17206_v24 = vld [vmem:[%s17741_s25 + $0x88] sm:$0xff]   ;;  %v17209_v45 = vld [vmem:[%s17741_s25 + $0xa0] sm:$0xff]  }
  0x39   : > { %15387 = vmatmul.mubr.msk.bf16.gmra.mrb[12].mxu0 %vm1204_vm2, %v5395_v32  ;;  %v758_v60 = vor.u32 %v756_v48, %v754_v54  ;;  %v5435_v0 = vrot.slane %v5433_v52, 1  ;;  %v5438_v1 = vrot.slane %v5436_v53, 2  ;;  %v5442_v2 = vshrl.u32 %v17201_v50, 16  ;;  %v17210_v53 = vld [vmem:[%s17741_s25 + $0x98] sm:$0xff]  }
  0x3a   : > { %15390 = vmatprep.mubr.msk.bf16.mxu0 %vm1204_vm2, %v5404_v36  ;;  %v764_v5 = vshrl.u32 %v17198_v31, 16  ;;  %v5445_v6 = vshll.u32 %v17201_v50, 16  ;;  %v755_v7 = vsel %vm655_vm1, %v750_v56, %v754_v54  ;;  %v5430_v8 = vor.u32 %v5429_v57, %v5426_v55  ;;  %v17211_v56 = vld [vmem:[%s17741_s25 + $0xa8] sm:$0xff]  }
  0x3b   : > { %v763_v10 = vsel %vm655_vm1, %v758_v60, %v762_v58  ;;  %v770_v11 = vrot.slane %v768_v61, 1  ;;  %v772_v13 = vshrl.u32 %v17200_v49, 16  ;;  %v776_v14 = vshll.u32 %v17202_v62, 16 }
  0x3c   : > { %v5439_v15 = vor.u32 %v5438_v1, %v5435_v0  ;;  %v5444_v16 = vrot.slane %v5442_v2, 1  ;;  %v5451_v17 = vshrl.u32 %v17203_v4, 16  ;;  %v5454_v18 = vshll.u32 %v17203_v4, 16 }
  0x3d   : > { %v766_v19 = vor.u32 %v764_v5, %v762_v58  ;;  %v5447_v21 = vrot.slane %v5445_v6, 2  ;;  %v5431_v25 = vsel %vm5315_vm3, %v5421_v51, %v5430_v8  ;;  %v774_v26 = vor.u32 %v772_v13, %v770_v11  ;;  %v17213_v13 = vld [vmem:[%s17741_s25 + $0xb0] sm:$0xff]  }
  0x3e   : > { %14839 = vmatmul.mubr.msk.bf16.gmra.mrb[16].mxu1 %vm1204_vm2, %v739_v43  ;;  %v778_v27 = vrot.slane %v776_v14, 1  ;;  %v5440_v12 = vsel %vm5315_vm3, %v5430_v8, %v5439_v15  ;;  %v5453_v29 = vrot.slane %v5451_v17, 1  ;;  %v5456_v30 = vrot.slane %v5454_v18, 2  ;;  %v17208_v43 = vld [vmem:[%s17741_s25 + $0x90] sm:$0xff]   ;;  %v17214_v17 = vld [vmem:[%s17741_s25 + $0xa8] sm:$0xff]  }
  0x3f   : > { %14842 = vmatprep.mubr.msk.bf16.mxu1 %vm1204_vm2, %v747_v47  ;;  %v771_v31 = vsel %vm655_vm1, %v766_v19, %v770_v11  ;;  %v5448_v32 = vor.u32 %v5447_v21, %v5444_v16  ;;  %v784_v33 = vshll.u32 %v17204_v22, 16  ;;  %v780_v34 = vshrl.u32 %v17202_v62, 16 }
  0x40   : > { %v5460_v35 = vshrl.u32 %v17205_v23, 16  ;;  %v5463_v36 = vshll.u32 %v17205_v23, 16  ;;  %v788_v37 = vshrl.u32 %v17204_v22, 16  ;;  %v779_v38 = vsel %vm655_vm1, %v774_v26, %v778_v27  ;;  %v17215_v22 = vld [vmem:[%s17741_s25 + $0xb8] sm:$0xff]  }
  0x41   : > { %15391 = vmatmul.mubr.msk.bf16.gmra.mrb[16].mxu0 %vm1204_vm2, %v5413_v59  ;;  %v792_v39 = vshll.u32 %v17206_v24, 16  ;;  %v5469_v40 = vshrl.u32 %v17207_v28, 16  ;;  %v5457_v41 = vor.u32 %v5456_v30, %v5453_v29  ;;  %v5472_v42 = vshll.u32 %v17207_v28, 16 }
  0x42   : > { %15394 = vmatprep.mubr.msk.bf16.mxu0 %vm1204_vm2, %v5422_v63  ;;  %v786_v44 = vrot.slane %v784_v33, 1  ;;  %v5449_v46 = vsel %vm5315_vm3, %v5439_v15, %v5448_v32  ;;  %v782_v47 = vor.u32 %v780_v34, %v778_v27  ;;  %v5462_v48 = vrot.slane %v5460_v35, 1  ;;  %v17216_v35 = vld [vmem:[%s17741_s25 + $0xb0] sm:$0xff]  }
  0x43   : > { %v5465_v49 = vrot.slane %v5463_v36, 2  ;;  %v794_v51 = vrot.slane %v792_v39, 1  ;;  %v5471_v52 = vrot.slane %v5469_v40, 1  ;;  %v5458_v54 = vsel %vm5315_vm3, %v5448_v32, %v5457_v41 }
  0x44   : > { %v790_v50 = vor.u32 %v788_v37, %v786_v44  ;;  %v5474_v55 = vrot.slane %v5472_v42, 2  ;;  %v796_v57 = vshrl.u32 %v17206_v24, 16  ;;  %v800_v58 = vshll.u32 %v17208_v43, 16 }
  0x45   : > { %v5478_v59 = vshrl.u32 %v17209_v45, 16  ;;  %v787_v60 = vsel %vm655_vm1, %v782_v47, %v786_v44  ;;  %v5481_v61 = vshll.u32 %v17209_v45, 16  ;;  %v5466_v62 = vor.u32 %v5465_v49, %v5462_v48  ;;  %v17219_v47 = vld [vmem:[%s17741_s25 + $0xc8] sm:$0xff]  }
  0x46   : > { %14843 = vmatmul.mubr.msk.bf16.gmra.mrb[20].mxu1 %vm1204_vm2, %v755_v7  ;;  %v795_v63 = vsel %vm655_vm1, %v790_v50, %v794_v51  ;;  %v804_v0 = vshrl.u32 %v17208_v43, 16  ;;  %v808_v1 = vshll.u32 %v17210_v53, 16  ;;  %v5475_v2 = vor.u32 %v5474_v55, %v5471_v52  ;;  %v17218_v43 = vld [vmem:[%s17741_s25 + $0xb8] sm:$0xff]  }
  0x47   : > { %14846 = vmatprep.mubr.msk.bf16.mxu1 %vm1204_vm2, %v763_v10  ;;  %v5487_v4 = vshrl.u32 %v17211_v56, 16  ;;  %v5490_v5 = vshll.u32 %v17211_v56, 16  ;;  %v798_v6 = vor.u32 %v796_v57, %v794_v51  ;;  %v802_v7 = vrot.slane %v800_v58, 1  ;;  %v17212_v10 = vld [vmem:[%s17741_s25 + $0xa0] sm:$0xff]  }
  0x48   : > { %v5480_v8 = vrot.slane %v5478_v59, 1  ;;  %v5483_v11 = vrot.slane %v5481_v61, 2  ;;  %v5467_v14 = vsel %vm5315_vm3, %v5457_v41, %v5466_v62  ;;  %v810_v16 = vrot.slane %v808_v1, 1  ;;  %v17220_v61 = vld [vmem:[%s17741_s25 + $0xc0] sm:$0xff]  }
  0x49   : > { %15395 = vmatmul.mubr.msk.bf16.gmra.mrb[20].mxu0 %vm1204_vm2, %v5431_v25  ;;  %v806_v15 = vor.u32 %v804_v0, %v802_v7  ;;  %v5476_v18 = vsel %vm5315_vm3, %v5466_v62, %v5475_v2  ;;  %v5489_v19 = vrot.slane %v5487_v4, 1  ;;  %v5492_v21 = vrot.slane %v5490_v5, 2  ;;  %v17221_v62 = vld [vmem:[%s17741_s25 + $0xd0] sm:$0xff]  }
  0x4a   : > { %15398 = vmatprep.mubr.msk.bf16.mxu0 %vm1204_vm2, %v5440_v12  ;;  %v803_v23 = vsel %vm655_vm1, %v798_v6, %v802_v7  ;;  %v816_v24 = vshll.u32 %v17212_v10, 16  ;;  %v5484_v25 = vor.u32 %v5483_v11, %v5480_v8  ;;  %v812_v26 = vshrl.u32 %v17210_v53, 16  ;;  %v17222_v6 = vld [vmem:[%s17741_s25 + $0xc8] sm:$0xff]   ;;  %v17223_v11 = vld [vmem:[%s17741_s25 + $0xd8] sm:$0xff]  }
  0x4b   : > { %v5496_v27 = vshrl.u32 %v17213_v13, 16  ;;  %v5499_v28 = vshll.u32 %v17213_v13, 16  ;;  %v811_v12 = vsel %vm655_vm1, %v806_v15, %v810_v16  ;;  %v820_v29 = vshrl.u32 %v17212_v10, 16 }
  0x4c   : > { %v824_v30 = vshll.u32 %v17214_v17, 16  ;;  %v5505_v32 = vshrl.u32 %v17215_v22, 16  ;;  %v5508_v33 = vshll.u32 %v17215_v22, 16  ;;  %v818_v34 = vrot.slane %v816_v24, 1 }
  0x4d   : > { %v5485_v36 = vsel %vm5315_vm3, %v5475_v2, %v5484_v25  ;;  %v814_v37 = vor.u32 %v812_v26, %v810_v16  ;;  %v5498_v39 = vrot.slane %v5496_v27, 1  ;;  %v5501_v40 = vrot.slane %v5499_v28, 2  ;;  %v17224_v28 = vld [vmem:[%s17741_s25 + $0xd0] sm:$0xff]  }
  0x4e   : > { %14847 = vmatmul.mubr.msk.bf16.gmra.mrb[24].mxu1 %vm1204_vm2, %v771_v31  ;;  %v5493_v31 = vor.u32 %v5492_v21, %v5489_v19  ;;  %v822_v41 = vor.u32 %v820_v29, %v818_v34  ;;  %v826_v42 = vrot.slane %v824_v30, 1  ;;  %v5507_v45 = vrot.slane %v5505_v32, 1 }
  0x4f   : > { %14850 = vmatprep.mubr.msk.bf16.mxu1 %vm1204_vm2, %v779_v38  ;;  %v17217_v38 = vld [vmem:[%s17741_s25 + $0xc0] sm:$0xff]   ;;  %v832_v48 = vshll.u32 %v17216_v35, 16  ;;  %v819_v49 = vsel %vm655_vm1, %v814_v37, %v818_v34  ;;  %v828_v50 = vshrl.u32 %v17214_v17, 16  ;;  %v5502_v53 = vor.u32 %v5501_v40, %v5498_v39 }
  0x50   : > { %v5494_v44 = vsel %vm5315_vm3, %v5484_v25, %v5493_v31  ;;  %v5514_v51 = vshrl.u32 %v17217_v38, 16  ;;  %v5517_v52 = vshll.u32 %v17217_v38, 16  ;;  %v836_v55 = vshrl.u32 %v17216_v35, 16  ;;  %v17227_v35 = vld [vmem:[%s17741_s25 + $0xe8] sm:$0xff]  }
  0x51   : > { %15399 = vmatmul.mubr.msk.bf16.gmra.mrb[24].mxu0 %vm1204_vm2, %v5449_v46  ;;  %v5510_v46 = vrot.slane %v5508_v33, 2  ;;  %v840_v56 = vshll.u32 %v17218_v43, 16  ;;  %v5523_v58 = vshrl.u32 %v17219_v47, 16  ;;  %v5526_v59 = vshll.u32 %v17219_v47, 16 }
  0x52   : > { %15402 = vmatprep.mubr.msk.bf16.mxu0 %vm1204_vm2, %v5458_v54  ;;  %v827_v54 = vsel %vm655_vm1, %v822_v41, %v826_v42  ;;  %v5516_v0 = vrot.slane %v5514_v51, 1  ;;  %v5519_v1 = vrot.slane %v5517_v52, 2  ;;  %v5503_v2 = vsel %vm5315_vm3, %v5493_v31, %v5502_v53  ;;  %v17226_v31 = vld [vmem:[%s17741_s25 + $0xd8] sm:$0xff]   ;;  %v17228_v52 = vld [vmem:[%s17741_s25 + $0xe0] sm:$0xff]  }
  0x53   : > { %v5511_v57 = vor.u32 %v5510_v46, %v5507_v45  ;;  %v842_v5 = vrot.slane %v840_v56, 1  ;;  %v5525_v8 = vrot.slane %v5523_v58, 1  ;;  %v5528_v10 = vrot.slane %v5526_v59, 2 }
  0x54   : > { %v848_v13 = vshll.u32 %v17220_v61, 16  ;;  %v844_v16 = vshrl.u32 %v17218_v43, 16  ;;  %v5535_v17 = vshll.u32 %v17221_v62, 16  ;;  %v852_v21 = vshrl.u32 %v17220_v61, 16 }
  0x55   : > { %v5512_v7 = vsel %vm5315_vm3, %v5502_v53, %v5511_v57  ;;  %v856_v22 = vshll.u32 %v17222_v6, 16  ;;  %v5541_v24 = vshrl.u32 %v17223_v11, 16  ;;  %v5544_v25 = vshll.u32 %v17223_v11, 16  ;;  %v17229_v53 = vld [vmem:[%s17741_s25 + $0xf0] sm:$0xff]  }
  0x56   : > { %14851 = vmatmul.mubr.msk.bf16.gmra.mrb[28].mxu1 %vm1204_vm2, %v787_v60  ;;  %v834_v60 = vrot.slane %v832_v48, 1  ;;  %v850_v26 = vrot.slane %v848_v13, 1  ;;  %v846_v29 = vor.u32 %v844_v16, %v842_v5  ;;  %v5537_v30 = vrot.slane %v5535_v17, 2 }
  0x57   : > { %14854 = vmatprep.mubr.msk.bf16.mxu1 %vm1204_vm2, %v795_v63  ;;  %v830_v63 = vor.u32 %v828_v50, %v826_v42  ;;  %v858_v34 = vrot.slane %v856_v22, 1  ;;  %v5543_v37 = vrot.slane %v5541_v24, 1  ;;  %v5546_v38 = vrot.slane %v5544_v25, 2  ;;  %v17232_v22 = vld [vmem:[%s17741_s25 + $0xf0] sm:$0xff]  }
  0x58   : > { %v838_v4 = vor.u32 %v836_v55, %v834_v60  ;;  %v854_v33 = vor.u32 %v852_v21, %v850_v26  ;;  %v860_v39 = vshrl.u32 %v17222_v6, 16  ;;  %v864_v40 = vshll.u32 %v17224_v28, 16 }
  0x59   : > { %15403 = vmatmul.mubr.msk.bf16.gmra.mrb[28].mxu0 %vm1204_vm2, %v5467_v14  ;;  %v5532_v14 = vshrl.u32 %v17221_v62, 16  ;;  %v835_v15 = vsel %vm655_vm1, %v830_v63, %v834_v60  ;;  %v851_v42 = vsel %vm655_vm1, %v846_v29, %v850_v26  ;;  %v868_v47 = vshrl.u32 %v17224_v28, 16  ;;  %v17230_v62 = vld [vmem:[%s17741_s25 + $0xe8] sm:$0xff]  }
  0x5a   : > { %15406 = vmatprep.mubr.msk.bf16.mxu0 %vm1204_vm2, %v5476_v18  ;;  %v5520_v18 = vor.u32 %v5519_v1, %v5516_v0  ;;  %v843_v19 = vsel %vm655_vm1, %v838_v4, %v842_v5  ;;  %v859_v46 = vsel %vm655_vm1, %v854_v33, %v858_v34  ;;  %v5559_v48 = vshrl.u32 %v17227_v35, 16  ;;  %v17231_v1 = vld [vmem:[%s17741_s25 + $0xf8] sm:$0xff]   ;;  %v17235_v28 = vld [vmem:[%s17741_s25 + $0x108] sm:$0xff]  }
  0x5b   : > { %v5534_v27 = vrot.slane %v5532_v14, 1  ;;  %v5562_v50 = vshll.u32 %v17227_v35, 16  ;;  %v866_v51 = vrot.slane %v864_v40, 1  ;;  %v862_v55 = vor.u32 %v860_v39, %v858_v34 }
  0x5c   : > { %v5521_v32 = vsel %vm5315_vm3, %v5511_v57, %v5520_v18  ;;  %v5561_v61 = vrot.slane %v5559_v48, 1  ;;  %v880_v4 = vshll.u32 %v17228_v52, 16  ;;  %v5568_v5 = vshrl.u32 %v17229_v53, 16  ;;  %v17237_v48 = vld [vmem:[%s17741_s25 + $0x110] sm:$0xff]  }
  0x5d   : > { %v5538_v45 = vor.u32 %v5537_v30, %v5534_v27  ;;  %v870_v60 = vor.u32 %v868_v47, %v866_v51  ;;  %v5564_v0 = vrot.slane %v5562_v50, 2  ;;  %v5571_v6 = vshll.u32 %v17229_v53, 16  ;;  %v17234_v27 = vld [vmem:[%s17741_s25 + $0xf8] sm:$0xff]   ;;  %v17238_v53 = vld [vmem:[%s17741_s25 + $0x108] sm:$0xff]  }
  0x5e   : > { %14855 = vmatmul.mubr.msk.bf16.gmra.mrb[32].mxu1 %vm1204_vm2, %v803_v23  ;;  %v5529_v23 = vor.u32 %v5528_v10, %v5525_v8  ;;  %v884_v11 = vshrl.u32 %v17228_v52, 16  ;;  %v888_v13 = vshll.u32 %v17230_v62, 16  ;;  %v5580_v16 = vshll.u32 %v17231_v1, 16 }
  0x5f   : > { %14858 = vmatprep.mubr.msk.bf16.mxu1 %vm1204_vm2, %v811_v12  ;;  %v17225_v12 = vld [vmem:[%s17741_s25 + $0xe0] sm:$0xff]   ;;  %v5565_v14 = vor.u32 %v5564_v0, %v5561_v61  ;;  %v5573_v21 = vrot.slane %v5571_v6, 2  ;;  %v896_v33 = vshll.u32 %v17232_v22, 16  ;;  %v892_v34 = vshrl.u32 %v17230_v62, 16 }
  0x60   : > { %v5550_v41 = vshrl.u32 %v17225_v12, 16  ;;  %v5553_v43 = vshll.u32 %v17225_v12, 16  ;;  %v5539_v59 = vsel %vm5315_vm3, %v5529_v23, %v5538_v45  ;;  %v890_v26 = vrot.slane %v888_v13, 1 }
  0x61   : > { %15407 = vmatmul.mubr.msk.bf16.gmra.mrb[32].mxu0 %vm1204_vm2, %v5485_v36  ;;  %v5530_v36 = vsel %vm5315_vm3, %v5520_v18, %v5529_v23  ;;  %v882_v18 = vrot.slane %v880_v4, 1  ;;  %v17233_v23 = vld [vmem:[%s17741_s25 + $0x100] sm:$0xff]   ;;  %v5582_v30 = vrot.slane %v5580_v16, 2  ;;  %v904_v39 = vshll.u32 %v17234_v27, 16 }
  0x62   : > { %15410 = vmatprep.mubr.msk.bf16.mxu0 %vm1204_vm2, %v5494_v44  ;;  %v872_v44 = vshll.u32 %v17226_v31, 16  ;;  %v5552_v56 = vrot.slane %v5550_v41, 1  ;;  %v5555_v57 = vrot.slane %v5553_v43, 2  ;;  %v5586_v35 = vshrl.u32 %v17233_v23, 16 }
  0x63   : > { %v886_v25 = vor.u32 %v884_v11, %v882_v18  ;;  %v5595_v40 = vshrl.u32 %v17235_v28, 16  ;;  %v898_v43 = vrot.slane %v896_v33, 1  ;;  %v5604_v61 = vshrl.u32 %v17237_v48, 16  ;;  %v6856_v33 = vld [vmem:[%s17741_s25 + $0x10] sm:$0xc] }
  0x64   : > { %v874_v58 = vrot.slane %v872_v44, 1  ;;  %v5556_v8 = vor.u32 %v5555_v57, %v5552_v56  ;;  %v17236_v44 = vld [vmem:[%s17741_s25 + $0x100] sm:$0xff]   ;;  %v5588_v47 = vrot.slane %v5586_v35, 1  ;;  %v17239_v57 = vld [vmem:[%s17741_s25 + $0x118] sm:$0xff]   ;;  %v5607_v62 = vshll.u32 %v17237_v48, 16 }
  0x65   : > { %v5597_v52 = vrot.slane %v5595_v40, 1  ;;  %v5616_v6 = vshll.u32 %v17239_v57, 16  ;;  %v5606_v11 = vrot.slane %v5604_v61, 1 }
  0x66   : > { %14859 = vmatmul.mubr.msk.bf16.gmra.mrb[36].mxu1 %vm1204_vm2, %v819_v49  ;;  %v5547_v49 = vor.u32 %v5546_v38, %v5543_v37  ;;  %v875_v10 = vsel %vm655_vm1, %v870_v60, %v874_v58  ;;  %v5566_v12 = vsel %vm5315_vm3, %v5556_v8, %v5565_v14  ;;  %v900_v37 = vshrl.u32 %v17232_v22, 16 }
  0x67   : > { %14862 = vmatprep.mubr.msk.bf16.mxu1 %vm1204_vm2, %v827_v54  ;;  %v17914_v54 = vld [vmem:[%s20652_s1 + $0x18] sm:$0xf]  ;;  %v891_v38 = vsel %vm655_vm1, %v886_v25, %v890_v26  ;;  %v5609_v13 = vrot.slane %v5607_v62, 2  ;;  %v5618_v22 = vrot.slane %v5616_v6, 2 }
  0x68   : > { %17159 = vmatprep.subr.msk.bf16.mxu0 %vm1409_vm0, %v17914_v54  ;;  %v5548_v63 = vsel %vm5315_vm3, %v5538_v45, %v5547_v49  ;;  %v5557_v24 = vsel %vm5315_vm3, %v5547_v49, %v5556_v8  ;;  %v902_v50 = vor.u32 %v900_v37, %v898_v43  ;;  %v17240_v8 = vld [vmem:[%s17741_s25 + $0x110] sm:$0xff]   ;;  %v17247_v62 = vld [vmem:[%s17741_s25 + $0x138] sm:$0xff]  }
  0x69   : > { %15411 = vmatmul.mubr.msk.bf16.gmra.mrb[36].mxu0 %vm1204_vm2, %v5503_v2  ;;  %v876_v2 = vshrl.u32 %v17226_v31, 16 }
  0x6a   : > { %15414 = vmatprep.mubr.msk.bf16.mxu0 %vm1204_vm2, %v5512_v7  ;;  %v867_v7 = vsel %vm655_vm1, %v862_v55, %v866_v51  ;;  %v906_v51 = vrot.slane %v904_v39, 1 }
  0x6b   : > { %v878_v17 = vor.u32 %v876_v2, %v874_v58  ;;  %v908_v58 = vshrl.u32 %v17234_v27, 16  ;;  %v920_v2 = vshll.u32 %v17238_v53, 16 }
  0x6c   : > { %v907_v0 = vsel %vm655_vm1, %v902_v50, %v906_v51 }
  0x6d   : > { %v883_v31 = vsel %vm655_vm1, %v878_v17, %v882_v18  ;;  %v922_v17 = vrot.slane %v920_v2, 1  ;;  %v17242_v18 = vld [vmem:[%s17741_s25 + $0x118] sm:$0xff]  }
  0x6e   : > { %14863 = vmatmul.mubr.msk.bf16.gmra.mrb[40].mxu1 %vm1204_vm2, %v835_v15  ;;  %v5577_v15 = vshrl.u32 %v17231_v1, 16  ;;  %v916_v1 = vshrl.u32 %v17236_v44, 16 }
  0x6f   : > { %14866 = vmatprep.mubr.msk.bf16.mxu1 %vm1204_vm2, %v843_v19  ;;  %v5570_v19 = vrot.slane %v5568_v5, 1  ;;  %v5613_v5 = vshrl.u32 %v17239_v57, 16  ;;  %v17246_v57 = vld [vmem:[%s17741_s25 + $0x130] sm:$0xff]  }
  0x70   : > { %v5579_v29 = vrot.slane %v5577_v15, 1 }
  0x71   : > { %15415 = vmatmul.mubr.msk.bf16.gmra.mrb[40].mxu0 %vm1204_vm2, %v5521_v32  ;;  %v5574_v32 = vor.u32 %v5573_v21, %v5570_v19  ;;  %v5615_v21 = vrot.slane %v5613_v5, 1 }
  0x72   : > { %15418 = vmatprep.mubr.msk.bf16.mxu0 %vm1204_vm2, %v5530_v36  ;;  %v5589_v36 = vshll.u32 %v17233_v23, 16  ;;  %v5583_v41 = vor.u32 %v5582_v30, %v5579_v29  ;;  %v924_v23 = vshrl.u32 %v17238_v53, 16  ;;  %v932_v29 = vshrl.u32 %v17240_v8, 16  ;;  %v17385_v53 = vld [vmem:[%s17741_s25 + $0x18] sm:$0xff]  }
  0x73   : > { %v5575_v45 = vsel %vm5315_vm3, %v5565_v14, %v5574_v32  ;;  %v17241_v14 = vld [vmem:[%s17741_s25 + $0x120] sm:$0xff]   ;;  %v936_v30 = vshll.u32 %v17242_v18, 16 }
  0x74   : > { %v5591_v49 = vrot.slane %v5589_v36, 2  ;;  %v5584_v55 = vsel %vm5315_vm3, %v5574_v32, %v5583_v41  ;;  %v5622_v27 = vshrl.u32 %v17241_v14, 16  ;;  %v926_v36 = vor.u32 %v924_v23, %v922_v17 }
  0x75   : > { %v938_v40 = vrot.slane %v936_v30, 1  ;;  %v17389_v30 = vld [vmem:[%s17741_s25 + $0x38] sm:$0xff]  }
  0x76   : > { %14867 = vmatmul.mubr.msk.bf16.gmra.mrb[44].mxu1 %vm1204_vm2, %v851_v42  ;;  %v5598_v42 = vshll.u32 %v17235_v28, 16  ;;  %v5625_v28 = vshll.u32 %v17241_v14, 16  ;;  %v5624_v37 = vrot.slane %v5622_v27, 1  ;;  %v17248_v14 = vld [vmem:[%s17741_s25 + $0x140] sm:$0xff]   ;;  %v972_v27 = vshrl.u32 %v17247_v62, 16 }
  0x77   : > { %14870 = vmatprep.mubr.msk.bf16.mxu1 %vm1204_vm2, %v859_v46  ;;  %v894_v46 = vor.u32 %v892_v34, %v890_v26  ;;  %v5610_v26 = vor.u32 %v5609_v13, %v5606_v11  ;;  %v17244_v34 = vld [vmem:[%s17741_s25 + $0x120] sm:$0xff]   ;;  %v976_v23 = vshll.u32 %v17248_v14, 16 }
  0x78   : > { %v5600_v56 = vrot.slane %v5598_v42, 2  ;;  %v948_v50 = vshrl.u32 %v17244_v34, 16 }
  0x79   : > { %15419 = vmatmul.mubr.msk.bf16.gmra.mrb[44].mxu0 %vm1204_vm2, %v5539_v59  ;;  %v912_v59 = vshll.u32 %v17236_v44, 16  ;;  %v899_v60 = vsel %vm655_vm1, %v894_v46, %v898_v43  ;;  %v17384_v43 = vld [vmem:[%s17741_s25 + $0x14] sm:$0xf] }
  0x7a   : > { %15422 = vmatprep.mubr.msk.bf16.mxu0 %vm1204_vm2, %v5548_v63  ;;  %v5592_v63 = vor.u32 %v5591_v49, %v5588_v47  ;;  %v5601_v4 = vor.u32 %v5600_v56, %v5597_v52  ;;  %v13577_v44 = vcombine.low %v6856_v33, %v17384_v43  ;;  %v940_v47 = vshrl.u32 %v17242_v18, 16  ;;  %v17250_v33 = vld [vmem:[%s17741_s25 + $0x150] sm:$0xff]  }
  0x7c   : > { %v5593_v15 = vsel %vm5315_vm3, %v5583_v41, %v5592_v63  ;;  %v5602_v19 = vsel %vm5315_vm3, %v5592_v63, %v5601_v4  ;;  %v5611_v35 = vsel %vm5315_vm3, %v5601_v4, %v5610_v26  ;;  %v17245_v41 = vld [vmem:[%s17741_s25 + $0x128] sm:$0xff]   ;;  %v6863_v52 = vrot.slane %v13577_v44, 2  ;;  %v17386_v4 = vld [vmem:[%s17741_s25 + $0x20] sm:$0xff]  }
  0x7d   : > { %v956_v2 = vshrl.u32 %v17245_v41, 16  ;;  %v6866_v5 = vrot.slane %v17386_v4, 2  ;;  %v17390_v44 = vld [vmem:[%s17741_s25 + $0x40] sm:$0xff]  }
  0x7e   : > { %14871 = vmatmul.mubr.msk.bf16.gmra.mrb[48].mxu1 %vm1204_vm2, %v867_v7  ;;  %v914_v7 = vrot.slane %v912_v59, 1 }
  0x7f   : > { %14874 = vmatprep.mubr.msk.bf16.mxu1 %vm1204_vm2, %v875_v10  ;;  %v910_v10 = vor.u32 %v908_v58, %v906_v51  ;;  %v952_v51 = vshll.u32 %v17245_v41, 16  ;;  %v942_v58 = vor.u32 %v940_v47, %v938_v40  ;;  %v17252_v41 = vld [vmem:[%s17741_s25 + $0x160] sm:$0xff]   ;;  %v996_v47 = vshrl.u32 %v17250_v33, 16 }
  0x80   : > { %v918_v16 = vor.u32 %v916_v1, %v914_v7  ;;  %v1012_v4 = vshrl.u32 %v17252_v41, 16 }
  0x81   : > { %15423 = vmatmul.mubr.msk.bf16.gmra.mrb[48].mxu0 %vm1204_vm2, %v5557_v24  ;;  %v928_v24 = vshll.u32 %v17240_v8, 16  ;;  %v915_v25 = vsel %vm655_vm1, %v910_v10, %v914_v7  ;;  %v954_v61 = vrot.slane %v952_v51, 1  ;;  %v964_v7 = vshrl.u32 %v17246_v57, 16  ;;  %v17387_v10 = vld [vmem:[%s17741_s25 + $0x28] sm:$0xff]  }
  0x82   : > { %15426 = vmatprep.mubr.msk.bf16.mxu0 %vm1204_vm2, %v5566_v12  ;;  %v923_v12 = vsel %vm655_vm1, %v918_v16, %v922_v17  ;;  %v968_v8 = vshll.u32 %v17247_v62, 16  ;;  %v6868_v11 = vrot.slane %v17387_v10, 2  ;;  %v17391_v51 = vld [vmem:[%s17741_s25 + $0x48] sm:$0xff]  }
  0x83   : > { %v930_v32 = vrot.slane %v928_v24, 1 }
  0x84   : > { %v970_v18 = vrot.slane %v968_v8, 1  ;;  %v17394_v8 = vld [vmem:[%s17741_s25 + $0x60] sm:$0xff]  }
  0x85   : > { %v934_v39 = vor.u32 %v932_v29, %v930_v32  ;;  %v931_v46 = vsel %vm655_vm1, %v926_v36, %v930_v32  ;;  %v978_v32 = vrot.slane %v976_v23, 1  ;;  %v6882_v10 = vrot.slane %v17394_v8, 2  ;;  %v17257_v23 = vld [vmem:[%s17741_s25 + $0x188] sm:$0xff]  }
  0x86   : > { %14875 = vmatmul.mubr.msk.bf16.gmra.mrb[52].mxu1 %vm1204_vm2, %v883_v31  ;;  %v5619_v31 = vor.u32 %v5618_v22, %v5615_v21  ;;  %v8744_v21 = vsel %vm1409_vm0, %v17914_v54, 0  ;;  %v6869_v22 = vsel %vm6862_vm4, %v6866_v5, %v6868_v11 }
  0x87   : > { %14878 = vmatprep.mubr.msk.bf16.mxu1 %vm1204_vm2, %v891_v38  ;;  %v5627_v38 = vrot.slane %v5625_v28, 2  ;;  %v939_v49 = vsel %vm655_vm1, %v934_v39, %v938_v40  ;;  %v18004_v28 = vld [vmem:[%s20652_s1 + $0x8] sm:$0xf]  ;;  %v992_v40 = vshll.u32 %v17250_v33, 16 }
  0x88   : > { %v5620_v42 = vsel %vm5315_vm3, %v5610_v26, %v5619_v31  ;;  %17154 = vmatprep.subr.msk.bf16.mxu1 %vm1409_vm0, %v18004_v28 }
  0x89   : > { %15427 = vmatmul.mubr.msk.bf16.gmra.mrb[52].mxu0 %vm1204_vm2, %v5575_v45  ;;  %v944_v45 = vshll.u32 %v17244_v34, 16  ;;  %v17973_v48 = vor.u32 %v5627_v38, %v5624_v37  ;;  %v974_v34 = vor.u32 %v972_v27, %v970_v18  ;;  %v17251_v38 = vld [vmem:[%s17741_s25 + $0x158] sm:$0xff]  }
  0x8a   : > { %15430 = vmatprep.mubr.msk.bf16.mxu0 %vm1204_vm2, %v5584_v55  ;;  %v6864_v55 = vrot.slane %v17385_v53, 2  ;;  %v17392_v53 = vld [vmem:[%s17741_s25 + $0x50] sm:$0xff]  }
  0x8b   : > { %20711 = vst [vmem:[#allocation4_spill] sm:$0xff] %v17973_v48  ;;  %v946_v56 = vrot.slane %v944_v45, 1  ;;  %v5629_v59 = vsel %vm5315_vm3, %v5619_v31, %v17973_v48  ;;  %v6872_v31 = vrot.slane %v17389_v30, 2  ;;  %v6874_v45 = vrot.slane %v17390_v44, 2  ;;  %v17397_v44 = vld [vmem:[%s17741_s25 + $0x78] sm:$0xff]  }
  0x8c   : > { %v6865_v63 = vsel %vm6862_vm4, %v6863_v52, %v6864_v55  ;;  %v6867_v16 = vsel %vm6862_vm4, %v6864_v55, %v6866_v5  ;;  %v6876_v52 = vrot.slane %v17391_v51, 2  ;;  %v6878_v55 = vrot.slane %v17392_v53, 2  ;;  %v18578_v48 = vld [vmem:[%s17741_s25 + $0x58] sm:$0xff]  }
  0x8d   : > { %v947_v1 = vsel %vm655_vm1, %v942_v58, %v946_v56  ;;  %20716 = vst [vmem:[#allocation9_spill] sm:$0xff] %v18578_v48  ;;  %v8415_v20 = vrot.slane %v18578_v48, 2 }
  0x8e   : > { %14879 = vmatmul.mubr.msk.bf16.gmra.mrb[56].mxu1 %vm1204_vm2, %v899_v60  ;;  %v950_v60 = vor.u32 %v948_v50, %v946_v56  ;;  %v17253_v50 = vld [vmem:[%s17741_s25 + $0x168] sm:$0xff]   ;;  %v994_v56 = vrot.slane %v992_v40, 1 }
  0x8f   : > { %14882 = vmatprep.mubr.msk.bf16.mxu1 %vm1204_vm2, %v907_v0  ;;  %v960_v0 = vshll.u32 %v17246_v57, 16  ;;  %v1008_v57 = vshll.u32 %v17252_v41, 16  ;;  %v1016_v62 = vshll.u32 %v17253_v50, 16 }
  0x90   : > { %v955_v6 = vsel %vm655_vm1, %v950_v60, %v954_v61  ;;  %v998_v60 = vor.u32 %v996_v47, %v994_v56 }
  0x91   : > { %15431 = vmatmul.mubr.msk.bf16.gmra.mrb[56].mxu0 %vm1204_vm2, %v5593_v15  ;;  %v962_v13 = vrot.slane %v960_v0, 1  ;;  %v958_v15 = vor.u32 %v956_v2, %v954_v61  ;;  %v17254_v0 = vld [vmem:[%s17741_s25 + $0x170] sm:$0xff]   ;;  %v1004_v2 = vshrl.u32 %v17251_v38, 16 }
  0x92   : > { %15434 = vmatprep.mubr.msk.bf16.mxu0 %vm1204_vm2, %v5602_v19  ;;  %v17249_v19 = vld [vmem:[%s17741_s25 + $0x148] sm:$0xff]  }
  0x93   : > { %v966_v17 = vor.u32 %v964_v7, %v962_v13  ;;  %v963_v24 = vsel %vm655_vm1, %v958_v15, %v962_v13  ;;  %v984_v29 = vshll.u32 %v17249_v19, 16  ;;  %v988_v43 = vshrl.u32 %v17249_v19, 16 }
  0x94   : > { %v1010_v13 = vrot.slane %v1008_v57, 1  ;;  %v1024_v19 = vshll.u32 %v17254_v0, 16 }
  0x95   : > { %v971_v54 = vsel %vm655_vm1, %v966_v17, %v970_v18  ;;  %v986_v37 = vrot.slane %v984_v29, 1  ;;  %v1020_v18 = vshrl.u32 %v17253_v50, 16  ;;  %v17396_v29 = vld [vmem:[%s17741_s25 + $0x70] sm:$0xff]  }
  0x96   : > { %14883 = vmatmul.mubr.msk.bf16.gmra.mrb[60].mxu1 %vm1204_vm2, %v915_v25  ;;  %v17388_v25 = vld [vmem:[%s17741_s25 + $0x30] sm:$0xff]   ;;  %v1014_v17 = vor.u32 %v1012_v4, %v1010_v13  ;;  %v6886_v30 = vrot.slane %v17396_v29, 2 }
  0x97   : > { %14886 = vmatprep.mubr.msk.bf16.mxu1 %vm1204_vm2, %v923_v12  ;;  %v6870_v26 = vrot.slane %v17388_v25, 2  ;;  %v980_v12 = vshrl.u32 %v17248_v14, 16  ;;  %v990_v58 = vor.u32 %v988_v43, %v986_v37  ;;  %v1018_v14 = vrot.slane %v1016_v62, 1  ;;  %v17400_v4 = vld [vmem:[%s17741_s25 + $0x90] sm:$0xff]  }
  0x98   : > { %v1028_v25 = vshrl.u32 %v17254_v0, 16 }
  0x99   : > { %15435 = vmatmul.mubr.msk.bf16.gmra.mrb[60].mxu0 %vm1204_vm2, %v5611_v35  ;;  %v6871_v35 = vsel %vm6862_vm4, %v6868_v11, %v6870_v26  ;;  %v982_v36 = vor.u32 %v980_v12, %v978_v32  ;;  %v6873_v39 = vsel %vm6862_vm4, %v6870_v26, %v6872_v31  ;;  %v17255_v11 = vld [vmem:[%s17741_s25 + $0x178] sm:$0xff]   ;;  %v1019_v27 = vsel %vm655_vm1, %v1014_v17, %v1018_v14 }
  0x9a   : > { %15438 = vmatprep.mubr.msk.bf16.mxu0 %vm1204_vm2, %v5620_v42  ;;  %v979_v42 = vsel %vm655_vm1, %v974_v34, %v978_v32  ;;  %v1032_v26 = vshll.u32 %v17255_v11, 16  ;;  %v1022_v33 = vor.u32 %v1020_v18, %v1018_v14  ;;  %v1036_v41 = vshrl.u32 %v17255_v11, 16 }
  0x9e   : > { %14887 = vmatmul.mubr.msk.bf16.gmra.mrb[64].mxu1 %vm1204_vm2, %v931_v46  ;;  %v987_v46 = vsel %vm655_vm1, %v982_v36, %v986_v37  ;;  %v1034_v36 = vrot.slane %v1032_v26, 1  ;;  %v1048_v37 = vshll.u32 %v17257_v23, 16  ;;  %v17263_v26 = vld [vmem:[%s17741_s25 + $0x1b8] sm:$0xff]  }
  0x9f   : > { %14890 = vmatprep.mubr.msk.bf16.mxu1 %vm1204_vm2, %v939_v49  ;;  %v1000_v49 = vshll.u32 %v17251_v38, 16 }
  0xa0   : > { %v1050_v51 = vrot.slane %v1048_v37, 1 }
  0xa1   : > { %15439 = vmatmul.mubr.msk.bf16.gmra.mrb[64].mxu0 %vm1204_vm2, %v5629_v59  ;;  %v6875_v59 = vsel %vm6862_vm4, %v6872_v31, %v6874_v45  ;;  %v1002_v61 = vrot.slane %v1000_v49, 1  ;;  %v1026_v31 = vrot.slane %v1024_v19, 1  ;;  %v17259_v49 = vld [vmem:[%s17741_s25 + $0x198] sm:$0xff]  }
  0xa2   : > { %15512 = vmatprep.mubr.msk.bf16.mxu0 %vm1204_vm2, %v6865_v63  ;;  %v6877_v63 = vsel %vm6862_vm4, %v6874_v45, %v6876_v52  ;;  %v6888_v45 = vrot.slane %v17397_v44, 2  ;;  %v1068_v18 = vshrl.u32 %v17259_v49, 16 }
  0xa3   : > { %v1003_v5 = vsel %vm655_vm1, %v998_v60, %v1002_v61  ;;  %v1006_v15 = vor.u32 %v1004_v2, %v1002_v61  ;;  %v1027_v40 = vsel %vm655_vm1, %v1022_v33, %v1026_v31  ;;  %v17261_v60 = vld [vmem:[%s17741_s25 + $0x1a8] sm:$0xff]   ;;  %v17264_v33 = vld [vmem:[%s17741_s25 + $0x1c0] sm:$0xff]  }
  0xa4   : > { %v1080_v14 = vshll.u32 %v17261_v60, 16 }
  0xa6   : > { %14891 = vmatmul.mubr.msk.bf16.gmra.mrb[68].mxu1 %vm1204_vm2, %v947_v1  ;;  %v995_v1 = vsel %vm655_vm1, %v990_v58, %v994_v56  ;;  %v1052_v56 = vshrl.u32 %v17257_v23, 16  ;;  %v17260_v58 = vld [vmem:[%s17741_s25 + $0x1a0] sm:$0xff]  }
  0xa7   : > { %14894 = vmatprep.mubr.msk.bf16.mxu1 %vm1204_vm2, %v955_v6  ;;  %v17393_v6 = vld [vmem:[%s17741_s25 + $0x58] sm:$0xff]   ;;  %v1076_v19 = vshrl.u32 %v17260_v58, 16 }
  0xa8   : > { %v6880_v7 = vrot.slane %v17393_v6, 2  ;;  %v1054_v8 = vor.u32 %v1052_v56, %v1050_v51  ;;  %v1100_v56 = vshrl.u32 %v17263_v26, 16 }
  0xa9   : > { %15513 = vmatmul.mubr.msk.bf16.vlgmr.msra.gmra.mrb[0].mxu0 %vm1204_vm2, %v6867_v16  ;;  %v6879_v16 = vsel %vm6862_vm4, %v6876_v52, %v6878_v55  ;;  %v1038_v52 = vor.u32 %v1036_v41, %v1034_v36 }
  0xaa   : > { %15649 = vmatpush3.bf16.msra.mxu0 %v8744_v21  ;;  %15516 = vmatprep.mubr.msk.bf16.mxu0 %vm1204_vm2, %v6869_v22  ;;  %v17256_v21 = vld [vmem:[%s17741_s25 + $0x180] sm:$0xff]   ;;  %v6881_v22 = vsel %vm6862_vm4, %v6878_v55, %v6880_v7  ;;  %v6883_v34 = vsel %vm6862_vm4, %v6880_v7, %v6882_v10  ;;  %v1072_v7 = vshll.u32 %v17260_v58, 16 }
  0xab   : > { %v1040_v32 = vshll.u32 %v17256_v21, 16 }
  0xad   : > { %v1042_v50 = vrot.slane %v1040_v32, 1 }
  0xae   : > { %14895 = vmatmul.mubr.msk.bf16.gmra.mrb[72].mxu1 %vm1204_vm2, %v963_v24  ;;  %v1011_v24 = vsel %vm655_vm1, %v1006_v15, %v1010_v13 }
  0xaf   : > { %14898 = vmatprep.mubr.msk.bf16.mxu1 %vm1204_vm2, %v971_v54  ;;  %v17395_v54 = vld [vmem:[%s17741_s25 + $0x68] sm:$0xff]   ;;  %v1043_v61 = vsel %vm655_vm1, %v1038_v52, %v1042_v50 }
  0xb0   : > { %v6884_v12 = vrot.slane %v17395_v54, 2  ;;  %v1082_v54 = vrot.slane %v1080_v14, 1 }
  0xb1   : > { %15517 = vmatmul.mubr.msk.bf16.gmra.mrb[4].mxu0 %vm1204_vm2, %v6871_v35  ;;  %v1030_v35 = vor.u32 %v1028_v25, %v1026_v31  ;;  %v1084_v31 = vshrl.u32 %v17261_v60, 16 }
  0xb2   : > { %15520 = vmatprep.mubr.msk.bf16.mxu0 %vm1204_vm2, %v6873_v39  ;;  %v6885_v38 = vsel %vm6862_vm4, %v6882_v10, %v6884_v12  ;;  %v17258_v39 = vld [vmem:[%s17741_s25 + $0x190] sm:$0xff]   ;;  %v6887_v53 = vsel %vm6862_vm4, %v6884_v12, %v6886_v30 }
  0xb3   : > { %v1035_v43 = vsel %vm655_vm1, %v1030_v35, %v1034_v36  ;;  %v1056_v57 = vshll.u32 %v17258_v39, 16  ;;  %v1060_v62 = vshrl.u32 %v17258_v39, 16  ;;  %v17265_v35 = vld [vmem:[%s17741_s25 + $0x1c8] sm:$0xff]  }
  0xb5   : > { %v1058_v6 = vrot.slane %v1056_v57, 1  ;;  %v1108_v57 = vshrl.u32 %v17264_v33, 16 }
  0xb6   : > { %14899 = vmatmul.mubr.msk.bf16.gmra.mrb[76].mxu1 %vm1204_vm2, %v979_v42  ;;  %v1044_v42 = vshrl.u32 %v17256_v21, 16 }
  0xb7   : > { %14902 = vmatprep.mubr.msk.bf16.mxu1 %vm1204_vm2, %v987_v46  ;;  %v17398_v46 = vld [vmem:[%s17741_s25 + $0x80] sm:$0xff]   ;;  %v1062_v11 = vor.u32 %v1060_v62, %v1058_v6  ;;  %v1059_v17 = vsel %vm655_vm1, %v1054_v8, %v1058_v6  ;;  %v1116_v6 = vshrl.u32 %v17265_v35, 16 }
  0xb8   : > { %v6890_v47 = vrot.slane %v17398_v46, 2  ;;  %v1046_v55 = vor.u32 %v1044_v42, %v1042_v50  ;;  %v17404_v42 = vld [vmem:[%s17741_s25 + $0xb0] sm:$0xff]   ;;  %v1086_v46 = vor.u32 %v1084_v31, %v1082_v54 }
  0xb9   : > { %15521 = vmatmul.mubr.msk.bf16.gmra.mrb[8].mxu0 %vm1204_vm2, %v6875_v59  ;;  %v6889_v59 = vsel %vm6862_vm4, %v6886_v30, %v6888_v45 }
  0xba   : > { %15524 = vmatprep.mubr.msk.bf16.mxu0 %vm1204_vm2, %v6877_v63  ;;  %v1064_v63 = vshll.u32 %v17259_v49, 16  ;;  %v1051_v0 = vsel %vm655_vm1, %v1046_v55, %v1050_v51  ;;  %v6891_v10 = vsel %vm6862_vm4, %v6888_v45, %v6890_v47  ;;  %v1104_v45 = vshll.u32 %v17264_v33, 16  ;;  %v17409_v33 = vld [vmem:[%s17741_s25 + $0xd8] sm:$0xff]  }
  0xbb   : > { %v1112_v51 = vshll.u32 %v17265_v35, 16 }
  0xbc   : > { %v1066_v13 = vrot.slane %v1064_v63, 1  ;;  %v18112_v63 = vld [vmem:[%s17741_s25 + $0x1d8] sm:$0xff]  }
  0xbd   : > { %v1128_v14 = vshll.u32 %v18112_v63, 16 }
  0xbe   : > { %14903 = vmatmul.mubr.msk.bf16.gmra.mrb[80].mxu1 %vm1204_vm2, %v995_v1  ;;  %v17399_v1 = vld [vmem:[%s17741_s25 + $0x88] sm:$0xff]   ;;  %v1067_v21 = vsel %vm655_vm1, %v1062_v11, %v1066_v13  ;;  %v1070_v12 = vor.u32 %v1068_v18, %v1066_v13  ;;  %v17408_v18 = vld [vmem:[%s17741_s25 + $0xd0] sm:$0xff]  }
  0xbf   : > { %14906 = vmatprep.mubr.msk.bf16.mxu1 %vm1204_vm2, %v1003_v5  ;;  %v6892_v2 = vrot.slane %v17399_v1, 2  ;;  %v6894_v5 = vrot.slane %v17400_v4, 2  ;;  %v1114_v1 = vrot.slane %v1112_v51, 1 }
  0xc1   : > { %15525 = vmatmul.mubr.msk.bf16.gmra.mrb[12].mxu0 %vm1204_vm2, %v6879_v16  ;;  %v6893_v15 = vsel %vm6862_vm4, %v6890_v47, %v6892_v2  ;;  %v17262_v16 = vld [vmem:[%s17741_s25 + $0x1b0] sm:$0xff]   ;;  %v6895_v29 = vsel %vm6862_vm4, %v6892_v2, %v6894_v5 }
  0xc2   : > { %15528 = vmatprep.mubr.msk.bf16.mxu0 %vm1204_vm2, %v6881_v22  ;;  %v17401_v22 = vld [vmem:[%s17741_s25 + $0x98] sm:$0xff]   ;;  %v1088_v32 = vshll.u32 %v17262_v16, 16  ;;  %v1092_v37 = vshrl.u32 %v17262_v16, 16  ;;  %v17407_v16 = vld [vmem:[%s17741_s25 + $0xc8] sm:$0xff]  }
  0xc3   : > { %v6896_v23 = vrot.slane %v17401_v22, 2 }
  0xc4   : > { %v1090_v44 = vrot.slane %v1088_v32, 1 }
  0xc6   : > { %14907 = vmatmul.mubr.msk.bf16.gmra.mrb[84].mxu1 %vm1204_vm2, %v1011_v24  ;;  %v17402_v24 = vld [vmem:[%s17741_s25 + $0xa0] sm:$0xff]   ;;  %v1094_v49 = vor.u32 %v1092_v37, %v1090_v44  ;;  %v1091_v55 = vsel %vm655_vm1, %v1086_v46, %v1090_v44 }
  0xc7   : > { %14910 = vmatprep.mubr.msk.bf16.mxu1 %vm1204_vm2, %v1019_v27  ;;  %v6898_v25 = vrot.slane %v17402_v24, 2  ;;  %v1074_v27 = vrot.slane %v1072_v7, 1  ;;  %v1118_v24 = vor.u32 %v1116_v6, %v1114_v1  ;;  %v17410_v46 = vld [vmem:[%s17741_s25 + $0xe0] sm:$0xff]  }
  0xc9   : > { %15529 = vmatmul.mubr.msk.bf16.gmra.mrb[16].mxu0 %vm1204_vm2, %v6883_v34  ;;  %v1078_v30 = vor.u32 %v1076_v19, %v1074_v27  ;;  %v6897_v34 = vsel %vm6862_vm4, %v6894_v5, %v6896_v23  ;;  %v1075_v36 = vsel %vm655_vm1, %v1070_v12, %v1074_v27  ;;  %v6899_v47 = vsel %vm6862_vm4, %v6896_v23, %v6898_v25 }
  0xca   : > { %15532 = vmatprep.mubr.msk.bf16.mxu0 %vm1204_vm2, %v6885_v38  ;;  %v1096_v38 = vshll.u32 %v17263_v26, 16  ;;  %v6910_v19 = vrot.slane %v17408_v18, 2  ;;  %v1132_v23 = vshrl.u32 %v18112_v63, 16  ;;  %v1130_v27 = vrot.slane %v1128_v14, 1 }
  0xcb   : > { %v1083_v39 = vsel %vm655_vm1, %v1078_v30, %v1082_v54 }
  0xcc   : > { %v1098_v50 = vrot.slane %v1096_v38, 1  ;;  %v1134_v37 = vor.u32 %v1132_v23, %v1130_v27  ;;  %v18193_v23 = vld [vmem:[%s17741_s25 + $0x218] sm:$0xff]  }
  0xce   : > { %14911 = vmatmul.mubr.msk.bf16.gmra.mrb[88].mxu1 %vm1204_vm2, %v1027_v40  ;;  %v17403_v40 = vld [vmem:[%s17741_s25 + $0xa8] sm:$0xff]   ;;  %v1099_v58 = vsel %vm655_vm1, %v1094_v49, %v1098_v50  ;;  %v1102_v2 = vor.u32 %v1100_v56, %v1098_v50 }
  0xcf   : > { %14914 = vmatprep.mubr.msk.bf16.mxu1 %vm1204_vm2, %v1035_v43  ;;  %v6900_v41 = vrot.slane %v17403_v40, 2  ;;  %v6902_v43 = vrot.slane %v17404_v42, 2 }
  0xd1   : > { %15533 = vmatmul.mubr.msk.bf16.gmra.mrb[20].mxu0 %vm1204_vm2, %v6887_v53  ;;  %v6901_v52 = vsel %vm6862_vm4, %v6898_v25, %v6900_v41  ;;  %v18103_v53 = vld [vmem:[%s17741_s25 + $0x1d0] sm:$0xff]   ;;  %v6903_v4 = vsel %vm6862_vm4, %v6900_v41, %v6902_v43  ;;  %v18153_v41 = vld [vmem:[%s17741_s25 + $0x1f8] sm:$0xff]  }
  0xd2   : > { %15536 = vmatprep.mubr.msk.bf16.mxu0 %vm1204_vm2, %v6889_v59  ;;  %v17405_v59 = vld [vmem:[%s17741_s25 + $0xb8] sm:$0xff]   ;;  %v1120_v7 = vshll.u32 %v18103_v53, 16  ;;  %v1124_v13 = vshrl.u32 %v18103_v53, 16  ;;  %v1160_v51 = vshll.u32 %v18153_v41, 16 }
  0xd3   : > { %v6904_v60 = vrot.slane %v17405_v59, 2 }
  0xd4   : > { %v1122_v22 = vrot.slane %v1120_v7, 1 }
  0xd5   : > { %v6905_v8 = vsel %vm6862_vm4, %v6902_v43, %v6904_v60 }
  0xd6   : > { %14915 = vmatmul.mubr.msk.bf16.gmra.mrb[92].mxu1 %vm1204_vm2, %v1043_v61  ;;  %v17406_v61 = vld [vmem:[%s17741_s25 + $0xc0] sm:$0xff]   ;;  %v1126_v26 = vor.u32 %v1124_v13, %v1122_v22  ;;  %v17413_v13 = vld [vmem:[%s17741_s25 + $0xf8] sm:$0xff]  }
  0xd7   : > { %14918 = vmatprep.mubr.msk.bf16.mxu1 %vm1204_vm2, %v1051_v0  ;;  %v6906_v62 = vrot.slane %v17406_v61, 2  ;;  %v1106_v0 = vrot.slane %v1104_v45, 1  ;;  %v1162_v61 = vrot.slane %v1160_v51, 1  ;;  %v6920_v14 = vrot.slane %v17413_v13, 2  ;;  %v18239_v13 = vld [vmem:[%s17741_s25 + $0x8] sm:$0xff]  }
  0xd8   : > { %v1131_v32 = vsel %vm655_vm1, %v1126_v26, %v1130_v27 }
  0xd9   : > { %15537 = vmatmul.mubr.msk.bf16.gmra.mrb[24].mxu0 %vm1204_vm2, %v6891_v10  ;;  %v1110_v5 = vor.u32 %v1108_v57, %v1106_v0  ;;  %v18120_v10 = vld [vmem:[%s17741_s25 + $0x1e0] sm:$0xff]   ;;  %v1107_v11 = vsel %vm655_vm1, %v1102_v2, %v1106_v0  ;;  %v6907_v25 = vsel %vm6862_vm4, %v6904_v60, %v6906_v62 }
  0xda   : > { %15540 = vmatprep.mubr.msk.bf16.mxu0 %vm1204_vm2, %v6893_v15  ;;  %v1136_v54 = vshll.u32 %v18120_v10, 16  ;;  %v1140_v30 = vshrl.u32 %v18120_v10, 16  ;;  %v18168_v57 = vld [vmem:[%s17741_s25 + $0x200] sm:$0xff]  }
  0xdb   : > { %v1115_v15 = vsel %vm655_vm1, %v1110_v5, %v1114_v1  ;;  %v1168_v1 = vshll.u32 %v18168_v57, 16  ;;  %v17412_v5 = vld [vmem:[%s17741_s25 + $0xf0] sm:$0xff]  }
  0xdc   : > { %v1138_v35 = vrot.slane %v1136_v54, 1  ;;  %v6918_v6 = vrot.slane %v17412_v5, 2  ;;  %v17414_v54 = vld [vmem:[%s17741_s25 + $0x100] sm:$0xff]  }
  0xde   : > { %14919 = vmatmul.mubr.msk.bf16.gmra.mrb[96].mxu1 %vm1204_vm2, %v1059_v17  ;;  %v6908_v17 = vrot.slane %v17407_v16, 2  ;;  %v1139_v44 = vsel %vm655_vm1, %v1134_v37, %v1138_v35  ;;  %v18188_v16 = vld [vmem:[%s17741_s25 + $0x210] sm:$0xff]   ;;  %v17276_v37 = vld [vmem:[%s17741_s25 + $0x220] ss:$0 sps:$4 sm:$0x11]  }
  0xdf   : > { %14922 = vmatprep.mubr.msk.bf16.mxu1 %vm1204_vm2, %v1067_v21  ;;  %v18131_v21 = vld [vmem:[%s17741_s25 + $0x1e8] sm:$0xff]  }
  0xe0   : > { %v6909_v12 = vsel %vm6862_vm4, %v6906_v62, %v6908_v17  ;;  %v1144_v31 = vshll.u32 %v18131_v21, 16  ;;  %v6911_v38 = vsel %vm6862_vm4, %v6908_v17, %v6910_v19  ;;  %v1148_v45 = vshrl.u32 %v18131_v21, 16  ;;  %v18173_v62 = vld [vmem:[%s17741_s25 + $0x208] sm:$0xff]  }
  0xe1   : > { %15541 = vmatmul.mubr.msk.bf16.gmra.mrb[28].mxu0 %vm1204_vm2, %v6895_v29  ;;  %v1123_v29 = vsel %vm655_vm1, %v1118_v24, %v1122_v22  ;;  %v6921_v24 = vsel %vm6862_vm4, %v6918_v6, %v6920_v14  ;;  %v1180_v27 = vshrl.u32 %v18173_v62, 16 }
  0xe2   : > { %15544 = vmatprep.mubr.msk.bf16.mxu0 %vm1204_vm2, %v6897_v34  ;;  %v6912_v34 = vrot.slane %v17409_v33, 2  ;;  %v1146_v40 = vrot.slane %v1144_v31, 1  ;;  %v1192_v31 = vshll.u32 %v18193_v23, 16 }
  0xe4   : > { %v6913_v42 = vsel %vm6862_vm4, %v6910_v19, %v6912_v34 }
  0xe6   : > { %14923 = vmatmul.mubr.msk.bf16.gmra.mrb[100].mxu1 %vm1204_vm2, %v1075_v36  ;;  %v18148_v36 = vld [vmem:[%s17741_s25 + $0x1f0] sm:$0xff]  }
  0xe7   : > { %14926 = vmatprep.mubr.msk.bf16.mxu1 %vm1204_vm2, %v1083_v39  ;;  %v1142_v39 = vor.u32 %v1140_v30, %v1138_v35  ;;  %v1152_v43 = vshll.u32 %v18148_v36, 16  ;;  %v1156_v50 = vshrl.u32 %v18148_v36, 16  ;;  %v1188_v30 = vshrl.u32 %v18188_v16, 16 }
  0xe9   : > { %15545 = vmatmul.mubr.msk.bf16.gmra.mrb[32].mxu0 %vm1204_vm2, %v6899_v47  ;;  %v6914_v47 = vrot.slane %v17410_v46, 2  ;;  %v1147_v49 = vsel %vm655_vm1, %v1142_v39, %v1146_v40  ;;  %v1154_v56 = vrot.slane %v1152_v43, 1  ;;  %v17416_v46 = vld [vmem:[%s17741_s25 + $0x110] sm:$0xff]  }
  0xea   : > { %15548 = vmatprep.mubr.msk.bf16.mxu0 %vm1204_vm2, %v6901_v52  ;;  %v17411_v52 = vld [vmem:[%s17741_s25 + $0xe8] sm:$0xff]  }
  0xeb   : > { %v6915_v59 = vsel %vm6862_vm4, %v6912_v34, %v6914_v47  ;;  %v1158_v60 = vor.u32 %v1156_v50, %v1154_v56  ;;  %v17417_v50 = vld [vmem:[%s17741_s25 + $0x118] sm:$0xff]  }
  0xec   : > { %v6928_v51 = vrot.slane %v17417_v50, 2  ;;  %v18310_v50 = vld [vmem:[%s17741_s25 + $0x48] sm:$0xff]  }
  0xed   : > { %v1163_v7 = vsel %vm655_vm1, %v1158_v60, %v1162_v61 }
  0xee   : > { %14927 = vmatmul.mubr.msk.bf16.gmra.mrb[104].mxu1 %vm1204_vm2, %v1091_v55  ;;  %v6916_v55 = vrot.slane %v17411_v52, 2 }
  0xef   : > { %14930 = vmatprep.mubr.msk.bf16.mxu1 %vm1204_vm2, %v1099_v58  ;;  %v1150_v58 = vor.u32 %v1148_v45, %v1146_v40  ;;  %v1194_v40 = vrot.slane %v1192_v31, 1  ;;  %v1200_v45 = vshll.u32 %v17276_v37, 16  ;;  %v18278_v31 = vld [vmem:[%s17741_s25 + $0x28] sm:$0xff]  }
  0xf0   : > { %v6917_v0 = vsel %vm6862_vm4, %v6914_v47, %v6916_v55  ;;  %v6919_v18 = vsel %vm6862_vm4, %v6916_v55, %v6918_v6  ;;  %v6926_v47 = vrot.slane %v17416_v46, 2  ;;  %v17279_v6 = vld [vmem:[%s17741_s25 + $0x138] sm:$0xff]   ;;  %v17285_v37 = vld [vmem:[%s17741_s25 + $0x168] sm:$0xff]  }
  0xf1   : > { %15549 = vmatmul.mubr.msk.bf16.gmra.mrb[36].mxu0 %vm1204_vm2, %v6903_v4  ;;  %v1155_v2 = vsel %vm655_vm1, %v1150_v58, %v1154_v56  ;;  %v1164_v4 = vshrl.u32 %v18153_v41, 16  ;;  %v1202_v55 = vrot.slane %v1200_v45, 1  ;;  %v17287_v46 = vld [vmem:[%s17741_s25 + $0x178] sm:$0xff]  }
  0xf2   : > { %15552 = vmatprep.mubr.msk.bf16.mxu0 %vm1204_vm2, %v6905_v8  ;;  %v1172_v8 = vshrl.u32 %v18168_v57, 16  ;;  %v6929_v58 = vsel %vm6862_vm4, %v6926_v47, %v6928_v51 }
  0xf3   : > { %v1166_v17 = vor.u32 %v1164_v4, %v1162_v61  ;;  %v17418_v61 = vld [vmem:[%s17741_s25 + $0x120] sm:$0xff]   ;;  %v17278_v4 = vld [vmem:[%s17741_s25 + $0x130] sm:$0xff]  }
  0xf6   : > { %14931 = vmatmul.mubr.msk.bf16.gmra.mrb[108].mxu1 %vm1204_vm2, %v1107_v11  ;;  %v1176_v11 = vshll.u32 %v18173_v62, 16 }
  0xf7   : > { %14934 = vmatprep.mubr.msk.bf16.mxu1 %vm1204_vm2, %v1115_v15  ;;  %v1170_v15 = vrot.slane %v1168_v1, 1 }
  0xf8   : > { %v1178_v22 = vrot.slane %v1176_v11, 1  ;;  %v6936_v11 = vrot.slane %v17279_v6, 2 }
  0xf9   : > { %15553 = vmatmul.mubr.msk.bf16.gmra.mrb[40].mxu0 %vm1204_vm2, %v6907_v25  ;;  %v1174_v19 = vor.u32 %v1172_v8, %v1170_v15  ;;  %v1184_v25 = vshll.u32 %v18188_v16, 16  ;;  %v1171_v26 = vsel %vm655_vm1, %v1166_v17, %v1170_v15  ;;  %v6934_v8 = vrot.slane %v17278_v4, 2  ;;  %v17280_v15 = vld [vmem:[%s17741_s25 + $0x140] sm:$0xff]   ;;  %v17281_v17 = vld [vmem:[%s17741_s25 + $0x148] sm:$0xff]  }
  0xfa   : > { %15556 = vmatprep.mubr.msk.bf16.mxu0 %vm1204_vm2, %v6909_v12  ;;  %v6922_v12 = vrot.slane %v17414_v54, 2  ;;  %v1182_v35 = vor.u32 %v1180_v27, %v1178_v22  ;;  %v17282_v27 = vld [vmem:[%s17741_s25 + $0x150] sm:$0xff]  }
  0xfb   : > { %v1186_v34 = vrot.slane %v1184_v25, 1  ;;  %v18267_v25 = vld [vmem:[%s17741_s25 + $0x20] sm:$0xff]  }
  0xfd   : > { %v1190_v39 = vor.u32 %v1188_v30, %v1186_v34  ;;  %v1187_v43 = vsel %vm655_vm1, %v1182_v35, %v1186_v34  ;;  %v17284_v34 = vld [vmem:[%s17741_s25 + $0x160] sm:$0xff]  }
  0xfe   : > { %14935 = vmatmul.mubr.msk.bf16.gmra.mrb[112].mxu1 %vm1204_vm2, %v1123_v29  ;;  %v1179_v29 = vsel %vm655_vm1, %v1174_v19, %v1178_v22  ;;  %v18257_v19 = vld [vmem:[%s20652_s1 + $0x1c] sm:$0xf]  ;;  %v6940_v22 = vrot.slane %v17281_v17, 2  ;;  %v17293_v17 = vld [vmem:[%s17741_s25 + $0x1a8] sm:$0xff]  }
  0xff   : > { %14938 = vmatprep.mubr.msk.bf16.mxu1 %vm1204_vm2, %v1131_v32  ;;  %v17415_v32 = vld [vmem:[%s17741_s25 + $0x108] sm:$0xff]   ;;  %17160 = vmatprep.subr.msk.bf16.mxu0 %vm1409_vm0, %v18257_v19 }
 0x100   : > { %v6924_v33 = vrot.slane %v17415_v32, 2  ;;  %v18283_v32 = vld [vmem:[%s17741_s25 + $0x30] sm:$0xff]  }
 0x101   : > { %15557 = vmatmul.mubr.msk.bf16.gmra.mrb[44].mxu0 %vm1204_vm2, %v6911_v38  ;;  %v6923_v38 = vsel %vm6862_vm4, %v6920_v14, %v6922_v12 }
 0x102   : > { %15560 = vmatprep.mubr.msk.bf16.mxu0 %vm1204_vm2, %v6913_v42  ;;  %v6925_v42 = vsel %vm6862_vm4, %v6922_v12, %v6924_v33  ;;  %v6927_v56 = vsel %vm6862_vm4, %v6924_v33, %v6926_v47  ;;  %v17283_v12 = vld [vmem:[%s17741_s25 + $0x158] sm:$0xff]  }
 0x103   : > { %v6944_v30 = vrot.slane %v17283_v12, 2  ;;  %v17294_v12 = vld [vmem:[%s17741_s25 + $0x1b0] sm:$0xff]  }
 0x106   : > { %14939 = vmatmul.mubr.msk.bf16.gmra.mrb[116].mxu1 %vm1204_vm2, %v1139_v44  ;;  %v1196_v44 = vshrl.u32 %v18193_v23, 16 }
 0x107   : > { %14942 = vmatprep.mubr.msk.bf16.mxu1 %vm1204_vm2, %v1147_v49  ;;  %v1195_v49 = vsel %vm655_vm1, %v1190_v39, %v1194_v40  ;;  %v6948_v39 = vrot.slane %v17285_v37, 2  ;;  %v18379_v37 = vld [vmem:[%s17741_s25 + $0x90] sm:$0xff]  }
 0x108   : > { %v1198_v52 = vor.u32 %v1196_v44, %v1194_v40  ;;  %v18294_v40 = vld [vmem:[%s17741_s25 + $0x38] sm:$0xff]   ;;  %v17286_v44 = vld [vmem:[%s17741_s25 + $0x170] sm:$0xff]  }
 0x109   : > { %15561 = vmatmul.mubr.msk.bf16.gmra.mrb[48].mxu0 %vm1204_vm2, %v6915_v59  ;;  %v17277_v59 = vld [vmem:[%s17741_s25 + $0x128] sm:$0xff]   ;;  %v6950_v47 = vrot.slane %v17286_v44, 2 }
 0x10a   : > { %15564 = vmatprep.mubr.msk.bf16.mxu0 %vm1204_vm2, %v6917_v0  ;;  %v1203_v60 = vsel %vm655_vm1, %v1198_v52, %v1202_v55  ;;  %v6930_v0 = vrot.slane %v17418_v61, 2  ;;  %v6932_v1 = vrot.slane %v17277_v59, 2  ;;  %v17288_v55 = vld [vmem:[%s17741_s25 + $0x180] sm:$0xff]   ;;  %v18326_v61 = vld [vmem:[%s17741_s25 + $0x58] sm:$0xff]   ;;  %v17297_v44 = vld [vmem:[%s17741_s25 + $0x1c8] sm:$0xff]  }
 0x10b   : > { %v6951_v52 = vsel %vm6862_vm4, %v6948_v39, %v6950_v47  ;;  %v6954_v59 = vrot.slane %v17288_v55, 2  ;;  %v17298_v55 = vld [vmem:[%s17741_s25 + $0x1d0] sm:$0xff]  }
 0x10c   : > { %v6933_v5 = vsel %vm6862_vm4, %v6930_v0, %v6932_v1  ;;  %v6935_v14 = vsel %vm6862_vm4, %v6932_v1, %v6934_v8 }
 0x10e   : > { %14943 = vmatmul.mubr.msk.bf16.gmra.mrb[120].mxu1 %vm1204_vm2, %v1155_v2  ;;  %v6931_v2 = vsel %vm6862_vm4, %v6928_v51, %v6930_v0  ;;  %v18315_v51 = vld [vmem:[%s17741_s25 + $0x50] sm:$0xff]   ;;  %v18331_v0 = vld [vmem:[%s17741_s25 + $0x60] sm:$0xff]  }
 0x10f   : > { %14946 = vmatprep.mubr.msk.bf16.mxu1 %vm1204_vm2, %v1163_v7  ;;  %v3055_v7 = vsel %vm1409_vm0, %v18004_v28, 0  ;;  %v6937_v28 = vsel %vm6862_vm4, %v6934_v8, %v6936_v11  ;;  %v18342_v8 = vld [vmem:[%s17741_s25 + $0x68] sm:$0xff]  }
 0x111   : > { %15565 = vmatmul.mubr.msk.bf16.gmra.mrb[52].mxu0 %vm1204_vm2, %v6919_v18  ;;  %v6938_v18 = vrot.slane %v17280_v15, 2  ;;  %v17292_v15 = vld [vmem:[%s17741_s25 + $0x1a0] sm:$0xff]  }
 0x112   : > { %15568 = vmatprep.mubr.msk.bf16.mxu0 %vm1204_vm2, %v6921_v24  ;;  %v18262_v24 = vld [vmem:[%s17741_s25 + $0x18] sm:$0xff]  }
 0x113   : > { %v6941_v54 = vsel %vm6862_vm4, %v6938_v18, %v6940_v22 }
 0x116   : > { %14947 = vmatmul.mubr.msk.bf16.gmra.mrb[124].mxu1 %vm1204_vm2, %v1171_v26  ;;  %v6939_v26 = vsel %vm6862_vm4, %v6936_v11, %v6938_v18  ;;  %v18347_v11 = vld [vmem:[%s17741_s25 + $0x70] sm:$0xff]   ;;  %v6962_v18 = vrot.slane %v17292_v15, 2 }
 0x117   : > { %14950 = vmatprep.mubr.msk.bf16.mxu1 %vm1204_vm2, %v1179_v29  ;;  %v6942_v29 = vrot.slane %v17282_v27, 2  ;;  %v18363_v27 = vld [vmem:[%s17741_s25 + $0x80] sm:$0xff]  }
 0x119   : > { %15569 = vmatmul.mubr.msk.bf16.gmra.mrb[56].mxu0 %vm1204_vm2, %v6923_v38  ;;  %v6943_v33 = vsel %vm6862_vm4, %v6940_v22, %v6942_v29  ;;  %v6945_v35 = vsel %vm6862_vm4, %v6942_v29, %v6944_v30  ;;  %v6946_v38 = vrot.slane %v17284_v34, 2  ;;  %v6964_v22 = vrot.slane %v17293_v17, 2  ;;  %v18427_v17 = vld [vmem:[%s17741_s25 + $0xc0] sm:$0xff]  }
 0x11a   : > { %15572 = vmatprep.mubr.msk.bf16.mxu0 %vm1204_vm2, %v6925_v42  ;;  %v18299_v42 = vld [vmem:[%s17741_s25 + $0x40] sm:$0xff]  }
 0x11b   : > { %v6949_v45 = vsel %vm6862_vm4, %v6946_v38, %v6948_v39  ;;  %v6965_v29 = vsel %vm6862_vm4, %v6962_v18, %v6964_v22  ;;  %v17296_v39 = vld [vmem:[%s17741_s25 + $0x1c0] sm:$0xff]  }
 0x11e   : > { %14951 = vmatmul.mubr.msk.bf16.gmra.mrb[128].mxu1 %vm1204_vm2, %v1187_v43  ;;  %v6947_v43 = vsel %vm6862_vm4, %v6944_v30, %v6946_v38  ;;  %v17295_v30 = vld [vmem:[%s17741_s25 + $0x1b8] sm:$0xff]  }
 0x11f   : > { %14954 = vmatprep.mubr.msk.bf16.mxu1 %vm1204_vm2, %v1195_v49  ;;  %v6952_v49 = vrot.slane %v17287_v46, 2  ;;  %v6968_v34 = vrot.slane %v17295_v30, 2  ;;  %v6972_v46 = vrot.slane %v17297_v44, 2  ;;  %v17305_v44 = vld [vmem:[%s17741_s25 + $0x208] sm:$0xff]  }
 0x121   : > { %15573 = vmatmul.mubr.msk.bf16.gmra.mrb[60].mxu0 %vm1204_vm2, %v6927_v56  ;;  %v6953_v56 = vsel %vm6862_vm4, %v6950_v47, %v6952_v49  ;;  %v6955_v1 = vsel %vm6862_vm4, %v6952_v49, %v6954_v59  ;;  %v18390_v47 = vld [vmem:[%s17741_s25 + $0x98] sm:$0xff]   ;;  %v18395_v49 = vld [vmem:[%s17741_s25 + $0xa0] sm:$0xff]  }
 0x122   : > { %15576 = vmatprep.mubr.msk.bf16.mxu0 %vm1204_vm2, %v6929_v58  ;;  %v17289_v58 = vld [vmem:[%s17741_s25 + $0x188] sm:$0xff]  }
 0x126   : > { %14955 = vmatmul.mubr.msk.bf16.gmra.mrb[132].mxu1 %vm1204_vm2, %v1203_v60  ;;  %v6956_v60 = vrot.slane %v17289_v58, 2  ;;  %v17299_v58 = vld [vmem:[%s17741_s25 + $0x1d8] sm:$0xff]  }
 0x127   : > { %14960 = vmatprep.mubr.msk.bf16.mxu1 %vm1204_vm2, %v17746_v9  ;;  %v18244_v9 = vld [vmem:[%s17741_s25 + $0x10] sm:$0xff]  }
 0x128   : > { %v6957_v4 = vsel %vm6862_vm4, %v6954_v59, %v6956_v60  ;;  %v6974_v59 = vrot.slane %v17298_v55, 2  ;;  %v18459_v55 = vld [vmem:[%s17741_s25 + $0xe0] sm:$0xff]  }
 0x129   : > { %15577 = vmatmul.mubr.msk.bf16.gmra.mrb[64].mxu0 %vm1204_vm2, %v6931_v2  ;;  %v17290_v2 = vld [vmem:[%s17741_s25 + $0x190] sm:$0xff]  }
 0x12a   : > { %15580 = vmatprep.mubr.msk.bf16.mxu0 %vm1204_vm2, %v6933_v5  ;;  %v17291_v5 = vld [vmem:[%s17741_s25 + $0x198] sm:$0xff]   ;;  %v6958_v6 = vrot.slane %v17290_v2, 2  ;;  %v18411_v2 = vld [vmem:[%s17741_s25 + $0xb0] sm:$0xff]  }
 0x12e   : > { %14961 = vmatmul.mubr.msk.bf16.vlgmr.msra.gmra.mrb[0].mxu1 %vm1204_vm2, %v18239_v13 }
 0x12f   : > { %15097 = vmatpush3.bf16.msra.mxu1 %v3055_v7  ;;  %14964 = vmatprep.mubr.msk.bf16.mxu1 %vm1204_vm2, %v18244_v9  ;;  %v6960_v7 = vrot.slane %v17291_v5, 2  ;;  %v17300_v5 = vld [vmem:[%s17741_s25 + $0x1e0] sm:$0xff]  }
 0x131   : > { %15581 = vmatmul.mubr.msk.bf16.gmra.mrb[68].mxu0 %vm1204_vm2, %v6935_v14  ;;  %v6959_v14 = vsel %vm6862_vm4, %v6956_v60, %v6958_v6  ;;  %v6976_v60 = vrot.slane %v17299_v58, 2  ;;  %v17306_v58 = vld [vmem:[%s17741_s25 + $0x210] sm:$0xff]  }
 0x132   : > { %15584 = vmatprep.mubr.msk.bf16.mxu0 %vm1204_vm2, %v6937_v28  ;;  %v6961_v28 = vsel %vm6862_vm4, %v6958_v6, %v6960_v7 }
 0x133   : > { %v6977_v6 = vsel %vm6862_vm4, %v6974_v59, %v6976_v60 }
 0x136   : > { %14965 = vmatmul.mubr.msk.bf16.gmra.mrb[4].mxu1 %vm1204_vm2, %v18262_v24 }
 0x137   : > { %14968 = vmatprep.mubr.msk.bf16.mxu1 %vm1204_vm2, %v18267_v25 }
 0x139   : > { %15585 = vmatmul.mubr.msk.bf16.gmra.mrb[72].mxu0 %vm1204_vm2, %v6939_v26  ;;  %v18358_v26 = vld [vmem:[%s17741_s25 + $0x78] sm:$0xff]  }
 0x13a   : > { %15588 = vmatprep.mubr.msk.bf16.mxu0 %vm1204_vm2, %v6941_v54  ;;  %v6963_v54 = vsel %vm6862_vm4, %v6960_v7, %v6962_v18  ;;  %v17301_v7 = vld [vmem:[%s17741_s25 + $0x1e8] sm:$0xff]  }
 0x13b   : > { %v6980_v15 = vrot.slane %v17301_v7, 2  ;;  %v18475_v7 = vld [vmem:[%s17741_s25 + $0xf0] sm:$0xff]  }
 0x13e   : > { %14969 = vmatmul.mubr.msk.bf16.gmra.mrb[8].mxu1 %vm1204_vm2, %v18278_v31 }
 0x13f   : > { %14972 = vmatprep.mubr.msk.bf16.mxu1 %vm1204_vm2, %v18283_v32 }
 0x141   : > { %15589 = vmatmul.mubr.msk.bf16.gmra.mrb[76].mxu0 %vm1204_vm2, %v6943_v33  ;;  %v6966_v33 = vrot.slane %v17294_v12, 2  ;;  %v17303_v12 = vld [vmem:[%s17741_s25 + $0x1f8] sm:$0xff]  }
 0x142   : > { %15592 = vmatprep.mubr.msk.bf16.mxu0 %vm1204_vm2, %v6945_v35  ;;  %v18374_v35 = vld [vmem:[%s17741_s25 + $0x88] sm:$0xff]   ;;  %v6984_v30 = vrot.slane %v17303_v12, 2 }
 0x143   : > { %v6967_v38 = vsel %vm6862_vm4, %v6964_v22, %v6966_v33  ;;  %v17302_v22 = vld [vmem:[%s17741_s25 + $0x1f0] sm:$0xff]  }
 0x146   : > { %14973 = vmatmul.mubr.msk.bf16.gmra.mrb[12].mxu1 %vm1204_vm2, %v18294_v40 }
 0x147   : > { %14976 = vmatprep.mubr.msk.bf16.mxu1 %vm1204_vm2, %v18299_v42 }
 0x149   : > { %15593 = vmatmul.mubr.msk.bf16.gmra.mrb[80].mxu0 %vm1204_vm2, %v6947_v43  ;;  %v6969_v43 = vsel %vm6862_vm4, %v6966_v33, %v6968_v34  ;;  %v18438_v33 = vld [vmem:[%s17741_s25 + $0xc8] sm:$0xff]  }
 0x14a   : > { %15596 = vmatprep.mubr.msk.bf16.mxu0 %vm1204_vm2, %v6949_v45  ;;  %v6970_v45 = vrot.slane %v17296_v39, 2  ;;  %v17304_v39 = vld [vmem:[%s17741_s25 + $0x200] sm:$0xff]  }
 0x14e   : > { %14977 = vmatmul.mubr.msk.bf16.gmra.mrb[16].mxu1 %vm1204_vm2, %v18310_v50 }
 0x14f   : > { %14980 = vmatprep.mubr.msk.bf16.mxu1 %vm1204_vm2, %v18315_v51 }
 0x151   : > { %15597 = vmatmul.mubr.msk.bf16.gmra.mrb[84].mxu0 %vm1204_vm2, %v6951_v52  ;;  %v6971_v52 = vsel %vm6862_vm4, %v6968_v34, %v6970_v45  ;;  %v18443_v34 = vld [vmem:[%s17741_s25 + $0xd0] sm:$0xff]  }
 0x152   : > { %15600 = vmatprep.mubr.msk.bf16.mxu0 %vm1204_vm2, %v6953_v56  ;;  %v6973_v56 = vsel %vm6862_vm4, %v6970_v45, %v6972_v46  ;;  %v6986_v45 = vrot.slane %v17304_v39, 2  ;;  %v18493_v39 = vld [vmem:[%s17741_s25 + $0x100] sm:$0xff]  }
 0x156   : > { %14981 = vmatmul.mubr.msk.bf16.gmra.mrb[20].mxu1 %vm1204_vm2, %v18326_v61 }
 0x157   : > { %14984 = vmatprep.mubr.msk.bf16.mxu1 %vm1204_vm2, %v18331_v0 }
 0x159   : > { %15601 = vmatmul.mubr.msk.bf16.gmra.mrb[88].mxu0 %vm1204_vm2, %v6955_v1  ;;  %v18406_v1 = vld [vmem:[%s17741_s25 + $0xa8] sm:$0xff]  }
 0x15a   : > { %15604 = vmatprep.mubr.msk.bf16.mxu0 %vm1204_vm2, %v6957_v4  ;;  %v6975_v4 = vsel %vm6862_vm4, %v6972_v46, %v6974_v59  ;;  %v6988_v46 = vrot.slane %v17305_v44, 2  ;;  %v17310_v44 = vld [vmem:[%s17741_s25 + $0x230] ss:$0 sps:$4 sm:$0x33]  }
 0x15c   : > { %v6989_v59 = vsel %vm6862_vm4, %v6986_v45, %v6988_v46 }
 0x15e   : > { %14985 = vmatmul.mubr.msk.bf16.gmra.mrb[24].mxu1 %vm1204_vm2, %v18342_v8 }
 0x15f   : > { %14988 = vmatprep.mubr.msk.bf16.mxu1 %vm1204_vm2, %v18347_v11 }
 0x161   : > { %15605 = vmatmul.mubr.msk.bf16.gmra.mrb[92].mxu0 %vm1204_vm2, %v6959_v14  ;;  %v6978_v14 = vrot.slane %v17300_v5, 2 }
 0x162   : > { %15608 = vmatprep.mubr.msk.bf16.mxu0 %vm1204_vm2, %v6961_v28  ;;  %v18422_v28 = vld [vmem:[%s17741_s25 + $0xb8] sm:$0xff]  }
 0x163   : > { %v6979_v18 = vsel %vm6862_vm4, %v6976_v60, %v6978_v14  ;;  %v17307_v60 = vld [vmem:[%s17741_s25 + $0x218] sm:$0xff]  }
 0x164   : > { %v6992_v5 = vrot.slane %v17307_v60, 2 }
 0x166   : > { %14989 = vmatmul.mubr.msk.bf16.gmra.mrb[28].mxu1 %vm1204_vm2, %v18358_v26 }
 0x167   : > { %14992 = vmatprep.mubr.msk.bf16.mxu1 %vm1204_vm2, %v18363_v27 }
 0x169   : > { %15609 = vmatmul.mubr.msk.bf16.gmra.mrb[96].mxu0 %vm1204_vm2, %v6963_v54  ;;  %v6981_v54 = vsel %vm6862_vm4, %v6978_v14, %v6980_v15 }
 0x16a   : > { %15612 = vmatprep.mubr.msk.bf16.mxu0 %vm1204_vm2, %v6965_v29  ;;  %v6982_v29 = vrot.slane %v17302_v22, 2  ;;  %v17309_v22 = vld [vmem:[%s17741_s25 + $0x228] sm:$0xff]  }
 0x16b   : > { %v6996_v12 = vrot.slane %v17309_v22, 2  ;;  %v18525_v22 = vld [vmem:[%s17741_s25 + $0x38] sm:$0xff]  }
 0x16e   : > { %14993 = vmatmul.mubr.msk.bf16.gmra.mrb[32].mxu1 %vm1204_vm2, %v18374_v35 }
 0x16f   : > { %14996 = vmatprep.mubr.msk.bf16.mxu1 %vm1204_vm2, %v18379_v37 }
 0x171   : > { %15613 = vmatmul.mubr.msk.bf16.gmra.mrb[100].mxu0 %vm1204_vm2, %v6967_v38  ;;  %v6983_v38 = vsel %vm6862_vm4, %v6980_v15, %v6982_v29  ;;  %v17308_v15 = vld [vmem:[%s17741_s25 + $0x220] sm:$0xff]  }
 0x172   : > { %15616 = vmatprep.mubr.msk.bf16.mxu0 %vm1204_vm2, %v6969_v43  ;;  %v6985_v43 = vsel %vm6862_vm4, %v6982_v29, %v6984_v30  ;;  %v18486_v29 = vld [vmem:[%s17741_s25 + $0xf8] sm:$0xff]  }
 0x176   : > { %14997 = vmatmul.mubr.msk.bf16.gmra.mrb[36].mxu1 %vm1204_vm2, %v18390_v47 }
 0x177   : > { %15000 = vmatprep.mubr.msk.bf16.mxu1 %vm1204_vm2, %v18395_v49 }
 0x179   : > { %15617 = vmatmul.mubr.msk.bf16.gmra.mrb[104].mxu0 %vm1204_vm2, %v6971_v52  ;;  %v18454_v52 = vld [vmem:[%s17741_s25 + $0xd8] sm:$0xff]  }
 0x17a   : > { %15620 = vmatprep.mubr.msk.bf16.mxu0 %vm1204_vm2, %v6973_v56  ;;  %v6987_v56 = vsel %vm6862_vm4, %v6984_v30, %v6986_v45  ;;  %v7920_v30 = vld [vmem:[%s17741_s25 + $0x20] sm:$0xc] }
 0x17e   : > { %15001 = vmatmul.mubr.msk.bf16.gmra.mrb[40].mxu1 %vm1204_vm2, %v18406_v1 }
 0x17f   : > { %15004 = vmatprep.mubr.msk.bf16.mxu1 %vm1204_vm2, %v18411_v2 }
 0x181   : > { %15621 = vmatmul.mubr.msk.bf16.gmra.mrb[108].mxu0 %vm1204_vm2, %v6975_v4  ;;  %v6990_v4 = vrot.slane %v17306_v58, 2  ;;  %v6998_v58 = vrot.slane %v17310_v44, 2  ;;  %v18543_v44 = vld [vmem:[%s17741_s25 + $0x40] sm:$0xff]  }
 0x182   : > { %15624 = vmatprep.mubr.msk.bf16.mxu0 %vm1204_vm2, %v6977_v6  ;;  %v18470_v6 = vld [vmem:[%s17741_s25 + $0xe8] sm:$0xff]   ;;  %20712 = vst [vmem:[#allocation5_spill] sm:$0xff] %v18543_v44 }
 0x183   : > { %v6991_v14 = vsel %vm6862_vm4, %v6988_v46, %v6990_v4 }
 0x186   : > { %15005 = vmatmul.mubr.msk.bf16.gmra.mrb[44].mxu1 %vm1204_vm2, %v18422_v28 }
 0x187   : > { %15008 = vmatprep.mubr.msk.bf16.mxu1 %vm1204_vm2, %v18427_v17 }
 0x189   : > { %15625 = vmatmul.mubr.msk.bf16.gmra.mrb[112].mxu0 %vm1204_vm2, %v6979_v18  ;;  %v6993_v18 = vsel %vm6862_vm4, %v6990_v4, %v6992_v5  ;;  %v18510_v4 = vld [vmem:[%s17741_s25 + $0x108] sm:$0xff]  }
 0x18a   : > { %15628 = vmatprep.mubr.msk.bf16.mxu0 %vm1204_vm2, %v6981_v54  ;;  %v6994_v54 = vrot.slane %v17308_v15, 2  ;;  %v18521_v15 = vld [vmem:[%s17741_s25 + $0x30] sm:$0xff]  }
 0x18c   : > { %v6997_v45 = vsel %vm6862_vm4, %v6994_v54, %v6996_v12 }
 0x18e   : > { %15009 = vmatmul.mubr.msk.bf16.gmra.mrb[48].mxu1 %vm1204_vm2, %v18438_v33 }
 0x18f   : > { %15012 = vmatprep.mubr.msk.bf16.mxu1 %vm1204_vm2, %v18443_v34 }
 0x191   : > { %15629 = vmatmul.mubr.msk.bf16.gmra.mrb[116].mxu0 %vm1204_vm2, %v6983_v38  ;;  %v7921_v38 = vld [vmem:[%s17741_s25 + $0x24] sm:$0xf] }
 0x192   : > { %15632 = vmatprep.mubr.msk.bf16.mxu0 %vm1204_vm2, %v6985_v43  ;;  %v6995_v43 = vsel %vm6862_vm4, %v6992_v5, %v6994_v54  ;;  %v18500_v46 = vcombine.low %v7920_v30, %v7921_v38  ;;  %v18515_v5 = vld [vmem:[%s17741_s25 + $0x110] sm:$0xff]   ;;  %v8405_v54 = vrot.slane %v18521_v15, 2  ;;  %v8407_v30 = vrot.slane %v18525_v22, 2  ;;  %v18532_v38 = vld [vmem:[%s17741_s25 + $0x118] sm:$0xff]  }
 0x196   : > { %15013 = vmatmul.mubr.msk.bf16.gmra.mrb[52].mxu1 %vm1204_vm2, %v18454_v52 }
 0x197   : > { %15016 = vmatprep.mubr.msk.bf16.mxu1 %vm1204_vm2, %v18459_v55 }
 0x199   : > { %15633 = vmatmul.mubr.msk.bf16.gmra.mrb[120].mxu0 %vm1204_vm2, %v6987_v56  ;;  %v18503_v56 = vld [vmem:[%s17741_s25 + $0x28] sm:$0xff]  }
 0x19a   : > { %15636 = vmatprep.mubr.msk.bf16.mxu0 %vm1204_vm2, %v6989_v59  ;;  %v8402_v59 = vrot.slane %v18500_v46, 2  ;;  %v8403_v60 = vrot.slane %v18503_v56, 2 }
 0x19e   : > { %15017 = vmatmul.mubr.msk.bf16.gmra.mrb[56].mxu1 %vm1204_vm2, %v18470_v6 }
 0x19f   : > { %15020 = vmatprep.mubr.msk.bf16.mxu1 %vm1204_vm2, %v18475_v7 }
 0x1a1   : > { %15637 = vmatmul.mubr.msk.bf16.gmra.mrb[124].mxu0 %vm1204_vm2, %v6991_v14  ;;  %v6999_v14 = vsel %vm6862_vm4, %v6996_v12, %v6998_v58  ;;  %v18537_v12 = vld [vmem:[%s17741_s25 + $0x120] sm:$0xff]   ;;  %v8408_v58 = vsel %vm6862_vm4, %v8405_v54, %v8407_v30 }
 0x1a2   : > { %15640 = vmatprep.mubr.msk.bf16.mxu0 %vm1204_vm2, %v6993_v18  ;;  %v8404_v18 = vsel %vm6862_vm4, %v8402_v59, %v8403_v60  ;;  %v18549_v59 = vld [vmem:[%s17741_s25 + $0x48] sm:$0xff]  }
 0x1a3   : > { %20713 = vst [vmem:[#allocation6_spill] sm:$0xff] %v18549_v59 }
 0x1a6   : > { %15021 = vmatmul.mubr.msk.bf16.gmra.mrb[60].mxu1 %vm1204_vm2, %v18486_v29 }
 0x1a7   : > { %15024 = vmatprep.mubr.msk.bf16.mxu1 %vm1204_vm2, %v18493_v39 }
 0x1a9   : > { %15641 = vmatmul.mubr.msk.bf16.gmra.mrb[128].mxu0 %vm1204_vm2, %v6995_v43  ;;  %v8406_v43 = vsel %vm6862_vm4, %v8403_v60, %v8405_v54  ;;  %v8409_v60 = vrot.slane %v18543_v44, 2  ;;  %v18568_v54 = vld [vmem:[%s17741_s25 + $0x130] sm:$0xff]   ;;  %v17334_v44 = vld [vmem:[%s17741_s25 + $0xd8] sm:$0xff]  }
 0x1aa   : > { %15644 = vmatprep.mubr.msk.bf16.mxu0 %vm1204_vm2, %v6997_v45  ;;  %v10291_v45 = vsel %vm1409_vm0, %v18257_v19, 0  ;;  %v8411_v19 = vrot.slane %v18549_v59, 2  ;;  %20714 = vst [vmem:[#allocation7_spill] sm:$0xff] %v18568_v54  ;;  %v18733_v59 = vld [vmem:[%s17741_s25 + $0x1a8] sm:$0xff]  }
 0x1ab   : > { %20743 = vst [vmem:[#allocation36_spill] sm:$0xff] %v18733_v59 }
 0x1ae   : > { %15025 = vmatmul.mubr.msk.bf16.gmra.mrb[64].mxu1 %vm1204_vm2, %v18510_v4 }
 0x1af   : > { %15028 = vmatprep.mubr.msk.bf16.mxu1 %vm1204_vm2, %v18515_v5 }
 0x1b1   : > { %15645 = vmatmul.mubr.msk.bf16.gmra.mrb[132].mxu0 %vm1204_vm2, %v6999_v14  ;;  %v18555_v14 = vld [vmem:[%s20652_s1 + $0xc] sm:$0xf] }
 0x1b2   : > { %15650 = vmatprep.mubr.msk.bf16.mxu0 %vm1204_vm2, %v8404_v18  ;;  %17155 = vmatprep.subr.msk.bf16.mxu1 %vm1409_vm0, %v18555_v14  ;;  %v18563_v18 = vld [vmem:[%s17741_s25 + $0x128] sm:$0xff]  }
 0x1b6   : > { %15029 = vmatmul.mubr.msk.bf16.gmra.mrb[68].mxu1 %vm1204_vm2, %v18532_v38 }
 0x1b7   : > { %15032 = vmatprep.mubr.msk.bf16.mxu1 %vm1204_vm2, %v18537_v12 }
 0x1b9   : > { %15651 = vmatmul.mubr.msk.bf16.vlgmr.msra.gmra.mrb[0].mxu0 %vm1204_vm2, %v8406_v43  ;;  %v8410_v43 = vsel %vm6862_vm4, %v8407_v30, %v8409_v60  ;;  %v18590_v30 = vld [vmem:[%s17741_s25 + $0x140] sm:$0xff]  }
 0x1ba   : > { %15787 = vmatpush3.bf16.msra.mxu0 %v10291_v45  ;;  %15654 = vmatprep.mubr.msk.bf16.mxu0 %vm1204_vm2, %v8408_v58  ;;  %v18574_v45 = vld [vmem:[%s17741_s25 + $0x50] sm:$0xff]   ;;  %v8412_v58 = vsel %vm6862_vm4, %v8409_v60, %v8411_v19  ;;  %20718 = vst [vmem:[#allocation11_spill] sm:$0xff] %v18590_v30 }
 0x1bb   : > { %20715 = vst [vmem:[#allocation8_spill] sm:$0xff] %v18574_v45  ;;  %v8413_v3 = vrot.slane %v18574_v45, 2  ;;  %v18600_v45 = vld [vmem:[%s17741_s25 + $0x68] sm:$0xff]  }
 0x1bc   : > { %20720 = vst [vmem:[#allocation13_spill] sm:$0xff] %v18600_v45 }
 0x1bd   : > { %v8414_v60 = vsel %vm6862_vm4, %v8411_v19, %v8413_v3  ;;  %v18612_v19 = vld [vmem:[%s17741_s25 + $0x150] sm:$0xff]  }
 0x1be   : > { %15033 = vmatmul.mubr.msk.bf16.gmra.mrb[72].mxu1 %vm1204_vm2, %v18563_v18  ;;  %20722 = vst [vmem:[#allocation15_spill] sm:$0xff] %v18612_v19 }
 0x1bf   : > { %15036 = vmatprep.mubr.msk.bf16.mxu1 %vm1204_vm2, %v18568_v54  ;;  %v18585_v54 = vld [vmem:[%s17741_s25 + $0x138] sm:$0xff]  }
 0x1c0   : > { %20717 = vst [vmem:[#allocation10_spill] sm:$0xff] %v18585_v54 }
 0x1c1   : > { %15655 = vmatmul.mubr.msk.bf16.gmra.mrb[4].mxu0 %vm1204_vm2, %v8410_v43  ;;  %v18596_v43 = vld [vmem:[%s17741_s25 + $0x60] sm:$0xff]  }
 0x1c2   : > { %15658 = vmatprep.mubr.msk.bf16.mxu0 %vm1204_vm2, %v8412_v58  ;;  %20719 = vst [vmem:[#allocation12_spill] sm:$0xff] %v18596_v43  ;;  %v8416_v58 = vsel %vm6862_vm4, %v8413_v3, %v8415_v20  ;;  %v8417_v48 = vrot.slane %v18596_v43, 2  ;;  %v18622_v43 = vld [vmem:[%s17741_s25 + $0x78] sm:$0xff]  }
 0x1c3   : > { %20724 = vst [vmem:[#allocation17_spill] sm:$0xff] %v18622_v43 }
 0x1c4   : > { %v8418_v3 = vsel %vm6862_vm4, %v8415_v20, %v8417_v48  ;;  %v18634_v20 = vld [vmem:[%s17741_s25 + $0x160] sm:$0xff]  }
 0x1c5   : > { %20726 = vst [vmem:[#allocation19_spill] sm:$0xff] %v18634_v20 }
 0x1c6   : > { %15037 = vmatmul.mubr.msk.bf16.gmra.mrb[76].mxu1 %vm1204_vm2, %v18585_v54  ;;  %v8419_v54 = vrot.slane %v18600_v45, 2 }
 0x1c7   : > { %15040 = vmatprep.mubr.msk.bf16.mxu1 %vm1204_vm2, %v18590_v30  ;;  %v18607_v30 = vld [vmem:[%s17741_s25 + $0x148] sm:$0xff]  }
 0x1c8   : > { %20721 = vst [vmem:[#allocation14_spill] sm:$0xff] %v18607_v30 }
 0x1c9   : > { %15659 = vmatmul.mubr.msk.bf16.gmra.mrb[8].mxu0 %vm1204_vm2, %v8414_v60  ;;  %v18618_v60 = vld [vmem:[%s17741_s25 + $0x70] sm:$0xff]  }
 0x1ca   : > { %15662 = vmatprep.mubr.msk.bf16.mxu0 %vm1204_vm2, %v8416_v58  ;;  %20723 = vst [vmem:[#allocation16_spill] sm:$0xff] %v18618_v60  ;;  %v8420_v58 = vsel %vm6862_vm4, %v8417_v48, %v8419_v54  ;;  %v8421_v45 = vrot.slane %v18618_v60, 2  ;;  %v18644_v60 = vld [vmem:[%s17741_s25 + $0x88] sm:$0xff]  }
 0x1cb   : > { %20728 = vst [vmem:[#allocation21_spill] sm:$0xff] %v18644_v60 }
 0x1cc   : > { %v8422_v48 = vsel %vm6862_vm4, %v8419_v54, %v8421_v45  ;;  %v18656_v54 = vld [vmem:[%s17741_s25 + $0x170] sm:$0xff]  }
 0x1cd   : > { %20730 = vst [vmem:[#allocation23_spill] sm:$0xff] %v18656_v54 }
 0x1ce   : > { %15041 = vmatmul.mubr.msk.bf16.gmra.mrb[80].mxu1 %vm1204_vm2, %v18607_v30  ;;  %v8423_v30 = vrot.slane %v18622_v43, 2 }
 0x1cf   : > { %15044 = vmatprep.mubr.msk.bf16.mxu1 %vm1204_vm2, %v18612_v19  ;;  %v18629_v19 = vld [vmem:[%s17741_s25 + $0x158] sm:$0xff]  }
 0x1d0   : > { %20725 = vst [vmem:[#allocation18_spill] sm:$0xff] %v18629_v19 }
 0x1d1   : > { %15663 = vmatmul.mubr.msk.bf16.gmra.mrb[12].mxu0 %vm1204_vm2, %v8418_v3  ;;  %v18640_v3 = vld [vmem:[%s17741_s25 + $0x80] sm:$0xff]  }
 0x1d2   : > { %15666 = vmatprep.mubr.msk.bf16.mxu0 %vm1204_vm2, %v8420_v58  ;;  %20727 = vst [vmem:[#allocation20_spill] sm:$0xff] %v18640_v3  ;;  %v8424_v58 = vsel %vm6862_vm4, %v8421_v45, %v8423_v30  ;;  %v8425_v43 = vrot.slane %v18640_v3, 2  ;;  %v18666_v3 = vld [vmem:[%s17741_s25 + $0x98] sm:$0xff]  }
 0x1d3   : > { %20732 = vst [vmem:[#allocation25_spill] sm:$0xff] %v18666_v3 }
 0x1d4   : > { %v8426_v45 = vsel %vm6862_vm4, %v8423_v30, %v8425_v43  ;;  %v18678_v30 = vld [vmem:[%s17741_s25 + $0x180] sm:$0xff]  }
 0x1d5   : > { %20734 = vst [vmem:[#allocation27_spill] sm:$0xff] %v18678_v30 }
 0x1d6   : > { %15045 = vmatmul.mubr.msk.bf16.gmra.mrb[84].mxu1 %vm1204_vm2, %v18629_v19  ;;  %v8427_v19 = vrot.slane %v18644_v60, 2 }
 0x1d7   : > { %15048 = vmatprep.mubr.msk.bf16.mxu1 %vm1204_vm2, %v18634_v20  ;;  %v18651_v20 = vld [vmem:[%s17741_s25 + $0x168] sm:$0xff]  }
 0x1d8   : > { %20729 = vst [vmem:[#allocation22_spill] sm:$0xff] %v18651_v20 }
 0x1d9   : > { %15667 = vmatmul.mubr.msk.bf16.gmra.mrb[16].mxu0 %vm1204_vm2, %v8422_v48  ;;  %v18662_v48 = vld [vmem:[%s17741_s25 + $0x90] sm:$0xff]  }
 0x1da   : > { %15670 = vmatprep.mubr.msk.bf16.mxu0 %vm1204_vm2, %v8424_v58  ;;  %20731 = vst [vmem:[#allocation24_spill] sm:$0xff] %v18662_v48  ;;  %v8428_v58 = vsel %vm6862_vm4, %v8425_v43, %v8427_v19  ;;  %v8429_v60 = vrot.slane %v18662_v48, 2  ;;  %v18688_v48 = vld [vmem:[%s17741_s25 + $0xa8] sm:$0xff]  }
 0x1db   : > { %20736 = vst [vmem:[#allocation29_spill] sm:$0xff] %v18688_v48 }
 0x1dc   : > { %v8430_v43 = vsel %vm6862_vm4, %v8427_v19, %v8429_v60  ;;  %v18700_v19 = vld [vmem:[%s17741_s25 + $0x190] sm:$0xff]  }
 0x1dd   : > { %20738 = vst [vmem:[#allocation31_spill] sm:$0xff] %v18700_v19 }
 0x1de   : > { %15049 = vmatmul.mubr.msk.bf16.gmra.mrb[88].mxu1 %vm1204_vm2, %v18651_v20  ;;  %v8431_v20 = vrot.slane %v18666_v3, 2 }
 0x1df   : > { %15052 = vmatprep.mubr.msk.bf16.mxu1 %vm1204_vm2, %v18656_v54  ;;  %v18673_v54 = vld [vmem:[%s17741_s25 + $0x178] sm:$0xff]  }
 0x1e0   : > { %20733 = vst [vmem:[#allocation26_spill] sm:$0xff] %v18673_v54 }
 0x1e1   : > { %15671 = vmatmul.mubr.msk.bf16.gmra.mrb[20].mxu0 %vm1204_vm2, %v8426_v45  ;;  %v18684_v45 = vld [vmem:[%s17741_s25 + $0xa0] sm:$0xff]  }
 0x1e2   : > { %15674 = vmatprep.mubr.msk.bf16.mxu0 %vm1204_vm2, %v8428_v58  ;;  %20735 = vst [vmem:[#allocation28_spill] sm:$0xff] %v18684_v45  ;;  %v8432_v58 = vsel %vm6862_vm4, %v8429_v60, %v8431_v20  ;;  %v8433_v3 = vrot.slane %v18684_v45, 2  ;;  %v18710_v45 = vld [vmem:[%s17741_s25 + $0xb8] sm:$0xff]  }
 0x1e3   : > { %20740 = vst [vmem:[#allocation33_spill] sm:$0xff] %v18710_v45 }
 0x1e4   : > { %v8434_v60 = vsel %vm6862_vm4, %v8431_v20, %v8433_v3  ;;  %v18722_v20 = vld [vmem:[%s17741_s25 + $0x1a0] sm:$0xff]  }
 0x1e5   : > { %20742 = vst [vmem:[#allocation35_spill] sm:$0xff] %v18722_v20 }
 0x1e6   : > { %15053 = vmatmul.mubr.msk.bf16.gmra.mrb[92].mxu1 %vm1204_vm2, %v18673_v54  ;;  %v8435_v54 = vrot.slane %v18688_v48, 2 }
 0x1e7   : > { %15056 = vmatprep.mubr.msk.bf16.mxu1 %vm1204_vm2, %v18678_v30  ;;  %v18695_v30 = vld [vmem:[%s17741_s25 + $0x188] sm:$0xff]  }
 0x1e8   : > { %20737 = vst [vmem:[#allocation30_spill] sm:$0xff] %v18695_v30 }
 0x1e9   : > { %15675 = vmatmul.mubr.msk.bf16.gmra.mrb[24].mxu0 %vm1204_vm2, %v8430_v43  ;;  %v18706_v43 = vld [vmem:[%s17741_s25 + $0xb0] sm:$0xff]  }
 0x1ea   : > { %15678 = vmatprep.mubr.msk.bf16.mxu0 %vm1204_vm2, %v8432_v58  ;;  %20739 = vst [vmem:[#allocation32_spill] sm:$0xff] %v18706_v43  ;;  %v8436_v58 = vsel %vm6862_vm4, %v8433_v3, %v8435_v54  ;;  %v8437_v48 = vrot.slane %v18706_v43, 2  ;;  %v17332_v43 = vld [vmem:[%s17741_s25 + $0xc8] sm:$0xff]  }
 0x1ec   : > { %v8438_v3 = vsel %vm6862_vm4, %v8435_v54, %v8437_v48 }
 0x1ee   : > { %15057 = vmatmul.mubr.msk.bf16.gmra.mrb[96].mxu1 %vm1204_vm2, %v18695_v30  ;;  %v8439_v30 = vrot.slane %v18710_v45, 2 }
 0x1ef   : > { %15060 = vmatprep.mubr.msk.bf16.mxu1 %vm1204_vm2, %v18700_v19  ;;  %v18717_v19 = vld [vmem:[%s17741_s25 + $0x198] sm:$0xff]  }
 0x1f0   : > { %20741 = vst [vmem:[#allocation34_spill] sm:$0xff] %v18717_v19 }
 0x1f1   : > { %15679 = vmatmul.mubr.msk.bf16.gmra.mrb[28].mxu0 %vm1204_vm2, %v8434_v60  ;;  %v17331_v60 = vld [vmem:[%s17741_s25 + $0xc0] sm:$0xff]  }
 0x1f2   : > { %15682 = vmatprep.mubr.msk.bf16.mxu0 %vm1204_vm2, %v8436_v58  ;;  %v8440_v58 = vsel %vm6862_vm4, %v8437_v48, %v8439_v30  ;;  %v8441_v45 = vrot.slane %v17331_v60, 2  ;;  %v17333_v48 = vld [vmem:[%s17741_s25 + $0xd0] sm:$0xff]   ;;  %v8447_v60 = vrot.slane %v17334_v44, 2 }
 0x1f4   : > { %v8442_v54 = vsel %vm6862_vm4, %v8439_v30, %v8441_v45 }
 0x1f6   : > { %15061 = vmatmul.mubr.msk.bf16.gmra.mrb[100].mxu1 %vm1204_vm2, %v18717_v19  ;;  %v8443_v19 = vrot.slane %v17332_v43, 2  ;;  %v8445_v43 = vrot.slane %v17333_v48, 2 }
 0x1f7   : > { %15064 = vmatprep.mubr.msk.bf16.mxu1 %vm1204_vm2, %v18722_v20  ;;  %v17472_v20 = vld [vmem:[%s17741_s25 + $0x1b0] sm:$0xff]  }
 0x1f8   : > { %v8446_v30 = vsel %vm6862_vm4, %v8443_v19, %v8445_v43 }
 0x1f9   : > { %15683 = vmatmul.mubr.msk.bf16.gmra.mrb[32].mxu0 %vm1204_vm2, %v8438_v3  ;;  %v8444_v3 = vsel %vm6862_vm4, %v8441_v45, %v8443_v19  ;;  %v17335_v45 = vld [vmem:[%s17741_s25 + $0xe0] sm:$0xff]  }
 0x1fa   : > { %15686 = vmatprep.mubr.msk.bf16.mxu0 %vm1204_vm2, %v8440_v58  ;;  %v18746_v58 = vld [vmem:[%s17741_s25 + $0x1b8] sm:$0xff]   ;;  %v8449_v44 = vrot.slane %v17335_v45, 2 }
 0x1fb   : > { %20744 = vst [vmem:[#allocation37_spill] sm:$0xff] %v18746_v58 }
 0x1fc   : > { %v8450_v19 = vsel %vm6862_vm4, %v8447_v60, %v8449_v44 }
 0x1fe   : > { %15065 = vmatmul.mubr.msk.bf16.gmra.mrb[104].mxu1 %vm1204_vm2, %v18733_v59  ;;  %v17336_v59 = vld [vmem:[%s17741_s25 + $0xe8] sm:$0xff]  }
 0x1ff   : > { %15068 = vmatprep.mubr.msk.bf16.mxu1 %vm1204_vm2, %v17472_v20  ;;  %v17474_v20 = vld [vmem:[%s17741_s25 + $0x1c0] sm:$0xff]   ;;  %v8451_v48 = vrot.slane %v17336_v59, 2 }
 0x201   : > { %15687 = vmatmul.mubr.msk.bf16.gmra.mrb[36].mxu0 %vm1204_vm2, %v8442_v54  ;;  %v8448_v54 = vsel %vm6862_vm4, %v8445_v43, %v8447_v60  ;;  %v8452_v43 = vsel %vm6862_vm4, %v8449_v44, %v8451_v48  ;;  %v17339_v60 = vld [vmem:[%s17741_s25 + $0x100] sm:$0xff]  }
 0x202   : > { %15690 = vmatprep.mubr.msk.bf16.mxu0 %vm1204_vm2, %v8444_v3  ;;  %v17475_v3 = vld [vmem:[%s17741_s25 + $0x1c8] sm:$0xff]   ;;  %v8457_v44 = vrot.slane %v17339_v60, 2  ;;  %v17476_v60 = vld [vmem:[%s17741_s25 + $0x4] sm:$0xf] }
 0x206   : > { %15069 = vmatmul.mubr.msk.bf16.gmra.mrb[108].mxu1 %vm1204_vm2, %v18746_v58  ;;  %v17338_v58 = vld [vmem:[%s17741_s25 + $0xf8] sm:$0xff]  }
 0x207   : > { %15072 = vmatprep.mubr.msk.bf16.mxu1 %vm1204_vm2, %v17474_v20  ;;  %v17337_v20 = vld [vmem:[%s17741_s25 + $0xf0] sm:$0xff]   ;;  %v8455_v59 = vrot.slane %v17338_v58, 2 }
 0x209   : > { %15691 = vmatmul.mubr.msk.bf16.gmra.mrb[40].mxu0 %vm1204_vm2, %v8446_v30  ;;  %v8453_v30 = vrot.slane %v17337_v20, 2 }
 0x20a   : > { %15694 = vmatprep.mubr.msk.bf16.mxu0 %vm1204_vm2, %v8448_v54  ;;  %v17340_v54 = vld [vmem:[%s17741_s25 + $0x108] sm:$0xff]  }
 0x20b   : > { %v8456_v45 = vsel %vm6862_vm4, %v8453_v30, %v8455_v59  ;;  %v8459_v58 = vrot.slane %v17340_v54, 2  ;;  %v17345_v54 = vld [vmem:[%s17741_s25 + $0x130] sm:$0xff]  }
 0x20e   : > { %15073 = vmatmul.mubr.msk.bf16.gmra.mrb[112].mxu1 %vm1204_vm2, %v17475_v3  ;;  %v17342_v3 = vld [vmem:[%s17741_s25 + $0x118] sm:$0xff]  }
 0x20f   : > { %15076 = vmatprep.mubr.msk.bf16.mxu1 %vm1204_vm2, %v18103_v53  ;;  %v8454_v53 = vsel %vm6862_vm4, %v8451_v48, %v8453_v30  ;;  %v8460_v48 = vsel %vm6862_vm4, %v8457_v44, %v8459_v58  ;;  %v8463_v20 = vrot.slane %v17342_v3, 2  ;;  %v17344_v30 = vld [vmem:[%s17741_s25 + $0x128] sm:$0xff]  }
 0x211   : > { %15695 = vmatmul.mubr.msk.bf16.gmra.mrb[44].mxu0 %vm1204_vm2, %v8450_v19 }
 0x212   : > { %15698 = vmatprep.mubr.msk.bf16.mxu0 %vm1204_vm2, %v8452_v43 }
 0x216   : > { %15077 = vmatmul.mubr.msk.bf16.gmra.mrb[116].mxu1 %vm1204_vm2, %v18112_v63  ;;  %v8458_v63 = vsel %vm6862_vm4, %v8455_v59, %v8457_v44  ;;  %v2706_v59 = vld [vmem:[%s17741_s25] sm:$0xe] }
 0x217   : > { %15080 = vmatprep.mubr.msk.bf16.mxu1 %vm1204_vm2, %v18120_v10  ;;  %v17341_v10 = vld [vmem:[%s17741_s25 + $0x110] sm:$0xff]  }
 0x218   : > { %v8461_v19 = vrot.slane %v17341_v10, 2  ;;  %v17347_v10 = vld [vmem:[%s17741_s25 + $0x138] sm:$0xff]  }
 0x219   : > { %15699 = vmatmul.mubr.msk.bf16.gmra.mrb[48].mxu0 %vm1204_vm2, %v8454_v53 }
 0x21a   : > { %15702 = vmatprep.mubr.msk.bf16.mxu0 %vm1204_vm2, %v8456_v45  ;;  %v8464_v43 = vsel %vm6862_vm4, %v8461_v19, %v8463_v20  ;;  %v13299_v45 = vcombine.low %v2706_v59, %v17476_v60  ;;  %v17350_v60 = vld [vmem:[%s17741_s25 + $0x150] sm:$0xff]  }
 0x21c   : > { %v2713_v44 = vrot.slane %v13299_v45, 1  ;;  %v2722_v45 = vrot.slane %v18278_v31, 1 }
 0x21e   : > { %15081 = vmatmul.mubr.msk.bf16.gmra.mrb[120].mxu1 %vm1204_vm2, %v18131_v21  ;;  %v8462_v21 = vsel %vm6862_vm4, %v8459_v58, %v8461_v19  ;;  %v2714_v58 = vrot.slane %v18239_v13, 1  ;;  %v2716_v13 = vrot.slane %v18244_v9, 1  ;;  %v17348_v19 = vld [vmem:[%s17741_s25 + $0x140] sm:$0xff]  }
 0x21f   : > { %15084 = vmatprep.mubr.msk.bf16.mxu1 %vm1204_vm2, %v18148_v36  ;;  %v17343_v36 = vld [vmem:[%s17741_s25 + $0x120] sm:$0xff]   ;;  %v8473_v9 = vrot.slane %v17348_v19, 2 }
 0x220   : > { %v8465_v53 = vrot.slane %v17343_v36, 2  ;;  %v17349_v36 = vld [vmem:[%s17741_s25 + $0x148] sm:$0xff]  }
 0x221   : > { %15703 = vmatmul.mubr.msk.bf16.gmra.mrb[52].mxu0 %vm1204_vm2, %v8458_v63  ;;  %v8475_v59 = vrot.slane %v17349_v36, 2  ;;  %v17354_v36 = vld [vmem:[%s17741_s25 + $0x170] sm:$0xff]  }
 0x222   : > { %15706 = vmatprep.mubr.msk.bf16.mxu0 %vm1204_vm2, %v8460_v48  ;;  %v2715_v48 = vsel %vm2712_vm5, %v2713_v44, %v2714_v58  ;;  %v18846_v44 = vld [vmem:[%s20652_s1 + $0x20] sm:$0xf] }
 0x223   : > { %17161 = vmatprep.subr.msk.bf16.mxu0 %vm1409_vm0, %v18846_v44 }
 0x226   : > { %15085 = vmatmul.mubr.msk.bf16.gmra.mrb[124].mxu1 %vm1204_vm2, %v18153_v41  ;;  %v8467_v41 = vrot.slane %v17344_v30, 2 }
 0x227   : > { %15088 = vmatprep.mubr.msk.bf16.mxu1 %vm1204_vm2, %v18168_v57  ;;  %v8466_v57 = vsel %vm6862_vm4, %v8463_v20, %v8465_v53  ;;  %v2718_v20 = vrot.slane %v18262_v24, 1  ;;  %v2720_v24 = vrot.slane %v18267_v25, 1 }
 0x228   : > { %v8468_v63 = vsel %vm6862_vm4, %v8465_v53, %v8467_v41 }
 0x229   : > { %15707 = vmatmul.mubr.msk.bf16.gmra.mrb[56].mxu0 %vm1204_vm2, %v8462_v21  ;;  %v2719_v30 = vsel %vm2712_vm5, %v2716_v13, %v2718_v20  ;;  %v2721_v25 = vsel %vm2712_vm5, %v2718_v20, %v2720_v24  ;;  %v2723_v31 = vsel %vm2712_vm5, %v2720_v24, %v2722_v45 }
 0x22a   : > { %15710 = vmatprep.mubr.msk.bf16.mxu0 %vm1204_vm2, %v8464_v43  ;;  %v2717_v43 = vsel %vm2712_vm5, %v2714_v58, %v2716_v13  ;;  %v17353_v13 = vld [vmem:[%s17741_s25 + $0x168] sm:$0xff]  }
 0x22e   : > { %15089 = vmatmul.mubr.msk.bf16.gmra.mrb[128].mxu1 %vm1204_vm2, %v18173_v62  ;;  %v8469_v62 = vrot.slane %v17345_v54, 2  ;;  %v8477_v54 = vrot.slane %v17350_v60, 2  ;;  %v17356_v60 = vld [vmem:[%s17741_s25 + $0x180] sm:$0xff]  }
 0x22f   : > { %15092 = vmatprep.mubr.msk.bf16.mxu1 %vm1204_vm2, %v18188_v16  ;;  %v8471_v16 = vrot.slane %v17347_v10, 2 }
 0x230   : > { %v8470_v3 = vsel %vm6862_vm4, %v8467_v41, %v8469_v62  ;;  %v8476_v41 = vsel %vm6862_vm4, %v8473_v9, %v8475_v59  ;;  %v8478_v10 = vsel %vm6862_vm4, %v8475_v59, %v8477_v54  ;;  %v8485_v59 = vrot.slane %v17354_v36, 2 }
 0x231   : > { %15711 = vmatmul.mubr.msk.bf16.gmra.mrb[60].mxu0 %vm1204_vm2, %v8466_v57  ;;  %v8472_v21 = vsel %vm6862_vm4, %v8469_v62, %v8471_v16  ;;  %v8474_v53 = vsel %vm6862_vm4, %v8471_v16, %v8473_v9  ;;  %v17351_v57 = vld [vmem:[%s17741_s25 + $0x158] sm:$0xff]   ;;  %v17352_v62 = vld [vmem:[%s17741_s25 + $0x160] sm:$0xff]  }
 0x232   : > { %15714 = vmatprep.mubr.msk.bf16.mxu0 %vm1204_vm2, %v8468_v63  ;;  %v8479_v58 = vrot.slane %v17351_v57, 2  ;;  %v2724_v63 = vrot.slane %v18283_v32, 1  ;;  %v8481_v19 = vrot.slane %v17352_v62, 2  ;;  %v8483_v32 = vrot.slane %v17353_v13, 2  ;;  %v17355_v9 = vld [vmem:[%s17741_s25 + $0x178] sm:$0xff]  }
 0x233   : > { %v17359_v62 = vld [vmem:[%s17741_s25 + $0x198] sm:$0xff]  }
 0x234   : > { %v8480_v16 = vsel %vm6862_vm4, %v8477_v54, %v8479_v58 }
 0x236   : > { %15093 = vmatmul.mubr.msk.bf16.gmra.mrb[132].mxu1 %vm1204_vm2, %v18193_v23  ;;  %v4594_v23 = vsel %vm1409_vm0, %v18555_v14, 0  ;;  %v17477_v14 = vld [vmem:[%s20652_s1 + $0x10] sm:$0xf] }
 0x237   : > { %15098 = vmatprep.mubr.msk.bf16.mxu1 %vm1204_vm2, %v2715_v48  ;;  %v2726_v48 = vrot.slane %v18294_v40, 1  ;;  %v2728_v40 = vrot.slane %v18299_v42, 1  ;;  %v8487_v42 = vrot.slane %v17355_v9, 2  ;;  %v17362_v9 = vld [vmem:[%s17741_s25 + $0x1b0] sm:$0xff]  }
 0x239   : > { %15715 = vmatmul.mubr.msk.bf16.gmra.mrb[64].mxu0 %vm1204_vm2, %v8470_v3  ;;  %v2725_v3 = vsel %vm2712_vm5, %v2722_v45, %v2724_v63  ;;  %v2727_v20 = vsel %vm2712_vm5, %v2724_v63, %v2726_v48  ;;  %v2734_v45 = vrot.slane %v18326_v61, 1  ;;  %v2736_v61 = vrot.slane %v18331_v0, 1 }
 0x23a   : > { %15718 = vmatprep.mubr.msk.bf16.mxu0 %vm1204_vm2, %v8472_v21  ;;  %v8482_v21 = vsel %vm6862_vm4, %v8479_v58, %v8481_v19  ;;  %v17358_v58 = vld [vmem:[%s17741_s25 + $0x190] sm:$0xff]   ;;  %v2738_v63 = vrot.slane %v18342_v8, 1  ;;  %v8495_v0 = vrot.slane %v17359_v62, 2  ;;  %v2740_v8 = vrot.slane %v18347_v11, 1 }
 0x23c   : > { %v2739_v13 = vsel %vm2712_vm5, %v2736_v61, %v2738_v63 }
 0x23e   : > { %15099 = vmatmul.mubr.msk.bf16.vlgmr.msra.gmra.mrb[0].mxu1 %vm1204_vm2, %v2717_v43  ;;  %v2730_v43 = vrot.slane %v18310_v50, 1  ;;  %v2732_v50 = vrot.slane %v18315_v51, 1 }
 0x23f   : > { %15235 = vmatpush3.bf16.msra.mxu1 %v4594_v23  ;;  %15102 = vmatprep.mubr.msk.bf16.mxu1 %vm1204_vm2, %v2719_v30  ;;  %v8484_v23 = vsel %vm6862_vm4, %v8481_v19, %v8483_v32  ;;  %v2729_v30 = vsel %vm2712_vm5, %v2726_v48, %v2728_v40  ;;  %v2737_v48 = vsel %vm2712_vm5, %v2734_v45, %v2736_v61  ;;  %v17360_v19 = vld [vmem:[%s17741_s25 + $0x1a0] sm:$0xff]  }
 0x240   : > { %17157 = vmatprep.subr.msk.bf16.mxu1 %vm1409_vm0, %v17477_v14  ;;  %v2731_v24 = vsel %vm2712_vm5, %v2728_v40, %v2730_v43  ;;  %v8488_v14 = vsel %vm6862_vm4, %v8485_v59, %v8487_v42  ;;  %v2733_v57 = vsel %vm2712_vm5, %v2730_v43, %v2732_v50  ;;  %v2735_v54 = vsel %vm2712_vm5, %v2732_v50, %v2734_v45  ;;  %v17361_v40 = vld [vmem:[%s17741_s25 + $0x1a8] sm:$0xff]   ;;  %v17364_v45 = vld [vmem:[%s17741_s25 + $0x1c0] sm:$0xff]  }
 0x241   : > { %15719 = vmatmul.mubr.msk.bf16.gmra.mrb[68].mxu0 %vm1204_vm2, %v8474_v53  ;;  %v8486_v53 = vsel %vm6862_vm4, %v8483_v32, %v8485_v59  ;;  %v8497_v36 = vrot.slane %v17360_v19, 2  ;;  %v8499_v11 = vrot.slane %v17361_v40, 2  ;;  %v8501_v50 = vrot.slane %v17362_v9, 2  ;;  %v17369_v19 = vld [vmem:[%s17741_s25 + $0x1e8] sm:$0xff]  }
 0x242   : > { %15722 = vmatprep.mubr.msk.bf16.mxu0 %vm1204_vm2, %v8476_v41  ;;  %v17357_v41 = vld [vmem:[%s17741_s25 + $0x188] sm:$0xff]  }
 0x243   : > { %v8491_v51 = vrot.slane %v17357_v41, 2  ;;  %v8500_v59 = vsel %vm6862_vm4, %v8497_v36, %v8499_v11 }
 0x246   : > { %15103 = vmatmul.mubr.msk.bf16.gmra.mrb[4].mxu1 %vm1204_vm2, %v2721_v25  ;;  %v8489_v25 = vrot.slane %v17356_v60, 2  ;;  %v8502_v60 = vsel %vm6862_vm4, %v8499_v11, %v8501_v50 }
 0x247   : > { %15106 = vmatprep.mubr.msk.bf16.mxu1 %vm1204_vm2, %v2723_v31 }
 0x248   : > { %v8490_v31 = vsel %vm6862_vm4, %v8487_v42, %v8489_v25 }
 0x249   : > { %15723 = vmatmul.mubr.msk.bf16.gmra.mrb[72].mxu0 %vm1204_vm2, %v8478_v10  ;;  %v8492_v10 = vsel %vm6862_vm4, %v8489_v25, %v8491_v51 }
 0x24a   : > { %15726 = vmatprep.mubr.msk.bf16.mxu0 %vm1204_vm2, %v8480_v16  ;;  %v8493_v16 = vrot.slane %v17358_v58, 2  ;;  %v2754_v58 = vrot.slane %v18406_v1, 1  ;;  %v2756_v1 = vrot.slane %v18411_v2, 1  ;;  %v8515_v2 = vrot.slane %v17369_v19, 2 }
 0x24c   : > { %v8496_v32 = vsel %vm6862_vm4, %v8493_v16, %v8495_v0 }
 0x24e   : > { %15107 = vmatmul.mubr.msk.bf16.gmra.mrb[8].mxu1 %vm1204_vm2, %v2725_v3  ;;  %v8494_v3 = vsel %vm6862_vm4, %v8491_v51, %v8493_v16 }
 0x24f   : > { %15110 = vmatprep.mubr.msk.bf16.mxu1 %vm1204_vm2, %v2727_v20  ;;  %v2742_v20 = vrot.slane %v18358_v26, 1  ;;  %v2744_v26 = vrot.slane %v18363_v27, 1 }
 0x251   : > { %15727 = vmatmul.mubr.msk.bf16.gmra.mrb[76].mxu0 %vm1204_vm2, %v8482_v21  ;;  %v2741_v21 = vsel %vm2712_vm5, %v2738_v63, %v2740_v8  ;;  %v2743_v43 = vsel %vm2712_vm5, %v2740_v8, %v2742_v20  ;;  %v2745_v42 = vsel %vm2712_vm5, %v2742_v20, %v2744_v26  ;;  %v2758_v8 = vrot.slane %v18422_v28, 1 }
 0x252   : > { %15730 = vmatprep.mubr.msk.bf16.mxu0 %vm1204_vm2, %v8484_v23  ;;  %v8498_v23 = vsel %vm6862_vm4, %v8495_v0, %v8497_v36  ;;  %v17368_v0 = vld [vmem:[%s17741_s25 + $0x1e0] sm:$0xff]   ;;  %v2757_v20 = vsel %vm2712_vm5, %v2754_v58, %v2756_v1  ;;  %v2760_v28 = vrot.slane %v18427_v17, 1  ;;  %v17370_v36 = vld [vmem:[%s17741_s25 + $0x1f0] sm:$0xff]  }
 0x253   : > { %v2759_v40 = vsel %vm2712_vm5, %v2756_v1, %v2758_v8  ;;  %v8517_v9 = vrot.slane %v17370_v36, 2  ;;  %v2778_v1 = vrot.slane %v18510_v4, 1  ;;  %v9475_v4 = vshrl.u32 %v18503_v56, 16  ;;  %v17380_v36 = vld [vmem:[%s17741_s25 + $0x240] ss:$0 sps:$4 sm:$0x33]  }
 0x256   : > { %15111 = vmatmul.mubr.msk.bf16.gmra.mrb[12].mxu1 %vm1204_vm2, %v2729_v30  ;;  %v2746_v30 = vrot.slane %v18374_v35, 1  ;;  %v2748_v35 = vrot.slane %v18379_v37, 1 }
 0x257   : > { %15114 = vmatprep.mubr.msk.bf16.mxu1 %vm1204_vm2, %v2731_v24  ;;  %v17363_v24 = vld [vmem:[%s17741_s25 + $0x1b8] sm:$0xff]  }
 0x258   : > { %v8503_v27 = vrot.slane %v17363_v24, 2  ;;  %v2749_v25 = vsel %vm2712_vm5, %v2746_v30, %v2748_v35  ;;  %v17372_v24 = vld [vmem:[%s17741_s25 + $0x200] sm:$0xff]  }
 0x259   : > { %15731 = vmatmul.mubr.msk.bf16.gmra.mrb[80].mxu0 %vm1204_vm2, %v8486_v53  ;;  %v2747_v53 = vsel %vm2712_vm5, %v2744_v26, %v2746_v30  ;;  %v17371_v26 = vld [vmem:[%s17741_s25 + $0x1f8] sm:$0xff]  }
 0x25a   : > { %15734 = vmatprep.mubr.msk.bf16.mxu0 %vm1204_vm2, %v8488_v14  ;;  %v2750_v14 = vrot.slane %v18390_v47, 1  ;;  %v8504_v41 = vsel %vm6862_vm4, %v8501_v50, %v8503_v27  ;;  %v2752_v47 = vrot.slane %v18395_v49, 1  ;;  %v8519_v17 = vrot.slane %v17371_v26, 2 }
 0x25c   : > { %v2751_v51 = vsel %vm2712_vm5, %v2748_v35, %v2750_v14  ;;  %v2753_v62 = vsel %vm2712_vm5, %v2750_v14, %v2752_v47  ;;  %v2755_v16 = vsel %vm2712_vm5, %v2752_v47, %v2754_v58  ;;  %v8520_v50 = vsel %vm6862_vm4, %v8517_v9, %v8519_v17  ;;  %v17374_v14 = vld [vmem:[%s17741_s25 + $0x210] sm:$0xff]  }
 0x25d   : > { %v8521_v35 = vrot.slane %v17372_v24, 2  ;;  %v9496_v24 = vshll.u32 %v18525_v22, 16 }
 0x25e   : > { %15115 = vmatmul.mubr.msk.bf16.gmra.mrb[16].mxu1 %vm1204_vm2, %v2733_v57  ;;  %v17365_v57 = vld [vmem:[%s17741_s25 + $0x1c8] sm:$0xff]  }
 0x25f   : > { %15118 = vmatprep.mubr.msk.bf16.mxu1 %vm1204_vm2, %v2735_v54  ;;  %v8505_v54 = vrot.slane %v17364_v45, 2  ;;  %v8507_v37 = vrot.slane %v17365_v57, 2  ;;  %v8522_v45 = vsel %vm6862_vm4, %v8519_v17, %v8521_v35  ;;  %v9487_v17 = vshll.u32 %v18521_v15, 16 }
 0x261   : > { %15735 = vmatmul.mubr.msk.bf16.gmra.mrb[84].mxu0 %vm1204_vm2, %v8490_v31  ;;  %v8506_v61 = vsel %vm6862_vm4, %v8503_v27, %v8505_v54  ;;  %v17366_v31 = vld [vmem:[%s17741_s25 + $0x1d0] sm:$0xff]   ;;  %v8508_v63 = vsel %vm6862_vm4, %v8505_v54, %v8507_v37 }
 0x262   : > { %15738 = vmatprep.mubr.msk.bf16.mxu0 %vm1204_vm2, %v8492_v10  ;;  %v17367_v10 = vld [vmem:[%s17741_s25 + $0x1d8] sm:$0xff]  }
 0x263   : > { %v8511_v49 = vrot.slane %v17367_v10, 2 }
 0x266   : > { %15119 = vmatmul.mubr.msk.bf16.gmra.mrb[20].mxu1 %vm1204_vm2, %v2737_v48  ;;  %v8509_v48 = vrot.slane %v17366_v31, 2  ;;  %v2774_v31 = vrot.slane %v18486_v29, 1 }
 0x267   : > { %15122 = vmatprep.mubr.msk.bf16.mxu1 %vm1204_vm2, %v2739_v13 }
 0x268   : > { %v8510_v13 = vsel %vm6862_vm4, %v8507_v37, %v8509_v48 }
 0x269   : > { %15739 = vmatmul.mubr.msk.bf16.gmra.mrb[88].mxu0 %vm1204_vm2, %v8494_v3  ;;  %v8512_v3 = vsel %vm6862_vm4, %v8509_v48, %v8511_v49 }
 0x26a   : > { %15742 = vmatprep.mubr.msk.bf16.mxu0 %vm1204_vm2, %v8496_v32  ;;  %v8513_v32 = vrot.slane %v17368_v0, 2 }
 0x26c   : > { %v8516_v11 = vsel %vm6862_vm4, %v8513_v32, %v8515_v2 }
 0x26e   : > { %15123 = vmatmul.mubr.msk.bf16.gmra.mrb[24].mxu1 %vm1204_vm2, %v2741_v21  ;;  %v8514_v21 = vsel %vm6862_vm4, %v8511_v49, %v8513_v32  ;;  %v17378_v49 = vld [vmem:[%s17741_s25 + $0x230] sm:$0xff]   ;;  %v9470_v32 = vshll.u32 %v18500_v46, 16 }
 0x26f   : > { %15126 = vmatprep.mubr.msk.bf16.mxu1 %vm1204_vm2, %v2743_v43  ;;  %v2762_v43 = vrot.slane %v18438_v33, 1  ;;  %v2764_v33 = vrot.slane %v18443_v34, 1 }
 0x270   : > { %v9472_v26 = vrot.slane %v9470_v32, 3 }
 0x271   : > { %15743 = vmatmul.mubr.msk.bf16.gmra.mrb[92].mxu0 %vm1204_vm2, %v8498_v23  ;;  %v2761_v23 = vsel %vm2712_vm5, %v2758_v8, %v2760_v28  ;;  %v2763_v30 = vsel %vm2712_vm5, %v2760_v28, %v2762_v43  ;;  %v2765_v27 = vsel %vm2712_vm5, %v2762_v43, %v2764_v33  ;;  %v2782_v43 = vrot.slane %v18532_v38, 1 }
 0x272   : > { %15746 = vmatprep.mubr.msk.bf16.mxu0 %vm1204_vm2, %v8500_v59  ;;  %v8518_v59 = vsel %vm6862_vm4, %v8515_v2, %v8517_v9  ;;  %v2780_v2 = vrot.slane %v18515_v5, 1  ;;  %v8537_v9 = vrot.slane %v17380_v36, 2  ;;  %v9493_v38 = vshrl.u32 %v18525_v22, 16 }
 0x274   : > { %v2783_v5 = vsel %vm2712_vm5, %v2780_v2, %v2782_v43 }
 0x276   : > { %15127 = vmatmul.mubr.msk.bf16.gmra.mrb[28].mxu1 %vm1204_vm2, %v2745_v42  ;;  %v2766_v42 = vrot.slane %v18454_v52, 1  ;;  %v2768_v52 = vrot.slane %v18459_v55, 1 }
 0x277   : > { %15130 = vmatprep.mubr.msk.bf16.mxu1 %vm1204_vm2, %v2747_v53  ;;  %v17373_v53 = vld [vmem:[%s17741_s25 + $0x208] sm:$0xff]  }
 0x278   : > { %v8523_v34 = vrot.slane %v17373_v53, 2  ;;  %v2769_v54 = vsel %vm2712_vm5, %v2766_v42, %v2768_v52 }
 0x279   : > { %15747 = vmatmul.mubr.msk.bf16.gmra.mrb[96].mxu0 %vm1204_vm2, %v8502_v60  ;;  %v2767_v60 = vsel %vm2712_vm5, %v2764_v33, %v2766_v42  ;;  %v2784_v42 = vrot.slane %v18537_v12, 1  ;;  %v20745_v12 = vld [vmem:[#allocation5_spill] sm:$0xff] }
 0x27a   : > { %15750 = vmatprep.mubr.msk.bf16.mxu0 %vm1204_vm2, %v8504_v41  ;;  %v2770_v41 = vrot.slane %v18470_v6, 1  ;;  %v8524_v57 = vsel %vm6862_vm4, %v8521_v35, %v8523_v34  ;;  %v2772_v6 = vrot.slane %v18475_v7, 1  ;;  %v2786_v35 = vrot.slane %v18563_v18, 1 }
 0x27b   : > { %v2785_v22 = vsel %vm2712_vm5, %v2782_v43, %v2784_v42 }
 0x27c   : > { %v2771_v37 = vsel %vm2712_vm5, %v2768_v52, %v2770_v41  ;;  %v2773_v10 = vsel %vm2712_vm5, %v2770_v41, %v2772_v6  ;;  %v2775_v48 = vsel %vm2712_vm5, %v2772_v6, %v2774_v31  ;;  %v9505_v41 = vshll.u32 %v20745_v12, 16 }
 0x27e   : > { %15131 = vmatmul.mubr.msk.bf16.gmra.mrb[32].mxu1 %vm1204_vm2, %v2749_v25  ;;  %v17375_v25 = vld [vmem:[%s17741_s25 + $0x218] sm:$0xff]  }
 0x27f   : > { %15134 = vmatprep.mubr.msk.bf16.mxu1 %vm1204_vm2, %v2751_v51  ;;  %v8525_v51 = vrot.slane %v17374_v14, 2  ;;  %v8527_v55 = vrot.slane %v17375_v25, 2  ;;  %v9502_v14 = vshrl.u32 %v20745_v12, 16  ;;  %v20746_v25 = vld [vmem:[#allocation6_spill] sm:$0xff] }
 0x280   : > { %v9511_v18 = vshrl.u32 %v20746_v25, 16 }
 0x281   : > { %15751 = vmatmul.mubr.msk.bf16.gmra.mrb[100].mxu0 %vm1204_vm2, %v8506_v61  ;;  %v8526_v47 = vsel %vm6862_vm4, %v8523_v34, %v8525_v51  ;;  %v17376_v61 = vld [vmem:[%s17741_s25 + $0x220] sm:$0xff]   ;;  %v8528_v58 = vsel %vm6862_vm4, %v8525_v51, %v8527_v55  ;;  %v9498_v34 = vrot.slane %v9496_v24, 3  ;;  %v20747_v51 = vld [vmem:[#allocation7_spill] sm:$0xff]  ;;  %v9504_v6 = vrot.slane %v9502_v14, 2  ;;  %v20758_v14 = vld [vmem:[#allocation17_spill] sm:$0xff] }
 0x282   : > { %15754 = vmatprep.mubr.msk.bf16.mxu0 %vm1204_vm2, %v8508_v63  ;;  %v17377_v63 = vld [vmem:[%s17741_s25 + $0x228] sm:$0xff]  }
 0x283   : > { %v8531_v7 = vrot.slane %v17377_v63, 2 }
 0x286   : > { %15135 = vmatmul.mubr.msk.bf16.gmra.mrb[36].mxu1 %vm1204_vm2, %v2753_v62  ;;  %v8529_v62 = vrot.slane %v17376_v61, 2  ;;  %v20748_v61 = vld [vmem:[#allocation10_spill] sm:$0xff] }
 0x287   : > { %15138 = vmatprep.mubr.msk.bf16.mxu1 %vm1204_vm2, %v2755_v16  ;;  %v2776_v16 = vrot.slane %v18493_v39, 1  ;;  %v9467_v39 = vshrl.u32 %v18500_v46, 16  ;;  %v9477_v46 = vrot.slane %v9475_v4, 2  ;;  %v20752_v4 = vld [vmem:[#allocation14_spill] sm:$0xff] }
 0x288   : > { %v8530_v29 = vsel %vm6862_vm4, %v8527_v55, %v8529_v62  ;;  %v8532_v0 = vsel %vm6862_vm4, %v8529_v62, %v8531_v7 }
 0x289   : > { %15755 = vmatmul.mubr.msk.bf16.gmra.mrb[104].mxu0 %vm1204_vm2, %v8510_v13  ;;  %v17379_v13 = vld [vmem:[%s17741_s25 + $0x238] sm:$0xff]   ;;  %v2777_v8 = vsel %vm2712_vm5, %v2774_v31, %v2776_v16  ;;  %v2779_v19 = vsel %vm2712_vm5, %v2776_v16, %v2778_v1  ;;  %v2790_v31 = vrot.slane %v20748_v61, 1 }
 0x28a   : > { %15758 = vmatprep.mubr.msk.bf16.mxu0 %vm1204_vm2, %v8512_v3  ;;  %v8533_v3 = vrot.slane %v17378_v49, 2 }
 0x28c   : > { %v8534_v28 = vsel %vm6862_vm4, %v8531_v7, %v8533_v3 }
 0x28e   : > { %15139 = vmatmul.mubr.msk.bf16.gmra.mrb[40].mxu1 %vm1204_vm2, %v2757_v20  ;;  %v8535_v20 = vrot.slane %v17379_v13, 2 }
 0x28f   : > { %15142 = vmatprep.mubr.msk.bf16.mxu1 %vm1204_vm2, %v2759_v40  ;;  %v9478_v40 = vshll.u32 %v18503_v56, 16  ;;  %v2781_v56 = vsel %vm2712_vm5, %v2778_v1, %v2780_v2 }
 0x291   : > { %15759 = vmatmul.mubr.msk.bf16.gmra.mrb[108].mxu0 %vm1204_vm2, %v8514_v21  ;;  %v8536_v21 = vsel %vm6862_vm4, %v8533_v3, %v8535_v20  ;;  %v20751_v3 = vld [vmem:[#allocation11_spill] sm:$0xff] }
 0x292   : > { %15762 = vmatprep.mubr.msk.bf16.mxu0 %vm1204_vm2, %v8516_v11  ;;  %v9469_v11 = vrot.slane %v9467_v39, 2 }
 0x294   : > { %v9473_v33 = vor.u32 %v9472_v26, %v9469_v11  ;;  %v20753_v26 = vld [vmem:[#allocation12_spill] sm:$0xff] }
 0x296   : > { %15143 = vmatmul.mubr.msk.bf16.gmra.mrb[44].mxu1 %vm1204_vm2, %v2761_v23  ;;  %v9480_v23 = vrot.slane %v9478_v40, 3  ;;  %v2794_v40 = vrot.slane %v20752_v4, 1 }
 0x297   : > { %15146 = vmatprep.mubr.msk.bf16.mxu1 %vm1204_vm2, %v2763_v30  ;;  %v9484_v30 = vshrl.u32 %v18521_v15, 16 }
 0x299   : > { %15763 = vmatmul.mubr.msk.bf16.gmra.mrb[112].mxu0 %vm1204_vm2, %v8518_v59  ;;  %v9481_v59 = vor.u32 %v9480_v23, %v9477_v46  ;;  %v9486_v53 = vrot.slane %v9484_v30, 2  ;;  %v9538_v46 = vshrl.u32 %v20753_v26, 16  ;;  %v9541_v23 = vshll.u32 %v20753_v26, 16  ;;  %v20766_v26 = vld [vmem:[#allocation25_spill] sm:$0xff] }
 0x29a   : > { %15766 = vmatprep.mubr.msk.bf16.mxu0 %vm1204_vm2, %v8520_v50  ;;  %v8538_v50 = vsel %vm6862_vm4, %v8535_v20, %v8537_v9  ;;  %v20754_v9 = vld [vmem:[#allocation13_spill] sm:$0xff] }
 0x29b   : > { %v9482_v15 = vsel %vm9465_vm6, %v9473_v33, %v9481_v59  ;;  %v9550_v30 = vshll.u32 %v20754_v9, 16  ;;  %v9543_v24 = vrot.slane %v9541_v23, 3  ;;  %v9604_v23 = vshll.u32 %v20766_v26, 16 }
 0x29e   : > { %15147 = vmatmul.mubr.msk.bf16.gmra.mrb[48].mxu1 %vm1204_vm2, %v2765_v27  ;;  %v9489_v27 = vrot.slane %v9487_v17, 3  ;;  %v20755_v17 = vld [vmem:[#allocation15_spill] sm:$0xff] }
 0x29f   : > { %15150 = vmatprep.mubr.msk.bf16.mxu1 %vm1204_vm2, %v2767_v60  ;;  %v9495_v60 = vrot.slane %v9493_v38, 2  ;;  %v2796_v33 = vrot.slane %v20755_v17, 1  ;;  %v9540_v38 = vrot.slane %v9538_v46, 2  ;;  %v9601_v46 = vshrl.u32 %v20766_v26, 16 }
 0x2a0   : > { %v9490_v52 = vor.u32 %v9489_v27, %v9486_v53 }
 0x2a1   : > { %15767 = vmatmul.mubr.msk.bf16.gmra.mrb[116].mxu0 %vm1204_vm2, %v8522_v45  ;;  %v2787_v45 = vsel %vm2712_vm5, %v2784_v42, %v2786_v35  ;;  %v20756_v42 = vld [vmem:[#allocation18_spill] sm:$0xff] }
 0x2a2   : > { %15770 = vmatprep.mubr.msk.bf16.mxu0 %vm1204_vm2, %v8524_v57  ;;  %v9499_v57 = vor.u32 %v9498_v34, %v9495_v60  ;;  %v9491_v55 = vsel %vm9465_vm6, %v9481_v59, %v9490_v52  ;;  %v9544_v60 = vor.u32 %v9543_v24, %v9540_v38  ;;  %v9603_v24 = vrot.slane %v9601_v46, 2 }
 0x2a4   : > { %v9500_v63 = vsel %vm9465_vm6, %v9490_v52, %v9499_v57 }
 0x2a6   : > { %15151 = vmatmul.mubr.msk.bf16.gmra.mrb[52].mxu1 %vm1204_vm2, %v2769_v54  ;;  %v9514_v54 = vshll.u32 %v20746_v25, 16  ;;  %v20759_v25 = vld [vmem:[#allocation19_spill] sm:$0xff] }
 0x2a7   : > { %15154 = vmatprep.mubr.msk.bf16.mxu1 %vm1204_vm2, %v2771_v37  ;;  %v2788_v37 = vrot.slane %v20747_v51, 1 }
 0x2a8   : > { %v9516_v62 = vrot.slane %v9514_v54, 3 }
 0x2a9   : > { %15771 = vmatmul.mubr.msk.bf16.gmra.mrb[120].mxu0 %vm1204_vm2, %v8526_v47  ;;  %v9507_v47 = vrot.slane %v9505_v41, 3  ;;  %v2791_v16 = vsel %vm2712_vm5, %v2788_v37, %v2790_v31  ;;  %v9565_v41 = vshrl.u32 %v20758_v14, 16 }
 0x2aa   : > { %15774 = vmatprep.mubr.msk.bf16.mxu0 %vm1204_vm2, %v8528_v58  ;;  %v11355_v58 = vsel %vm1409_vm0, %v18846_v44, 0  ;;  %v20750_v44 = vld [vmem:[#allocation9_spill] sm:$0xff] }
 0x2ab   : > { %v9508_v7 = vor.u32 %v9507_v47, %v9504_v6  ;;  %v9567_v61 = vrot.slane %v9565_v41, 2 }
 0x2ad   : > { %v9509_v20 = vsel %vm9465_vm6, %v9499_v57, %v9508_v7  ;;  %v9568_v57 = vshll.u32 %v20758_v14, 16 }
 0x2ae   : > { %15155 = vmatmul.mubr.msk.bf16.gmra.mrb[56].mxu1 %vm1204_vm2, %v2773_v10  ;;  %v9513_v10 = vrot.slane %v9511_v18, 2  ;;  %v2800_v18 = vrot.slane %v20759_v25, 1 }
 0x2af   : > { %15158 = vmatprep.mubr.msk.bf16.mxu1 %vm1204_vm2, %v2775_v48  ;;  %v2789_v48 = vsel %vm2712_vm5, %v2786_v35, %v2788_v37  ;;  %v9552_v35 = vrot.slane %v9550_v30, 3 }
 0x2b0   : > { %v9517_v13 = vor.u32 %v9516_v62, %v9513_v10  ;;  %v20761_v62 = vld [vmem:[#allocation20_spill] sm:$0xff] }
 0x2b1   : > { %15775 = vmatmul.mubr.msk.bf16.gmra.mrb[124].mxu0 %vm1204_vm2, %v8530_v29  ;;  %v20749_v29 = vld [vmem:[#allocation8_spill] sm:$0xff] }
 0x2b2   : > { %15778 = vmatprep.mubr.msk.bf16.mxu0 %vm1204_vm2, %v8532_v0  ;;  %v9520_v49 = vshrl.u32 %v20749_v29, 16  ;;  %v9523_v1 = vshll.u32 %v20749_v29, 16  ;;  %v9529_v0 = vshrl.u32 %v20750_v44, 16  ;;  %v9518_v2 = vsel %vm9465_vm6, %v9508_v7, %v9517_v13  ;;  %v20762_v29 = vld [vmem:[#allocation21_spill] sm:$0xff] }
 0x2b3   : > { %v9577_v7 = vshll.u32 %v20761_v62, 16 }
 0x2b4   : > { %v9522_v39 = vrot.slane %v9520_v49, 2  ;;  %v9525_v32 = vrot.slane %v9523_v1, 3  ;;  %v9583_v49 = vshrl.u32 %v20762_v29, 16  ;;  %v9586_v1 = vshll.u32 %v20762_v29, 16 }
 0x2b6   : > { %15159 = vmatmul.mubr.msk.bf16.gmra.mrb[60].mxu1 %vm1204_vm2, %v2777_v8  ;;  %v9532_v8 = vshll.u32 %v20750_v44, 16  ;;  %v9526_v43 = vor.u32 %v9525_v32, %v9522_v39  ;;  %v9585_v32 = vrot.slane %v9583_v49, 2  ;;  %v9588_v4 = vrot.slane %v9586_v1, 3 }
 0x2b7   : > { %15162 = vmatprep.mubr.msk.bf16.mxu1 %vm1204_vm2, %v2779_v19  ;;  %v2792_v19 = vrot.slane %v20751_v3, 1  ;;  %v9579_v3 = vrot.slane %v9577_v7, 3 }
 0x2b8   : > { %v9527_v59 = vsel %vm9465_vm6, %v9517_v13, %v9526_v43  ;;  %v20763_v13 = vld [vmem:[#allocation23_spill] sm:$0xff] }
 0x2b9   : > { %15779 = vmatmul.mubr.msk.bf16.gmra.mrb[128].mxu0 %vm1204_vm2, %v8534_v28  ;;  %v9531_v28 = vrot.slane %v9529_v0, 2  ;;  %v2793_v36 = vsel %vm2712_vm5, %v2790_v31, %v2792_v19  ;;  %v2795_v11 = vsel %vm2712_vm5, %v2792_v19, %v2794_v40  ;;  %v9570_v31 = vrot.slane %v9568_v57, 3  ;;  %v20764_v19 = vld [vmem:[#allocation26_spill] sm:$0xff] }
 0x2ba   : > { %15782 = vmatprep.mubr.msk.bf16.mxu0 %vm1204_vm2, %v8536_v21  ;;  %v9534_v21 = vrot.slane %v9532_v8, 3  ;;  %v2804_v44 = vrot.slane %v20763_v13, 1 }
 0x2be   : > { %15163 = vmatmul.mubr.msk.bf16.gmra.mrb[64].mxu1 %vm1204_vm2, %v2781_v56  ;;  %v9535_v56 = vor.u32 %v9534_v21, %v9531_v28  ;;  %v20765_v21 = vld [vmem:[#allocation24_spill] sm:$0xff] }
 0x2bf   : > { %15166 = vmatprep.mubr.msk.bf16.mxu1 %vm1204_vm2, %v2783_v5  ;;  %v9547_v5 = vshrl.u32 %v20754_v9, 16 }
 0x2c0   : > { %v9536_v53 = vsel %vm9465_vm6, %v9526_v43, %v9535_v56  ;;  %v9545_v54 = vsel %vm9465_vm6, %v9535_v56, %v9544_v60  ;;  %v9595_v43 = vshll.u32 %v20765_v21, 16  ;;  %v20767_v56 = vld [vmem:[#allocation27_spill] sm:$0xff] }
 0x2c1   : > { %15783 = vmatmul.mubr.msk.bf16.gmra.mrb[132].mxu0 %vm1204_vm2, %v8538_v50  ;;  %v2798_v50 = vrot.slane %v20756_v42, 1  ;;  %v9549_v27 = vrot.slane %v9547_v5, 2  ;;  %v2808_v9 = vrot.slane %v20767_v56, 1  ;;  %v9606_v42 = vrot.slane %v9604_v23, 3 }
 0x2c2   : > { %15788 = vmatprep.mubr.msk.bf16.mxu0 %vm1204_vm2, %v9482_v15  ;;  %v2797_v15 = vsel %vm2712_vm5, %v2794_v40, %v2796_v33  ;;  %v9597_v17 = vrot.slane %v9595_v43, 3 }
 0x2c3   : > { %v2799_v34 = vsel %vm2712_vm5, %v2796_v33, %v2798_v50  ;;  %v9553_v12 = vor.u32 %v9552_v35, %v9549_v27  ;;  %v20768_v33 = vld [vmem:[#allocation30_spill] sm:$0xff]  ;;  %v20769_v35 = vld [vmem:[#allocation28_spill] sm:$0xff] }
 0x2c5   : > { %v9554_v47 = vsel %vm9465_vm6, %v9544_v60, %v9553_v12  ;;  %v9613_v60 = vshll.u32 %v20769_v35, 16 }
 0x2c6   : > { %15167 = vmatmul.mubr.msk.bf16.gmra.mrb[68].mxu1 %vm1204_vm2, %v2785_v22  ;;  %v20757_v22 = vld [vmem:[#allocation16_spill] sm:$0xff] }
 0x2c7   : > { %15170 = vmatprep.mubr.msk.bf16.mxu1 %vm1204_vm2, %v2787_v45  ;;  %v9556_v52 = vshrl.u32 %v20757_v22, 16  ;;  %v9559_v45 = vshll.u32 %v20757_v22, 16  ;;  %v20770_v22 = vld [vmem:[#allocation29_spill] sm:$0xff]  ;;  %v9615_v25 = vrot.slane %v9613_v60, 3 }
 0x2c9   : > { %15789 = vmatmul.mubr.msk.bf16.vlgmr.msra.gmra.mrb[0].mxu0 %vm1204_vm2, %v9491_v55  ;;  %v9558_v51 = vrot.slane %v9556_v52, 2  ;;  %v9561_v37 = vrot.slane %v9559_v45, 3  ;;  %v20760_v55 = vld [vmem:[#allocation22_spill] sm:$0xff]  ;;  %v9619_v52 = vshrl.u32 %v20770_v22, 16  ;;  %v9622_v45 = vshll.u32 %v20770_v22, 16 }
 0x2ca   : > { %15925 = vmatpush3.bf16.msra.mxu0 %v11355_v58  ;;  %15792 = vmatprep.mubr.msk.bf16.mxu0 %vm1204_vm2, %v9500_v63  ;;  %v2802_v6 = vrot.slane %v20760_v55, 1  ;;  %v2801_v58 = vsel %vm2712_vm5, %v2798_v50, %v2800_v18 }
 0x2cb   : > { %v9562_v63 = vor.u32 %v9561_v37, %v9558_v51  ;;  %v9621_v37 = vrot.slane %v9619_v52, 2  ;;  %v9624_v55 = vrot.slane %v9622_v45, 3 }
 0x2cc   : > { %v2803_v10 = vsel %vm2712_vm5, %v2800_v18, %v2802_v6  ;;  %v2805_v40 = vsel %vm2712_vm5, %v2802_v6, %v2804_v44  ;;  %v20772_v18 = vld [vmem:[#allocation34_spill] sm:$0xff] }
 0x2cd   : > { %v9563_v0 = vsel %vm9465_vm6, %v9553_v12, %v9562_v63  ;;  %v20771_v12 = vld [vmem:[#allocation31_spill] sm:$0xff] }
 0x2ce   : > { %15171 = vmatmul.mubr.msk.bf16.gmra.mrb[72].mxu1 %vm1204_vm2, %v2789_v48  ;;  %v9574_v48 = vshrl.u32 %v20761_v62, 16  ;;  %v2812_v14 = vrot.slane %v20771_v12, 1  ;;  %v20774_v62 = vld [vmem:[#allocation33_spill] sm:$0xff] }
 0x2cf   : > { %15174 = vmatprep.mubr.msk.bf16.mxu1 %vm1204_vm2, %v2791_v16  ;;  %v9571_v16 = vor.u32 %v9570_v31, %v9567_v61  ;;  %v20773_v31 = vld [vmem:[#allocation32_spill] sm:$0xff]  ;;  %v9640_v7 = vshll.u32 %v20774_v62, 16 }
 0x2d0   : > { %v9576_v8 = vrot.slane %v9574_v48, 2  ;;  %v9637_v48 = vshrl.u32 %v20774_v62, 16 }
 0x2d1   : > { %15793 = vmatmul.mubr.msk.bf16.gmra.mrb[4].mxu0 %vm1204_vm2, %v9509_v20  ;;  %v2806_v20 = vrot.slane %v20764_v19, 1  ;;  %v9572_v39 = vsel %vm9465_vm6, %v9562_v63, %v9571_v16  ;;  %v9631_v63 = vshll.u32 %v20773_v31, 16  ;;  %v9642_v19 = vrot.slane %v9640_v7, 3 }
 0x2d2   : > { %15796 = vmatprep.mubr.msk.bf16.mxu0 %vm1204_vm2, %v9518_v2  ;;  %v9580_v2 = vor.u32 %v9579_v3, %v9576_v8  ;;  %v9639_v3 = vrot.slane %v9637_v48, 2 }
 0x2d3   : > { %v2807_v28 = vsel %vm2712_vm5, %v2804_v44, %v2806_v20  ;;  %v2809_v50 = vsel %vm2712_vm5, %v2806_v20, %v2808_v9  ;;  %v9633_v13 = vrot.slane %v9631_v63, 3  ;;  %v20776_v44 = vld [vmem:[#allocation36_spill] sm:$0xff] }
 0x2d4   : > { %v9581_v5 = vsel %vm9465_vm6, %v9571_v16, %v9580_v2  ;;  %v20775_v16 = vld [vmem:[#allocation35_spill] sm:$0xff] }
 0x2d5   : > { %v2816_v29 = vrot.slane %v20775_v16, 1 }
 0x2d6   : > { %15175 = vmatmul.mubr.msk.bf16.gmra.mrb[76].mxu1 %vm1204_vm2, %v2793_v36  ;;  %v9592_v36 = vshrl.u32 %v20765_v21, 16  ;;  %v17479_v21 = vld [vmem:[%s17741_s25 + $0xc8] sm:$0xff]  }
 0x2d7   : > { %15178 = vmatprep.mubr.msk.bf16.mxu1 %vm1204_vm2, %v2795_v11  ;;  %v9589_v11 = vor.u32 %v9588_v4, %v9585_v32  ;;  %v17478_v4 = vld [vmem:[%s17741_s25 + $0xc0] sm:$0xff]   ;;  %v9658_v43 = vshll.u32 %v17479_v21, 16 }
 0x2d8   : > { %v9594_v30 = vrot.slane %v9592_v36, 2  ;;  %v9655_v36 = vshrl.u32 %v17479_v21, 16 }
 0x2d9   : > { %15797 = vmatmul.mubr.msk.bf16.gmra.mrb[8].mxu0 %vm1204_vm2, %v9527_v59  ;;  %v2810_v59 = vrot.slane %v20768_v33, 1  ;;  %v9590_v38 = vsel %vm9465_vm6, %v9580_v2, %v9589_v11  ;;  %v9649_v2 = vshll.u32 %v17478_v4, 16  ;;  %v9660_v33 = vrot.slane %v9658_v43, 3 }
 0x2da   : > { %15800 = vmatprep.mubr.msk.bf16.mxu0 %vm1204_vm2, %v9536_v53  ;;  %v9598_v53 = vor.u32 %v9597_v17, %v9594_v30  ;;  %v9657_v17 = vrot.slane %v9655_v36, 2 }
 0x2db   : > { %v2811_v27 = vsel %vm2712_vm5, %v2808_v9, %v2810_v59  ;;  %v2813_v6 = vsel %vm2712_vm5, %v2810_v59, %v2812_v14  ;;  %v9651_v56 = vrot.slane %v9649_v2, 3  ;;  %v20777_v9 = vld [vmem:[#allocation37_spill] sm:$0xff] }
 0x2dc   : > { %v9599_v41 = vsel %vm9465_vm6, %v9589_v11, %v9598_v53  ;;  %v17480_v11 = vld [vmem:[%s17741_s25 + $0x1b0] sm:$0xff]  }
 0x2dd   : > { %v2820_v26 = vrot.slane %v17480_v11, 1 }
 0x2de   : > { %15179 = vmatmul.mubr.msk.bf16.gmra.mrb[80].mxu1 %vm1204_vm2, %v2797_v15  ;;  %v9610_v15 = vshrl.u32 %v20769_v35, 16  ;;  %v17482_v35 = vld [vmem:[%s17741_s25 + $0xd8] sm:$0xff]  }
 0x2df   : > { %15182 = vmatprep.mubr.msk.bf16.mxu1 %vm1204_vm2, %v2799_v34  ;;  %v9607_v34 = vor.u32 %v9606_v42, %v9603_v24  ;;  %v17481_v42 = vld [vmem:[%s17741_s25 + $0xd0] sm:$0xff]   ;;  %v9676_v60 = vshll.u32 %v17482_v35, 16 }
 0x2e0   : > { %v9612_v57 = vrot.slane %v9610_v15, 2  ;;  %v9673_v15 = vshrl.u32 %v17482_v35, 16 }
 0x2e1   : > { %15801 = vmatmul.mubr.msk.bf16.gmra.mrb[12].mxu0 %vm1204_vm2, %v9545_v54  ;;  %v2814_v54 = vrot.slane %v20772_v18, 1  ;;  %v9608_v51 = vsel %vm9465_vm6, %v9598_v53, %v9607_v34  ;;  %v9667_v53 = vshll.u32 %v17481_v42, 16  ;;  %v9678_v18 = vrot.slane %v9676_v60, 3 }
 0x2e2   : > { %15804 = vmatprep.mubr.msk.bf16.mxu0 %vm1204_vm2, %v9554_v47  ;;  %v9616_v47 = vor.u32 %v9615_v25, %v9612_v57  ;;  %v9675_v25 = vrot.slane %v9673_v15, 2 }
 0x2e3   : > { %v2815_v61 = vsel %vm2712_vm5, %v2812_v14, %v2814_v54  ;;  %v2817_v20 = vsel %vm2712_vm5, %v2814_v54, %v2816_v29  ;;  %v9669_v12 = vrot.slane %v9667_v53, 3  ;;  %v17484_v14 = vld [vmem:[%s17741_s25 + $0x1c8] sm:$0xff]  }
 0x2e4   : > { %v9617_v49 = vsel %vm9465_vm6, %v9607_v34, %v9616_v47  ;;  %v17483_v34 = vld [vmem:[%s17741_s25 + $0x1c0] sm:$0xff]  }
 0x2e5   : > { %v2824_v22 = vrot.slane %v17483_v34, 1 }
 0x2e6   : > { %15183 = vmatmul.mubr.msk.bf16.gmra.mrb[84].mxu1 %vm1204_vm2, %v2801_v58  ;;  %v9628_v58 = vshrl.u32 %v20773_v31, 16  ;;  %v17486_v31 = vld [vmem:[%s17741_s25 + $0xe8] sm:$0xff]  }
 0x2e7   : > { %15186 = vmatprep.mubr.msk.bf16.mxu1 %vm1204_vm2, %v2803_v10  ;;  %v9625_v10 = vor.u32 %v9624_v55, %v9621_v37  ;;  %v17485_v55 = vld [vmem:[%s17741_s25 + $0xe0] sm:$0xff]   ;;  %v9694_v63 = vshll.u32 %v17486_v31, 16 }
 0x2e8   : > { %v9630_v1 = vrot.slane %v9628_v58, 2  ;;  %v9691_v58 = vshrl.u32 %v17486_v31, 16 }
 0x2e9   : > { %15805 = vmatmul.mubr.msk.bf16.gmra.mrb[16].mxu0 %vm1204_vm2, %v9563_v0  ;;  %v2818_v0 = vrot.slane %v20776_v44, 1  ;;  %v9626_v8 = vsel %vm9465_vm6, %v9616_v47, %v9625_v10  ;;  %v9685_v47 = vshll.u32 %v17485_v55, 16  ;;  %v9696_v44 = vrot.slane %v9694_v63, 3 }
 0x2ea   : > { %15808 = vmatprep.mubr.msk.bf16.mxu0 %vm1204_vm2, %v9572_v39  ;;  %v9634_v39 = vor.u32 %v9633_v13, %v9630_v1  ;;  %v9693_v13 = vrot.slane %v9691_v58, 2 }
 0x2eb   : > { %v2819_v32 = vsel %vm2712_vm5, %v2816_v29, %v2818_v0  ;;  %v2821_v59 = vsel %vm2712_vm5, %v2818_v0, %v2820_v26  ;;  %v9687_v16 = vrot.slane %v9685_v47, 3  ;;  %v17488_v29 = vld [vmem:[%s17741_s25 + $0x1d8] sm:$0xff]  }
 0x2ec   : > { %v9635_v46 = vsel %vm9465_vm6, %v9625_v10, %v9634_v39  ;;  %v17487_v10 = vld [vmem:[%s17741_s25 + $0x1d0] sm:$0xff]  }
 0x2ed   : > { %v2828_v62 = vrot.slane %v17487_v10, 1 }
 0x2ee   : > { %15187 = vmatmul.mubr.msk.bf16.gmra.mrb[88].mxu1 %vm1204_vm2, %v2805_v40  ;;  %v9646_v40 = vshrl.u32 %v17478_v4, 16  ;;  %v17490_v4 = vld [vmem:[%s17741_s25 + $0xf8] sm:$0xff]  }
 0x2ef   : > { %15190 = vmatprep.mubr.msk.bf16.mxu1 %vm1204_vm2, %v2807_v28  ;;  %v9643_v28 = vor.u32 %v9642_v19, %v9639_v3  ;;  %v17489_v19 = vld [vmem:[%s17741_s25 + $0xf0] sm:$0xff]   ;;  %v9712_v2 = vshll.u32 %v17490_v4, 16 }
 0x2f0   : > { %v9648_v23 = vrot.slane %v9646_v40, 2  ;;  %v9709_v40 = vshrl.u32 %v17490_v4, 16 }
 0x2f1   : > { %15809 = vmatmul.mubr.msk.bf16.gmra.mrb[20].mxu0 %vm1204_vm2, %v9581_v5  ;;  %v2822_v5 = vrot.slane %v20777_v9, 1  ;;  %v9644_v30 = vsel %vm9465_vm6, %v9634_v39, %v9643_v28  ;;  %v9703_v39 = vshll.u32 %v17489_v19, 16  ;;  %v9714_v9 = vrot.slane %v9712_v2, 3 }
 0x2f2   : > { %15812 = vmatprep.mubr.msk.bf16.mxu0 %vm1204_vm2, %v9590_v38  ;;  %v9652_v38 = vor.u32 %v9651_v56, %v9648_v23  ;;  %v9711_v56 = vrot.slane %v9709_v40, 2 }
 0x2f3   : > { %v2823_v24 = vsel %vm2712_vm5, %v2820_v26, %v2822_v5  ;;  %v2825_v54 = vsel %vm2712_vm5, %v2822_v5, %v2824_v22  ;;  %v9705_v11 = vrot.slane %v9703_v39, 3  ;;  %v17492_v26 = vld [vmem:[%s17741_s25 + $0x1e8] sm:$0xff]  }
 0x2f4   : > { %v9653_v52 = vsel %vm9465_vm6, %v9643_v28, %v9652_v38  ;;  %v17491_v28 = vld [vmem:[%s17741_s25 + $0x1e0] sm:$0xff]  }
 0x2f5   : > { %v2832_v21 = vrot.slane %v17491_v28, 1 }
 0x2f6   : > { %15191 = vmatmul.mubr.msk.bf16.gmra.mrb[92].mxu1 %vm1204_vm2, %v2809_v50  ;;  %v9664_v50 = vshrl.u32 %v17481_v42, 16  ;;  %v17494_v42 = vld [vmem:[%s17741_s25 + $0x108] sm:$0xff]  }
 0x2f7   : > { %15194 = vmatprep.mubr.msk.bf16.mxu1 %vm1204_vm2, %v2811_v27  ;;  %v9661_v27 = vor.u32 %v9660_v33, %v9657_v17  ;;  %v17493_v33 = vld [vmem:[%s17741_s25 + $0x100] sm:$0xff]   ;;  %v9730_v53 = vshll.u32 %v17494_v42, 16 }
 0x2f8   : > { %v9666_v45 = vrot.slane %v9664_v50, 2  ;;  %v9727_v50 = vshrl.u32 %v17494_v42, 16  ;;  %v17507_v42 = vld [vmem:[%s17741_s25 + $0x220] ss:$0 sps:$4 sm:$0x11]  }
 0x2f9   : > { %15813 = vmatmul.mubr.msk.bf16.gmra.mrb[24].mxu0 %vm1204_vm2, %v9599_v41  ;;  %v2826_v41 = vrot.slane %v17484_v14, 1  ;;  %v9662_v57 = vsel %vm9465_vm6, %v9652_v38, %v9661_v27  ;;  %v9721_v38 = vshll.u32 %v17493_v33, 16  ;;  %v9732_v14 = vrot.slane %v9730_v53, 3 }
 0x2fa   : > { %15816 = vmatprep.mubr.msk.bf16.mxu0 %vm1204_vm2, %v9608_v51  ;;  %v9670_v51 = vor.u32 %v9669_v12, %v9666_v45  ;;  %v9729_v12 = vrot.slane %v9727_v50, 2  ;;  %v2848_v50 = vrot.slane %v17507_v42, 1 }
 0x2fb   : > { %v2827_v37 = vsel %vm2712_vm5, %v2824_v22, %v2826_v41  ;;  %v2829_v0 = vsel %vm2712_vm5, %v2826_v41, %v2828_v62  ;;  %v9723_v34 = vrot.slane %v9721_v38, 3  ;;  %v17496_v22 = vld [vmem:[%s17741_s25 + $0x1f8] sm:$0xff]  }
 0x2fc   : > { %v9671_v48 = vsel %vm9465_vm6, %v9661_v27, %v9670_v51  ;;  %v17495_v27 = vld [vmem:[%s17741_s25 + $0x1f0] sm:$0xff]  }
 0x2fd   : > { %v2836_v35 = vrot.slane %v17495_v27, 1 }
 0x2fe   : > { %15195 = vmatmul.mubr.msk.bf16.gmra.mrb[96].mxu1 %vm1204_vm2, %v2813_v6  ;;  %v9682_v6 = vshrl.u32 %v17485_v55, 16  ;;  %v17498_v55 = vld [vmem:[%s17741_s25 + $0x118] sm:$0xff]  }
 0x2ff   : > { %15198 = vmatprep.mubr.msk.bf16.mxu1 %vm1204_vm2, %v2815_v61  ;;  %v9679_v61 = vor.u32 %v9678_v18, %v9675_v25  ;;  %v17497_v18 = vld [vmem:[%s17741_s25 + $0x110] sm:$0xff]   ;;  %v9748_v47 = vshll.u32 %v17498_v55, 16 }
 0x300   : > { %v9684_v7 = vrot.slane %v9682_v6, 2  ;;  %v9745_v6 = vshrl.u32 %v17498_v55, 16 }
 0x301   : > { %15817 = vmatmul.mubr.msk.bf16.gmra.mrb[28].mxu0 %vm1204_vm2, %v9617_v49  ;;  %v2830_v49 = vrot.slane %v17488_v29, 1  ;;  %v9680_v1 = vsel %vm9465_vm6, %v9670_v51, %v9679_v61  ;;  %v9739_v51 = vshll.u32 %v17497_v18, 16  ;;  %v9750_v29 = vrot.slane %v9748_v47, 3 }
 0x302   : > { %15820 = vmatprep.mubr.msk.bf16.mxu0 %vm1204_vm2, %v9626_v8  ;;  %v9688_v8 = vor.u32 %v9687_v16, %v9684_v7  ;;  %v9747_v16 = vrot.slane %v9745_v6, 2  ;;  %v17511_v6 = vld [vmem:[%s17741_s25 + $0x20] sm:$0xff]  }
 0x303   : > { %v2831_v3 = vsel %vm2712_vm5, %v2828_v62, %v2830_v49  ;;  %v2833_v5 = vsel %vm2712_vm5, %v2830_v49, %v2832_v21  ;;  %v9741_v10 = vrot.slane %v9739_v51, 3  ;;  %v17500_v62 = vld [vmem:[%s17741_s25 + $0x208] sm:$0xff]   ;;  %v4255_v47 = vrot.slane %v17511_v6, 1 }
 0x304   : > { %v9689_v36 = vsel %vm9465_vm6, %v9679_v61, %v9688_v8  ;;  %v17499_v61 = vld [vmem:[%s17741_s25 + $0x200] sm:$0xff]   ;;  %v17510_v51 = vld [vmem:[%s17741_s25 + $0x148] sm:$0xff]  }
 0x305   : > { %v2840_v31 = vrot.slane %v17499_v61, 1  ;;  %v9802_v55 = vshll.u32 %v17510_v51, 16 }
 0x306   : > { %15199 = vmatmul.mubr.msk.bf16.gmra.mrb[100].mxu1 %vm1204_vm2, %v2817_v20  ;;  %v9700_v20 = vshrl.u32 %v17489_v19, 16  ;;  %v17502_v19 = vld [vmem:[%s17741_s25 + $0x128] sm:$0xff]  }
 0x307   : > { %15202 = vmatprep.mubr.msk.bf16.mxu1 %vm1204_vm2, %v2819_v32  ;;  %v9697_v32 = vor.u32 %v9696_v44, %v9693_v13  ;;  %v9766_v39 = vshll.u32 %v17502_v19, 16 }
 0x308   : > { %v9702_v43 = vrot.slane %v9700_v20, 2  ;;  %v9763_v20 = vshrl.u32 %v17502_v19, 16 }
 0x309   : > { %15821 = vmatmul.mubr.msk.bf16.gmra.mrb[32].mxu0 %vm1204_vm2, %v9635_v46  ;;  %v2834_v46 = vrot.slane %v17492_v26, 1  ;;  %v9698_v23 = vsel %vm9465_vm6, %v9688_v8, %v9697_v32  ;;  %v9768_v26 = vrot.slane %v9766_v39, 3  ;;  %v17515_v39 = vld [vmem:[%s17741_s25 + $0x30] sm:$0xff]  }
 0x30a   : > { %15824 = vmatprep.mubr.msk.bf16.mxu0 %vm1204_vm2, %v9644_v30  ;;  %v9706_v30 = vor.u32 %v9705_v11, %v9702_v43  ;;  %v9765_v11 = vrot.slane %v9763_v20, 2  ;;  %v20779_v20 = vld [vmem:[#allocation2_spill] sm:$0xff] }
 0x30b   : > { %v2835_v17 = vsel %vm2712_vm5, %v2832_v21, %v2834_v46  ;;  %v2837_v41 = vsel %vm2712_vm5, %v2834_v46, %v2836_v35  ;;  %v17504_v21 = vld [vmem:[%s17741_s25 + $0x218] sm:$0xff]  }
 0x30c   : > { %v9707_v15 = vsel %vm9465_vm6, %v9697_v32, %v9706_v30  ;;  %v17503_v32 = vld [vmem:[%s17741_s25 + $0x210] sm:$0xff]  }
 0x30d   : > { %v2844_v4 = vrot.slane %v17503_v32, 1  ;;  %v4259_v32 = vrot.slane %v17515_v39, 1 }
 0x30e   : > { %15203 = vmatmul.mubr.msk.bf16.gmra.mrb[104].mxu1 %vm1204_vm2, %v2821_v59  ;;  %v9718_v59 = vshrl.u32 %v17493_v33, 16  ;;  %v17506_v33 = vld [vmem:[%s17741_s25 + $0x138] sm:$0xff]  }
 0x30f   : > { %15206 = vmatprep.mubr.msk.bf16.mxu1 %vm1204_vm2, %v2823_v24  ;;  %v9715_v24 = vor.u32 %v9714_v9, %v9711_v56  ;;  %v17505_v9 = vld [vmem:[%s17741_s25 + $0x130] sm:$0xff]   ;;  %v9784_v38 = vshll.u32 %v17506_v33, 16 }
 0x310   : > { %v9720_v60 = vrot.slane %v9718_v59, 2  ;;  %v9781_v59 = vshrl.u32 %v17506_v33, 16 }
 0x311   : > { %15825 = vmatmul.mubr.msk.bf16.gmra.mrb[36].mxu0 %vm1204_vm2, %v9653_v52  ;;  %v2838_v52 = vrot.slane %v17496_v22, 1  ;;  %v9716_v45 = vsel %vm9465_vm6, %v9706_v30, %v9715_v24  ;;  %v9775_v30 = vshll.u32 %v17505_v9, 16 }
 0x312   : > { %15828 = vmatprep.mubr.msk.bf16.mxu0 %vm1204_vm2, %v9662_v57  ;;  %v9724_v57 = vor.u32 %v9723_v34, %v9720_v60  ;;  %v17508_v60 = vld [vmem:[%s17741_s25 + $0x18] sm:$0xff]  }
 0x313   : > { %v2839_v25 = vsel %vm2712_vm5, %v2836_v35, %v2838_v52  ;;  %v2841_v49 = vsel %vm2712_vm5, %v2838_v52, %v2840_v31  ;;  %v9777_v27 = vrot.slane %v9775_v30, 3  ;;  %v20778_v35 = vld [vmem:[#allocation3_spill] sm:$0xff]  ;;  %v4253_v34 = vrot.slane %v17508_v60, 1 }
 0x314   : > { %v9725_v58 = vsel %vm9465_vm6, %v9715_v24, %v9724_v57  ;;  %v9783_v52 = vrot.slane %v9781_v59, 2 }
 0x316   : > { %15207 = vmatmul.mubr.msk.bf16.gmra.mrb[108].mxu1 %vm1204_vm2, %v2825_v54  ;;  %v9736_v54 = vshrl.u32 %v17497_v18, 16 }
 0x317   : > { %15210 = vmatprep.mubr.msk.bf16.mxu1 %vm1204_vm2, %v2827_v37  ;;  %v9733_v37 = vor.u32 %v9732_v14, %v9729_v12 }
 0x318   : > { %v9738_v63 = vrot.slane %v9736_v54, 2 }
 0x319   : > { %15829 = vmatmul.mubr.msk.bf16.gmra.mrb[40].mxu0 %vm1204_vm2, %v9671_v48  ;;  %v2842_v48 = vrot.slane %v17500_v62, 1  ;;  %v9734_v7 = vsel %vm9465_vm6, %v9724_v57, %v9733_v37  ;;  %v17509_v57 = vld [vmem:[%s17741_s25 + $0x140] sm:$0xff]  }
 0x31a   : > { %15832 = vmatprep.mubr.msk.bf16.mxu0 %vm1204_vm2, %v9680_v1  ;;  %v17501_v1 = vld [vmem:[%s17741_s25 + $0x120] sm:$0xff]   ;;  %v9793_v18 = vshll.u32 %v17509_v57, 16 }
 0x31b   : > { %v9754_v13 = vshrl.u32 %v17501_v1, 16  ;;  %v9757_v44 = vshll.u32 %v17501_v1, 16  ;;  %v2843_v8 = vsel %vm2712_vm5, %v2840_v31, %v2842_v48  ;;  %v2845_v46 = vsel %vm2712_vm5, %v2842_v48, %v2844_v4  ;;  %v17513_v1 = vld [vmem:[%s17741_s25 + $0x150] sm:$0xff]  }
 0x31d   : > { %v9756_v40 = vrot.slane %v9754_v13, 2  ;;  %v9759_v2 = vrot.slane %v9757_v44, 3  ;;  %v9808_v13 = vshrl.u32 %v17513_v1, 16  ;;  %v9811_v44 = vshll.u32 %v17513_v1, 16 }
 0x31e   : > { %15211 = vmatmul.mubr.msk.bf16.gmra.mrb[112].mxu1 %vm1204_vm2, %v2829_v0  ;;  %v9742_v0 = vor.u32 %v9741_v10, %v9738_v63  ;;  %v17512_v63 = vld [vmem:[%s17741_s25 + $0x28] sm:$0xff]  }
 0x31f   : > { %15214 = vmatprep.mubr.msk.bf16.mxu1 %vm1204_vm2, %v2831_v3  ;;  %v9751_v3 = vor.u32 %v9750_v29, %v9747_v16  ;;  %v4257_v10 = vrot.slane %v17512_v63, 1  ;;  %v4256_v16 = vsel %vm2712_vm5, %v4253_v34, %v4255_v47 }
 0x320   : > { %v9743_v28 = vsel %vm9465_vm6, %v9733_v37, %v9742_v0  ;;  %v9799_v37 = vshrl.u32 %v17510_v51, 16  ;;  %v17523_v51 = vld [vmem:[%s17741_s25 + $0x50] sm:$0xff]  }
 0x321   : > { %15833 = vmatmul.mubr.msk.bf16.gmra.mrb[44].mxu0 %vm1204_vm2, %v9689_v36  ;;  %v2846_v36 = vrot.slane %v17504_v21, 1  ;;  %v9752_v43 = vsel %vm9465_vm6, %v9742_v0, %v9751_v3 }
 0x322   : > { %15836 = vmatprep.mubr.msk.bf16.mxu0 %vm1204_vm2, %v9698_v23  ;;  %v9760_v23 = vor.u32 %v9759_v2, %v9756_v40  ;;  %v9801_v48 = vrot.slane %v9799_v37, 2  ;;  %v9810_v40 = vrot.slane %v9808_v13, 2  ;;  %v9813_v2 = vrot.slane %v9811_v44, 3  ;;  %v17526_v13 = vld [vmem:[%s17741_s25 + $0x188] sm:$0xff]  }
 0x323   : > { %v2847_v56 = vsel %vm2712_vm5, %v2844_v4, %v2846_v36  ;;  %v2849_v12 = vsel %vm2712_vm5, %v2846_v36, %v2848_v50  ;;  %v4267_v37 = vrot.slane %v17523_v51, 1  ;;  %v9871_v44 = vshrl.u32 %v17526_v13, 16 }
 0x324   : > { %v9761_v24 = vsel %vm9465_vm6, %v9751_v3, %v9760_v23 }
 0x326   : > { %15215 = vmatmul.mubr.msk.bf16.gmra.mrb[116].mxu1 %vm1204_vm2, %v2833_v5  ;;  %v9772_v5 = vshrl.u32 %v17505_v9, 16 }
 0x327   : > { %15218 = vmatprep.mubr.msk.bf16.mxu1 %vm1204_vm2, %v2835_v17  ;;  %v9769_v17 = vor.u32 %v9768_v26, %v9765_v11  ;;  %v4260_v26 = vsel %vm2712_vm5, %v4257_v10, %v4259_v32 }
 0x328   : > { %v9774_v53 = vrot.slane %v9772_v5, 2 }
 0x329   : > { %15837 = vmatmul.mubr.msk.bf16.gmra.mrb[48].mxu0 %vm1204_vm2, %v9707_v15  ;;  %v4252_v15 = vrot.slane %v20778_v35, 1  ;;  %v9770_v22 = vsel %vm9465_vm6, %v9760_v23, %v9769_v17 }
 0x32a   : > { %15840 = vmatprep.mubr.msk.bf16.mxu0 %vm1204_vm2, %v9716_v45  ;;  %v9786_v45 = vrot.slane %v9784_v38, 3  ;;  %v9778_v14 = vor.u32 %v9777_v27, %v9774_v53  ;;  %v17519_v38 = vld [vmem:[%s17741_s25 + $0x40] sm:$0xff]   ;;  %v17520_v27 = vld [vmem:[%s17741_s25 + $0x48] sm:$0xff]  }
 0x32b   : > { %v4265_v35 = vrot.slane %v17520_v27, 1 }
 0x32c   : > { %v9787_v54 = vor.u32 %v9786_v45, %v9783_v52  ;;  %v9779_v61 = vsel %vm9465_vm6, %v9769_v17, %v9778_v14  ;;  %v17518_v17 = vld [vmem:[%s17741_s25 + $0x168] sm:$0xff]  }
 0x32d   : > { %v9835_v33 = vshrl.u32 %v17518_v17, 16  ;;  %v9838_v59 = vshll.u32 %v17518_v17, 16 }
 0x32e   : > { %15219 = vmatmul.mubr.msk.bf16.gmra.mrb[120].mxu1 %vm1204_vm2, %v2837_v41  ;;  %v4254_v41 = vsel %vm2712_vm5, %v4252_v15, %v4253_v34  ;;  %v9788_v62 = vsel %vm9465_vm6, %v9778_v14, %v9787_v54 }
 0x32f   : > { %15222 = vmatprep.mubr.msk.bf16.mxu1 %vm1204_vm2, %v2839_v25  ;;  %v9790_v25 = vshrl.u32 %v17509_v57, 16  ;;  %v9837_v60 = vrot.slane %v9835_v33, 2  ;;  %v9840_v34 = vrot.slane %v9838_v59, 3 }
 0x331   : > { %15841 = vmatmul.mubr.msk.bf16.gmra.mrb[52].mxu0 %vm1204_vm2, %v9725_v58  ;;  %v9792_v31 = vrot.slane %v9790_v25, 2  ;;  %v9795_v58 = vrot.slane %v9793_v18, 3  ;;  %v9841_v57 = vor.u32 %v9840_v34, %v9837_v60  ;;  %v17522_v25 = vld [vmem:[%s17741_s25 + $0x178] sm:$0xff]   ;;  %v17533_v34 = vld [vmem:[%s17741_s25 + $0x1a0] sm:$0xff]  }
 0x332   : > { %15844 = vmatprep.mubr.msk.bf16.mxu0 %vm1204_vm2, %v9734_v7  ;;  %v9804_v7 = vrot.slane %v9802_v55, 3  ;;  %v9853_v18 = vshrl.u32 %v17522_v25, 16 }
 0x333   : > { %v9796_v29 = vor.u32 %v9795_v58, %v9792_v31 }
 0x334   : > { %v9805_v0 = vor.u32 %v9804_v7, %v9801_v48  ;;  %v9855_v63 = vrot.slane %v9853_v18, 2 }
 0x335   : > { %v9797_v4 = vsel %vm9465_vm6, %v9787_v54, %v9796_v29  ;;  %v9856_v54 = vshll.u32 %v17522_v25, 16 }
 0x336   : > { %15223 = vmatmul.mubr.msk.bf16.gmra.mrb[124].mxu1 %vm1204_vm2, %v2841_v49  ;;  %v4258_v49 = vsel %vm2712_vm5, %v4255_v47, %v4257_v10  ;;  %v9806_v36 = vsel %vm9465_vm6, %v9796_v29, %v9805_v0 }
 0x337   : > { %15226 = vmatprep.mubr.msk.bf16.mxu1 %vm1204_vm2, %v2843_v8  ;;  %v17514_v8 = vld [vmem:[%s17741_s25 + $0x158] sm:$0xff]   ;;  %v9858_v10 = vrot.slane %v9856_v54, 3 }
 0x338   : > { %v9817_v3 = vshrl.u32 %v17514_v8, 16  ;;  %v9820_v19 = vshll.u32 %v17514_v8, 16  ;;  %v17527_v8 = vld [vmem:[%s17741_s25 + $0x60] sm:$0xff]  }
 0x339   : > { %15845 = vmatmul.mubr.msk.bf16.gmra.mrb[56].mxu0 %vm1204_vm2, %v9743_v28  ;;  %v17516_v28 = vld [vmem:[%s17741_s25 + $0x38] sm:$0xff]   ;;  %v9859_v1 = vor.u32 %v9858_v10, %v9855_v63  ;;  %v17537_v10 = vld [vmem:[%s17741_s25 + $0x1b0] sm:$0xff]  }
 0x33a   : > { %15848 = vmatprep.mubr.msk.bf16.mxu0 %vm1204_vm2, %v9752_v43  ;;  %v4261_v21 = vrot.slane %v17516_v28, 1  ;;  %v9819_v43 = vrot.slane %v9817_v3, 2  ;;  %v9822_v11 = vrot.slane %v9820_v19, 3  ;;  %v4271_v3 = vrot.slane %v17527_v8, 1 }
 0x33c   : > { %v4262_v23 = vsel %vm2712_vm5, %v4259_v32, %v4261_v21  ;;  %v9823_v30 = vor.u32 %v9822_v11, %v9819_v43  ;;  %v17528_v32 = vld [vmem:[%s17741_s25 + $0x68] sm:$0xff]   ;;  %v17529_v11 = vld [vmem:[%s17741_s25 + $0x190] sm:$0xff]  }
 0x33e   : > { %15227 = vmatmul.mubr.msk.bf16.gmra.mrb[128].mxu1 %vm1204_vm2, %v2845_v46  ;;  %v9814_v46 = vor.u32 %v9813_v2, %v9810_v40  ;;  %v9873_v2 = vrot.slane %v9871_v44, 2 }
 0x33f   : > { %15230 = vmatprep.mubr.msk.bf16.mxu1 %vm1204_vm2, %v2847_v56  ;;  %v17517_v56 = vld [vmem:[%s17741_s25 + $0x160] sm:$0xff]  }
 0x340   : > { %v9826_v9 = vshrl.u32 %v17517_v56, 16  ;;  %v9829_v5 = vshll.u32 %v17517_v56, 16  ;;  %v9815_v42 = vsel %vm9465_vm6, %v9805_v0, %v9814_v46  ;;  %v9824_v15 = vsel %vm9465_vm6, %v9814_v46, %v9823_v30  ;;  %v17530_v56 = vld [vmem:[%s17741_s25 + $0x198] sm:$0xff]  }
 0x341   : > { %15849 = vmatmul.mubr.msk.bf16.gmra.mrb[60].mxu0 %vm1204_vm2, %v9761_v24  ;;  %v4263_v24 = vrot.slane %v17519_v38, 1  ;;  %v9874_v0 = vshll.u32 %v17526_v13, 16  ;;  %v9883_v46 = vshll.u32 %v17529_v11, 16 }
 0x342   : > { %15852 = vmatprep.mubr.msk.bf16.mxu0 %vm1204_vm2, %v9770_v22  ;;  %v9828_v50 = vrot.slane %v9826_v9, 2  ;;  %v9831_v53 = vrot.slane %v9829_v5, 3  ;;  %v9889_v9 = vshrl.u32 %v17530_v56, 16  ;;  %v9892_v5 = vshll.u32 %v17530_v56, 16 }
 0x343   : > { %v4264_v22 = vsel %vm2712_vm5, %v4261_v21, %v4263_v24  ;;  %v4266_v45 = vsel %vm2712_vm5, %v4263_v24, %v4265_v35  ;;  %v9876_v28 = vrot.slane %v9874_v0, 3  ;;  %v9885_v38 = vrot.slane %v9883_v46, 3  ;;  %v17532_v24 = vld [vmem:[%s17741_s25 + $0x78] sm:$0xff]  }
 0x344   : > { %v9832_v52 = vor.u32 %v9831_v53, %v9828_v50  ;;  %v9891_v53 = vrot.slane %v9889_v9, 2  ;;  %v9894_v27 = vrot.slane %v9892_v5, 3 }
 0x346   : > { %15231 = vmatmul.mubr.msk.bf16.gmra.mrb[132].mxu1 %vm1204_vm2, %v2849_v12  ;;  %v17521_v12 = vld [vmem:[%s17741_s25 + $0x170] sm:$0xff]   ;;  %v9833_v55 = vsel %vm9465_vm6, %v9823_v30, %v9832_v52  ;;  %v9842_v58 = vsel %vm9465_vm6, %v9832_v52, %v9841_v57  ;;  %v9901_v52 = vshll.u32 %v17533_v34, 16 }
 0x347   : > { %15236 = vmatprep.mubr.msk.bf16.mxu1 %vm1204_vm2, %v4254_v41  ;;  %v9844_v14 = vshrl.u32 %v17521_v12, 16  ;;  %v9847_v41 = vshll.u32 %v17521_v12, 16  ;;  %v17531_v30 = vld [vmem:[%s17741_s25 + $0x70] sm:$0xff]   ;;  %v17534_v12 = vld [vmem:[%s17741_s25 + $0x1a8] sm:$0xff]  }
 0x348   : > { %v4275_v17 = vrot.slane %v17531_v30, 1  ;;  %v9903_v51 = vrot.slane %v9901_v52, 3 }
 0x349   : > { %15853 = vmatmul.mubr.msk.bf16.gmra.mrb[64].mxu0 %vm1204_vm2, %v9779_v61  ;;  %v9846_v6 = vrot.slane %v9844_v14, 2  ;;  %v9849_v47 = vrot.slane %v9847_v41, 3  ;;  %v17524_v61 = vld [vmem:[%s17741_s25 + $0x58] sm:$0xff]   ;;  %v9907_v14 = vshrl.u32 %v17534_v12, 16  ;;  %v9910_v41 = vshll.u32 %v17534_v12, 16 }
 0x34a   : > { %15856 = vmatprep.mubr.msk.bf16.mxu0 %vm1204_vm2, %v9788_v62  ;;  %v4269_v31 = vrot.slane %v17524_v61, 1  ;;  %v4268_v62 = vsel %vm2712_vm5, %v4265_v35, %v4267_v37 }
 0x34b   : > { %v9850_v48 = vor.u32 %v9849_v47, %v9846_v6  ;;  %v9909_v47 = vrot.slane %v9907_v14, 2  ;;  %v9912_v61 = vrot.slane %v9910_v41, 3 }
 0x34c   : > { %v4270_v7 = vsel %vm2712_vm5, %v4267_v37, %v4269_v31  ;;  %v4272_v21 = vsel %vm2712_vm5, %v4269_v31, %v4271_v3  ;;  %v17536_v37 = vld [vmem:[%s17741_s25 + $0x88] sm:$0xff]  }
 0x34d   : > { %v9851_v19 = vsel %vm9465_vm6, %v9841_v57, %v9850_v48  ;;  %v9860_v40 = vsel %vm9465_vm6, %v9850_v48, %v9859_v1  ;;  %v17535_v57 = vld [vmem:[%s17741_s25 + $0x80] sm:$0xff]   ;;  %v9919_v48 = vshll.u32 %v17537_v10, 16 }
 0x34e   : > { %15237 = vmatmul.mubr.msk.bf16.vlgmr.msra.gmra.mrb[0].mxu1 %vm1204_vm2, %v4256_v16  ;;  %v17525_v16 = vld [vmem:[%s17741_s25 + $0x180] sm:$0xff]   ;;  %v4279_v25 = vrot.slane %v17535_v57, 1 }
 0x34f   : > { %16063 = vmatpush3.bf16.msra.mxu1 %v20779_v20  ;;  %15240 = vmatprep.mubr.msk.bf16.mxu1 %vm1204_vm2, %v4258_v49  ;;  %v9862_v29 = vshrl.u32 %v17525_v16, 16  ;;  %v9865_v49 = vshll.u32 %v17525_v16, 16  ;;  %v17538_v16 = vld [vmem:[%s17741_s25 + $0x1b8] sm:$0xff]   ;;  %v9921_v8 = vrot.slane %v9919_v48, 3 }
 0x351   : > { %15857 = vmatmul.mubr.msk.bf16.gmra.mrb[68].mxu0 %vm1204_vm2, %v9797_v4  ;;  %v9864_v20 = vrot.slane %v9862_v29, 2  ;;  %v9867_v39 = vrot.slane %v9865_v49, 3  ;;  %v4273_v4 = vrot.slane %v17528_v32, 1  ;;  %v9925_v29 = vshrl.u32 %v17538_v16, 16 }
 0x352   : > { %15860 = vmatprep.mubr.msk.bf16.mxu0 %vm1204_vm2, %v9806_v36  ;;  %v9928_v49 = vshll.u32 %v17538_v16, 16 }
 0x353   : > { %v9868_v36 = vor.u32 %v9867_v39, %v9864_v20  ;;  %v4274_v43 = vsel %vm2712_vm5, %v4271_v3, %v4273_v4  ;;  %v4276_v35 = vsel %vm2712_vm5, %v4273_v4, %v4275_v17  ;;  %v17540_v3 = vld [vmem:[%s17741_s25 + $0x98] sm:$0xff]   ;;  %v9927_v39 = vrot.slane %v9925_v29, 2 }
 0x354   : > { %v9930_v32 = vrot.slane %v9928_v49, 3 }
 0x355   : > { %v9869_v33 = vsel %vm9465_vm6, %v9859_v1, %v9868_v36  ;;  %v17539_v1 = vld [vmem:[%s17741_s25 + $0x90] sm:$0xff]  }
 0x356   : > { %15241 = vmatmul.mubr.msk.bf16.gmra.mrb[4].mxu1 %vm1204_vm2, %v4260_v26  ;;  %v9880_v26 = vshrl.u32 %v17529_v11, 16  ;;  %v4283_v13 = vrot.slane %v17539_v1, 1  ;;  %v17542_v11 = vld [vmem:[%s17741_s25 + $0x1c8] sm:$0xff]  }
 0x357   : > { %15244 = vmatprep.mubr.msk.bf16.mxu1 %vm1204_vm2, %v4262_v23  ;;  %v9877_v23 = vor.u32 %v9876_v28, %v9873_v2  ;;  %v17541_v28 = vld [vmem:[%s17741_s25 + $0x1c0] sm:$0xff]   ;;  %v9946_v46 = vshll.u32 %v17542_v11, 16 }
 0x358   : > { %v9882_v59 = vrot.slane %v9880_v26, 2  ;;  %v9943_v26 = vshrl.u32 %v17542_v11, 16 }
 0x359   : > { %15861 = vmatmul.mubr.msk.bf16.gmra.mrb[72].mxu0 %vm1204_vm2, %v9815_v42  ;;  %v4277_v42 = vrot.slane %v17532_v24, 1  ;;  %v9878_v50 = vsel %vm9465_vm6, %v9868_v36, %v9877_v23  ;;  %v9937_v36 = vshll.u32 %v17541_v28, 16  ;;  %v9948_v24 = vrot.slane %v9946_v46, 3 }
 0x35a   : > { %15864 = vmatprep.mubr.msk.bf16.mxu0 %vm1204_vm2, %v9824_v15  ;;  %v9886_v15 = vor.u32 %v9885_v38, %v9882_v59  ;;  %v9945_v38 = vrot.slane %v9943_v26, 2 }
 0x35b   : > { %v4278_v60 = vsel %vm2712_vm5, %v4275_v17, %v4277_v42  ;;  %v4280_v31 = vsel %vm2712_vm5, %v4277_v42, %v4279_v25  ;;  %v9939_v30 = vrot.slane %v9937_v36, 3  ;;  %v17544_v17 = vld [vmem:[%s17741_s25 + $0xa8] sm:$0xff]  }
 0x35c   : > { %v9887_v18 = vsel %vm9465_vm6, %v9877_v23, %v9886_v15  ;;  %v17543_v23 = vld [vmem:[%s17741_s25 + $0xa0] sm:$0xff]  }
 0x35d   : > { %v4287_v56 = vrot.slane %v17543_v23, 1 }
 0x35e   : > { %15245 = vmatmul.mubr.msk.bf16.gmra.mrb[8].mxu1 %vm1204_vm2, %v4264_v22  ;;  %v9898_v22 = vshrl.u32 %v17533_v34, 16  ;;  %v17546_v34 = vld [vmem:[%s17741_s25 + $0x1d8] sm:$0xff]  }
 0x35f   : > { %15248 = vmatprep.mubr.msk.bf16.mxu1 %vm1204_vm2, %v4266_v45  ;;  %v9895_v45 = vor.u32 %v9894_v27, %v9891_v53  ;;  %v17545_v27 = vld [vmem:[%s17741_s25 + $0x1d0] sm:$0xff]   ;;  %v9964_v52 = vshll.u32 %v17546_v34, 16 }
 0x360   : > { %v9900_v54 = vrot.slane %v9898_v22, 2  ;;  %v9961_v22 = vshrl.u32 %v17546_v34, 16 }
 0x361   : > { %15865 = vmatmul.mubr.msk.bf16.gmra.mrb[76].mxu0 %vm1204_vm2, %v9833_v55  ;;  %v4281_v55 = vrot.slane %v17536_v37, 1  ;;  %v9896_v6 = vsel %vm9465_vm6, %v9886_v15, %v9895_v45  ;;  %v9955_v15 = vshll.u32 %v17545_v27, 16  ;;  %v9966_v37 = vrot.slane %v9964_v52, 3 }
 0x362   : > { %15868 = vmatprep.mubr.msk.bf16.mxu0 %vm1204_vm2, %v9842_v58  ;;  %v9904_v58 = vor.u32 %v9903_v51, %v9900_v54  ;;  %v9963_v51 = vrot.slane %v9961_v22, 2 }
 0x363   : > { %v4282_v63 = vsel %vm2712_vm5, %v4279_v25, %v4281_v55  ;;  %v4284_v4 = vsel %vm2712_vm5, %v4281_v55, %v4283_v13  ;;  %v9957_v57 = vrot.slane %v9955_v15, 3  ;;  %v17548_v25 = vld [vmem:[%s17741_s25 + $0xb8] sm:$0xff]  }
 0x364   : > { %v9905_v44 = vsel %vm9465_vm6, %v9895_v45, %v9904_v58  ;;  %v17547_v45 = vld [vmem:[%s17741_s25 + $0xb0] sm:$0xff]  }
 0x365   : > { %v4291_v12 = vrot.slane %v17547_v45, 1 }
 0x366   : > { %15249 = vmatmul.mubr.msk.bf16.gmra.mrb[12].mxu1 %vm1204_vm2, %v4268_v62  ;;  %v9916_v62 = vshrl.u32 %v17537_v10, 16  ;;  %v17550_v10 = vld [vmem:[%s17741_s25 + $0x1e8] sm:$0xff]  }
 0x367   : > { %15252 = vmatprep.mubr.msk.bf16.mxu1 %vm1204_vm2, %v4270_v7  ;;  %v9913_v7 = vor.u32 %v9912_v61, %v9909_v47  ;;  %v17549_v61 = vld [vmem:[%s17741_s25 + $0x1e0] sm:$0xff]   ;;  %v9982_v48 = vshll.u32 %v17550_v10, 16 }
 0x368   : > { %v9918_v0 = vrot.slane %v9916_v62, 2  ;;  %v9979_v62 = vshrl.u32 %v17550_v10, 16 }
 0x369   : > { %15869 = vmatmul.mubr.msk.bf16.gmra.mrb[80].mxu0 %vm1204_vm2, %v9851_v19  ;;  %v4285_v19 = vrot.slane %v17540_v3, 1  ;;  %v9914_v20 = vsel %vm9465_vm6, %v9904_v58, %v9913_v7  ;;  %v9973_v58 = vshll.u32 %v17549_v61, 16  ;;  %v9984_v3 = vrot.slane %v9982_v48, 3 }
 0x36a   : > { %15872 = vmatprep.mubr.msk.bf16.mxu0 %vm1204_vm2, %v9860_v40  ;;  %v9922_v40 = vor.u32 %v9921_v8, %v9918_v0  ;;  %v9981_v8 = vrot.slane %v9979_v62, 2 }
 0x36b   : > { %v4286_v2 = vsel %vm2712_vm5, %v4283_v13, %v4285_v19  ;;  %v4288_v42 = vsel %vm2712_vm5, %v4285_v19, %v4287_v56  ;;  %v9975_v1 = vrot.slane %v9973_v58, 3  ;;  %v17552_v13 = vld [vmem:[%s17741_s25 + $0xc8] sm:$0xff]  }
 0x36c   : > { %v9923_v9 = vsel %vm9465_vm6, %v9913_v7, %v9922_v40  ;;  %v17551_v7 = vld [vmem:[%s17741_s25 + $0xc0] sm:$0xff]  }
 0x36d   : > { %v4295_v16 = vrot.slane %v17551_v7, 1 }
 0x36e   : > { %15253 = vmatmul.mubr.msk.bf16.gmra.mrb[16].mxu1 %vm1204_vm2, %v4272_v21  ;;  %v9934_v21 = vshrl.u32 %v17541_v28, 16  ;;  %v17554_v28 = vld [vmem:[%s17741_s25 + $0x1f8] sm:$0xff]  }
 0x36f   : > { %15256 = vmatprep.mubr.msk.bf16.mxu1 %vm1204_vm2, %v4274_v43  ;;  %v9931_v43 = vor.u32 %v9930_v32, %v9927_v39  ;;  %v17553_v32 = vld [vmem:[%s17741_s25 + $0x1f0] sm:$0xff]   ;;  %v10000_v36 = vshll.u32 %v17554_v28, 16 }
 0x370   : > { %v9936_v5 = vrot.slane %v9934_v21, 2  ;;  %v9997_v21 = vshrl.u32 %v17554_v28, 16 }
 0x371   : > { %15873 = vmatmul.mubr.msk.bf16.gmra.mrb[84].mxu0 %vm1204_vm2, %v9869_v33  ;;  %v4289_v33 = vrot.slane %v17544_v17, 1  ;;  %v9932_v59 = vsel %vm9465_vm6, %v9922_v40, %v9931_v43  ;;  %v9991_v40 = vshll.u32 %v17553_v32, 16  ;;  %v10002_v17 = vrot.slane %v10000_v36, 3 }
 0x372   : > { %15876 = vmatprep.mubr.msk.bf16.mxu0 %vm1204_vm2, %v9878_v50  ;;  %v9940_v50 = vor.u32 %v9939_v30, %v9936_v5  ;;  %v9999_v30 = vrot.slane %v9997_v21, 2 }
 0x373   : > { %v4290_v53 = vsel %vm2712_vm5, %v4287_v56, %v4289_v33  ;;  %v4292_v55 = vsel %vm2712_vm5, %v4289_v33, %v4291_v12  ;;  %v9993_v23 = vrot.slane %v9991_v40, 3  ;;  %v17556_v56 = vld [vmem:[%s17741_s25 + $0xd8] sm:$0xff]  }
 0x374   : > { %v9941_v14 = vsel %vm9465_vm6, %v9931_v43, %v9940_v50  ;;  %v17555_v43 = vld [vmem:[%s17741_s25 + $0xd0] sm:$0xff]  }
 0x375   : > { %v4299_v11 = vrot.slane %v17555_v43, 1 }
 0x376   : > { %15257 = vmatmul.mubr.msk.bf16.gmra.mrb[20].mxu1 %vm1204_vm2, %v4276_v35  ;;  %v9952_v35 = vshrl.u32 %v17545_v27, 16  ;;  %v17558_v27 = vld [vmem:[%s17741_s25 + $0x208] sm:$0xff]  }
 0x377   : > { %15260 = vmatprep.mubr.msk.bf16.mxu1 %vm1204_vm2, %v4278_v60  ;;  %v9949_v60 = vor.u32 %v9948_v24, %v9945_v38  ;;  %v17557_v24 = vld [vmem:[%s17741_s25 + $0x200] sm:$0xff]   ;;  %v10018_v15 = vshll.u32 %v17558_v27, 16 }
 0x378   : > { %v9954_v41 = vrot.slane %v9952_v35, 2  ;;  %v10015_v35 = vshrl.u32 %v17558_v27, 16 }
 0x379   : > { %15877 = vmatmul.mubr.msk.bf16.gmra.mrb[88].mxu0 %vm1204_vm2, %v9887_v18  ;;  %v4293_v18 = vrot.slane %v17548_v25, 1  ;;  %v9950_v54 = vsel %vm9465_vm6, %v9940_v50, %v9949_v60  ;;  %v10009_v50 = vshll.u32 %v17557_v24, 16  ;;  %v10020_v25 = vrot.slane %v10018_v15, 3 }
 0x37a   : > { %15880 = vmatprep.mubr.msk.bf16.mxu0 %vm1204_vm2, %v9896_v6  ;;  %v9958_v6 = vor.u32 %v9957_v57, %v9954_v41  ;;  %v10017_v57 = vrot.slane %v10015_v35, 2 }
 0x37b   : > { %v4294_v47 = vsel %vm2712_vm5, %v4291_v12, %v4293_v18  ;;  %v4296_v19 = vsel %vm2712_vm5, %v4293_v18, %v4295_v16  ;;  %v10011_v45 = vrot.slane %v10009_v50, 3  ;;  %v17560_v12 = vld [vmem:[%s17741_s25 + $0xe8] sm:$0xff]  }
 0x37c   : > { %v9959_v29 = vsel %vm9465_vm6, %v9949_v60, %v9958_v6  ;;  %v17559_v60 = vld [vmem:[%s17741_s25 + $0xe0] sm:$0xff]  }
 0x37d   : > { %v4303_v34 = vrot.slane %v17559_v60, 1 }
 0x37e   : > { %15261 = vmatmul.mubr.msk.bf16.gmra.mrb[24].mxu1 %vm1204_vm2, %v4280_v31  ;;  %v9970_v31 = vshrl.u32 %v17549_v61, 16  ;;  %v17562_v61 = vld [vmem:[%s17741_s25 + $0x218] sm:$0xff]  }
 0x37f   : > { %15264 = vmatprep.mubr.msk.bf16.mxu1 %vm1204_vm2, %v4282_v63  ;;  %v9967_v63 = vor.u32 %v9966_v37, %v9963_v51  ;;  %v17561_v37 = vld [vmem:[%s17741_s25 + $0x210] sm:$0xff]   ;;  %v10036_v58 = vshll.u32 %v17562_v61, 16 }
 0x380   : > { %v9972_v49 = vrot.slane %v9970_v31, 2  ;;  %v10033_v31 = vshrl.u32 %v17562_v61, 16 }
 0x381   : > { %15881 = vmatmul.mubr.msk.bf16.gmra.mrb[92].mxu0 %vm1204_vm2, %v9905_v44  ;;  %v4297_v44 = vrot.slane %v17552_v13, 1  ;;  %v9968_v0 = vsel %vm9465_vm6, %v9958_v6, %v9967_v63  ;;  %v10027_v6 = vshll.u32 %v17561_v37, 16  ;;  %v10038_v13 = vrot.slane %v10036_v58, 3  ;;  %v19458_v58 = vld [vmem:[%s17741_s25 + $0x128] sm:$0xff]  }
 0x382   : > { %15884 = vmatprep.mubr.msk.bf16.mxu0 %vm1204_vm2, %v9914_v20  ;;  %v9976_v20 = vor.u32 %v9975_v1, %v9972_v49  ;;  %v10035_v1 = vrot.slane %v10033_v31, 2 }
 0x383   : > { %v4298_v39 = vsel %vm2712_vm5, %v4295_v16, %v4297_v44  ;;  %v4300_v33 = vsel %vm2712_vm5, %v4297_v44, %v4299_v11  ;;  %v10029_v7 = vrot.slane %v10027_v6, 3  ;;  %v17564_v16 = vld [vmem:[%s17741_s25 + $0xf8] sm:$0xff]  }
 0x384   : > { %v9977_v26 = vsel %vm9465_vm6, %v9967_v63, %v9976_v20  ;;  %v17563_v63 = vld [vmem:[%s17741_s25 + $0xf0] sm:$0xff]  }
 0x385   : > { %v4307_v10 = vrot.slane %v17563_v63, 1  ;;  %v4321_v63 = vrot.slane %v19458_v58, 1 }
 0x386   : > { %15265 = vmatmul.mubr.msk.bf16.gmra.mrb[28].mxu1 %vm1204_vm2, %v4284_v4  ;;  %v9988_v4 = vshrl.u32 %v17553_v32, 16  ;;  %v17566_v32 = vld [vmem:[%s17741_s25 + $0x228] sm:$0xff]  }
 0x387   : > { %15268 = vmatprep.mubr.msk.bf16.mxu1 %vm1204_vm2, %v4286_v2  ;;  %v9985_v2 = vor.u32 %v9984_v3, %v9981_v8  ;;  %v17565_v3 = vld [vmem:[%s17741_s25 + $0x220] sm:$0xff]   ;;  %v10054_v40 = vshll.u32 %v17566_v32, 16 }
 0x388   : > { %v9990_v46 = vrot.slane %v9988_v4, 2  ;;  %v10051_v4 = vshrl.u32 %v17566_v32, 16  ;;  %v17579_v32 = vld [vmem:[%s17741_s25 + $0x30] sm:$0xff]  }
 0x389   : > { %15885 = vmatmul.mubr.msk.bf16.gmra.mrb[96].mxu0 %vm1204_vm2, %v9923_v9  ;;  %v4301_v9 = vrot.slane %v17556_v56, 1  ;;  %v9986_v5 = vsel %vm9465_vm6, %v9976_v20, %v9985_v2  ;;  %v10045_v20 = vshll.u32 %v17565_v3, 16  ;;  %v10056_v56 = vrot.slane %v10054_v40, 3 }
 0x38a   : > { %15888 = vmatprep.mubr.msk.bf16.mxu0 %vm1204_vm2, %v9932_v59  ;;  %v9994_v59 = vor.u32 %v9993_v23, %v9990_v46  ;;  %v10053_v23 = vrot.slane %v10051_v4, 2  ;;  %v11016_v4 = vrot.slane %v17579_v32, 3 }
 0x38b   : > { %v4302_v38 = vsel %vm2712_vm5, %v4299_v11, %v4301_v9  ;;  %v4304_v18 = vsel %vm2712_vm5, %v4301_v9, %v4303_v34  ;;  %v10047_v43 = vrot.slane %v10045_v20, 3  ;;  %v17568_v11 = vld [vmem:[%s17741_s25 + $0x108] sm:$0xff]  }
 0x38c   : > { %v9995_v22 = vsel %vm9465_vm6, %v9985_v2, %v9994_v59  ;;  %v17567_v2 = vld [vmem:[%s17741_s25 + $0x100] sm:$0xff]  }
 0x38d   : > { %v4311_v28 = vrot.slane %v17567_v2, 1  ;;  %v17580_v2 = vld [vmem:[%s17741_s25 + $0x38] sm:$0xff]  }
 0x38e   : > { %15269 = vmatmul.mubr.msk.bf16.gmra.mrb[32].mxu1 %vm1204_vm2, %v4288_v42  ;;  %v10006_v42 = vshrl.u32 %v17557_v24, 16  ;;  %v17570_v24 = vld [vmem:[%s17741_s25 + $0x238] sm:$0xff]  }
 0x38f   : > { %15272 = vmatprep.mubr.msk.bf16.mxu1 %vm1204_vm2, %v4290_v53  ;;  %v10003_v53 = vor.u32 %v10002_v17, %v9999_v30  ;;  %v17569_v17 = vld [vmem:[%s17741_s25 + $0x230] sm:$0xff]   ;;  %v10072_v50 = vshll.u32 %v17570_v24, 16 }
 0x390   : > { %v10008_v52 = vrot.slane %v10006_v42, 2  ;;  %v10069_v42 = vshrl.u32 %v17570_v24, 16  ;;  %v19512_v24 = vld [vmem:[%s17741_s25 + $0x158] sm:$0xff]  }
 0x391   : > { %15889 = vmatmul.mubr.msk.bf16.gmra.mrb[100].mxu0 %vm1204_vm2, %v9941_v14  ;;  %v4305_v14 = vrot.slane %v17560_v12, 1  ;;  %v10004_v41 = vsel %vm9465_vm6, %v9994_v59, %v10003_v53  ;;  %v10063_v59 = vshll.u32 %v17569_v17, 16 }
 0x392   : > { %15892 = vmatprep.mubr.msk.bf16.mxu0 %vm1204_vm2, %v9950_v54  ;;  %v10012_v54 = vor.u32 %v10011_v45, %v10008_v52  ;;  %v17381_v52 = vld [vmem:[%s17741_s25 + $0x240] ss:$0 sps:$4 sm:$0x77]   ;;  %v10071_v12 = vrot.slane %v10069_v42, 2  ;;  %v4333_v42 = vrot.slane %v19512_v24, 1 }
 0x393   : > { %v4306_v51 = vsel %vm2712_vm5, %v4303_v34, %v4305_v14  ;;  %v4308_v44 = vsel %vm2712_vm5, %v4305_v14, %v4307_v10  ;;  %v10065_v60 = vrot.slane %v10063_v59, 3  ;;  %v17572_v34 = vld [vmem:[%s17741_s25 + $0x118] sm:$0xff]   ;;  %v10074_v14 = vrot.slane %v10072_v50, 3 }
 0x394   : > { %v10013_v62 = vsel %vm9465_vm6, %v10003_v53, %v10012_v54  ;;  %v17571_v53 = vld [vmem:[%s17741_s25 + $0x110] sm:$0xff]  }
 0x395   : > { %v4315_v27 = vrot.slane %v17571_v53, 1 }
 0x396   : > { %15273 = vmatmul.mubr.msk.bf16.gmra.mrb[36].mxu1 %vm1204_vm2, %v4292_v55  ;;  %v10024_v55 = vshrl.u32 %v17561_v37, 16  ;;  %v11006_v37 = vld [vmem:[%s17741_s25 + $0x20] sm:$0x8] }
 0x397   : > { %15276 = vmatprep.mubr.msk.bf16.mxu1 %vm1204_vm2, %v4294_v47  ;;  %v10021_v47 = vor.u32 %v10020_v25, %v10017_v57 }
 0x398   : > { %v10026_v48 = vrot.slane %v10024_v55, 2  ;;  %v17573_v55 = vld [vmem:[%s17741_s25 + $0x120] sm:$0xff]  }
 0x399   : > { %15893 = vmatmul.mubr.msk.bf16.gmra.mrb[104].mxu0 %vm1204_vm2, %v9959_v29  ;;  %v4309_v29 = vrot.slane %v17564_v16, 1  ;;  %v10022_v49 = vsel %vm9465_vm6, %v10012_v54, %v10021_v47  ;;  %v10081_v54 = vshll.u32 %v17381_v52, 16  ;;  %v4319_v6 = vrot.slane %v17573_v55, 1  ;;  %v19543_v55 = vld [vmem:[%s17741_s25 + $0x170] sm:$0xff]  }
 0x39a   : > { %15896 = vmatprep.mubr.msk.bf16.mxu0 %vm1204_vm2, %v9968_v0  ;;  %v10030_v0 = vor.u32 %v10029_v7, %v10026_v48 }
 0x39b   : > { %v4310_v8 = vsel %vm2712_vm5, %v4307_v10, %v4309_v29  ;;  %v4312_v9 = vsel %vm2712_vm5, %v4309_v29, %v4311_v28  ;;  %v10083_v31 = vrot.slane %v10081_v54, 3  ;;  %v4322_v29 = vsel %vm2712_vm5, %v4319_v6, %v4321_v63 }
 0x39c   : > { %v10031_v21 = vsel %vm9465_vm6, %v10021_v47, %v10030_v0 }
 0x39e   : > { %15277 = vmatmul.mubr.msk.bf16.gmra.mrb[40].mxu1 %vm1204_vm2, %v4296_v19  ;;  %v10042_v19 = vshrl.u32 %v17565_v3, 16  ;;  %v19476_v3 = vld [vmem:[%s17741_s25 + $0x138] sm:$0xff]  }
 0x39f   : > { %15280 = vmatprep.mubr.msk.bf16.mxu1 %vm1204_vm2, %v4298_v39  ;;  %v10039_v39 = vor.u32 %v10038_v13, %v10035_v1  ;;  %v17576_v1 = vld [vmem:[%s17741_s25 + $0x28] sm:$0xff]  }
 0x3a0   : > { %v10044_v36 = vrot.slane %v10042_v19, 2  ;;  %v11014_v13 = vrot.slane %v17576_v1, 3  ;;  %v4325_v19 = vrot.slane %v19476_v3, 1 }
 0x3a1   : > { %15897 = vmatmul.mubr.msk.bf16.gmra.mrb[108].mxu0 %vm1204_vm2, %v9977_v26  ;;  %v4313_v26 = vrot.slane %v17568_v11, 1  ;;  %v10040_v46 = vsel %vm9465_vm6, %v10030_v0, %v10039_v39  ;;  %v19494_v11 = vld [vmem:[%s17741_s25 + $0x148] sm:$0xff]  }
 0x3a2   : > { %15900 = vmatprep.mubr.msk.bf16.mxu0 %vm1204_vm2, %v9986_v5  ;;  %v10048_v5 = vor.u32 %v10047_v43, %v10044_v36  ;;  %v11017_v43 = vsel %vm11012_vm7, %v11014_v13, %v11016_v4 }
 0x3a3   : > { %v4314_v30 = vsel %vm2712_vm5, %v4311_v28, %v4313_v26  ;;  %v11018_v28 = vrot.slane %v17580_v2, 3 }
 0x3a4   : > { %v10049_v35 = vsel %vm9465_vm6, %v10039_v39, %v10048_v5 }
 0x3a6   : > { %15281 = vmatmul.mubr.msk.bf16.gmra.mrb[44].mxu1 %vm1204_vm2, %v4300_v33  ;;  %v10060_v33 = vshrl.u32 %v17569_v17, 16 }
 0x3a7   : > { %15284 = vmatprep.mubr.msk.bf16.mxu1 %vm1204_vm2, %v4302_v38  ;;  %v10057_v38 = vor.u32 %v10056_v56, %v10053_v23  ;;  %v17583_v56 = vld [vmem:[%s17741_s25 + $0x40] sm:$0xff]  }
 0x3a8   : > { %v10062_v15 = vrot.slane %v10060_v33, 2  ;;  %v19507_v33 = vld [vmem:[%s17741_s25 + $0x150] sm:$0xff]  }
 0x3a9   : > { %15901 = vmatmul.mubr.msk.bf16.gmra.mrb[112].mxu0 %vm1204_vm2, %v9995_v22  ;;  %v4317_v22 = vrot.slane %v17572_v34, 1  ;;  %v10058_v45 = vsel %vm9465_vm6, %v10048_v5, %v10057_v38  ;;  %v4331_v59 = vrot.slane %v19507_v33, 1 }
 0x3aa   : > { %15904 = vmatprep.mubr.msk.bf16.mxu0 %vm1204_vm2, %v10004_v41  ;;  %v4316_v41 = vsel %vm2712_vm5, %v4313_v26, %v4315_v27  ;;  %v10066_v57 = vor.u32 %v10065_v60, %v10062_v15  ;;  %v4329_v26 = vrot.slane %v19494_v11, 1  ;;  %v17588_v60 = vld [vmem:[%s17741_s25 + $0x58] sm:$0xff]  }
 0x3ab   : > { %v4318_v25 = vsel %vm2712_vm5, %v4315_v27, %v4317_v22  ;;  %v4320_v7 = vsel %vm2712_vm5, %v4317_v22, %v4319_v6  ;;  %v17587_v27 = vld [vmem:[%s17741_s25 + $0x50] sm:$0xff]   ;;  %v4334_v15 = vsel %vm2712_vm5, %v4331_v59, %v4333_v42  ;;  %v11026_v34 = vrot.slane %v17588_v60, 3  ;;  %v19525_v22 = vld [vmem:[%s17741_s25 + $0x160] sm:$0xff]  }
 0x3ac   : > { %v10067_v47 = vsel %vm9465_vm6, %v10057_v38, %v10066_v57  ;;  %v4332_v53 = vsel %vm2712_vm5, %v4329_v26, %v4331_v59  ;;  %v4339_v6 = vrot.slane %v19543_v55, 1  ;;  %v17607_v60 = vld [vmem:[%s17741_s25 + $0xa0] sm:$0xff]  }
 0x3ae   : > { %15285 = vmatmul.mubr.msk.bf16.gmra.mrb[48].mxu1 %vm1204_vm2, %v4304_v18  ;;  %v10078_v18 = vshrl.u32 %v17381_v52, 16  ;;  %v4335_v52 = vrot.slane %v19525_v22, 1 }
 0x3af   : > { %15288 = vmatprep.mubr.msk.bf16.mxu1 %vm1204_vm2, %v4306_v51  ;;  %v10075_v51 = vor.u32 %v10074_v14, %v10071_v12  ;;  %v19530_v12 = vld [vmem:[%s17741_s25 + $0x168] sm:$0xff]  }
 0x3b0   : > { %v10080_v61 = vrot.slane %v10078_v18, 2  ;;  %v4337_v14 = vrot.slane %v19530_v12, 1 }
 0x3b1   : > { %15905 = vmatmul.mubr.msk.bf16.gmra.mrb[116].mxu0 %vm1204_vm2, %v10013_v62  ;;  %v10076_v10 = vsel %vm9465_vm6, %v10066_v57, %v10075_v51  ;;  %v17575_v62 = vld [vmem:[%s17741_s25 + $0x24] sm:$0xf]  ;;  %v4336_v57 = vsel %vm2712_vm5, %v4333_v42, %v4335_v52 }
 0x3b2   : > { %15908 = vmatprep.mubr.msk.bf16.mxu0 %vm1204_vm2, %v10022_v49  ;;  %v13855_v48 = vcombine.low %v11006_v37, %v17575_v62  ;;  %v10084_v16 = vor.u32 %v10083_v31, %v10080_v61  ;;  %v4338_v54 = vsel %vm2712_vm5, %v4335_v52, %v4337_v14  ;;  %v19548_v61 = vld [vmem:[%s17741_s25 + $0x178] sm:$0xff]   ;;  %v17595_v62 = vld [vmem:[%s17741_s25 + $0x70] sm:$0xff]  }
 0x3b3   : > { %v4341_v31 = vrot.slane %v19548_v61, 1 }
 0x3b4   : > { %v11013_v49 = vrot.slane %v13855_v48, 3  ;;  %v11032_v48 = vrot.slane %v17595_v62, 3  ;;  %v19633_v62 = vld [vmem:[%s17741_s25 + $0x1c0] sm:$0xff]  }
 0x3b6   : > { %15289 = vmatmul.mubr.msk.bf16.gmra.mrb[52].mxu1 %vm1204_vm2, %v4308_v44  ;;  %v19471_v44 = vld [vmem:[%s17741_s25 + $0x130] sm:$0xff]   ;;  %v11015_v20 = vsel %vm11012_vm7, %v11013_v49, %v11014_v13  ;;  %v19561_v49 = vld [vmem:[%s17741_s25 + $0x180] sm:$0xff]  }
 0x3b7   : > { %15292 = vmatprep.mubr.msk.bf16.mxu1 %vm1204_vm2, %v4310_v8  ;;  %v4323_v0 = vrot.slane %v19471_v44, 1  ;;  %v10085_v8 = vsel %vm9465_vm6, %v10075_v51, %v10084_v16  ;;  %v17592_v51 = vld [vmem:[%s17741_s25 + $0x68] sm:$0xff]   ;;  %v17596_v16 = vld [vmem:[%s17741_s25 + $0x78] sm:$0xff]   ;;  %v4343_v1 = vrot.slane %v19561_v49, 1 }
 0x3b8   : > { %v11030_v37 = vrot.slane %v17592_v51, 3 }
 0x3b9   : > { %15909 = vmatmul.mubr.msk.bf16.gmra.mrb[120].mxu0 %vm1204_vm2, %v10031_v21  ;;  %v4324_v39 = vsel %vm2712_vm5, %v4321_v63, %v4323_v0  ;;  %v4326_v40 = vsel %vm2712_vm5, %v4323_v0, %v4325_v19  ;;  %v19489_v21 = vld [vmem:[%s17741_s25 + $0x140] sm:$0xff]   ;;  %v19566_v0 = vld [vmem:[%s17741_s25 + $0x188] sm:$0xff]  }
 0x3ba   : > { %15912 = vmatprep.mubr.msk.bf16.mxu0 %vm1204_vm2, %v10040_v46  ;;  %v4327_v36 = vrot.slane %v19489_v21, 1  ;;  %v11019_v46 = vsel %vm11012_vm7, %v11016_v4, %v11018_v28  ;;  %v11033_v13 = vsel %vm11012_vm7, %v11030_v37, %v11032_v48 }
 0x3bc   : > { %v4328_v23 = vsel %vm2712_vm5, %v4325_v19, %v4327_v36  ;;  %v4330_v5 = vsel %vm2712_vm5, %v4327_v36, %v4329_v26  ;;  %v19584_v26 = vld [vmem:[%s17741_s25 + $0x198] sm:$0xff]  }
 0x3be   : > { %15293 = vmatmul.mubr.msk.bf16.gmra.mrb[56].mxu1 %vm1204_vm2, %v4312_v9  ;;  %v11020_v9 = vrot.slane %v17583_v56, 3 }
 0x3bf   : > { %15296 = vmatprep.mubr.msk.bf16.mxu1 %vm1204_vm2, %v4314_v30  ;;  %v17584_v30 = vld [vmem:[%s17741_s25 + $0x48] sm:$0xff]  }
 0x3c0   : > { %v11022_v17 = vrot.slane %v17584_v30, 3  ;;  %v11021_v38 = vsel %vm11012_vm7, %v11018_v28, %v11020_v9  ;;  %v19579_v28 = vld [vmem:[%s17741_s25 + $0x190] sm:$0xff]  }
 0x3c1   : > { %15913 = vmatmul.mubr.msk.bf16.gmra.mrb[124].mxu0 %vm1204_vm2, %v10049_v35  ;;  %v11024_v35 = vrot.slane %v17587_v27, 3  ;;  %v4347_v36 = vrot.slane %v19579_v28, 1 }
 0x3c2   : > { %15916 = vmatprep.mubr.msk.bf16.mxu0 %vm1204_vm2, %v10058_v45  ;;  %v11023_v50 = vsel %vm11012_vm7, %v11020_v9, %v11022_v17  ;;  %v17603_v9 = vld [vmem:[%s17741_s25 + $0x90] sm:$0xff]  }
 0x3c3   : > { %v11025_v45 = vsel %vm11012_vm7, %v11022_v17, %v11024_v35  ;;  %v17604_v17 = vld [vmem:[%s17741_s25 + $0x98] sm:$0xff]  }
 0x3c4   : > { %v11042_v59 = vrot.slane %v17604_v17, 3  ;;  %v17619_v17 = vld [vmem:[%s17741_s25 + $0xd0] sm:$0xff]  }
 0x3c6   : > { %15297 = vmatmul.mubr.msk.bf16.gmra.mrb[60].mxu1 %vm1204_vm2, %v4316_v41  ;;  %v11027_v41 = vsel %vm11012_vm7, %v11024_v35, %v11026_v34 }
 0x3c7   : > { %15300 = vmatprep.mubr.msk.bf16.mxu1 %vm1204_vm2, %v4318_v25  ;;  %v17591_v25 = vld [vmem:[%s17741_s25 + $0x60] sm:$0xff]  }
 0x3c8   : > { %v11028_v18 = vrot.slane %v17591_v25, 3 }
 0x3c9   : > { %15917 = vmatmul.mubr.msk.bf16.gmra.mrb[128].mxu0 %vm1204_vm2, %v10067_v47 }
 0x3ca   : > { %15920 = vmatprep.mubr.msk.bf16.mxu0 %vm1204_vm2, %v10076_v10  ;;  %v11029_v47 = vsel %vm11012_vm7, %v11026_v34, %v11028_v18  ;;  %v11031_v63 = vsel %vm11012_vm7, %v11028_v18, %v11030_v37  ;;  %v4340_v10 = vsel %vm2712_vm5, %v4337_v14, %v4339_v6  ;;  %v11044_v34 = vrot.slane %v17607_v60, 3  ;;  %v19620_v18 = vld [vmem:[%s17741_s25 + $0x1b8] sm:$0xff]  }
 0x3cc   : > { %v11045_v25 = vsel %vm11012_vm7, %v11042_v59, %v11044_v34 }
 0x3ce   : > { %15301 = vmatmul.mubr.msk.bf16.gmra.mrb[64].mxu1 %vm1204_vm2, %v4320_v7  ;;  %v4342_v7 = vsel %vm2712_vm5, %v4339_v6, %v4341_v31  ;;  %v17611_v6 = vld [vmem:[%s17741_s25 + $0xb0] sm:$0xff]  }
 0x3cf   : > { %15304 = vmatprep.mubr.msk.bf16.mxu1 %vm1204_vm2, %v4322_v29  ;;  %v11034_v29 = vrot.slane %v17596_v16, 3  ;;  %v19638_v16 = vld [vmem:[%s17741_s25 + $0x1c8] sm:$0xff]  }
 0x3d1   : > { %15921 = vmatmul.mubr.msk.bf16.gmra.mrb[132].mxu0 %vm1204_vm2, %v10085_v8  ;;  %v4345_v8 = vrot.slane %v19566_v0, 1  ;;  %v11035_v19 = vsel %vm11012_vm7, %v11032_v48, %v11034_v29  ;;  %v4359_v48 = vrot.slane %v19633_v62, 1 }
 0x3d2   : > { %15926 = vmatprep.mubr.msk.bf16.mxu0 %vm1204_vm2, %v11015_v20  ;;  %v4344_v20 = vsel %vm2712_vm5, %v4341_v31, %v4343_v1 }
 0x3d3   : > { %v4346_v4 = vsel %vm2712_vm5, %v4343_v1, %v4345_v8  ;;  %v4348_v56 = vsel %vm2712_vm5, %v4345_v8, %v4347_v36  ;;  %v17615_v8 = vld [vmem:[%s17741_s25 + $0xc0] sm:$0xff]  }
 0x3d6   : > { %15305 = vmatmul.mubr.msk.bf16.gmra.mrb[68].mxu1 %vm1204_vm2, %v4324_v39  ;;  %v17599_v39 = vld [vmem:[%s17741_s25 + $0x80] sm:$0xff]  }
 0x3d7   : > { %15308 = vmatprep.mubr.msk.bf16.mxu1 %vm1204_vm2, %v4326_v40  ;;  %v11036_v32 = vrot.slane %v17599_v39, 3  ;;  %v17600_v40 = vld [vmem:[%s17741_s25 + $0x88] sm:$0xff]  }
 0x3d8   : > { %v11038_v2 = vrot.slane %v17600_v40, 3  ;;  %v17616_v39 = vld [vmem:[%s17741_s25 + $0xc8] sm:$0xff]  }
 0x3d9   : > { %15927 = vmatmul.mubr.msk.bf16.vlgmr.msra.gmra.mrb[0].mxu0 %vm1204_vm2, %v11017_v43  ;;  %v11037_v43 = vsel %vm11012_vm7, %v11034_v29, %v11036_v32  ;;  %v4361_v29 = vrot.slane %v19638_v16, 1 }
 0x3da   : > { %15930 = vmatprep.mubr.msk.bf16.mxu0 %vm1204_vm2, %v11019_v46  ;;  %v4349_v46 = vrot.slane %v19584_v26, 1 }
 0x3dc   : > { %v4350_v30 = vsel %vm2712_vm5, %v4347_v36, %v4349_v46  ;;  %v19656_v36 = vld [vmem:[%s17741_s25 + $0x1d8] sm:$0xff]  }
 0x3de   : > { %15309 = vmatmul.mubr.msk.bf16.gmra.mrb[72].mxu1 %vm1204_vm2, %v4328_v23  ;;  %v11039_v23 = vsel %vm11012_vm7, %v11036_v32, %v11038_v2  ;;  %v11054_v32 = vrot.slane %v17616_v39, 3 }
 0x3df   : > { %15312 = vmatprep.mubr.msk.bf16.mxu1 %vm1204_vm2, %v4330_v5  ;;  %v11040_v5 = vrot.slane %v17603_v9, 3 }
 0x3e1   : > { %15931 = vmatmul.mubr.msk.bf16.gmra.mrb[4].mxu0 %vm1204_vm2, %v11021_v38  ;;  %v19597_v38 = vld [vmem:[%s17741_s25 + $0x1a0] sm:$0xff]   ;;  %v11043_v35 = vsel %vm11012_vm7, %v11040_v5, %v11042_v59  ;;  %v11056_v59 = vrot.slane %v17619_v17, 3 }
 0x3e2   : > { %15934 = vmatprep.mubr.msk.bf16.mxu0 %vm1204_vm2, %v11023_v50  ;;  %v4351_v42 = vrot.slane %v19597_v38, 1  ;;  %v11041_v50 = vsel %vm11012_vm7, %v11038_v2, %v11040_v5  ;;  %v19729_v17 = vld [vmem:[%s17741_s25 + $0x200] sm:$0xff]  }
 0x3e3   : > { %v11057_v60 = vsel %vm11012_vm7, %v11054_v32, %v11056_v59 }
 0x3e6   : > { %15313 = vmatmul.mubr.msk.bf16.gmra.mrb[76].mxu1 %vm1204_vm2, %v4332_v53  ;;  %v19602_v53 = vld [vmem:[%s17741_s25 + $0x1a8] sm:$0xff]  }
 0x3e7   : > { %15316 = vmatprep.mubr.msk.bf16.mxu1 %vm1204_vm2, %v4334_v15  ;;  %v4353_v27 = vrot.slane %v19602_v53, 1  ;;  %v4352_v15 = vsel %vm2712_vm5, %v4349_v46, %v4351_v42 }
 0x3e9   : > { %15935 = vmatmul.mubr.msk.bf16.gmra.mrb[8].mxu0 %vm1204_vm2, %v11025_v45  ;;  %v4354_v52 = vsel %vm2712_vm5, %v4351_v42, %v4353_v27  ;;  %v17608_v45 = vld [vmem:[%s17741_s25 + $0xa8] sm:$0xff]  }
 0x3ea   : > { %15938 = vmatprep.mubr.msk.bf16.mxu0 %vm1204_vm2, %v11027_v41  ;;  %v11046_v14 = vrot.slane %v17608_v45, 3  ;;  %v19615_v41 = vld [vmem:[%s17741_s25 + $0x1b0] sm:$0xff]  }
 0x3ec   : > { %v11047_v51 = vsel %vm11012_vm7, %v11044_v34, %v11046_v14  ;;  %v19682_v34 = vld [vmem:[%s17741_s25 + $0x1e8] sm:$0xff]  }
 0x3ee   : > { %15317 = vmatmul.mubr.msk.bf16.gmra.mrb[80].mxu1 %vm1204_vm2, %v4336_v57  ;;  %v4355_v57 = vrot.slane %v19615_v41, 1 }
 0x3ef   : > { %15320 = vmatprep.mubr.msk.bf16.mxu1 %vm1204_vm2, %v4338_v54  ;;  %v4357_v54 = vrot.slane %v19620_v18, 1 }
 0x3f0   : > { %v4356_v37 = vsel %vm2712_vm5, %v4353_v27, %v4355_v57 }
 0x3f1   : > { %15939 = vmatmul.mubr.msk.bf16.gmra.mrb[12].mxu0 %vm1204_vm2, %v11029_v47  ;;  %v11048_v47 = vrot.slane %v17611_v6, 3  ;;  %v4358_v31 = vsel %vm2712_vm5, %v4355_v57, %v4357_v54 }
 0x3f2   : > { %15942 = vmatprep.mubr.msk.bf16.mxu0 %vm1204_vm2, %v11031_v63  ;;  %v17612_v63 = vld [vmem:[%s17741_s25 + $0xb8] sm:$0xff]  }
 0x3f6   : > { %15321 = vmatmul.mubr.msk.bf16.gmra.mrb[84].mxu1 %vm1204_vm2, %v4340_v10  ;;  %v11050_v10 = vrot.slane %v17612_v63, 3 }
 0x3f7   : > { %15324 = vmatprep.mubr.msk.bf16.mxu1 %vm1204_vm2, %v4342_v7  ;;  %v11049_v7 = vsel %vm11012_vm7, %v11046_v14, %v11048_v47 }
 0x3f8   : > { %v11051_v1 = vsel %vm11012_vm7, %v11048_v47, %v11050_v10 }
 0x3f9   : > { %15943 = vmatmul.mubr.msk.bf16.gmra.mrb[16].mxu0 %vm1204_vm2, %v11033_v13  ;;  %v4360_v13 = vsel %vm2712_vm5, %v4357_v54, %v4359_v48 }
 0x3fa   : > { %15946 = vmatprep.mubr.msk.bf16.mxu0 %vm1204_vm2, %v11035_v19  ;;  %v11052_v19 = vrot.slane %v17615_v8, 3 }
 0x3fc   : > { %v11053_v2 = vsel %vm11012_vm7, %v11050_v10, %v11052_v19  ;;  %v19703_v10 = vld [vmem:[%s17741_s25 + $0x1f0] sm:$0xff]  }
 0x3fe   : > { %15325 = vmatmul.mubr.msk.bf16.gmra.mrb[88].mxu1 %vm1204_vm2, %v4344_v20  ;;  %v4362_v20 = vsel %vm2712_vm5, %v4359_v48, %v4361_v29  ;;  %v4371_v48 = vrot.slane %v19703_v10, 1 }
 0x3ff   : > { %15328 = vmatprep.mubr.msk.bf16.mxu1 %vm1204_vm2, %v4346_v4  ;;  %v19651_v4 = vld [vmem:[%s17741_s25 + $0x1d0] sm:$0xff]  }
 0x400   : > { %v4363_v40 = vrot.slane %v19651_v4, 1 }
 0x401   : > { %15947 = vmatmul.mubr.msk.bf16.gmra.mrb[20].mxu0 %vm1204_vm2, %v11037_v43  ;;  %v4365_v43 = vrot.slane %v19656_v36, 1 }
 0x402   : > { %15950 = vmatprep.mubr.msk.bf16.mxu0 %vm1204_vm2, %v11039_v23  ;;  %v11055_v23 = vsel %vm11012_vm7, %v11052_v19, %v11054_v32  ;;  %v4364_v5 = vsel %vm2712_vm5, %v4361_v29, %v4363_v40  ;;  %v19708_v29 = vld [vmem:[%s17741_s25 + $0x1f8] sm:$0xff]  }
 0x403   : > { %v4366_v42 = vsel %vm2712_vm5, %v4363_v40, %v4365_v43  ;;  %v17627_v40 = vld [vmem:[%s17741_s25 + $0xf0] sm:$0xff]  }
 0x406   : > { %15329 = vmatmul.mubr.msk.bf16.gmra.mrb[92].mxu1 %vm1204_vm2, %v4348_v56 }
 0x407   : > { %15332 = vmatprep.mubr.msk.bf16.mxu1 %vm1204_vm2, %v4350_v30 }
 0x409   : > { %15951 = vmatmul.mubr.msk.bf16.gmra.mrb[24].mxu0 %vm1204_vm2, %v11041_v50  ;;  %v17620_v50 = vld [vmem:[%s17741_s25 + $0xd8] sm:$0xff]  }
 0x40a   : > { %15954 = vmatprep.mubr.msk.bf16.mxu0 %vm1204_vm2, %v11043_v35  ;;  %v11058_v27 = vrot.slane %v17620_v50, 3  ;;  %v19677_v35 = vld [vmem:[%s17741_s25 + $0x1e0] sm:$0xff]   ;;  %v19734_v50 = vld [vmem:[%s17741_s25 + $0x208] sm:$0xff]  }
 0x40c   : > { %v11059_v14 = vsel %vm11012_vm7, %v11056_v59, %v11058_v27  ;;  %v4375_v59 = vrot.slane %v19729_v17, 1 }
 0x40e   : > { %15333 = vmatmul.mubr.msk.bf16.gmra.mrb[96].mxu1 %vm1204_vm2, %v4352_v15  ;;  %v4367_v15 = vrot.slane %v19677_v35, 1 }
 0x40f   : > { %15336 = vmatprep.mubr.msk.bf16.mxu1 %vm1204_vm2, %v4354_v52  ;;  %v4369_v52 = vrot.slane %v19682_v34, 1 }
 0x410   : > { %v4368_v54 = vsel %vm2712_vm5, %v4365_v43, %v4367_v15 }
 0x411   : > { %15955 = vmatmul.mubr.msk.bf16.gmra.mrb[28].mxu0 %vm1204_vm2, %v11045_v25  ;;  %v4370_v47 = vsel %vm2712_vm5, %v4367_v15, %v4369_v52  ;;  %v4372_v39 = vsel %vm2712_vm5, %v4369_v52, %v4371_v48 }
 0x412   : > { %15958 = vmatprep.mubr.msk.bf16.mxu0 %vm1204_vm2, %v11047_v51 }
 0x416   : > { %15337 = vmatmul.mubr.msk.bf16.gmra.mrb[100].mxu1 %vm1204_vm2, %v4356_v37  ;;  %v17623_v37 = vld [vmem:[%s17741_s25 + $0xe0] sm:$0xff]  }
 0x417   : > { %15340 = vmatprep.mubr.msk.bf16.mxu1 %vm1204_vm2, %v4358_v31  ;;  %v11060_v6 = vrot.slane %v17623_v37, 3  ;;  %v17624_v31 = vld [vmem:[%s17741_s25 + $0xe8] sm:$0xff]  }
 0x418   : > { %v11062_v63 = vrot.slane %v17624_v31, 3 }
 0x419   : > { %15959 = vmatmul.mubr.msk.bf16.gmra.mrb[32].mxu0 %vm1204_vm2, %v11049_v7  ;;  %v11061_v7 = vsel %vm11012_vm7, %v11058_v27, %v11060_v6  ;;  %v4377_v27 = vrot.slane %v19734_v50, 1 }
 0x41a   : > { %15962 = vmatprep.mubr.msk.bf16.mxu0 %vm1204_vm2, %v11051_v1  ;;  %v4373_v1 = vrot.slane %v19708_v29, 1  ;;  %v11063_v8 = vsel %vm11012_vm7, %v11060_v6, %v11062_v63  ;;  %v17631_v6 = vld [vmem:[%s17741_s25 + $0x100] sm:$0xff]  }
 0x41b   : > { %v4378_v31 = vsel %vm2712_vm5, %v4375_v59, %v4377_v27 }
 0x41c   : > { %v4374_v43 = vsel %vm2712_vm5, %v4371_v48, %v4373_v1 }
 0x41e   : > { %15341 = vmatmul.mubr.msk.bf16.gmra.mrb[104].mxu1 %vm1204_vm2, %v4360_v13 }
 0x41f   : > { %15344 = vmatprep.mubr.msk.bf16.mxu1 %vm1204_vm2, %v4362_v20 }
 0x421   : > { %v19659_v46 = vpop.f32.mrb[0].mxu1  ;;  %15963 = vmatmul.mubr.msk.bf16.gmra.mrb[36].mxu0 %vm1204_vm2, %v11053_v2  ;;  %v11064_v2 = vrot.slane %v17627_v40, 3 }
 0x422   : > { %v19662_v56 = vpop.f32.mrb[1].mxu1  ;;  %15966 = vmatprep.mubr.msk.bf16.mxu0 %vm1204_vm2, %v11055_v23  ;;  %v17628_v23 = vld [vmem:[%s17741_s25 + $0xf8] sm:$0xff]  }
 0x423   : > { %v19665_v9 = vpop.f32.mrb[2].mxu1 }
 0x424   : > { %v19668_v30 = vpop.f32.mrb[3].mxu1 }
 0x426   : > { %15345 = vmatmul.mubr.msk.bf16.gmra.mrb[108].mxu1 %vm1204_vm2, %v4364_v5  ;;  %v11066_v5 = vrot.slane %v17628_v23, 3 }
 0x427   : > { %15348 = vmatprep.mubr.msk.bf16.mxu1 %vm1204_vm2, %v4366_v42  ;;  %v11065_v42 = vsel %vm11012_vm7, %v11062_v63, %v11064_v2  ;;  %v17632_v63 = vld [vmem:[%s17741_s25 + $0x108] sm:$0xff]  }
 0x428   : > { %v11070_v48 = vrot.slane %v17632_v63, 3 }
 0x429   : > { %v19685_v45 = vpop.f32.mrb[4].mxu1  ;;  %15967 = vmatmul.mubr.msk.bf16.gmra.mrb[40].mxu0 %vm1204_vm2, %v11057_v60  ;;  %v11067_v60 = vsel %vm11012_vm7, %v11064_v2, %v11066_v5 }
 0x42a   : > { %v19688_v57 = vpop.f32.mrb[5].mxu1  ;;  %15970 = vmatprep.mubr.msk.bf16.mxu0 %vm1204_vm2, %v11059_v14 }
 0x42b   : > { %v19691_v25 = vpop.f32.mrb[6].mxu1 }
 0x42c   : > { %v19694_v51 = vpop.f32.mrb[7].mxu1 }
 0x42e   : > { %15349 = vmatmul.mubr.msk.bf16.gmra.mrb[112].mxu1 %vm1204_vm2, %v4368_v54  ;;  %v4376_v54 = vsel %vm2712_vm5, %v4373_v1, %v4375_v59 }
 0x42f   : > { %15352 = vmatprep.mubr.msk.bf16.mxu1 %vm1204_vm2, %v4370_v47  ;;  %v11068_v47 = vrot.slane %v17631_v6, 3 }
 0x431   : > { %v19711_v13 = vpop.f32.mrb[8].mxu1  ;;  %15971 = vmatmul.mubr.msk.bf16.gmra.mrb[44].mxu0 %vm1204_vm2, %v11061_v7  ;;  %v19755_v7 = vld [vmem:[%s17741_s25 + $0x210] sm:$0xff]  }
 0x432   : > { %v19714_v19 = vpop.f32.mrb[9].mxu1  ;;  %15974 = vmatprep.mubr.msk.bf16.mxu0 %vm1204_vm2, %v11063_v8  ;;  %v4379_v1 = vrot.slane %v19755_v7, 1  ;;  %v11069_v8 = vsel %vm11012_vm7, %v11066_v5, %v11068_v47  ;;  %v17635_v5 = vld [vmem:[%s17741_s25 + $0x110] sm:$0xff]  }
 0x433   : > { %v19717_v20 = vpop.f32.mrb[10].mxu1 }
 0x434   : > { %v19720_v32 = vpop.f32.mrb[11].mxu1 }
 0x436   : > { %15353 = vmatmul.mubr.msk.bf16.gmra.mrb[116].mxu1 %vm1204_vm2, %v4372_v39  ;;  %v19760_v39 = vld [vmem:[%s17741_s25 + $0x218] sm:$0xff]  }
 0x437   : > { %15356 = vmatprep.mubr.msk.bf16.mxu1 %vm1204_vm2, %v4374_v43  ;;  %v4381_v40 = vrot.slane %v19760_v39, 1  ;;  %v11071_v43 = vsel %vm11012_vm7, %v11068_v47, %v11070_v48  ;;  %v19781_v47 = vld [vmem:[%s17741_s25 + $0x220] sm:$0xff]  }
 0x439   : > { %v19737_v15 = vpop.f32.mrb[12].mxu1  ;;  %15975 = vmatmul.mubr.msk.bf16.gmra.mrb[48].mxu0 %vm1204_vm2, %v11065_v42  ;;  %v4380_v42 = vsel %vm2712_vm5, %v4377_v27, %v4379_v1  ;;  %v4382_v6 = vsel %vm2712_vm5, %v4379_v1, %v4381_v40  ;;  %v4383_v27 = vrot.slane %v19781_v47, 1  ;;  %v5631_v1 = vshrl.u32 %v19458_v58, 16 }
 0x43a   : > { %20780 = vst [vmem:[#allocation5_spill] sm:$0xff] %v19737_v15  ;;  %v19740_v52 = vpop.f32.mrb[13].mxu1  ;;  %15978 = vmatprep.mubr.msk.bf16.mxu0 %vm1204_vm2, %v11067_v60 }
 0x43b   : > { %20781 = vst [vmem:[#allocation6_spill] sm:$0xff] %v19740_v52  ;;  %v19743_v14 = vpop.f32.mrb[14].mxu1 }
 0x43c   : > { %20782 = vst [vmem:[#allocation7_spill] sm:$0xff] %v19743_v14  ;;  %v19746_v37 = vpop.f32.mrb[15].mxu1 }
 0x43d   : > { %20783 = vst [vmem:[#allocation10_spill] sm:$0xff] %v19746_v37  ;;  %v17639_v37 = vld [vmem:[%s17741_s25 + $0x120] sm:$0xff]  }
 0x43e   : > { %15357 = vmatmul.mubr.msk.bf16.gmra.mrb[120].mxu1 %vm1204_vm2, %v4376_v54  ;;  %v11072_v54 = vrot.slane %v17635_v5, 3  ;;  %v5634_v5 = vshll.u32 %v19458_v58, 16  ;;  %v11076_v14 = vrot.slane %v17639_v37, 3  ;;  %v5649_v37 = vshrl.u32 %v19476_v3, 16 }
 0x43f   : > { %15360 = vmatprep.mubr.msk.bf16.mxu1 %vm1204_vm2, %v4378_v31  ;;  %v17636_v31 = vld [vmem:[%s17741_s25 + $0x118] sm:$0xff]  }
 0x440   : > { %v11074_v63 = vrot.slane %v17636_v31, 3 }
 0x441   : > { %v19763_v2 = vpop.f32.mrb[16].mxu1  ;;  %15979 = vmatmul.mubr.msk.bf16.gmra.mrb[52].mxu0 %vm1204_vm2, %v11069_v8  ;;  %v11073_v8 = vsel %vm11012_vm7, %v11070_v48, %v11072_v54  ;;  %v4384_v48 = vsel %vm2712_vm5, %v4381_v40, %v4383_v27  ;;  %v5640_v40 = vshrl.u32 %v19471_v44, 16 }
 0x442   : > { %20784 = vst [vmem:[#allocation8_spill] sm:$0xff] %v19763_v2  ;;  %v19766_v23 = vpop.f32.mrb[17].mxu1  ;;  %15982 = vmatprep.mubr.msk.bf16.mxu0 %vm1204_vm2, %v11071_v43 }
 0x443   : > { %20785 = vst [vmem:[#allocation9_spill] sm:$0xff] %v19766_v23  ;;  %v19769_v59 = vpop.f32.mrb[18].mxu1  ;;  %v17383_v23 = vld [vmem:[%s17741_s25 + $0x230] ss:$0 sps:$4 sm:$0x11]  }
 0x444   : > { %20786 = vst [vmem:[#allocation11_spill] sm:$0xff] %v19769_v59  ;;  %v19772_v60 = vpop.f32.mrb[19].mxu1 }
 0x445   : > { %20787 = vst [vmem:[#allocation14_spill] sm:$0xff] %v19772_v60  ;;  %v19786_v60 = vld [vmem:[%s17741_s25 + $0x228] sm:$0xff]  }
 0x446   : > { %15361 = vmatmul.mubr.msk.bf16.gmra.mrb[124].mxu1 %vm1204_vm2, %v4380_v42  ;;  %20788 = vst [vmem:[#allocation12_spill] sm:$0xff] %v19786_v60  ;;  %v4385_v43 = vrot.slane %v19786_v60, 1  ;;  %v11075_v42 = vsel %vm11012_vm7, %v11072_v54, %v11074_v63  ;;  %v5636_v60 = vrot.slane %v5634_v5, 2  ;;  %v17640_v54 = vld [vmem:[%s17741_s25 + $0x128] sm:$0xff]  }
 0x447   : > { %15364 = vmatprep.mubr.msk.bf16.mxu1 %vm1204_vm2, %v4382_v6  ;;  %v11078_v52 = vrot.slane %v17640_v54, 3  ;;  %v20795_v54 = vld [vmem:[#allocation4_spill] sm:$0xff] }
 0x448   : > { %v4386_v58 = vsel %vm2712_vm5, %v4383_v27, %v4385_v43  ;;  %v5652_v27 = vshll.u32 %v19476_v3, 16  ;;  %v17641_v3 = vld [vmem:[%s17741_s25 + $0x130] sm:$0xff]  }
 0x449   : > { %v19791_v31 = vpop.f32.mrb[20].mxu1  ;;  %15983 = vmatmul.mubr.msk.bf16.gmra.mrb[56].mxu0 %vm1204_vm2, %v11073_v8  ;;  %v4387_v8 = vrot.slane %v17383_v23, 1  ;;  %v11079_v5 = vsel %vm11012_vm7, %v11076_v14, %v11078_v52 }
 0x44a   : > { %20789 = vst [vmem:[#allocation13_spill] sm:$0xff] %v19791_v31  ;;  %v19794_v6 = vpop.f32.mrb[21].mxu1  ;;  %15986 = vmatprep.mubr.msk.bf16.mxu0 %vm1204_vm2, %v11075_v42  ;;  %v5633_v31 = vrot.slane %v5631_v1, 1  ;;  %v11077_v42 = vsel %vm11012_vm7, %v11074_v63, %v11076_v14  ;;  %v5651_v14 = vrot.slane %v5649_v37, 1  ;;  %v5670_v37 = vshll.u32 %v19494_v11, 16 }
 0x44b   : > { %20790 = vst [vmem:[#allocation15_spill] sm:$0xff] %v19794_v6  ;;  %v19797_v59 = vpop.f32.mrb[22].mxu1  ;;  %v5654_v6 = vrot.slane %v5652_v27, 2 }
 0x44c   : > { %20791 = vst [vmem:[#allocation18_spill] sm:$0xff] %v19797_v59  ;;  %v19801_v2 = vpop.f32.mrb[23].mxu1  ;;  %v5637_v59 = vor.u32 %v5636_v60, %v5633_v31  ;;  %v11080_v31 = vrot.slane %v17641_v3, 3 }
 0x44d   : > { %20792 = vst [vmem:[#allocation16_spill] sm:$0xff] %v19801_v2  ;;  %v5643_v2 = vshll.u32 %v19471_v44, 16  ;;  %v4388_v44 = vsel %vm2712_vm5, %v4385_v43, %v4387_v8  ;;  %v5661_v8 = vshll.u32 %v19489_v21, 16 }
 0x44e   : > { %15365 = vmatmul.mubr.msk.bf16.gmra.mrb[128].mxu1 %vm1204_vm2, %v4384_v48 }
 0x44f   : > { %15368 = vmatprep.mubr.msk.bf16.mxu1 %vm1204_vm2, %v4386_v58  ;;  %v5642_v58 = vrot.slane %v5640_v40, 1  ;;  %v5645_v63 = vrot.slane %v5643_v2, 2  ;;  %v5658_v2 = vshrl.u32 %v19489_v21, 16  ;;  %v11081_v40 = vsel %vm11012_vm7, %v11078_v52, %v11080_v31 }
 0x450   : > { %v5663_v52 = vrot.slane %v5661_v8, 2 }
 0x451   : > { %v19814_v1 = vpop.f32.mrb[24].mxu1  ;;  %15987 = vmatmul.mubr.msk.bf16.gmra.mrb[60].mxu0 %vm1204_vm2, %v11077_v42  ;;  %v5646_v43 = vor.u32 %v5645_v63, %v5642_v58  ;;  %v5655_v42 = vor.u32 %v5654_v6, %v5651_v14  ;;  %v5660_v58 = vrot.slane %v5658_v2, 1  ;;  %v17644_v14 = vld [vmem:[%s17741_s25 + $0x148] sm:$0xff]   ;;  %v5679_v2 = vshll.u32 %v19507_v33, 16 }
 0x452   : > { %20793 = vst [vmem:[#allocation17_spill] sm:$0xff] %v19814_v1  ;;  %v19817_v48 = vpop.f32.mrb[25].mxu1  ;;  %15990 = vmatprep.mubr.msk.bf16.mxu0 %vm1204_vm2, %v11079_v5  ;;  %v5638_v1 = vsel %vm5315_vm3, %v20795_v54, %v5637_v59  ;;  %v5667_v5 = vshrl.u32 %v19494_v11, 16  ;;  %v17643_v11 = vld [vmem:[%s17741_s25 + $0x140] sm:$0xff]  }
 0x453   : > { %20794 = vst [vmem:[#allocation19_spill] sm:$0xff] %v19817_v48  ;;  %v19820_v23 = vpop.f32.mrb[26].mxu1  ;;  %v17642_v48 = vld [vmem:[%s17741_s25 + $0x138] sm:$0xff]   ;;  %v5647_v21 = vsel %vm5315_vm3, %v5637_v59, %v5646_v43  ;;  %v11084_v63 = vrot.slane %v17643_v11, 3  ;;  %v5656_v3 = vsel %vm5315_vm3, %v5646_v43, %v5655_v42  ;;  %v5676_v59 = vshrl.u32 %v19507_v33, 16 }
 0x454   : > { %v19823_v60 = vpop.f32.mrb[27].mxu1  ;;  %v11082_v15 = vrot.slane %v17642_v48, 3  ;;  %v5669_v54 = vrot.slane %v5667_v5, 1  ;;  %v5685_v11 = vshrl.u32 %v19512_v24, 16  ;;  %v5688_v43 = vshll.u32 %v19512_v24, 16  ;;  %v17645_v24 = vld [vmem:[%s17741_s25 + $0x150] sm:$0xff]  }
 0x456   : > { %15369 = vmatmul.mubr.msk.bf16.gmra.mrb[132].mxu1 %vm1204_vm2, %v4388_v44  ;;  %v11083_v48 = vsel %vm11012_vm7, %v11080_v31, %v11082_v15  ;;  %v5672_v31 = vrot.slane %v5670_v37, 2  ;;  %v11085_v8 = vsel %vm11012_vm7, %v11082_v15, %v11084_v63  ;;  %v5681_v15 = vrot.slane %v5679_v2, 2 }
 0x457   : > { %15442 = vmatprep.mubr.msk.bf16.mxu1 %vm1204_vm2, %v5638_v1 }
 0x459   : > { %v19837_v27 = vpop.f32.mrb[28].mxu1  ;;  %15991 = vmatmul.mubr.msk.bf16.gmra.mrb[64].mxu0 %vm1204_vm2, %v11081_v40  ;;  %v5664_v40 = vor.u32 %v5663_v52, %v5660_v58  ;;  %v5678_v52 = vrot.slane %v5676_v59, 1  ;;  %v5697_v59 = vshll.u32 %v19525_v22, 16 }
 0x45a   : > { %v19840_v44 = vpop.f32.mrb[29].mxu1  ;;  %15994 = vmatprep.mubr.msk.bf16.mxu0 %vm1204_vm2, %v11083_v48  ;;  %v5673_v48 = vor.u32 %v5672_v31, %v5669_v54  ;;  %v11088_v54 = vrot.slane %v17645_v24, 3  ;;  %v5703_v24 = vshrl.u32 %v19530_v12, 16 }
 0x45b   : > { %20796 = vst [vmem:[#allocation22_spill] sm:$0xff] %v19840_v44  ;;  %v19843_v1 = vpop.f32.mrb[30].mxu1  ;;  %v11086_v44 = vrot.slane %v17644_v14, 3  ;;  %v5665_v33 = vsel %vm5315_vm3, %v5655_v42, %v5664_v40  ;;  %v5687_v14 = vrot.slane %v5685_v11, 1  ;;  %v5694_v42 = vshrl.u32 %v19525_v22, 16 }
 0x45c   : > { %v19846_v6 = vpop.f32.mrb[31].mxu1  ;;  %v5674_v31 = vsel %vm5315_vm3, %v5664_v40, %v5673_v48  ;;  %v5706_v40 = vshll.u32 %v19530_v12, 16  ;;  %v17647_v12 = vld [vmem:[%s17741_s25 + $0x160] sm:$0xff]  }
 0x45d   : > { %v11087_v37 = vsel %vm11012_vm7, %v11084_v63, %v11086_v44  ;;  %v5690_v63 = vrot.slane %v5688_v43, 2  ;;  %v11089_v2 = vsel %vm11012_vm7, %v11086_v44, %v11088_v54  ;;  %v5699_v44 = vrot.slane %v5697_v59, 2 }
 0x45e   : > { %15443 = vmatmul.mubr.msk.bf16.vlgmr.msra.gmra.mrb[68].mxu1 %vm1204_vm2, %v5647_v21 }
 0x45f   : > { %15446 = vmatprep.mubr.msk.bf16.mxu1 %vm1204_vm2, %v5656_v3 }
 0x461   : > { %v19859_v5 = vpop.f32.mrb[32].mxu1  ;;  %15995 = vmatmul.mubr.msk.bf16.gmra.mrb[68].mxu0 %vm1204_vm2, %v11085_v8  ;;  %v5682_v8 = vor.u32 %v5681_v15, %v5678_v52  ;;  %v5696_v52 = vrot.slane %v5694_v42, 1  ;;  %v5715_v42 = vshll.u32 %v19543_v55, 16 }
 0x462   : > { %20797 = vst [vmem:[#allocation20_spill] sm:$0xff] %v19859_v5  ;;  %v19862_v21 = vpop.f32.mrb[33].mxu1  ;;  %15998 = vmatprep.mubr.msk.bf16.mxu0 %vm1204_vm2, %v11087_v37  ;;  %v17646_v5 = vld [vmem:[%s17741_s25 + $0x158] sm:$0xff]   ;;  %v5691_v37 = vor.u32 %v5690_v63, %v5687_v14  ;;  %v5705_v63 = vrot.slane %v5703_v24, 1 }
 0x463   : > { %20798 = vst [vmem:[#allocation21_spill] sm:$0xff] %v19862_v21  ;;  %v19865_v58 = vpop.f32.mrb[34].mxu1  ;;  %v11090_v21 = vrot.slane %v17646_v5, 3  ;;  %v5683_v22 = vsel %vm5315_vm3, %v5673_v48, %v5682_v8  ;;  %v5712_v48 = vshrl.u32 %v19543_v55, 16 }
 0x464   : > { %v19868_v3 = vpop.f32.mrb[35].mxu1  ;;  %v5692_v14 = vsel %vm5315_vm3, %v5682_v8, %v5691_v37  ;;  %v5724_v8 = vshll.u32 %v19548_v61, 16 }
 0x465   : > { %v11091_v43 = vsel %vm11012_vm7, %v11088_v54, %v11090_v21  ;;  %v5708_v54 = vrot.slane %v5706_v40, 2 }
 0x466   : > { %15447 = vmatmul.mubr.msk.bf16.gmra.mrb[72].mxu1 %vm1204_vm2, %v5665_v33 }
 0x467   : > { %15450 = vmatprep.mubr.msk.bf16.mxu1 %vm1204_vm2, %v5674_v31  ;;  %v11092_v31 = vrot.slane %v17647_v12, 3  ;;  %v5721_v12 = vshrl.u32 %v19548_v61, 16  ;;  %v17649_v61 = vld [vmem:[%s17741_s25 + $0x170] sm:$0xff]  }
 0x469   : > { %v19881_v11 = vpop.f32.mrb[36].mxu1  ;;  %15999 = vmatmul.mubr.msk.bf16.gmra.mrb[72].mxu0 %vm1204_vm2, %v11089_v2  ;;  %v5700_v2 = vor.u32 %v5699_v44, %v5696_v52  ;;  %v11093_v59 = vsel %vm11012_vm7, %v11090_v21, %v11092_v31  ;;  %v5714_v52 = vrot.slane %v5712_v48, 1  ;;  %v5717_v21 = vrot.slane %v5715_v42, 2 }
 0x46a   : > { %20799 = vst [vmem:[#allocation23_spill] sm:$0xff] %v19881_v11  ;;  %v19884_v5 = vpop.f32.mrb[37].mxu1  ;;  %16002 = vmatprep.mubr.msk.bf16.mxu0 %vm1204_vm2, %v11091_v43  ;;  %v17648_v11 = vld [vmem:[%s17741_s25 + $0x168] sm:$0xff]   ;;  %v5709_v43 = vor.u32 %v5708_v54, %v5705_v63  ;;  %v5723_v54 = vrot.slane %v5721_v12, 1  ;;  %v5733_v48 = vshll.u32 %v19561_v49, 16 }
 0x46b   : > { %20800 = vst [vmem:[#allocation26_spill] sm:$0xff] %v19884_v5  ;;  %v19887_v33 = vpop.f32.mrb[38].mxu1  ;;  %v11094_v5 = vrot.slane %v17648_v11, 3  ;;  %v5701_v55 = vsel %vm5315_vm3, %v5691_v37, %v5700_v2  ;;  %v5730_v37 = vshrl.u32 %v19561_v49, 16 }
 0x46c   : > { %v19890_v15 = vpop.f32.mrb[39].mxu1  ;;  %v5710_v63 = vsel %vm5315_vm3, %v5700_v2, %v5709_v43  ;;  %v5742_v2 = vshll.u32 %v19566_v0, 16 }
 0x46d   : > { %v11095_v40 = vsel %vm11012_vm7, %v11092_v31, %v11094_v5  ;;  %v5726_v31 = vrot.slane %v5724_v8, 2 }
 0x46e   : > { %15451 = vmatmul.mubr.msk.bf16.gmra.mrb[76].mxu1 %vm1204_vm2, %v5683_v22 }
 0x46f   : > { %15454 = vmatprep.mubr.msk.bf16.mxu1 %vm1204_vm2, %v5692_v14  ;;  %v11096_v14 = vrot.slane %v17649_v61, 3  ;;  %v5739_v61 = vshrl.u32 %v19566_v0, 16  ;;  %v17651_v0 = vld [vmem:[%s17741_s25 + $0x180] sm:$0xff]  }
 0x471   : > { %v19903_v24 = vpop.f32.mrb[40].mxu1  ;;  %16003 = vmatmul.mubr.msk.bf16.gmra.mrb[76].mxu0 %vm1204_vm2, %v11093_v59  ;;  %v5718_v59 = vor.u32 %v5717_v21, %v5714_v52  ;;  %v11097_v42 = vsel %vm11012_vm7, %v11094_v5, %v11096_v14  ;;  %v5732_v52 = vrot.slane %v5730_v37, 1  ;;  %v5735_v5 = vrot.slane %v5733_v48, 2 }
 0x472   : > { %20801 = vst [vmem:[#allocation24_spill] sm:$0xff] %v19903_v24  ;;  %v19906_v11 = vpop.f32.mrb[41].mxu1  ;;  %16006 = vmatprep.mubr.msk.bf16.mxu0 %vm1204_vm2, %v11095_v40  ;;  %v17650_v24 = vld [vmem:[%s17741_s25 + $0x178] sm:$0xff]   ;;  %v5727_v40 = vor.u32 %v5726_v31, %v5723_v54  ;;  %v5741_v31 = vrot.slane %v5739_v61, 1  ;;  %v5751_v37 = vshll.u32 %v19579_v28, 16 }
 0x473   : > { %20802 = vst [vmem:[#allocation25_spill] sm:$0xff] %v19906_v11  ;;  %v19909_v22 = vpop.f32.mrb[42].mxu1  ;;  %v11098_v11 = vrot.slane %v17650_v24, 3  ;;  %v5719_v49 = vsel %vm5315_vm3, %v5709_v43, %v5718_v59  ;;  %v5748_v43 = vshrl.u32 %v19579_v28, 16 }
 0x474   : > { %v19912_v44 = vpop.f32.mrb[43].mxu1  ;;  %v5728_v54 = vsel %vm5315_vm3, %v5718_v59, %v5727_v40  ;;  %v5760_v59 = vshll.u32 %v19584_v26, 16 }
 0x475   : > { %v11099_v8 = vsel %vm11012_vm7, %v11096_v14, %v11098_v11  ;;  %v5744_v14 = vrot.slane %v5742_v2, 2 }
 0x476   : > { %15455 = vmatmul.mubr.msk.bf16.gmra.mrb[80].mxu1 %vm1204_vm2, %v5701_v55 }
 0x477   : > { %15458 = vmatprep.mubr.msk.bf16.mxu1 %vm1204_vm2, %v5710_v63  ;;  %v11100_v63 = vrot.slane %v17651_v0, 3  ;;  %v5757_v0 = vshrl.u32 %v19584_v26, 16  ;;  %v17653_v26 = vld [vmem:[%s17741_s25 + $0x190] sm:$0xff]  }
 0x479   : > { %v19925_v12 = vpop.f32.mrb[44].mxu1  ;;  %16007 = vmatmul.mubr.msk.bf16.gmra.mrb[80].mxu0 %vm1204_vm2, %v11097_v42  ;;  %v5736_v42 = vor.u32 %v5735_v5, %v5732_v52  ;;  %v11101_v48 = vsel %vm11012_vm7, %v11098_v11, %v11100_v63  ;;  %v5750_v52 = vrot.slane %v5748_v43, 1  ;;  %v5753_v11 = vrot.slane %v5751_v37, 2 }
 0x47a   : > { %20803 = vst [vmem:[#allocation27_spill] sm:$0xff] %v19925_v12  ;;  %v19928_v24 = vpop.f32.mrb[45].mxu1  ;;  %16010 = vmatprep.mubr.msk.bf16.mxu0 %vm1204_vm2, %v11099_v8  ;;  %v17652_v12 = vld [vmem:[%s17741_s25 + $0x188] sm:$0xff]   ;;  %v5745_v8 = vor.u32 %v5744_v14, %v5741_v31  ;;  %v5759_v14 = vrot.slane %v5757_v0, 1  ;;  %v5769_v43 = vshll.u32 %v19597_v38, 16 }
 0x47b   : > { %20804 = vst [vmem:[#allocation30_spill] sm:$0xff] %v19928_v24  ;;  %v19931_v55 = vpop.f32.mrb[46].mxu1  ;;  %v11102_v24 = vrot.slane %v17652_v12, 3  ;;  %v5737_v28 = vsel %vm5315_vm3, %v5727_v40, %v5736_v42  ;;  %v5766_v40 = vshrl.u32 %v19597_v38, 16 }
 0x47c   : > { %v19934_v21 = vpop.f32.mrb[47].mxu1  ;;  %v5746_v31 = vsel %vm5315_vm3, %v5736_v42, %v5745_v8  ;;  %v5778_v42 = vshll.u32 %v19602_v53, 16 }
 0x47d   : > { %v11103_v2 = vsel %vm11012_vm7, %v11100_v63, %v11102_v24  ;;  %v5762_v63 = vrot.slane %v5760_v59, 2 }
 0x47e   : > { %15459 = vmatmul.mubr.msk.bf16.gmra.mrb[84].mxu1 %vm1204_vm2, %v5719_v49 }
 0x47f   : > { %15462 = vmatprep.mubr.msk.bf16.mxu1 %vm1204_vm2, %v5728_v54  ;;  %v11104_v54 = vrot.slane %v17653_v26, 3  ;;  %v5775_v26 = vshrl.u32 %v19602_v53, 16  ;;  %v17655_v53 = vld [vmem:[%s17741_s25 + $0x1a0] sm:$0xff]  }
 0x481   : > { %v19947_v61 = vpop.f32.mrb[48].mxu1  ;;  %16011 = vmatmul.mubr.msk.bf16.gmra.mrb[84].mxu0 %vm1204_vm2, %v11101_v48  ;;  %v5754_v48 = vor.u32 %v5753_v11, %v5750_v52  ;;  %v11105_v37 = vsel %vm11012_vm7, %v11102_v24, %v11104_v54  ;;  %v5768_v52 = vrot.slane %v5766_v40, 1  ;;  %v5771_v24 = vrot.slane %v5769_v43, 2 }
 0x482   : > { %20805 = vst [vmem:[#allocation28_spill] sm:$0xff] %v19947_v61  ;;  %v19950_v12 = vpop.f32.mrb[49].mxu1  ;;  %16014 = vmatprep.mubr.msk.bf16.mxu0 %vm1204_vm2, %v11103_v2  ;;  %v17654_v61 = vld [vmem:[%s17741_s25 + $0x198] sm:$0xff]   ;;  %v5763_v2 = vor.u32 %v5762_v63, %v5759_v14  ;;  %v5777_v63 = vrot.slane %v5775_v26, 1  ;;  %v5787_v40 = vshll.u32 %v19615_v41, 16 }
 0x483   : > { %20806 = vst [vmem:[#allocation29_spill] sm:$0xff] %v19950_v12  ;;  %v19953_v49 = vpop.f32.mrb[50].mxu1  ;;  %v11106_v12 = vrot.slane %v17654_v61, 3  ;;  %v5755_v38 = vsel %vm5315_vm3, %v5745_v8, %v5754_v48  ;;  %v5784_v8 = vshrl.u32 %v19615_v41, 16 }
 0x484   : > { %v19956_v5 = vpop.f32.mrb[51].mxu1  ;;  %v5764_v14 = vsel %vm5315_vm3, %v5754_v48, %v5763_v2  ;;  %v5796_v48 = vshll.u32 %v19620_v18, 16 }
 0x485   : > { %v11107_v59 = vsel %vm11012_vm7, %v11104_v54, %v11106_v12  ;;  %v5780_v54 = vrot.slane %v5778_v42, 2 }
 0x486   : > { %15463 = vmatmul.mubr.msk.bf16.gmra.mrb[88].mxu1 %vm1204_vm2, %v5737_v28 }
 0x487   : > { %15466 = vmatprep.mubr.msk.bf16.mxu1 %vm1204_vm2, %v5746_v31  ;;  %v11108_v31 = vrot.slane %v17655_v53, 3  ;;  %v5793_v53 = vshrl.u32 %v19620_v18, 16  ;;  %v17657_v18 = vld [vmem:[%s17741_s25 + $0x1b0] sm:$0xff]  }
 0x489   : > { %v19969_v0 = vpop.f32.mrb[52].mxu1  ;;  %16015 = vmatmul.mubr.msk.bf16.gmra.mrb[88].mxu0 %vm1204_vm2, %v11105_v37  ;;  %v5772_v37 = vor.u32 %v5771_v24, %v5768_v52  ;;  %v11109_v43 = vsel %vm11012_vm7, %v11106_v12, %v11108_v31  ;;  %v5786_v52 = vrot.slane %v5784_v8, 1  ;;  %v5789_v12 = vrot.slane %v5787_v40, 2 }
 0x48a   : > { %20807 = vst [vmem:[#allocation31_spill] sm:$0xff] %v19969_v0  ;;  %v19972_v61 = vpop.f32.mrb[53].mxu1  ;;  %16018 = vmatprep.mubr.msk.bf16.mxu0 %vm1204_vm2, %v11107_v59  ;;  %v17656_v0 = vld [vmem:[%s17741_s25 + $0x1a8] sm:$0xff]   ;;  %v5781_v59 = vor.u32 %v5780_v54, %v5777_v63  ;;  %v5795_v54 = vrot.slane %v5793_v53, 1  ;;  %v5805_v8 = vshll.u32 %v19633_v62, 16 }
 0x48b   : > { %20808 = vst [vmem:[#allocation34_spill] sm:$0xff] %v19972_v61  ;;  %v19975_v28 = vpop.f32.mrb[54].mxu1  ;;  %v11110_v61 = vrot.slane %v17656_v0, 3  ;;  %v5773_v41 = vsel %vm5315_vm3, %v5763_v2, %v5772_v37  ;;  %v5802_v2 = vshrl.u32 %v19633_v62, 16 }
 0x48c   : > { %v19978_v11 = vpop.f32.mrb[55].mxu1  ;;  %v5782_v63 = vsel %vm5315_vm3, %v5772_v37, %v5781_v59  ;;  %v5814_v37 = vshll.u32 %v19638_v16, 16 }
 0x48d   : > { %v11111_v42 = vsel %vm11012_vm7, %v11108_v31, %v11110_v61  ;;  %v5798_v31 = vrot.slane %v5796_v48, 2 }
 0x48e   : > { %15467 = vmatmul.mubr.msk.bf16.gmra.mrb[92].mxu1 %vm1204_vm2, %v5755_v38 }
 0x48f   : > { %15470 = vmatprep.mubr.msk.bf16.mxu1 %vm1204_vm2, %v5764_v14  ;;  %v11112_v14 = vrot.slane %v17657_v18, 3  ;;  %v5811_v18 = vshrl.u32 %v19638_v16, 16  ;;  %v17659_v16 = vld [vmem:[%s17741_s25 + $0x1c0] sm:$0xff]  }
 0x491   : > { %v19991_v26 = vpop.f32.mrb[56].mxu1  ;;  %16019 = vmatmul.mubr.msk.bf16.gmra.mrb[92].mxu0 %vm1204_vm2, %v11109_v43  ;;  %v5790_v43 = vor.u32 %v5789_v12, %v5786_v52  ;;  %v11113_v40 = vsel %vm11012_vm7, %v11110_v61, %v11112_v14  ;;  %v5804_v52 = vrot.slane %v5802_v2, 1  ;;  %v5807_v61 = vrot.slane %v5805_v8, 2 }
 0x492   : > { %20809 = vst [vmem:[#allocation32_spill] sm:$0xff] %v19991_v26  ;;  %v19994_v0 = vpop.f32.mrb[57].mxu1  ;;  %16022 = vmatprep.mubr.msk.bf16.mxu0 %vm1204_vm2, %v11111_v42  ;;  %v17658_v26 = vld [vmem:[%s17741_s25 + $0x1b8] sm:$0xff]   ;;  %v5799_v42 = vor.u32 %v5798_v31, %v5795_v54  ;;  %v5813_v31 = vrot.slane %v5811_v18, 1  ;;  %v5823_v2 = vshll.u32 %v19651_v4, 16 }
 0x493   : > { %20810 = vst [vmem:[#allocation33_spill] sm:$0xff] %v19994_v0  ;;  %v19997_v38 = vpop.f32.mrb[58].mxu1  ;;  %v11114_v0 = vrot.slane %v17658_v26, 3  ;;  %v5791_v62 = vsel %vm5315_vm3, %v5781_v59, %v5790_v43  ;;  %v5820_v59 = vshrl.u32 %v19651_v4, 16 }
 0x494   : > { %v20000_v24 = vpop.f32.mrb[59].mxu1  ;;  %v5800_v54 = vsel %vm5315_vm3, %v5790_v43, %v5799_v42  ;;  %v5832_v43 = vshll.u32 %v19656_v36, 16 }
 0x495   : > { %v11115_v48 = vsel %vm11012_vm7, %v11112_v14, %v11114_v0  ;;  %v5816_v14 = vrot.slane %v5814_v37, 2 }
 0x496   : > { %15471 = vmatmul.mubr.msk.bf16.gmra.mrb[96].mxu1 %vm1204_vm2, %v5773_v41 }
 0x497   : > { %15474 = vmatprep.mubr.msk.bf16.mxu1 %vm1204_vm2, %v5782_v63  ;;  %v11116_v63 = vrot.slane %v17659_v16, 3  ;;  %v5829_v16 = vshrl.u32 %v19656_v36, 16  ;;  %v17661_v36 = vld [vmem:[%s17741_s25 + $0x1d0] sm:$0xff]  }
 0x499   : > { %v20013_v53 = vpop.f32.mrb[60].mxu1  ;;  %16023 = vmatmul.mubr.msk.bf16.gmra.mrb[96].mxu0 %vm1204_vm2, %v11113_v40  ;;  %v5808_v40 = vor.u32 %v5807_v61, %v5804_v52  ;;  %v11117_v8 = vsel %vm11012_vm7, %v11114_v0, %v11116_v63  ;;  %v5822_v52 = vrot.slane %v5820_v59, 1  ;;  %v5825_v0 = vrot.slane %v5823_v2, 2 }
 0x49a   : > { %20811 = vst [vmem:[#allocation35_spill] sm:$0xff] %v20013_v53  ;;  %v20016_v26 = vpop.f32.mrb[61].mxu1  ;;  %16026 = vmatprep.mubr.msk.bf16.mxu0 %vm1204_vm2, %v11115_v48  ;;  %v17660_v53 = vld [vmem:[%s17741_s25 + $0x1c8] sm:$0xff]   ;;  %v5817_v48 = vor.u32 %v5816_v14, %v5813_v31  ;;  %v5831_v14 = vrot.slane %v5829_v16, 1  ;;  %v5850_v16 = vshll.u32 %v19682_v34, 16 }
 0x49b   : > { %20812 = vst [vmem:[#allocation36_spill] sm:$0xff] %v20016_v26  ;;  %v20019_v41 = vpop.f32.mrb[62].mxu1  ;;  %v11118_v26 = vrot.slane %v17660_v53, 3  ;;  %v5809_v4 = vsel %vm5315_vm3, %v5799_v42, %v5808_v40  ;;  %v5826_v42 = vor.u32 %v5825_v0, %v5822_v52 }
 0x49c   : > { %20813 = vst [vmem:[#allocation37_spill] sm:$0xff] %v20019_v41  ;;  %v20022_v12 = vpop.f32.mrb[63].mxu1  ;;  %v5818_v31 = vsel %vm5315_vm3, %v5808_v40, %v5817_v48  ;;  %v5847_v40 = vshrl.u32 %v19682_v34, 16 }
 0x49d   : > { %20814 = vst [vmem:[#allocation3_spill] sm:$0xff] %v20022_v12  ;;  %v11119_v37 = vsel %vm11012_vm7, %v11116_v63, %v11118_v26  ;;  %v5834_v63 = vrot.slane %v5832_v43, 2  ;;  %v17666_v12 = vld [vmem:[%s17741_s25 + $0x1f8] sm:$0xff]  }
 0x49e   : > { %15475 = vmatmul.mubr.msk.bf16.gmra.mrb[100].mxu1 %vm1204_vm2, %v5791_v62  ;;  %v5849_v0 = vrot.slane %v5847_v40, 1  ;;  %v5868_v40 = vshll.u32 %v19708_v29, 16 }
 0x49f   : > { %15478 = vmatprep.mubr.msk.bf16.mxu1 %vm1204_vm2, %v5800_v54  ;;  %v11120_v54 = vrot.slane %v17661_v36, 3  ;;  %v5835_v2 = vor.u32 %v5834_v63, %v5831_v14  ;;  %v17663_v36 = vld [vmem:[%s17741_s25 + $0x1e0] sm:$0xff]   ;;  %v5859_v63 = vshll.u32 %v19703_v10, 16 }
 0x4a0   : > { %v20068_v14 = vld [vmem:[%s20653_s2] ss:$0 sm:$0xff] }
 0x4a1   : > { %v20035_v18 = vpop.f32.mrb[64].mxu1  ;;  %16027 = vmatmul.mubr.msk.bf16.gmra.mrb[100].mxu0 %vm1204_vm2, %v11117_v8  ;;  %v5838_v8 = vshrl.u32 %v19677_v35, 16  ;;  %v11121_v59 = vsel %vm11012_vm7, %v11118_v26, %v11120_v54  ;;  %v17664_v26 = vld [vmem:[%s17741_s25 + $0x1e8] sm:$0xff]  }
 0x4a2   : > { %20815 = vst [vmem:[#allocation2_spill] sm:$0xff] %v20035_v18  ;;  %v20038_v53 = vpop.f32.mrb[65].mxu1  ;;  %16030 = vmatprep.mubr.msk.bf16.mxu0 %vm1204_vm2, %v11119_v37  ;;  %v11126_v52 = vrot.slane %v17664_v26, 3 }
 0x4a3   : > { %20816 = vst [vmem:[#allocation4_spill] sm:$0xff] %v20038_v53  ;;  %v20041_v62 = vpop.f32.mrb[66].mxu1  ;;  %v17662_v53 = vld [vmem:[%s17741_s25 + $0x1d8] sm:$0xff]   ;;  %v5840_v37 = vrot.slane %v5838_v8, 1 }
 0x4a4   : > { %20817 = vst [vmem:[#allocation38_spill] sm:$0xff] %v20041_v62  ;;  %v20044_v61 = vpop.f32.mrb[67].mxu1  ;;  %v11122_v18 = vrot.slane %v17662_v53, 3  ;;  %v5841_v62 = vshll.u32 %v19677_v35, 16  ;;  %v5827_v35 = vsel %vm5315_vm3, %v5817_v48, %v5826_v42 }
 0x4a5   : > { %20818 = vst [vmem:[#allocation39_spill] sm:$0xff] %v20044_v61  ;;  %v11124_v61 = vrot.slane %v17663_v36, 3 }
 0x4a6   : > { %15479 = vmatmul.mubr.msk.bf16.gmra.mrb[104].mxu1 %vm1204_vm2, %v5809_v4  ;;  %v11123_v43 = vsel %vm11012_vm7, %v11120_v54, %v11122_v18  ;;  %v5843_v53 = vrot.slane %v5841_v62, 2  ;;  %v5836_v4 = vsel %vm5315_vm3, %v5826_v42, %v5835_v2  ;;  %v5856_v54 = vshrl.u32 %v19703_v10, 16 }
 0x4a7   : > { %15482 = vmatprep.mubr.msk.bf16.mxu1 %vm1204_vm2, %v5818_v31  ;;  %v5852_v31 = vrot.slane %v5850_v16, 2  ;;  %v11125_v48 = vsel %vm11012_vm7, %v11122_v18, %v11124_v61  ;;  %v17665_v18 = vld [vmem:[%s17741_s25 + $0x1f0] sm:$0xff]  }
 0x4a8   : > { %v5844_v34 = vor.u32 %v5843_v53, %v5840_v37  ;;  %v11127_v37 = vsel %vm11012_vm7, %v11124_v61, %v11126_v52  ;;  %v11128_v53 = vrot.slane %v17665_v18, 3  ;;  %v5858_v26 = vrot.slane %v5856_v54, 1  ;;  %v20102_v18 = vld [vmem:[%s17741_s25 + $0x200] sm:$0xff]  }
 0x4a9   : > { %16031 = vmatmul.mubr.msk.bf16.gmra.mrb[104].mxu0 %vm1204_vm2, %v11121_v59  ;;  %v5865_v59 = vshrl.u32 %v19708_v29, 16  ;;  %v5853_v10 = vor.u32 %v5852_v31, %v5849_v0  ;;  %v5870_v31 = vrot.slane %v5868_v40, 2 }
 0x4aa   : > { %16034 = vmatprep.mubr.msk.bf16.mxu0 %vm1204_vm2, %v11123_v43 }
 0x4ab   : > { %v5867_v0 = vrot.slane %v5865_v59, 1 }
 0x4ac   : > { %v15928_v62 = vpop.f32.mrb[0].mxu0 }
 0x4ad   : > { %v16064_v8 = vadd.f32 %v15928_v62, %v19659_v46  ;;  %v11391_v42 = vpop.f32.mrb[1].mxu0 }
 0x4ae   : > { %15483 = vmatmul.mubr.msk.bf16.gmra.mrb[108].mxu1 %vm1204_vm2, %v5827_v35  ;;  %v16065_v16 = vadd.f32 %v11391_v42, %v19662_v56  ;;  %v15929_v43 = vpop.f32.mrb[2].mxu0  ;;  %v11130_v56 = vrot.slane %v17666_v12, 3  ;;  %v5861_v42 = vrot.slane %v5859_v63, 2  ;;  %v11129_v12 = vsel %vm11012_vm7, %v11126_v52, %v11128_v53 }
 0x4af   : > { %15486 = vmatprep.mubr.msk.bf16.mxu1 %vm1204_vm2, %v5836_v4  ;;  %v12079_v46 = vadd.f32 %v16064_v8, %v20068_v14  ;;  %v16066_v36 = vadd.f32 %v15929_v43, %v19665_v9  ;;  %v11394_v35 = vpop.f32.mrb[3].mxu0  ;;  %v5845_v4 = vsel %vm5315_vm3, %v5835_v2, %v5844_v34  ;;  %v5854_v2 = vsel %vm5315_vm3, %v5844_v34, %v5853_v10 }
 0x4b0   : > { %v12077_v62 = vadd.f32 %v16065_v16, %v20068_v14  ;;  %v16067_v29 = vadd.f32 %v11394_v35, %v19668_v30  ;;  %v5874_v63 = vshrl.u32 %v19729_v17, 16  ;;  %v5877_v8 = vshll.u32 %v19729_v17, 16 }
 0x4b1   : > { %v12215_v41 = vmax.f32 %v12079_v46, 0.0  ;;  %v12080_v61 = vadd.f32 %v16066_v36, %v20068_v14  ;;  %16035 = vmatmul.mubr.msk.bf16.gmra.mrb[108].mxu0 %vm1204_vm2, %v11125_v48  ;;  %v5862_v43 = vor.u32 %v5861_v42, %v5858_v26  ;;  %v11132_v52 = vrot.slane %v20102_v18, 3 }
 0x4b2   : > { %v12213_v9 = vmax.f32 %v12077_v62, 0.0  ;;  %v12078_v30 = vadd.f32 %v16067_v29, %v20068_v14  ;;  %16038 = vmatprep.mubr.msk.bf16.mxu0 %vm1204_vm2, %v11127_v37  ;;  %v11131_v17 = vsel %vm11012_vm7, %v11128_v53, %v11130_v56  ;;  %v5871_v46 = vor.u32 %v5870_v31, %v5867_v0 }
 0x4b3   : > { %v14065_v54 = vpack.c.bf16 %v12215_v41, %v12215_v41  ;;  %v12216_v48 = vmax.f32 %v12080_v61, 0.0  ;;  %v5883_v26 = vshrl.u32 %v19734_v50, 16  ;;  %v5886_v62 = vshll.u32 %v19734_v50, 16 }
 0x4b4   : > { %v14063_v59 = vpack.c.bf16 %v12213_v9, %v12213_v9  ;;  %v12214_v40 = vmax.f32 %v12078_v30, 0.0  ;;  %v15932_v16 = vpop.f32.mrb[4].mxu0  ;;  %v5876_v61 = vrot.slane %v5874_v63, 1  ;;  %v5879_v53 = vrot.slane %v5877_v8, 2  ;;  %v17668_v8 = vld [vmem:[%s17741_s25 + $0x208] sm:$0xff]  }
 0x4b5   : > { %12896 = vst.msk [vmem:[%s20092_s17 + $0x8] sm:$0xf] %vm12893_vm8, %v14065_v54  ;;  %v14066_v41 = vpack.c.bf16 %v12216_v48, %v12216_v48  ;;  %v16068_v34 = vadd.f32 %v15932_v16, %v19685_v45  ;;  %v11407_v37 = vpop.f32.mrb[5].mxu0  ;;  %v5863_v31 = vsel %vm5315_vm3, %v5853_v10, %v5862_v43  ;;  %v5872_v30 = vsel %vm5315_vm3, %v5862_v43, %v5871_v46 }
 0x4b6   : > { %15487 = vmatmul.mubr.msk.bf16.gmra.mrb[112].mxu1 %vm1204_vm2, %v5845_v4  ;;  %12894 = vst.msk [vmem:[%s20092_s17] sm:$0xf] %vm12893_vm8, %v14063_v59  ;;  %v14064_v36 = vpack.c.bf16 %v12214_v40, %v12214_v40  ;;  %v16069_v35 = vadd.f32 %v11407_v37, %v19688_v57  ;;  %v15933_v4 = vpop.f32.mrb[6].mxu0  ;;  %v5888_v48 = vrot.slane %v5886_v62, 2  ;;  %v11134_v59 = vrot.slane %v17668_v8, 3 }
 0x4b7   : > { %15490 = vmatprep.mubr.msk.bf16.mxu1 %vm1204_vm2, %v5854_v2  ;;  %12897 = vst.msk [vmem:[%s20092_s17 + $0xc] sm:$0xf] %vm12893_vm8, %v14066_v41  ;;  %v12083_v45 = vadd.f32 %v16068_v34, %v20068_v14  ;;  %v16070_v29 = vadd.f32 %v15933_v4, %v19691_v25  ;;  %v11410_v42 = vpop.f32.mrb[7].mxu0  ;;  %v11133_v25 = vsel %vm11012_vm7, %v11130_v56, %v11132_v52  ;;  %v5892_v43 = vshrl.u32 %v19755_v7, 16 }
 0x4b8   : > { %12895 = vst.msk [vmem:[%s20092_s17 + $0x4] sm:$0xf] %vm12893_vm8, %v14064_v36  ;;  %v12081_v0 = vadd.f32 %v16069_v35, %v20068_v14  ;;  %v16071_v57 = vadd.f32 %v11410_v42, %v19694_v51  ;;  %v5885_v51 = vrot.slane %v5883_v26, 1  ;;  %v5895_v41 = vshll.u32 %v19755_v7, 16  ;;  %v17669_v7 = vld [vmem:[%s17741_s25 + $0x210] sm:$0xff]  }
 0x4b9   : > { %v12219_v9 = vmax.f32 %v12083_v45, 0.0  ;;  %v12084_v50 = vadd.f32 %v16070_v29, %v20068_v14  ;;  %16039 = vmatmul.mubr.msk.bf16.gmra.mrb[112].mxu0 %vm1204_vm2, %v11129_v12  ;;  %v5880_v12 = vor.u32 %v5879_v53, %v5876_v61  ;;  %v5901_v36 = vshrl.u32 %v19760_v39, 16 }
 0x4ba   : > { %v12217_v2 = vmax.f32 %v12081_v0, 0.0  ;;  %v12082_v54 = vadd.f32 %v16071_v57, %v20068_v14  ;;  %16042 = vmatprep.mubr.msk.bf16.mxu0 %vm1204_vm2, %v11131_v17  ;;  %v5904_v35 = vshll.u32 %v19760_v39, 16  ;;  %v11136_v45 = vrot.slane %v17669_v7, 3 }
 0x4bb   : > { %v14069_v10 = vpack.c.bf16 %v12219_v9, %v12219_v9  ;;  %v12220_v63 = vmax.f32 %v12084_v50, 0.0  ;;  %v5889_v29 = vor.u32 %v5888_v48, %v5885_v51  ;;  %v11135_v39 = vsel %vm11012_vm7, %v11132_v52, %v11134_v59  ;;  %v20165_v51 = vld [vmem:[%s17741_s25 + $0x218] sm:$0xff]  }
 0x4bc   : > { %v14067_v40 = vpack.c.bf16 %v12217_v2, %v12217_v2  ;;  %v12218_v16 = vmax.f32 %v12082_v54, 0.0  ;;  %v15936_v56 = vpop.f32.mrb[8].mxu0  ;;  %v5881_v53 = vsel %vm5315_vm3, %v5871_v46, %v5880_v12  ;;  %v5894_v57 = vrot.slane %v5892_v43, 1 }
 0x4bd   : > { %12900 = vst.msk [vmem:[%s20092_s17 + $0x18] sm:$0xf] %vm12893_vm8, %v14069_v10  ;;  %v14070_v34 = vpack.c.bf16 %v12220_v63, %v12220_v63  ;;  %v16072_v37 = vadd.f32 %v15936_v56, %v19711_v13  ;;  %v11423_v17 = vpop.f32.mrb[9].mxu0  ;;  %v5906_v18 = vrot.slane %v5904_v35, 2  ;;  %v11138_v48 = vrot.slane %v20165_v51, 3  ;;  %v20821_v35 = vld [vmem:[#allocation12_spill] sm:$0xff] }
 0x4be   : > { %15491 = vmatmul.mubr.msk.bf16.gmra.mrb[116].mxu1 %vm1204_vm2, %v5863_v31  ;;  %12898 = vst.msk [vmem:[%s20092_s17 + $0x10] sm:$0xf] %vm12893_vm8, %v14067_v40  ;;  %v14068_v4 = vpack.c.bf16 %v12218_v16, %v12218_v16  ;;  %v16073_v26 = vadd.f32 %v11423_v17, %v19714_v19  ;;  %v15937_v62 = vpop.f32.mrb[10].mxu0  ;;  %v5897_v31 = vrot.slane %v5895_v41, 2  ;;  %v5910_v8 = vshrl.u32 %v19781_v47, 16  ;;  %v20819_v16 = vld [vmem:[#allocation5_spill] sm:$0xff] }
 0x4bf   : > { %15494 = vmatprep.mubr.msk.bf16.mxu1 %vm1204_vm2, %v5872_v30  ;;  %12901 = vst.msk [vmem:[%s20092_s17 + $0x1c] sm:$0xf] %vm12893_vm8, %v14070_v34  ;;  %v12087_v13 = vadd.f32 %v16072_v37, %v20068_v14  ;;  %v16074_v42 = vadd.f32 %v15937_v62, %v19717_v20  ;;  %v11426_v61 = vpop.f32.mrb[11].mxu0  ;;  %v5903_v20 = vrot.slane %v5901_v36, 1  ;;  %v5890_v30 = vsel %vm5315_vm3, %v5880_v12, %v5889_v29  ;;  %v20820_v37 = vld [vmem:[#allocation6_spill] sm:$0xff]  ;;  %v20822_v62 = vld [vmem:[#allocation7_spill] sm:$0xff] }
 0x4c0   : > { %12899 = vst.msk [vmem:[%s20092_s17 + $0x14] sm:$0xf] %vm12893_vm8, %v14068_v4  ;;  %v12085_v19 = vadd.f32 %v16073_v26, %v20068_v14  ;;  %v16075_v0 = vadd.f32 %v11426_v61, %v19720_v32  ;;  %v11137_v32 = vsel %vm11012_vm7, %v11134_v59, %v11136_v45  ;;  %v5913_v40 = vshll.u32 %v19781_v47, 16  ;;  %v17671_v61 = vld [vmem:[%s17741_s25 + $0x220] sm:$0xff]  }
 0x4c1   : > { %v12223_v9 = vmax.f32 %v12087_v13, 0.0  ;;  %v12088_v50 = vadd.f32 %v16074_v42, %v20068_v14  ;;  %16043 = vmatmul.mubr.msk.bf16.gmra.mrb[116].mxu0 %vm1204_vm2, %v11133_v25  ;;  %v5898_v43 = vor.u32 %v5897_v31, %v5894_v57  ;;  %v5907_v41 = vor.u32 %v5906_v18, %v5903_v20 }
 0x4c2   : > { %v12221_v52 = vmax.f32 %v12085_v19, 0.0  ;;  %v12086_v46 = vadd.f32 %v16075_v0, %v20068_v14  ;;  %16046 = vmatprep.mubr.msk.bf16.mxu0 %vm1204_vm2, %v11135_v39  ;;  %v5919_v47 = vshrl.u32 %v20821_v35, 16  ;;  %v5922_v4 = vshll.u32 %v20821_v35, 16  ;;  %v20823_v19 = vld [vmem:[#allocation10_spill] sm:$0xff] }
 0x4c3   : > { %v14073_v2 = vpack.c.bf16 %v12223_v9, %v12223_v9  ;;  %v12224_v54 = vmax.f32 %v12088_v50, 0.0  ;;  %v11139_v42 = vsel %vm11012_vm7, %v11136_v45, %v11138_v48  ;;  %v11140_v39 = vrot.slane %v17671_v61, 3 }
 0x4c4   : > { %v14071_v25 = vpack.c.bf16 %v12221_v52, %v12221_v52  ;;  %v12222_v10 = vmax.f32 %v12086_v46, 0.0  ;;  %v15940_v63 = vpop.f32.mrb[12].mxu0  ;;  %v5912_v57 = vrot.slane %v5910_v8, 1  ;;  %v5915_v31 = vrot.slane %v5913_v40, 2 }
 0x4c5   : > { %12904 = vst.msk [vmem:[%s20092_s17 + $0x28] sm:$0xf] %vm12893_vm8, %v14073_v2  ;;  %v14074_v12 = vpack.c.bf16 %v12224_v54, %v12224_v54  ;;  %v16076_v59 = vadd.f32 %v15940_v63, %v20819_v16  ;;  %v11439_v56 = vpop.f32.mrb[13].mxu0  ;;  %v5899_v20 = vsel %vm5315_vm3, %v5889_v29, %v5898_v43  ;;  %v5908_v45 = vsel %vm5315_vm3, %v5898_v43, %v5907_v41 }
 0x4c6   : > { %15495 = vmatmul.mubr.msk.bf16.gmra.mrb[120].mxu1 %vm1204_vm2, %v5881_v53  ;;  %12902 = vst.msk [vmem:[%s20092_s17 + $0x20] sm:$0xf] %vm12893_vm8, %v14071_v25  ;;  %v14072_v34 = vpack.c.bf16 %v12222_v10, %v12222_v10  ;;  %v16077_v17 = vadd.f32 %v11439_v56, %v20820_v37  ;;  %v15941_v36 = vpop.f32.mrb[14].mxu0  ;;  %v5921_v46 = vrot.slane %v5919_v47, 1  ;;  %v17672_v25 = vld [vmem:[%s17741_s25 + $0x228] sm:$0xff]   ;;  %v5916_v29 = vor.u32 %v5915_v31, %v5912_v57 }
 0x4c7   : > { %15498 = vmatprep.mubr.msk.bf16.mxu1 %vm1204_vm2, %v5890_v30  ;;  %12905 = vst.msk [vmem:[%s20092_s17 + $0x2c] sm:$0xf] %vm12893_vm8, %v14074_v12  ;;  %v12091_v26 = vadd.f32 %v16076_v59, %v20068_v14  ;;  %v16078_v7 = vadd.f32 %v15941_v36, %v20822_v62  ;;  %v11442_v13 = vpop.f32.mrb[15].mxu0  ;;  %v5924_v30 = vrot.slane %v5922_v4, 2  ;;  %v11142_v10 = vrot.slane %v17672_v25, 3  ;;  %v20824_v12 = vld [vmem:[#allocation8_spill] sm:$0xff] }
 0x4c8   : > { %12903 = vst.msk [vmem:[%s20092_s17 + $0x24] sm:$0xf] %vm12893_vm8, %v14072_v34  ;;  %v12089_v53 = vadd.f32 %v16077_v17, %v20068_v14  ;;  %v16079_v0 = vadd.f32 %v11442_v13, %v20823_v19  ;;  %v17673_v56 = vld [vmem:[%s17741_s25 + $0x230] ss:$0 sps:$4 sm:$0x33]   ;;  %v20825_v17 = vld [vmem:[#allocation9_spill] sm:$0xff]  ;;  %v11141_v47 = vsel %vm11012_vm7, %v11138_v48, %v11140_v39  ;;  %v5917_v48 = vsel %vm5315_vm3, %v5907_v41, %v5916_v29 }
 0x4c9   : > { %v12227_v9 = vmax.f32 %v12091_v26, 0.0  ;;  %v12092_v50 = vadd.f32 %v16078_v7, %v20068_v14  ;;  %16047 = vmatmul.mubr.msk.bf16.gmra.mrb[120].mxu0 %vm1204_vm2, %v11137_v32  ;;  %v5928_v43 = vshrl.u32 %v17673_v56, 16  ;;  %v5931_v34 = vshll.u32 %v17673_v56, 16  ;;  %v20826_v62 = vld [vmem:[#allocation11_spill] sm:$0xff] }
 0x4ca   : > { %v12225_v18 = vmax.f32 %v12089_v53, 0.0  ;;  %v12090_v52 = vadd.f32 %v16079_v0, %v20068_v14  ;;  %16050 = vmatprep.mubr.msk.bf16.mxu0 %vm1204_vm2, %v11139_v42  ;;  %v5925_v4 = vor.u32 %v5924_v30, %v5921_v46  ;;  %v11143_v42 = vsel %vm11012_vm7, %v11140_v39, %v11142_v10  ;;  %v20827_v53 = vld [vmem:[#allocation14_spill] sm:$0xff] }
 0x4cb   : > { %v14077_v2 = vpack.c.bf16 %v12227_v9, %v12227_v9  ;;  %v12228_v54 = vmax.f32 %v12092_v50, 0.0  ;;  %v5930_v57 = vrot.slane %v5928_v43, 1  ;;  %v5933_v31 = vrot.slane %v5931_v34, 2  ;;  %v17674_v50 = vld [vmem:[%s17741_s25 + $0x230] sm:$0xff]   ;;  %v20830_v34 = vld [vmem:[#allocation18_spill] sm:$0xff] }
 0x4cc   : > { %v14075_v63 = vpack.c.bf16 %v12225_v18, %v12225_v18  ;;  %v12226_v32 = vmax.f32 %v12090_v52, 0.0  ;;  %v15944_v8 = vpop.f32.mrb[16].mxu0  ;;  %v17675_v52 = vld [vmem:[%s17741_s25 + $0x238] sm:$0xff]  }
 0x4cd   : > { %12908 = vst.msk [vmem:[%s20092_s17 + $0x38] sm:$0xf] %vm12893_vm8, %v14077_v2  ;;  %v14078_v40 = vpack.c.bf16 %v12228_v54, %v12228_v54  ;;  %v16080_v16 = vadd.f32 %v15944_v8, %v20824_v12  ;;  %v11455_v59 = vpop.f32.mrb[17].mxu0  ;;  %v11146_v46 = vrot.slane %v17675_v52, 3  ;;  %v20829_v12 = vld [vmem:[#allocation15_spill] sm:$0xff] }
 0x4ce   : > { %15499 = vmatmul.mubr.msk.bf16.gmra.mrb[124].mxu1 %vm1204_vm2, %v5899_v20  ;;  %12906 = vst.msk [vmem:[%s20092_s17 + $0x30] sm:$0xf] %vm12893_vm8, %v14075_v63  ;;  %v14076_v37 = vpack.c.bf16 %v12226_v32, %v12226_v32  ;;  %v16081_v36 = vadd.f32 %v11455_v59, %v20825_v17  ;;  %v15945_v35 = vpop.f32.mrb[18].mxu0  ;;  %v11144_v20 = vrot.slane %v17674_v50, 3  ;;  %v20828_v63 = vld [vmem:[#allocation13_spill] sm:$0xff] }
 0x4cf   : > { %15502 = vmatprep.mubr.msk.bf16.mxu1 %vm1204_vm2, %v5908_v45  ;;  %12909 = vst.msk [vmem:[%s20092_s17 + $0x3c] sm:$0xf] %vm12893_vm8, %v14078_v40  ;;  %v12095_v26 = vadd.f32 %v16080_v16, %v20068_v14  ;;  %v16082_v7 = vadd.f32 %v15945_v35, %v20826_v62  ;;  %v11458_v13 = vpop.f32.mrb[19].mxu0  ;;  %v5926_v45 = vsel %vm5315_vm3, %v5916_v29, %v5925_v4 }
 0x4d0   : > { %12907 = vst.msk [vmem:[%s20092_s17 + $0x34] sm:$0xf] %vm12893_vm8, %v14076_v37  ;;  %v12093_v61 = vadd.f32 %v16081_v36, %v20068_v14  ;;  %v16083_v51 = vadd.f32 %v11458_v13, %v20827_v53  ;;  %v5934_v29 = vor.u32 %v5933_v31, %v5930_v57  ;;  %v11145_v56 = vsel %vm11012_vm7, %v11142_v10, %v11144_v20  ;;  %v20832_v31 = vld [vmem:[#allocation17_spill] sm:$0xff] }
 0x4d1   : > { %v12231_v19 = vmax.f32 %v12095_v26, 0.0  ;;  %v12096_v0 = vadd.f32 %v16082_v7, %v20068_v14  ;;  %16051 = vmatmul.mubr.msk.bf16.gmra.mrb[124].mxu0 %vm1204_vm2, %v11141_v47  ;;  %v11147_v36 = vsel %vm11012_vm7, %v11144_v20, %v11146_v46  ;;  %v20831_v47 = vld [vmem:[#allocation16_spill] sm:$0xff]  ;;  %v20833_v20 = vld [vmem:[#allocation19_spill] sm:$0xff] }
 0x4d2   : > { %v12229_v9 = vmax.f32 %v12093_v61, 0.0  ;;  %v12094_v39 = vadd.f32 %v16083_v51, %v20068_v14  ;;  %16054 = vmatprep.mubr.msk.bf16.mxu0 %vm1204_vm2, %v11143_v42  ;;  %v5935_v7 = vsel %vm5315_vm3, %v5925_v4, %v5934_v29  ;;  %v17676_v61 = vld [vmem:[%s17741_s25 + $0x240] ss:$0 sps:$4 sm:$0x77]  }
 0x4d3   : > { %v14081_v18 = vpack.c.bf16 %v12231_v19, %v12231_v19  ;;  %v12232_v41 = vmax.f32 %v12096_v0, 0.0  ;;  %v11148_v53 = vrot.slane %v17676_v61, 3 }
 0x4d4   : > { %v14079_v30 = vpack.c.bf16 %v12229_v9, %v12229_v9  ;;  %v12230_v2 = vmax.f32 %v12094_v39, 0.0  ;;  %v15948_v54 = vpop.f32.mrb[20].mxu0 }
 0x4d5   : > { %12912 = vst.msk [vmem:[%s20092_s17 + $0x48] sm:$0xf] %vm12893_vm8, %v14081_v18  ;;  %v14082_v25 = vpack.c.bf16 %v12232_v41, %v12232_v41  ;;  %v16084_v32 = vadd.f32 %v15948_v54, %v20828_v63  ;;  %v11471_v8 = vpop.f32.mrb[21].mxu0  ;;  %v11149_v41 = vsel %vm11012_vm7, %v11146_v46, %v11148_v53 }
 0x4d6   : > { %15503 = vmatmul.mubr.msk.bf16.gmra.mrb[128].mxu1 %vm1204_vm2, %v5917_v48  ;;  %12910 = vst.msk [vmem:[%s20092_s17 + $0x40] sm:$0xf] %vm12893_vm8, %v14079_v30  ;;  %v14080_v40 = vpack.c.bf16 %v12230_v2, %v12230_v2  ;;  %v16085_v16 = vadd.f32 %v11471_v8, %v20829_v12  ;;  %v15949_v59 = vpop.f32.mrb[22].mxu0 }
 0x4d7   : > { %15506 = vmatprep.mubr.msk.bf16.mxu1 %vm1204_vm2, %v5926_v45  ;;  %12913 = vst.msk [vmem:[%s20092_s17 + $0x4c] sm:$0xf] %vm12893_vm8, %v14082_v25  ;;  %v12099_v43 = vadd.f32 %v16084_v32, %v20068_v14  ;;  %v16086_v37 = vadd.f32 %v15949_v59, %v20830_v34  ;;  %v11474_v17 = vpop.f32.mrb[23].mxu0  ;;  %v20834_v34 = vld [vmem:[#allocation22_spill] sm:$0xff] }
 0x4d8   : > { %12911 = vst.msk [vmem:[%s20092_s17 + $0x44] sm:$0xf] %vm12893_vm8, %v14080_v40  ;;  %v12097_v35 = vadd.f32 %v16085_v16, %v20068_v14  ;;  %v16087_v26 = vadd.f32 %v11474_v17, %v20831_v47 }
 0x4d9   : > { %v12235_v62 = vmax.f32 %v12099_v43, 0.0  ;;  %v12100_v10 = vadd.f32 %v16086_v37, %v20068_v14  ;;  %16055 = vmatmul.mubr.msk.bf16.gmra.mrb[128].mxu0 %vm1204_vm2, %v11145_v56 }
 0x4da   : > { %v12233_v13 = vmax.f32 %v12097_v35, 0.0  ;;  %v12098_v42 = vadd.f32 %v16087_v26, %v20068_v14  ;;  %16058 = vmatprep.mubr.msk.bf16.mxu0 %vm1204_vm2, %v11147_v36 }
 0x4db   : > { %v14085_v51 = vpack.c.bf16 %v12235_v62, %v12235_v62  ;;  %v12236_v48 = vmax.f32 %v12100_v10, 0.0 }
 0x4dc   : > { %v14083_v19 = vpack.c.bf16 %v12233_v13, %v12233_v13  ;;  %v12234_v0 = vmax.f32 %v12098_v42, 0.0  ;;  %v15952_v57 = vpop.f32.mrb[24].mxu0 }
 0x4dd   : > { %12916 = vst.msk [vmem:[%s20092_s17 + $0x58] sm:$0xf] %vm12893_vm8, %v14085_v51  ;;  %v14086_v4 = vpack.c.bf16 %v12236_v48, %v12236_v48  ;;  %v16088_v9 = vadd.f32 %v15952_v57, %v20832_v31  ;;  %v11487_v39 = vpop.f32.mrb[25].mxu0 }
 0x4de   : > { %15507 = vmatmul.mubr.msk.bf16.gmra.mrb[132].mxu1 %vm1204_vm2, %v5935_v7  ;;  %12914 = vst.msk [vmem:[%s20092_s17 + $0x50] sm:$0xf] %vm12893_vm8, %v14083_v19  ;;  %v14084_v50 = vpack.c.bf16 %v12234_v0, %v12234_v0  ;;  %v16089_v45 = vadd.f32 %v11487_v39, %v20833_v20  ;;  %v15953_v18 = vpop.f32.mrb[26].mxu0  ;;  %v20835_v19 = vld [vmem:[#allocation20_spill] sm:$0xff] }
 0x4df   : > { %12917 = vst.msk [vmem:[%s20092_s17 + $0x5c] sm:$0xf] %vm12893_vm8, %v14086_v4  ;;  %v12103_v52 = vadd.f32 %v16088_v9, %v20068_v14  ;;  %v16090_v30 = vadd.f32 %v15953_v18, %v19820_v23  ;;  %v11490_v2 = vpop.f32.mrb[27].mxu0  ;;  %v20836_v4 = vld [vmem:[#allocation21_spill] sm:$0xff] }
 0x4e0   : > { %12915 = vst.msk [vmem:[%s20092_s17 + $0x54] sm:$0xf] %vm12893_vm8, %v14084_v50  ;;  %v12101_v54 = vadd.f32 %v16089_v45, %v20068_v14  ;;  %v16091_v25 = vadd.f32 %v11490_v2, %v19823_v60 }
 0x4e1   : > { %v12239_v63 = vmax.f32 %v12103_v52, 0.0  ;;  %v12104_v32 = vadd.f32 %v16090_v30, %v20068_v14  ;;  %16059 = vmatmul.mubr.msk.bf16.gmra.mrb[132].mxu0 %vm1204_vm2, %v11149_v41 }
 0x4e2   : > { %v12237_v46 = vmax.f32 %v12101_v54, 0.0  ;;  %v12102_v8 = vadd.f32 %v16091_v25, %v20068_v14 }
 0x4e3   : > { %v14089_v29 = vpack.c.bf16 %v12239_v63, %v12239_v63  ;;  %v12240_v40 = vmax.f32 %v12104_v32, 0.0 }
 0x4e4   : > { %v14087_v23 = vpack.c.bf16 %v12237_v46, %v12237_v46  ;;  %v12238_v12 = vmax.f32 %v12102_v8, 0.0  ;;  %v15956_v16 = vpop.f32.mrb[28].mxu0  ;;  %v20837_v8 = vld [vmem:[#allocation23_spill] sm:$0xff] }
 0x4e5   : > { %12920 = vst.msk [vmem:[%s20092_s17 + $0x68] sm:$0xf] %vm12893_vm8, %v14089_v29  ;;  %v14090_v59 = vpack.c.bf16 %v12240_v40, %v12240_v40  ;;  %v16092_v60 = vadd.f32 %v15956_v16, %v19837_v27  ;;  %v11503_v56 = vpop.f32.mrb[29].mxu0 }
 0x4e6   : > { %12918 = vst.msk [vmem:[%s20092_s17 + $0x60] sm:$0xf] %vm12893_vm8, %v14087_v23  ;;  %v14088_v43 = vpack.c.bf16 %v12238_v12, %v12238_v12  ;;  %v16093_v37 = vadd.f32 %v11503_v56, %v20834_v34  ;;  %v15957_v17 = vpop.f32.mrb[30].mxu0  ;;  %v20838_v23 = vld [vmem:[#allocation26_spill] sm:$0xff] }
 0x4e7   : > { %12921 = vst.msk [vmem:[%s20092_s17 + $0x6c] sm:$0xf] %vm12893_vm8, %v14090_v59  ;;  %v12107_v36 = vadd.f32 %v16092_v60, %v20068_v14  ;;  %v16094_v35 = vadd.f32 %v15957_v17, %v19843_v1  ;;  %v11506_v47 = vpop.f32.mrb[31].mxu0 }
 0x4e8   : > { %12919 = vst.msk [vmem:[%s20092_s17 + $0x64] sm:$0xf] %vm12893_vm8, %v14088_v43  ;;  %v12105_v27 = vadd.f32 %v16093_v37, %v20068_v14  ;;  %v16095_v26 = vadd.f32 %v11506_v47, %v19846_v6 }
 0x4e9   : > { %v12243_v62 = vmax.f32 %v12107_v36, 0.0  ;;  %v12108_v10 = vadd.f32 %v16094_v35, %v20068_v14 }
 0x4ea   : > { %v12241_v7 = vmax.f32 %v12105_v27, 0.0  ;;  %v12106_v13 = vadd.f32 %v16095_v26, %v20068_v14 }
 0x4eb   : > { %v14093_v42 = vpack.c.bf16 %v12243_v62, %v12243_v62  ;;  %v12244_v61 = vmax.f32 %v12108_v10, 0.0 }
 0x4ec   : > { %v14091_v53 = vpack.c.bf16 %v12241_v7, %v12241_v7  ;;  %v12242_v1 = vmax.f32 %v12106_v13, 0.0  ;;  %v15960_v51 = vpop.f32.mrb[32].mxu0  ;;  %v20839_v7 = vld [vmem:[#allocation24_spill] sm:$0xff] }
 0x4ed   : > { %12924 = vst.msk [vmem:[%s20092_s17 + $0x78] sm:$0xf] %vm12893_vm8, %v14093_v42  ;;  %v14094_v48 = vpack.c.bf16 %v12244_v61, %v12244_v61  ;;  %v16096_v0 = vadd.f32 %v15960_v51, %v20835_v19  ;;  %v11519_v57 = vpop.f32.mrb[33].mxu0  ;;  %v20840_v61 = vld [vmem:[#allocation25_spill] sm:$0xff] }
 0x4ee   : > { %12922 = vst.msk [vmem:[%s20092_s17 + $0x70] sm:$0xf] %vm12893_vm8, %v14091_v53  ;;  %v14092_v6 = vpack.c.bf16 %v12242_v1, %v12242_v1  ;;  %v16097_v31 = vadd.f32 %v11519_v57, %v20836_v4  ;;  %v15961_v9 = vpop.f32.mrb[34].mxu0 }
 0x4ef   : > { %12925 = vst.msk [vmem:[%s20092_s17 + $0x7c] sm:$0xf] %vm12893_vm8, %v14094_v48  ;;  %v12111_v39 = vadd.f32 %v16096_v0, %v20068_v14  ;;  %v16098_v50 = vadd.f32 %v15961_v9, %v19865_v58  ;;  %v11522_v20 = vpop.f32.mrb[35].mxu0 }
 0x4f0   : > { %12923 = vst.msk [vmem:[%s20092_s17 + $0x74] sm:$0xf] %vm12893_vm8, %v14092_v6  ;;  %v12109_v45 = vadd.f32 %v16097_v31, %v20068_v14  ;;  %v16099_v18 = vadd.f32 %v11522_v20, %v19868_v3 }
 0x4f1   : > { %v12247_v41 = vmax.f32 %v12111_v39, 0.0  ;;  %v12112_v52 = vadd.f32 %v16098_v50, %v20068_v14 }
 0x4f2   : > { %v12245_v30 = vmax.f32 %v12109_v45, 0.0  ;;  %v12110_v2 = vadd.f32 %v16099_v18, %v20068_v14 }
 0x4f3   : > { %v14097_v54 = vpack.c.bf16 %v12247_v41, %v12247_v41  ;;  %v12248_v25 = vmax.f32 %v12112_v52, 0.0  ;;  %v20841_v41 = vld [vmem:[#allocation27_spill] sm:$0xff] }
 0x4f4   : > { %v14095_v63 = vpack.c.bf16 %v12245_v30, %v12245_v30  ;;  %v12246_v58 = vmax.f32 %v12110_v2, 0.0  ;;  %v15964_v32 = vpop.f32.mrb[36].mxu0  ;;  %v20842_v2 = vld [vmem:[#allocation30_spill] sm:$0xff] }
 0x4f5   : > { %12928 = vst.msk [vmem:[%s20092_s17 + $0x88] sm:$0xf] %vm12893_vm8, %v14097_v54  ;;  %v14098_v46 = vpack.c.bf16 %v12248_v25, %v12248_v25  ;;  %v16100_v29 = vadd.f32 %v15964_v32, %v20837_v8  ;;  %v11535_v40 = vpop.f32.mrb[37].mxu0 }
 0x4f6   : > { %12926 = vst.msk [vmem:[%s20092_s17 + $0x80] sm:$0xf] %vm12893_vm8, %v14095_v63  ;;  %v14096_v3 = vpack.c.bf16 %v12246_v58, %v12246_v58  ;;  %v16101_v12 = vadd.f32 %v11535_v40, %v20838_v23  ;;  %v15965_v16 = vpop.f32.mrb[38].mxu0 }
 0x4f7   : > { %12929 = vst.msk [vmem:[%s20092_s17 + $0x8c] sm:$0xf] %vm12893_vm8, %v14098_v46  ;;  %v12115_v59 = vadd.f32 %v16100_v29, %v20068_v14  ;;  %v16102_v60 = vadd.f32 %v15965_v16, %v19887_v33  ;;  %v11538_v56 = vpop.f32.mrb[39].mxu0 }
 0x4f8   : > { %12927 = vst.msk [vmem:[%s20092_s17 + $0x84] sm:$0xf] %vm12893_vm8, %v14096_v3  ;;  %v12113_v43 = vadd.f32 %v16101_v12, %v20068_v14  ;;  %v16103_v34 = vadd.f32 %v11538_v56, %v19890_v15 }
 0x4f9   : > { %v12251_v37 = vmax.f32 %v12115_v59, 0.0  ;;  %v12116_v17 = vadd.f32 %v16102_v60, %v20068_v14 }
 0x4fa   : > { %v12249_v36 = vmax.f32 %v12113_v43, 0.0  ;;  %v12114_v35 = vadd.f32 %v16103_v34, %v20068_v14  ;;  %v20843_v43 = vld [vmem:[#allocation28_spill] sm:$0xff] }
 0x4fb   : > { %v14101_v47 = vpack.c.bf16 %v12251_v37, %v12251_v37  ;;  %v12252_v27 = vmax.f32 %v12116_v17, 0.0  ;;  %v20844_v17 = vld [vmem:[#allocation29_spill] sm:$0xff] }
 0x4fc   : > { %v14099_v26 = vpack.c.bf16 %v12249_v36, %v12249_v36  ;;  %v12250_v33 = vmax.f32 %v12114_v35, 0.0  ;;  %v15968_v62 = vpop.f32.mrb[40].mxu0 }
 0x4fd   : > { %12932 = vst.msk [vmem:[%s20092_s17 + $0x98] sm:$0xf] %vm12893_vm8, %v14101_v47  ;;  %v14102_v10 = vpack.c.bf16 %v12252_v27, %v12252_v27  ;;  %v16104_v13 = vadd.f32 %v15968_v62, %v20839_v7  ;;  %v11551_v42 = vpop.f32.mrb[41].mxu0 }
 0x4fe   : > { %12930 = vst.msk [vmem:[%s20092_s17 + $0x90] sm:$0xf] %vm12893_vm8, %v14099_v26  ;;  %v14100_v15 = vpack.c.bf16 %v12250_v33, %v12250_v33  ;;  %v16105_v53 = vadd.f32 %v11551_v42, %v20840_v61  ;;  %v15969_v1 = vpop.f32.mrb[42].mxu0 }
 0x4ff   : > { %12933 = vst.msk [vmem:[%s20092_s17 + $0x9c] sm:$0xf] %vm12893_vm8, %v14102_v10  ;;  %v12119_v51 = vadd.f32 %v16104_v13, %v20068_v14  ;;  %v16106_v48 = vadd.f32 %v15969_v1, %v19909_v22  ;;  %v11554_v19 = vpop.f32.mrb[43].mxu0 }
 0x500   : > { %12931 = vst.msk [vmem:[%s20092_s17 + $0x94] sm:$0xf] %vm12893_vm8, %v14100_v15  ;;  %v12117_v0 = vadd.f32 %v16105_v53, %v20068_v14  ;;  %v16107_v57 = vadd.f32 %v11554_v19, %v19912_v44 }
 0x501   : > { %v12255_v6 = vmax.f32 %v12119_v51, 0.0  ;;  %v12120_v4 = vadd.f32 %v16106_v48, %v20068_v14  ;;  %v20845_v48 = vld [vmem:[#allocation31_spill] sm:$0xff] }
 0x502   : > { %v12253_v31 = vmax.f32 %v12117_v0, 0.0  ;;  %v12118_v9 = vadd.f32 %v16107_v57, %v20068_v14  ;;  %v20846_v57 = vld [vmem:[#allocation34_spill] sm:$0xff] }
 0x503   : > { %v14105_v39 = vpack.c.bf16 %v12255_v6, %v12255_v6  ;;  %v12256_v50 = vmax.f32 %v12120_v4, 0.0 }
 0x504   : > { %v14103_v20 = vpack.c.bf16 %v12253_v31, %v12253_v31  ;;  %v12254_v22 = vmax.f32 %v12118_v9, 0.0  ;;  %v15972_v45 = vpop.f32.mrb[44].mxu0 }
 0x505   : > { %12936 = vst.msk [vmem:[%s20092_s17 + $0xa8] sm:$0xf] %vm12893_vm8, %v14105_v39  ;;  %v14106_v18 = vpack.c.bf16 %v12256_v50, %v12256_v50  ;;  %v16108_v52 = vadd.f32 %v15972_v45, %v20841_v41  ;;  %v11567_v30 = vpop.f32.mrb[45].mxu0 }
 0x506   : > { %12934 = vst.msk [vmem:[%s20092_s17 + $0xa0] sm:$0xf] %vm12893_vm8, %v14103_v20  ;;  %v14104_v44 = vpack.c.bf16 %v12254_v22, %v12254_v22  ;;  %v16109_v54 = vadd.f32 %v11567_v30, %v20842_v2  ;;  %v15973_v25 = vpop.f32.mrb[46].mxu0 }
 0x507   : > { %12937 = vst.msk [vmem:[%s20092_s17 + $0xac] sm:$0xf] %vm12893_vm8, %v14106_v18  ;;  %v12123_v63 = vadd.f32 %v16108_v52, %v20068_v14  ;;  %v16110_v58 = vadd.f32 %v15973_v25, %v19931_v55  ;;  %v11570_v32 = vpop.f32.mrb[47].mxu0  ;;  %v20847_v25 = vld [vmem:[#allocation32_spill] sm:$0xff] }
 0x508   : > { %12935 = vst.msk [vmem:[%s20092_s17 + $0xa4] sm:$0xf] %vm12893_vm8, %v14104_v44  ;;  %v12121_v46 = vadd.f32 %v16109_v54, %v20068_v14  ;;  %v16111_v8 = vadd.f32 %v11570_v32, %v19934_v21  ;;  %v20848_v32 = vld [vmem:[#allocation33_spill] sm:$0xff] }
 0x509   : > { %v12259_v29 = vmax.f32 %v12123_v63, 0.0  ;;  %v12124_v40 = vadd.f32 %v16110_v58, %v20068_v14 }
 0x50a   : > { %v12257_v3 = vmax.f32 %v12121_v46, 0.0  ;;  %v12122_v23 = vadd.f32 %v16111_v8, %v20068_v14 }
 0x50b   : > { %v14109_v12 = vpack.c.bf16 %v12259_v29, %v12259_v29  ;;  %v12260_v16 = vmax.f32 %v12124_v40, 0.0 }
 0x50c   : > { %v14107_v59 = vpack.c.bf16 %v12257_v3, %v12257_v3  ;;  %v12258_v55 = vmax.f32 %v12122_v23, 0.0  ;;  %v15976_v60 = vpop.f32.mrb[48].mxu0 }
 0x50d   : > { %12940 = vst.msk [vmem:[%s20092_s17 + $0xb8] sm:$0xf] %vm12893_vm8, %v14109_v12  ;;  %v14110_v56 = vpack.c.bf16 %v12260_v16, %v12260_v16  ;;  %v16112_v34 = vadd.f32 %v15976_v60, %v20843_v43  ;;  %v11583_v37 = vpop.f32.mrb[49].mxu0 }
 0x50e   : > { %12938 = vst.msk [vmem:[%s20092_s17 + $0xb0] sm:$0xf] %vm12893_vm8, %v14107_v59  ;;  %v14108_v21 = vpack.c.bf16 %v12258_v55, %v12258_v55  ;;  %v16113_v36 = vadd.f32 %v11583_v37, %v20844_v17  ;;  %v15977_v35 = vpop.f32.mrb[50].mxu0  ;;  %v20849_v17 = vld [vmem:[#allocation35_spill] sm:$0xff] }
 0x50f   : > { %12941 = vst.msk [vmem:[%s20092_s17 + $0xbc] sm:$0xf] %vm12893_vm8, %v14110_v56  ;;  %v12127_v47 = vadd.f32 %v16112_v34, %v20068_v14  ;;  %v16114_v27 = vadd.f32 %v15977_v35, %v19953_v49  ;;  %v11586_v26 = vpop.f32.mrb[51].mxu0 }
 0x510   : > { %12939 = vst.msk [vmem:[%s20092_s17 + $0xb4] sm:$0xf] %vm12893_vm8, %v14108_v21  ;;  %v12125_v33 = vadd.f32 %v16113_v36, %v20068_v14  ;;  %v16115_v62 = vadd.f32 %v11586_v26, %v19956_v5 }
 0x511   : > { %v12263_v10 = vmax.f32 %v12127_v47, 0.0  ;;  %v12128_v7 = vadd.f32 %v16114_v27, %v20068_v14  ;;  %v20850_v47 = vld [vmem:[#allocation36_spill] sm:$0xff] }
 0x512   : > { %v12261_v13 = vmax.f32 %v12125_v33, 0.0  ;;  %v12126_v42 = vadd.f32 %v16115_v62, %v20068_v14  ;;  %v20851_v62 = vld [vmem:[#allocation37_spill] sm:$0xff] }
 0x513   : > { %v14113_v15 = vpack.c.bf16 %v12263_v10, %v12263_v10  ;;  %v12264_v61 = vmax.f32 %v12128_v7, 0.0 }
 0x514   : > { %v14111_v53 = vpack.c.bf16 %v12261_v13, %v12261_v13  ;;  %v12262_v49 = vmax.f32 %v12126_v42, 0.0  ;;  %v15980_v1 = vpop.f32.mrb[52].mxu0  ;;  %v20852_v42 = vld [vmem:[#allocation3_spill] sm:$0xff] }
 0x515   : > { %12944 = vst.msk [vmem:[%s20092_s17 + $0xc8] sm:$0xf] %vm12893_vm8, %v14113_v15  ;;  %v14114_v51 = vpack.c.bf16 %v12264_v61, %v12264_v61  ;;  %v16116_v19 = vadd.f32 %v15980_v1, %v20845_v48  ;;  %v11599_v0 = vpop.f32.mrb[53].mxu0 }
 0x516   : > { %12942 = vst.msk [vmem:[%s20092_s17 + $0xc0] sm:$0xf] %vm12893_vm8, %v14111_v53  ;;  %v14112_v5 = vpack.c.bf16 %v12262_v49, %v12262_v49  ;;  %v16117_v6 = vadd.f32 %v11599_v0, %v20846_v57  ;;  %v15981_v4 = vpop.f32.mrb[54].mxu0 }
 0x517   : > { %12945 = vst.msk [vmem:[%s20092_s17 + $0xcc] sm:$0xf] %vm12893_vm8, %v14114_v51  ;;  %v12131_v31 = vadd.f32 %v16116_v19, %v20068_v14  ;;  %v16118_v9 = vadd.f32 %v15981_v4, %v19975_v28  ;;  %v11602_v39 = vpop.f32.mrb[55].mxu0 }
 0x518   : > { %12943 = vst.msk [vmem:[%s20092_s17 + $0xc4] sm:$0xf] %vm12893_vm8, %v14112_v5  ;;  %v12129_v50 = vadd.f32 %v16117_v6, %v20068_v14  ;;  %v16119_v20 = vadd.f32 %v11602_v39, %v19978_v11  ;;  %v20853_v6 = vld [vmem:[#allocation2_spill] sm:$0xff]  ;;  %v20854_v39 = vld [vmem:[#allocation4_spill] sm:$0xff] }
 0x519   : > { %v12267_v22 = vmax.f32 %v12131_v31, 0.0  ;;  %v12132_v45 = vadd.f32 %v16118_v9, %v20068_v14 }
 0x51a   : > { %v12265_v18 = vmax.f32 %v12129_v50, 0.0  ;;  %v12130_v41 = vadd.f32 %v16119_v20, %v20068_v14 }
 0x51b   : > { %v14117_v52 = vpack.c.bf16 %v12267_v22, %v12267_v22  ;;  %v12268_v30 = vmax.f32 %v12132_v45, 0.0  ;;  %v20855_v45 = vld [vmem:[#allocation38_spill] sm:$0xff] }
 0x51c   : > { %v14115_v44 = vpack.c.bf16 %v12265_v18, %v12265_v18  ;;  %v12266_v28 = vmax.f32 %v12130_v41, 0.0  ;;  %v15984_v2 = vpop.f32.mrb[56].mxu0 }
 0x51d   : > { %12948 = vst.msk [vmem:[%s20092_s17 + $0xd8] sm:$0xf] %vm12893_vm8, %v14117_v52  ;;  %v14118_v54 = vpack.c.bf16 %v12268_v30, %v12268_v30  ;;  %v16120_v63 = vadd.f32 %v15984_v2, %v20847_v25  ;;  %v11615_v58 = vpop.f32.mrb[57].mxu0 }
 0x51e   : > { %12946 = vst.msk [vmem:[%s20092_s17 + $0xd0] sm:$0xf] %vm12893_vm8, %v14115_v44  ;;  %v14116_v11 = vpack.c.bf16 %v12266_v28, %v12266_v28  ;;  %v16121_v46 = vadd.f32 %v11615_v58, %v20848_v32  ;;  %v15985_v8 = vpop.f32.mrb[58].mxu0  ;;  %v20856_v44 = vld [vmem:[#allocation39_spill] sm:$0xff] }
 0x51f   : > { %12949 = vst.msk [vmem:[%s20092_s17 + $0xdc] sm:$0xf] %vm12893_vm8, %v14118_v54  ;;  %v12135_v29 = vadd.f32 %v16120_v63, %v20068_v14  ;;  %v16122_v40 = vadd.f32 %v15985_v8, %v19997_v38  ;;  %v11618_v3 = vpop.f32.mrb[59].mxu0 }
 0x520   : > { %12947 = vst.msk [vmem:[%s20092_s17 + $0xd4] sm:$0xf] %vm12893_vm8, %v14116_v11  ;;  %v12133_v23 = vadd.f32 %v16121_v46, %v20068_v14  ;;  %v16123_v12 = vadd.f32 %v11618_v3, %v20000_v24 }
 0x521   : > { %v12271_v16 = vmax.f32 %v12135_v29, 0.0  ;;  %v12136_v59 = vadd.f32 %v16122_v40, %v20068_v14 }
 0x522   : > { %v12269_v55 = vmax.f32 %v12133_v23, 0.0  ;;  %v12134_v60 = vadd.f32 %v16123_v12, %v20068_v14 }
 0x523   : > { %v14121_v56 = vpack.c.bf16 %v12271_v16, %v12271_v16  ;;  %v12272_v43 = vmax.f32 %v12136_v59, 0.0 }
 0x524   : > { %v14119_v34 = vpack.c.bf16 %v12269_v55, %v12269_v55  ;;  %v12270_v38 = vmax.f32 %v12134_v60, 0.0  ;;  %v15988_v37 = vpop.f32.mrb[60].mxu0 }
 0x525   : > { %12952 = vst.msk [vmem:[%s20092_s17 + $0xe8] sm:$0xf] %vm12893_vm8, %v14121_v56  ;;  %v14122_v21 = vpack.c.bf16 %v12272_v43, %v12272_v43  ;;  %v16124_v36 = vadd.f32 %v15988_v37, %v20849_v17  ;;  %v11631_v35 = vpop.f32.mrb[61].mxu0 }
 0x526   : > { %12950 = vst.msk [vmem:[%s20092_s17 + $0xe0] sm:$0xf] %vm12893_vm8, %v14119_v34  ;;  %v14120_v24 = vpack.c.bf16 %v12270_v38, %v12270_v38  ;;  %v16125_v27 = vadd.f32 %v11631_v35, %v20850_v47  ;;  %v15989_v26 = vpop.f32.mrb[62].mxu0 }
 0x527   : > { %12953 = vst.msk [vmem:[%s20092_s17 + $0xec] sm:$0xf] %vm12893_vm8, %v14122_v21  ;;  %v12139_v33 = vadd.f32 %v16124_v36, %v20068_v14  ;;  %v16126_v10 = vadd.f32 %v15989_v26, %v20851_v62  ;;  %v11634_v7 = vpop.f32.mrb[63].mxu0 }
 0x528   : > { %12951 = vst.msk [vmem:[%s20092_s17 + $0xe4] sm:$0xf] %vm12893_vm8, %v14120_v24  ;;  %v12137_v13 = vadd.f32 %v16125_v27, %v20068_v14  ;;  %v16127_v15 = vadd.f32 %v11634_v7, %v20852_v42 }
 0x529   : > { %v12275_v61 = vmax.f32 %v12139_v33, 0.0  ;;  %v12140_v53 = vadd.f32 %v16126_v10, %v20068_v14 }
 0x52a   : > { %v12273_v49 = vmax.f32 %v12137_v13, 0.0  ;;  %v12138_v1 = vadd.f32 %v16127_v15, %v20068_v14 }
 0x52b   : > { %v14125_v51 = vpack.c.bf16 %v12275_v61, %v12275_v61  ;;  %v12276_v48 = vmax.f32 %v12140_v53, 0.0 }
 0x52c   : > { %v14123_v19 = vpack.c.bf16 %v12273_v49, %v12273_v49  ;;  %v12274_v0 = vmax.f32 %v12138_v1, 0.0  ;;  %v15992_v5 = vpop.f32.mrb[64].mxu0 }
 0x52d   : > { %12956 = vst.msk [vmem:[%s20092_s17 + $0xf8] sm:$0xf] %vm12893_vm8, %v14125_v51  ;;  %v14126_v57 = vpack.c.bf16 %v12276_v48, %v12276_v48  ;;  %v16128_v4 = vadd.f32 %v15992_v5, %v20853_v6  ;;  %v11647_v31 = vpop.f32.mrb[65].mxu0 }
 0x52e   : > { %12954 = vst.msk [vmem:[%s20092_s17 + $0xf0] sm:$0xf] %vm12893_vm8, %v14123_v19  ;;  %v14124_v9 = vpack.c.bf16 %v12274_v0, %v12274_v0  ;;  %v16129_v50 = vadd.f32 %v11647_v31, %v20854_v39  ;;  %v15993_v20 = vpop.f32.mrb[66].mxu0 }
 0x52f   : > { %12957 = vst.msk [vmem:[%s20092_s17 + $0xfc] sm:$0xf] %vm12893_vm8, %v14126_v57  ;;  %v12143_v22 = vadd.f32 %v16128_v4, %v20068_v14  ;;  %v16130_v18 = vadd.f32 %v15993_v20, %v20855_v45  ;;  %v11650_v41 = vpop.f32.mrb[67].mxu0 }
 0x530   : > { %12955 = vst.msk [vmem:[%s20092_s17 + $0xf4] sm:$0xf] %vm12893_vm8, %v14124_v9  ;;  %v12141_v30 = vadd.f32 %v16129_v50, %v20068_v14  ;;  %v16131_v28 = vadd.f32 %v11650_v41, %v20856_v44 }
 0x531   : > { %v15444_v52 = vpop.f32.mrb[68].mxu1  ;;  %v12279_v54 = vmax.f32 %v12143_v22, 0.0  ;;  %v12144_v25 = vadd.f32 %v16130_v18, %v20068_v14 }
 0x532   : > { %v6449_v2 = vpop.f32.mrb[69].mxu1  ;;  %v12277_v58 = vmax.f32 %v12141_v30, 0.0  ;;  %v12142_v11 = vadd.f32 %v16131_v28, %v20068_v14  ;;  %v20440_v14 = vld [vmem:[%s20653_s2] ss:$0 sm:$0xff] }
 0x533   : > { %v15445_v63 = vpop.f32.mrb[70].mxu1  ;;  %v14129_v46 = vpack.c.bf16 %v12279_v54, %v12279_v54  ;;  %v12280_v8 = vmax.f32 %v12144_v25, 0.0 }
 0x534   : > { %v6452_v32 = vpop.f32.mrb[71].mxu1  ;;  %v14127_v29 = vpack.c.bf16 %v12277_v58, %v12277_v58  ;;  %v12278_v40 = vmax.f32 %v12142_v11, 0.0  ;;  %v15996_v3 = vpop.f32.mrb[68].mxu0 }
 0x535   : > { %12960 = vst.msk [vmem:[%s20092_s17 + $0x108] sm:$0xf] %vm12893_vm8, %v14129_v46  ;;  %v14130_v23 = vpack.c.bf16 %v12280_v8, %v12280_v8  ;;  %v16132_v12 = vadd.f32 %v15996_v3, %v15444_v52  ;;  %v11663_v16 = vpop.f32.mrb[69].mxu0 }
 0x536   : > { %12958 = vst.msk [vmem:[%s20092_s17 + $0x100] sm:$0xf] %vm12893_vm8, %v14127_v29  ;;  %v14128_v59 = vpack.c.bf16 %v12278_v40, %v12278_v40  ;;  %v16133_v55 = vadd.f32 %v11663_v16, %v6449_v2  ;;  %v15997_v60 = vpop.f32.mrb[70].mxu0 }
 0x537   : > { %12961 = vst.msk [vmem:[%s20092_s17 + $0x10c] sm:$0xf] %vm12893_vm8, %v14130_v23  ;;  %v12147_v56 = vadd.f32 %v20440_v14, %v16132_v12  ;;  %v16134_v43 = vadd.f32 %v15997_v60, %v15445_v63  ;;  %v11666_v34 = vpop.f32.mrb[71].mxu0 }
 0x538   : > { %12959 = vst.msk [vmem:[%s20092_s17 + $0x104] sm:$0xf] %vm12893_vm8, %v14128_v59  ;;  %v12145_v37 = vadd.f32 %v20440_v14, %v16133_v55  ;;  %v16135_v21 = vadd.f32 %v11666_v34, %v6452_v32 }
 0x539   : > { %v15448_v38 = vpop.f32.mrb[72].mxu1  ;;  %v12283_v36 = vmax.f32 %v12147_v56, 0.0  ;;  %v12148_v35 = vadd.f32 %v20440_v14, %v16134_v43 }
 0x53a   : > { %v6465_v17 = vpop.f32.mrb[73].mxu1  ;;  %v12281_v47 = vmax.f32 %v12145_v37, 0.0  ;;  %v12146_v27 = vadd.f32 %v20440_v14, %v16135_v21 }
 0x53b   : > { %v15449_v24 = vpop.f32.mrb[74].mxu1  ;;  %v14133_v33 = vpack.c.bf16 %v12283_v36, %v12283_v36  ;;  %v12284_v62 = vmax.f32 %v12148_v35, 0.0 }
 0x53c   : > { %v6468_v26 = vpop.f32.mrb[75].mxu1  ;;  %v14131_v10 = vpack.c.bf16 %v12281_v47, %v12281_v47  ;;  %v12282_v7 = vmax.f32 %v12146_v27, 0.0  ;;  %v16000_v13 = vpop.f32.mrb[72].mxu0 }
 0x53d   : > { %12964 = vst.msk [vmem:[%s20092_s17 + $0x118] sm:$0xf] %vm12893_vm8, %v14133_v33  ;;  %v14134_v42 = vpack.c.bf16 %v12284_v62, %v12284_v62  ;;  %v16136_v15 = vadd.f32 %v16000_v13, %v15448_v38  ;;  %v11679_v61 = vpop.f32.mrb[73].mxu0 }
 0x53e   : > { %12962 = vst.msk [vmem:[%s20092_s17 + $0x110] sm:$0xf] %vm12893_vm8, %v14131_v10  ;;  %v14132_v53 = vpack.c.bf16 %v12282_v7, %v12282_v7  ;;  %v16137_v49 = vadd.f32 %v11679_v61, %v6465_v17  ;;  %v16001_v1 = vpop.f32.mrb[74].mxu0 }
 0x53f   : > { %12965 = vst.msk [vmem:[%s20092_s17 + $0x11c] sm:$0xf] %vm12893_vm8, %v14134_v42  ;;  %v12151_v51 = vadd.f32 %v20440_v14, %v16136_v15  ;;  %v16138_v48 = vadd.f32 %v16001_v1, %v15449_v24  ;;  %v11682_v19 = vpop.f32.mrb[75].mxu0 }
 0x540   : > { %12963 = vst.msk [vmem:[%s20092_s17 + $0x114] sm:$0xf] %vm12893_vm8, %v14132_v53  ;;  %v12149_v5 = vadd.f32 %v20440_v14, %v16137_v49  ;;  %v16139_v57 = vadd.f32 %v11682_v19, %v6468_v26 }
 0x541   : > { %v15452_v0 = vpop.f32.mrb[76].mxu1  ;;  %v12287_v4 = vmax.f32 %v12151_v51, 0.0  ;;  %v12152_v31 = vadd.f32 %v20440_v14, %v16138_v48 }
 0x542   : > { %v6481_v6 = vpop.f32.mrb[77].mxu1  ;;  %v12285_v39 = vmax.f32 %v12149_v5, 0.0  ;;  %v12150_v50 = vadd.f32 %v20440_v14, %v16139_v57 }
 0x543   : > { %v15453_v9 = vpop.f32.mrb[78].mxu1  ;;  %v14137_v22 = vpack.c.bf16 %v12287_v4, %v12287_v4  ;;  %v12288_v45 = vmax.f32 %v12152_v31, 0.0 }
 0x544   : > { %v6484_v20 = vpop.f32.mrb[79].mxu1  ;;  %v14135_v18 = vpack.c.bf16 %v12285_v39, %v12285_v39  ;;  %v12286_v41 = vmax.f32 %v12150_v50, 0.0  ;;  %v16004_v52 = vpop.f32.mrb[76].mxu0 }
 0x545   : > { %12968 = vst.msk [vmem:[%s20092_s17 + $0x128] sm:$0xf] %vm12893_vm8, %v14137_v22  ;;  %v14138_v30 = vpack.c.bf16 %v12288_v45, %v12288_v45  ;;  %v16140_v44 = vadd.f32 %v16004_v52, %v15452_v0  ;;  %v11695_v28 = vpop.f32.mrb[77].mxu0 }
 0x546   : > { %12966 = vst.msk [vmem:[%s20092_s17 + $0x120] sm:$0xf] %vm12893_vm8, %v14135_v18  ;;  %v14136_v2 = vpack.c.bf16 %v12286_v41, %v12286_v41  ;;  %v16141_v54 = vadd.f32 %v11695_v28, %v6481_v6  ;;  %v16005_v25 = vpop.f32.mrb[78].mxu0 }
 0x547   : > { %12969 = vst.msk [vmem:[%s20092_s17 + $0x12c] sm:$0xf] %vm12893_vm8, %v14138_v30  ;;  %v12155_v63 = vadd.f32 %v20440_v14, %v16140_v44  ;;  %v16142_v58 = vadd.f32 %v16005_v25, %v15453_v9  ;;  %v11698_v11 = vpop.f32.mrb[79].mxu0 }
 0x548   : > { %12967 = vst.msk [vmem:[%s20092_s17 + $0x124] sm:$0xf] %vm12893_vm8, %v14136_v2  ;;  %v12153_v46 = vadd.f32 %v20440_v14, %v16141_v54  ;;  %v16143_v8 = vadd.f32 %v11698_v11, %v6484_v20 }
 0x549   : > { %v15456_v32 = vpop.f32.mrb[80].mxu1  ;;  %v12291_v40 = vmax.f32 %v12155_v63, 0.0  ;;  %v12156_v3 = vadd.f32 %v20440_v14, %v16142_v58 }
 0x54a   : > { %v6497_v29 = vpop.f32.mrb[81].mxu1  ;;  %v12289_v12 = vmax.f32 %v12153_v46, 0.0  ;;  %v12154_v16 = vadd.f32 %v20440_v14, %v16143_v8 }
 0x54b   : > { %v15457_v23 = vpop.f32.mrb[82].mxu1  ;;  %v14141_v55 = vpack.c.bf16 %v12291_v40, %v12291_v40  ;;  %v12292_v60 = vmax.f32 %v12156_v3, 0.0 }
 0x54c   : > { %v6500_v59 = vpop.f32.mrb[83].mxu1  ;;  %v14139_v56 = vpack.c.bf16 %v12289_v12, %v12289_v12  ;;  %v12290_v43 = vmax.f32 %v12154_v16, 0.0  ;;  %v16008_v34 = vpop.f32.mrb[80].mxu0 }
 0x54d   : > { %12972 = vst.msk [vmem:[%s20092_s17 + $0x138] sm:$0xf] %vm12893_vm8, %v14141_v55  ;;  %v14142_v38 = vpack.c.bf16 %v12292_v60, %v12292_v60  ;;  %v16144_v37 = vadd.f32 %v16008_v34, %v15456_v32  ;;  %v11711_v21 = vpop.f32.mrb[81].mxu0 }
 0x54e   : > { %12970 = vst.msk [vmem:[%s20092_s17 + $0x130] sm:$0xf] %vm12893_vm8, %v14139_v56  ;;  %v14140_v17 = vpack.c.bf16 %v12290_v43, %v12290_v43  ;;  %v16145_v36 = vadd.f32 %v11711_v21, %v6497_v29  ;;  %v16009_v35 = vpop.f32.mrb[82].mxu0 }
 0x54f   : > { %12973 = vst.msk [vmem:[%s20092_s17 + $0x13c] sm:$0xf] %vm12893_vm8, %v14142_v38  ;;  %v12159_v24 = vadd.f32 %v20440_v14, %v16144_v37  ;;  %v16146_v47 = vadd.f32 %v16009_v35, %v15457_v23  ;;  %v11714_v27 = vpop.f32.mrb[83].mxu0 }
 0x550   : > { %12971 = vst.msk [vmem:[%s20092_s17 + $0x134] sm:$0xf] %vm12893_vm8, %v14140_v17  ;;  %v12157_v33 = vadd.f32 %v20440_v14, %v16145_v36  ;;  %v16147_v62 = vadd.f32 %v11714_v27, %v6500_v59 }
 0x551   : > { %v15460_v26 = vpop.f32.mrb[84].mxu1  ;;  %v12295_v7 = vmax.f32 %v12159_v24, 0.0  ;;  %v12160_v13 = vadd.f32 %v20440_v14, %v16146_v47 }
 0x552   : > { %v6513_v10 = vpop.f32.mrb[85].mxu1  ;;  %v12293_v15 = vmax.f32 %v12157_v33, 0.0  ;;  %v12158_v61 = vadd.f32 %v20440_v14, %v16147_v62 }
 0x553   : > { %v15461_v42 = vpop.f32.mrb[86].mxu1  ;;  %v14145_v49 = vpack.c.bf16 %v12295_v7, %v12295_v7  ;;  %v12296_v1 = vmax.f32 %v12160_v13, 0.0 }
 0x554   : > { %v6516_v53 = vpop.f32.mrb[87].mxu1  ;;  %v14143_v51 = vpack.c.bf16 %v12293_v15, %v12293_v15  ;;  %v12294_v48 = vmax.f32 %v12158_v61, 0.0  ;;  %v16012_v19 = vpop.f32.mrb[84].mxu0 }
 0x555   : > { %12976 = vst.msk [vmem:[%s20092_s17 + $0x148] sm:$0xf] %vm12893_vm8, %v14145_v49  ;;  %v14146_v0 = vpack.c.bf16 %v12296_v1, %v12296_v1  ;;  %v16148_v5 = vadd.f32 %v16012_v19, %v15460_v26  ;;  %v11727_v57 = vpop.f32.mrb[85].mxu0 }
 0x556   : > { %12974 = vst.msk [vmem:[%s20092_s17 + $0x140] sm:$0xf] %vm12893_vm8, %v14143_v51  ;;  %v14144_v6 = vpack.c.bf16 %v12294_v48, %v12294_v48  ;;  %v16149_v4 = vadd.f32 %v11727_v57, %v6513_v10  ;;  %v16013_v31 = vpop.f32.mrb[86].mxu0 }
 0x557   : > { %12977 = vst.msk [vmem:[%s20092_s17 + $0x14c] sm:$0xf] %vm12893_vm8, %v14146_v0  ;;  %v12163_v9 = vadd.f32 %v20440_v14, %v16148_v5  ;;  %v16150_v39 = vadd.f32 %v16013_v31, %v15461_v42  ;;  %v11730_v50 = vpop.f32.mrb[87].mxu0 }
 0x558   : > { %12975 = vst.msk [vmem:[%s20092_s17 + $0x144] sm:$0xf] %vm12893_vm8, %v14144_v6  ;;  %v12161_v22 = vadd.f32 %v20440_v14, %v16149_v4  ;;  %v16151_v45 = vadd.f32 %v11730_v50, %v6516_v53 }
 0x559   : > { %v15464_v20 = vpop.f32.mrb[88].mxu1  ;;  %v12299_v41 = vmax.f32 %v12163_v9, 0.0  ;;  %v12164_v52 = vadd.f32 %v20440_v14, %v16150_v39 }
 0x55a   : > { %v6529_v18 = vpop.f32.mrb[89].mxu1  ;;  %v12297_v44 = vmax.f32 %v12161_v22, 0.0  ;;  %v12162_v28 = vadd.f32 %v20440_v14, %v16151_v45 }
 0x55b   : > { %v15465_v30 = vpop.f32.mrb[90].mxu1  ;;  %v14149_v54 = vpack.c.bf16 %v12299_v41, %v12299_v41  ;;  %v12300_v25 = vmax.f32 %v12164_v52, 0.0 }
 0x55c   : > { %v6532_v2 = vpop.f32.mrb[91].mxu1  ;;  %v14147_v63 = vpack.c.bf16 %v12297_v44, %v12297_v44  ;;  %v12298_v58 = vmax.f32 %v12162_v28, 0.0  ;;  %v16016_v11 = vpop.f32.mrb[88].mxu0 }
 0x55d   : > { %12980 = vst.msk [vmem:[%s20092_s17 + $0x158] sm:$0xf] %vm12893_vm8, %v14149_v54  ;;  %v14150_v32 = vpack.c.bf16 %v12300_v25, %v12300_v25  ;;  %v16152_v46 = vadd.f32 %v16016_v11, %v15464_v20  ;;  %v11743_v8 = vpop.f32.mrb[89].mxu0 }
 0x55e   : > { %12978 = vst.msk [vmem:[%s20092_s17 + $0x150] sm:$0xf] %vm12893_vm8, %v14147_v63  ;;  %v14148_v29 = vpack.c.bf16 %v12298_v58, %v12298_v58  ;;  %v16153_v40 = vadd.f32 %v11743_v8, %v6529_v18  ;;  %v16017_v3 = vpop.f32.mrb[90].mxu0 }
 0x55f   : > { %12981 = vst.msk [vmem:[%s20092_s17 + $0x15c] sm:$0xf] %vm12893_vm8, %v14150_v32  ;;  %v12167_v23 = vadd.f32 %v20440_v14, %v16152_v46  ;;  %v16154_v12 = vadd.f32 %v16017_v3, %v15465_v30  ;;  %v11746_v16 = vpop.f32.mrb[91].mxu0 }
 0x560   : > { %12979 = vst.msk [vmem:[%s20092_s17 + $0x154] sm:$0xf] %vm12893_vm8, %v14148_v29  ;;  %v12165_v55 = vadd.f32 %v20440_v14, %v16153_v40  ;;  %v16155_v60 = vadd.f32 %v11746_v16, %v6532_v2 }
 0x561   : > { %v15468_v59 = vpop.f32.mrb[92].mxu1  ;;  %v12303_v43 = vmax.f32 %v12167_v23, 0.0  ;;  %v12168_v34 = vadd.f32 %v20440_v14, %v16154_v12 }
 0x562   : > { %v6545_v56 = vpop.f32.mrb[93].mxu1  ;;  %v12301_v37 = vmax.f32 %v12165_v55, 0.0  ;;  %v12166_v21 = vadd.f32 %v20440_v14, %v16155_v60 }
 0x563   : > { %v15469_v38 = vpop.f32.mrb[94].mxu1  ;;  %v14153_v36 = vpack.c.bf16 %v12303_v43, %v12303_v43  ;;  %v12304_v35 = vmax.f32 %v12168_v34, 0.0 }
 0x564   : > { %v6548_v17 = vpop.f32.mrb[95].mxu1  ;;  %v14151_v24 = vpack.c.bf16 %v12301_v37, %v12301_v37  ;;  %v12302_v47 = vmax.f32 %v12166_v21, 0.0  ;;  %v16020_v27 = vpop.f32.mrb[92].mxu0 }
 0x565   : > { %12984 = vst.msk [vmem:[%s20092_s17 + $0x168] sm:$0xf] %vm12893_vm8, %v14153_v36  ;;  %v14154_v26 = vpack.c.bf16 %v12304_v35, %v12304_v35  ;;  %v16156_v33 = vadd.f32 %v16020_v27, %v15468_v59  ;;  %v11759_v62 = vpop.f32.mrb[93].mxu0 }
 0x566   : > { %12982 = vst.msk [vmem:[%s20092_s17 + $0x160] sm:$0xf] %vm12893_vm8, %v14151_v24  ;;  %v14152_v10 = vpack.c.bf16 %v12302_v47, %v12302_v47  ;;  %v16157_v7 = vadd.f32 %v11759_v62, %v6545_v56  ;;  %v16021_v13 = vpop.f32.mrb[94].mxu0 }
 0x567   : > { %12985 = vst.msk [vmem:[%s20092_s17 + $0x16c] sm:$0xf] %vm12893_vm8, %v14154_v26  ;;  %v12171_v42 = vadd.f32 %v20440_v14, %v16156_v33  ;;  %v16158_v15 = vadd.f32 %v16021_v13, %v15469_v38  ;;  %v11762_v61 = vpop.f32.mrb[95].mxu0 }
 0x568   : > { %12983 = vst.msk [vmem:[%s20092_s17 + $0x164] sm:$0xf] %vm12893_vm8, %v14152_v10  ;;  %v12169_v49 = vadd.f32 %v20440_v14, %v16157_v7  ;;  %v16159_v1 = vadd.f32 %v11762_v61, %v6548_v17 }
 0x569   : > { %v15472_v53 = vpop.f32.mrb[96].mxu1  ;;  %v12307_v48 = vmax.f32 %v12171_v42, 0.0  ;;  %v12172_v19 = vadd.f32 %v20440_v14, %v16158_v15 }
 0x56a   : > { %v6561_v51 = vpop.f32.mrb[97].mxu1  ;;  %v12305_v5 = vmax.f32 %v12169_v49, 0.0  ;;  %v12170_v57 = vadd.f32 %v20440_v14, %v16159_v1 }
 0x56b   : > { %v15473_v0 = vpop.f32.mrb[98].mxu1  ;;  %v14157_v4 = vpack.c.bf16 %v12307_v48, %v12307_v48  ;;  %v12308_v31 = vmax.f32 %v12172_v19, 0.0 }
 0x56c   : > { %v6564_v6 = vpop.f32.mrb[99].mxu1  ;;  %v14155_v9 = vpack.c.bf16 %v12305_v5, %v12305_v5  ;;  %v12306_v39 = vmax.f32 %v12170_v57, 0.0  ;;  %v16024_v50 = vpop.f32.mrb[96].mxu0 }
 0x56d   : > { %12988 = vst.msk [vmem:[%s20092_s17 + $0x178] sm:$0xf] %vm12893_vm8, %v14157_v4  ;;  %v14158_v20 = vpack.c.bf16 %v12308_v31, %v12308_v31  ;;  %v16160_v22 = vadd.f32 %v16024_v50, %v15472_v53  ;;  %v11775_v45 = vpop.f32.mrb[97].mxu0 }
 0x56e   : > { %12986 = vst.msk [vmem:[%s20092_s17 + $0x170] sm:$0xf] %vm12893_vm8, %v14155_v9  ;;  %v14156_v18 = vpack.c.bf16 %v12306_v39, %v12306_v39  ;;  %v16161_v41 = vadd.f32 %v11775_v45, %v6561_v51  ;;  %v16025_v52 = vpop.f32.mrb[98].mxu0 }
 0x56f   : > { %12989 = vst.msk [vmem:[%s20092_s17 + $0x17c] sm:$0xf] %vm12893_vm8, %v14158_v20  ;;  %v12175_v30 = vadd.f32 %v20440_v14, %v16160_v22  ;;  %v16162_v44 = vadd.f32 %v16025_v52, %v15473_v0  ;;  %v11778_v28 = vpop.f32.mrb[99].mxu0 }
 0x570   : > { %12987 = vst.msk [vmem:[%s20092_s17 + $0x174] sm:$0xf] %vm12893_vm8, %v14156_v18  ;;  %v12173_v54 = vadd.f32 %v20440_v14, %v16161_v41  ;;  %v16163_v25 = vadd.f32 %v11778_v28, %v6564_v6 }
 0x571   : > { %v15476_v2 = vpop.f32.mrb[100].mxu1  ;;  %v12311_v58 = vmax.f32 %v12175_v30, 0.0  ;;  %v12176_v11 = vadd.f32 %v20440_v14, %v16162_v44 }
 0x572   : > { %v6577_v63 = vpop.f32.mrb[101].mxu1  ;;  %v12309_v46 = vmax.f32 %v12173_v54, 0.0  ;;  %v12174_v8 = vadd.f32 %v20440_v14, %v16163_v25 }
 0x573   : > { %v15477_v32 = vpop.f32.mrb[102].mxu1  ;;  %v14161_v40 = vpack.c.bf16 %v12311_v58, %v12311_v58  ;;  %v12312_v3 = vmax.f32 %v12176_v11, 0.0 }
 0x574   : > { %v6580_v29 = vpop.f32.mrb[103].mxu1  ;;  %v14159_v23 = vpack.c.bf16 %v12309_v46, %v12309_v46  ;;  %v12310_v12 = vmax.f32 %v12174_v8, 0.0  ;;  %v16028_v16 = vpop.f32.mrb[100].mxu0 }
 0x575   : > { %12992 = vst.msk [vmem:[%s20092_s17 + $0x188] sm:$0xf] %vm12893_vm8, %v14161_v40  ;;  %v14162_v59 = vpack.c.bf16 %v12312_v3, %v12312_v3  ;;  %v16164_v55 = vadd.f32 %v16028_v16, %v15476_v2  ;;  %v11791_v60 = vpop.f32.mrb[101].mxu0 }
 0x576   : > { %12990 = vst.msk [vmem:[%s20092_s17 + $0x180] sm:$0xf] %vm12893_vm8, %v14159_v23  ;;  %v14160_v56 = vpack.c.bf16 %v12310_v12, %v12310_v12  ;;  %v16165_v43 = vadd.f32 %v11791_v60, %v6577_v63  ;;  %v16029_v34 = vpop.f32.mrb[102].mxu0 }
 0x577   : > { %12993 = vst.msk [vmem:[%s20092_s17 + $0x18c] sm:$0xf] %vm12893_vm8, %v14162_v59  ;;  %v12179_v38 = vadd.f32 %v20440_v14, %v16164_v55  ;;  %v16166_v37 = vadd.f32 %v16029_v34, %v15477_v32  ;;  %v11794_v21 = vpop.f32.mrb[103].mxu0 }
 0x578   : > { %12991 = vst.msk [vmem:[%s20092_s17 + $0x184] sm:$0xf] %vm12893_vm8, %v14160_v56  ;;  %v12177_v36 = vadd.f32 %v20440_v14, %v16165_v43  ;;  %v16167_v35 = vadd.f32 %v11794_v21, %v6580_v29 }
 0x579   : > { %v15480_v17 = vpop.f32.mrb[104].mxu1  ;;  %v12315_v47 = vmax.f32 %v12179_v38, 0.0  ;;  %v12180_v27 = vadd.f32 %v20440_v14, %v16166_v37 }
 0x57a   : > { %v6593_v24 = vpop.f32.mrb[105].mxu1  ;;  %v12313_v33 = vmax.f32 %v12177_v36, 0.0  ;;  %v12178_v62 = vadd.f32 %v20440_v14, %v16167_v35 }
 0x57b   : > { %v15481_v26 = vpop.f32.mrb[106].mxu1  ;;  %v14165_v7 = vpack.c.bf16 %v12315_v47, %v12315_v47  ;;  %v12316_v13 = vmax.f32 %v12180_v27, 0.0 }
 0x57c   : > { %v6596_v10 = vpop.f32.mrb[107].mxu1  ;;  %v14163_v42 = vpack.c.bf16 %v12313_v33, %v12313_v33  ;;  %v12314_v15 = vmax.f32 %v12178_v62, 0.0  ;;  %v16032_v61 = vpop.f32.mrb[104].mxu0 }
 0x57d   : > { %12996 = vst.msk [vmem:[%s20092_s17 + $0x198] sm:$0xf] %vm12893_vm8, %v14165_v7  ;;  %v14166_v53 = vpack.c.bf16 %v12316_v13, %v12316_v13  ;;  %v16168_v49 = vadd.f32 %v16032_v61, %v15480_v17  ;;  %v11807_v1 = vpop.f32.mrb[105].mxu0 }
 0x57e   : > { %12994 = vst.msk [vmem:[%s20092_s17 + $0x190] sm:$0xf] %vm12893_vm8, %v14163_v42  ;;  %v14164_v51 = vpack.c.bf16 %v12314_v15, %v12314_v15  ;;  %v16169_v48 = vadd.f32 %v11807_v1, %v6593_v24  ;;  %v16033_v19 = vpop.f32.mrb[106].mxu0 }
 0x57f   : > { %12997 = vst.msk [vmem:[%s20092_s17 + $0x19c] sm:$0xf] %vm12893_vm8, %v14166_v53  ;;  %v12183_v0 = vadd.f32 %v20440_v14, %v16168_v49  ;;  %v16170_v5 = vadd.f32 %v16033_v19, %v15481_v26  ;;  %v11810_v57 = vpop.f32.mrb[107].mxu0 }
 0x580   : > { %12995 = vst.msk [vmem:[%s20092_s17 + $0x194] sm:$0xf] %vm12893_vm8, %v14164_v51  ;;  %v12181_v4 = vadd.f32 %v20440_v14, %v16169_v48  ;;  %v16171_v31 = vadd.f32 %v11810_v57, %v6596_v10 }
 0x581   : > { %v15484_v6 = vpop.f32.mrb[108].mxu1  ;;  %v12319_v39 = vmax.f32 %v12183_v0, 0.0  ;;  %v12184_v50 = vadd.f32 %v20440_v14, %v16170_v5 }
 0x582   : > { %v6609_v9 = vpop.f32.mrb[109].mxu1  ;;  %v12317_v22 = vmax.f32 %v12181_v4, 0.0  ;;  %v12182_v45 = vadd.f32 %v20440_v14, %v16171_v31 }
 0x583   : > { %v15485_v20 = vpop.f32.mrb[110].mxu1  ;;  %v14169_v41 = vpack.c.bf16 %v12319_v39, %v12319_v39  ;;  %v12320_v52 = vmax.f32 %v12184_v50, 0.0 }
 0x584   : > { %v6612_v18 = vpop.f32.mrb[111].mxu1  ;;  %v14167_v30 = vpack.c.bf16 %v12317_v22, %v12317_v22  ;;  %v12318_v44 = vmax.f32 %v12182_v45, 0.0  ;;  %v16036_v28 = vpop.f32.mrb[108].mxu0 }
 0x585   : > { %13000 = vst.msk [vmem:[%s20092_s17 + $0x1a8] sm:$0xf] %vm12893_vm8, %v14169_v41  ;;  %v14170_v2 = vpack.c.bf16 %v12320_v52, %v12320_v52  ;;  %v16172_v54 = vadd.f32 %v16036_v28, %v15484_v6  ;;  %v11823_v25 = vpop.f32.mrb[109].mxu0 }
 0x586   : > { %12998 = vst.msk [vmem:[%s20092_s17 + $0x1a0] sm:$0xf] %vm12893_vm8, %v14167_v30  ;;  %v14168_v63 = vpack.c.bf16 %v12318_v44, %v12318_v44  ;;  %v16173_v58 = vadd.f32 %v11823_v25, %v6609_v9  ;;  %v16037_v11 = vpop.f32.mrb[110].mxu0 }
 0x587   : > { %13001 = vst.msk [vmem:[%s20092_s17 + $0x1ac] sm:$0xf] %vm12893_vm8, %v14170_v2  ;;  %v12187_v32 = vadd.f32 %v20440_v14, %v16172_v54  ;;  %v16174_v46 = vadd.f32 %v16037_v11, %v15485_v20  ;;  %v11826_v8 = vpop.f32.mrb[111].mxu0 }
 0x588   : > { %12999 = vst.msk [vmem:[%s20092_s17 + $0x1a4] sm:$0xf] %vm12893_vm8, %v14168_v63  ;;  %v12185_v40 = vadd.f32 %v20440_v14, %v16173_v58  ;;  %v16175_v3 = vadd.f32 %v11826_v8, %v6612_v18 }
 0x589   : > { %v15488_v29 = vpop.f32.mrb[112].mxu1  ;;  %v12323_v12 = vmax.f32 %v12187_v32, 0.0  ;;  %v12188_v16 = vadd.f32 %v20440_v14, %v16174_v46 }
 0x58a   : > { %v6625_v23 = vpop.f32.mrb[113].mxu1  ;;  %v12321_v55 = vmax.f32 %v12185_v40, 0.0  ;;  %v12186_v60 = vadd.f32 %v20440_v14, %v16175_v3 }
 0x58b   : > { %v15489_v59 = vpop.f32.mrb[114].mxu1  ;;  %v14173_v43 = vpack.c.bf16 %v12323_v12, %v12323_v12  ;;  %v12324_v34 = vmax.f32 %v12188_v16, 0.0 }
 0x58c   : > { %v6628_v56 = vpop.f32.mrb[115].mxu1  ;;  %v14171_v38 = vpack.c.bf16 %v12321_v55, %v12321_v55  ;;  %v12322_v37 = vmax.f32 %v12186_v60, 0.0  ;;  %v16040_v21 = vpop.f32.mrb[112].mxu0 }
 0x58d   : > { %13004 = vst.msk [vmem:[%s20092_s17 + $0x1b8] sm:$0xf] %vm12893_vm8, %v14173_v43  ;;  %v14174_v17 = vpack.c.bf16 %v12324_v34, %v12324_v34  ;;  %v16176_v36 = vadd.f32 %v16040_v21, %v15488_v29  ;;  %v11839_v35 = vpop.f32.mrb[113].mxu0 }
 0x58e   : > { %13002 = vst.msk [vmem:[%s20092_s17 + $0x1b0] sm:$0xf] %vm12893_vm8, %v14171_v38  ;;  %v14172_v24 = vpack.c.bf16 %v12322_v37, %v12322_v37  ;;  %v16177_v47 = vadd.f32 %v11839_v35, %v6625_v23  ;;  %v16041_v27 = vpop.f32.mrb[114].mxu0 }
 0x58f   : > { %13005 = vst.msk [vmem:[%s20092_s17 + $0x1bc] sm:$0xf] %vm12893_vm8, %v14174_v17  ;;  %v12191_v26 = vadd.f32 %v20440_v14, %v16176_v36  ;;  %v16178_v33 = vadd.f32 %v16041_v27, %v15489_v59  ;;  %v11842_v62 = vpop.f32.mrb[115].mxu0 }
 0x590   : > { %13003 = vst.msk [vmem:[%s20092_s17 + $0x1b4] sm:$0xf] %vm12893_vm8, %v14172_v24  ;;  %v12189_v7 = vadd.f32 %v20440_v14, %v16177_v47  ;;  %v16179_v13 = vadd.f32 %v11842_v62, %v6628_v56 }
 0x591   : > { %v15492_v10 = vpop.f32.mrb[116].mxu1  ;;  %v12327_v15 = vmax.f32 %v12191_v26, 0.0  ;;  %v12192_v61 = vadd.f32 %v20440_v14, %v16178_v33 }
 0x592   : > { %v6641_v42 = vpop.f32.mrb[117].mxu1  ;;  %v12325_v49 = vmax.f32 %v12189_v7, 0.0  ;;  %v12190_v1 = vadd.f32 %v20440_v14, %v16179_v13 }
 0x593   : > { %v15493_v53 = vpop.f32.mrb[118].mxu1  ;;  %v14177_v48 = vpack.c.bf16 %v12327_v15, %v12327_v15  ;;  %v12328_v19 = vmax.f32 %v12192_v61, 0.0 }
 0x594   : > { %v6644_v51 = vpop.f32.mrb[119].mxu1  ;;  %v14175_v0 = vpack.c.bf16 %v12325_v49, %v12325_v49  ;;  %v12326_v5 = vmax.f32 %v12190_v1, 0.0  ;;  %v16044_v57 = vpop.f32.mrb[116].mxu0 }
 0x595   : > { %13008 = vst.msk [vmem:[%s20092_s17 + $0x1c8] sm:$0xf] %vm12893_vm8, %v14177_v48  ;;  %v14178_v6 = vpack.c.bf16 %v12328_v19, %v12328_v19  ;;  %v16180_v4 = vadd.f32 %v16044_v57, %v15492_v10  ;;  %v11855_v31 = vpop.f32.mrb[117].mxu0 }
 0x596   : > { %13006 = vst.msk [vmem:[%s20092_s17 + $0x1c0] sm:$0xf] %vm12893_vm8, %v14175_v0  ;;  %v14176_v9 = vpack.c.bf16 %v12326_v5, %v12326_v5  ;;  %v16181_v39 = vadd.f32 %v11855_v31, %v6641_v42  ;;  %v16045_v50 = vpop.f32.mrb[118].mxu0 }
 0x597   : > { %13009 = vst.msk [vmem:[%s20092_s17 + $0x1cc] sm:$0xf] %vm12893_vm8, %v14178_v6  ;;  %v12195_v20 = vadd.f32 %v20440_v14, %v16180_v4  ;;  %v16182_v22 = vadd.f32 %v16045_v50, %v15493_v53  ;;  %v11858_v45 = vpop.f32.mrb[119].mxu0 }
 0x598   : > { %13007 = vst.msk [vmem:[%s20092_s17 + $0x1c4] sm:$0xf] %vm12893_vm8, %v14176_v9  ;;  %v12193_v41 = vadd.f32 %v20440_v14, %v16181_v39  ;;  %v16183_v52 = vadd.f32 %v11858_v45, %v6644_v51 }
 0x599   : > { %v15496_v18 = vpop.f32.mrb[120].mxu1  ;;  %v12331_v44 = vmax.f32 %v12195_v20, 0.0  ;;  %v12196_v28 = vadd.f32 %v20440_v14, %v16182_v22 }
 0x59a   : > { %v6657_v30 = vpop.f32.mrb[121].mxu1  ;;  %v12329_v54 = vmax.f32 %v12193_v41, 0.0  ;;  %v12194_v25 = vadd.f32 %v20440_v14, %v16183_v52 }
 0x59b   : > { %v15497_v2 = vpop.f32.mrb[122].mxu1  ;;  %v14181_v58 = vpack.c.bf16 %v12331_v44, %v12331_v44  ;;  %v12332_v11 = vmax.f32 %v12196_v28, 0.0 }
 0x59c   : > { %v6660_v63 = vpop.f32.mrb[123].mxu1  ;;  %v14179_v32 = vpack.c.bf16 %v12329_v54, %v12329_v54  ;;  %v12330_v46 = vmax.f32 %v12194_v25, 0.0  ;;  %v16048_v8 = vpop.f32.mrb[120].mxu0 }
 0x59d   : > { %13012 = vst.msk [vmem:[%s20092_s17 + $0x1d8] sm:$0xf] %vm12893_vm8, %v14181_v58  ;;  %v14182_v29 = vpack.c.bf16 %v12332_v11, %v12332_v11  ;;  %v16184_v40 = vadd.f32 %v16048_v8, %v15496_v18  ;;  %v11871_v3 = vpop.f32.mrb[121].mxu0 }
 0x59e   : > { %13010 = vst.msk [vmem:[%s20092_s17 + $0x1d0] sm:$0xf] %vm12893_vm8, %v14179_v32  ;;  %v14180_v23 = vpack.c.bf16 %v12330_v46, %v12330_v46  ;;  %v16185_v12 = vadd.f32 %v11871_v3, %v6657_v30  ;;  %v16049_v16 = vpop.f32.mrb[122].mxu0 }
 0x59f   : > { %13013 = vst.msk [vmem:[%s20092_s17 + $0x1dc] sm:$0xf] %vm12893_vm8, %v14182_v29  ;;  %v12199_v59 = vadd.f32 %v20440_v14, %v16184_v40  ;;  %v16186_v55 = vadd.f32 %v16049_v16, %v15497_v2  ;;  %v11874_v60 = vpop.f32.mrb[123].mxu0 }
 0x5a0   : > { %13011 = vst.msk [vmem:[%s20092_s17 + $0x1d4] sm:$0xf] %vm12893_vm8, %v14180_v23  ;;  %v12197_v43 = vadd.f32 %v20440_v14, %v16185_v12  ;;  %v16187_v34 = vadd.f32 %v11874_v60, %v6660_v63 }
 0x5a1   : > { %v15500_v56 = vpop.f32.mrb[124].mxu1  ;;  %v12335_v37 = vmax.f32 %v12199_v59, 0.0  ;;  %v12200_v21 = vadd.f32 %v20440_v14, %v16186_v55 }
 0x5a2   : > { %v6673_v38 = vpop.f32.mrb[125].mxu1  ;;  %v12333_v36 = vmax.f32 %v12197_v43, 0.0  ;;  %v12198_v35 = vadd.f32 %v20440_v14, %v16187_v34 }
 0x5a3   : > { %v15501_v17 = vpop.f32.mrb[126].mxu1  ;;  %v14185_v47 = vpack.c.bf16 %v12335_v37, %v12335_v37  ;;  %v12336_v27 = vmax.f32 %v12200_v21, 0.0 }
 0x5a4   : > { %v6676_v24 = vpop.f32.mrb[127].mxu1  ;;  %v14183_v26 = vpack.c.bf16 %v12333_v36, %v12333_v36  ;;  %v12334_v33 = vmax.f32 %v12198_v35, 0.0  ;;  %v16052_v62 = vpop.f32.mrb[124].mxu0 }
 0x5a5   : > { %13016 = vst.msk [vmem:[%s20092_s17 + $0x1e8] sm:$0xf] %vm12893_vm8, %v14185_v47  ;;  %v14186_v10 = vpack.c.bf16 %v12336_v27, %v12336_v27  ;;  %v16188_v7 = vadd.f32 %v16052_v62, %v15500_v56  ;;  %v11887_v13 = vpop.f32.mrb[125].mxu0 }
 0x5a6   : > { %13014 = vst.msk [vmem:[%s20092_s17 + $0x1e0] sm:$0xf] %vm12893_vm8, %v14183_v26  ;;  %v14184_v42 = vpack.c.bf16 %v12334_v33, %v12334_v33  ;;  %v16189_v15 = vadd.f32 %v11887_v13, %v6673_v38  ;;  %v16053_v61 = vpop.f32.mrb[126].mxu0 }
 0x5a7   : > { %13017 = vst.msk [vmem:[%s20092_s17 + $0x1ec] sm:$0xf] %vm12893_vm8, %v14186_v10  ;;  %v12203_v53 = vadd.f32 %v20440_v14, %v16188_v7  ;;  %v16190_v49 = vadd.f32 %v16053_v61, %v15501_v17  ;;  %v11890_v1 = vpop.f32.mrb[127].mxu0 }
 0x5a8   : > { %13015 = vst.msk [vmem:[%s20092_s17 + $0x1e4] sm:$0xf] %vm12893_vm8, %v14184_v42  ;;  %v12201_v48 = vadd.f32 %v20440_v14, %v16189_v15  ;;  %v16191_v19 = vadd.f32 %v11890_v1, %v6676_v24 }
 0x5a9   : > { %v15504_v51 = vpop.f32.mrb[128].mxu1  ;;  %v12339_v5 = vmax.f32 %v12203_v53, 0.0  ;;  %v12204_v57 = vadd.f32 %v20440_v14, %v16190_v49 }
 0x5aa   : > { %v6689_v0 = vpop.f32.mrb[129].mxu1  ;;  %v12337_v4 = vmax.f32 %v12201_v48, 0.0  ;;  %v12202_v31 = vadd.f32 %v20440_v14, %v16191_v19 }
 0x5ab   : > { %v15505_v6 = vpop.f32.mrb[130].mxu1  ;;  %v14189_v39 = vpack.c.bf16 %v12339_v5, %v12339_v5  ;;  %v12340_v50 = vmax.f32 %v12204_v57, 0.0 }
 0x5ac   : > { %v6692_v9 = vpop.f32.mrb[131].mxu1  ;;  %v14187_v20 = vpack.c.bf16 %v12337_v4, %v12337_v4  ;;  %v12338_v22 = vmax.f32 %v12202_v31, 0.0  ;;  %v16056_v45 = vpop.f32.mrb[128].mxu0 }
 0x5ad   : > { %13020 = vst.msk [vmem:[%s20092_s17 + $0x1f8] sm:$0xf] %vm12893_vm8, %v14189_v39  ;;  %v14190_v18 = vpack.c.bf16 %v12340_v50, %v12340_v50  ;;  %v16192_v41 = vadd.f32 %v16056_v45, %v15504_v51  ;;  %v11903_v52 = vpop.f32.mrb[129].mxu0 }
 0x5ae   : > { %13018 = vst.msk [vmem:[%s20092_s17 + $0x1f0] sm:$0xf] %vm12893_vm8, %v14187_v20  ;;  %v14188_v30 = vpack.c.bf16 %v12338_v22, %v12338_v22  ;;  %v16193_v44 = vadd.f32 %v11903_v52, %v6689_v0  ;;  %v16057_v28 = vpop.f32.mrb[130].mxu0 }
 0x5af   : > { %13021 = vst.msk [vmem:[%s20092_s17 + $0x1fc] sm:$0xf] %vm12893_vm8, %v14190_v18  ;;  %v12207_v2 = vadd.f32 %v20440_v14, %v16192_v41  ;;  %v16194_v54 = vadd.f32 %v16057_v28, %v15505_v6  ;;  %v11906_v25 = vpop.f32.mrb[131].mxu0 }
 0x5b0   : > { %13019 = vst.msk [vmem:[%s20092_s17 + $0x1f4] sm:$0xf] %vm12893_vm8, %v14188_v30  ;;  %v12205_v58 = vadd.f32 %v20440_v14, %v16193_v44  ;;  %v16195_v11 = vadd.f32 %v11906_v25, %v6692_v9 }
 0x5b1   : > { %v15508_v63 = vpop.f32.mrb[132].mxu1  ;;  %v12343_v46 = vmax.f32 %v12207_v2, 0.0  ;;  %v12208_v8 = vadd.f32 %v20440_v14, %v16194_v54 }
 0x5b2   : > { %v6705_v32 = vpop.f32.mrb[133].mxu1  ;;  %v12341_v40 = vmax.f32 %v12205_v58, 0.0  ;;  %v12206_v3 = vadd.f32 %v20440_v14, %v16195_v11 }
 0x5b3   : > { %v15509_v29 = vpop.f32.mrb[134].mxu1  ;;  %v14193_v12 = vpack.c.bf16 %v12343_v46, %v12343_v46  ;;  %v12344_v16 = vmax.f32 %v12208_v8, 0.0 }
 0x5b4   : > { %v6708_v23 = vpop.f32.mrb[135].mxu1  ;;  %v14191_v59 = vpack.c.bf16 %v12341_v40, %v12341_v40  ;;  %v12342_v55 = vmax.f32 %v12206_v3, 0.0  ;;  %v16060_v60 = vpop.f32.mrb[132].mxu0 }
 0x5b5   : > { %13024 = vst.msk [vmem:[%s20092_s17 + $0x208] sm:$0xf] %vm12893_vm8, %v14193_v12  ;;  %v14194_v56 = vpack.c.bf16 %v12344_v16, %v12344_v16  ;;  %v16196_v43 = vadd.f32 %v16060_v60, %v15508_v63  ;;  %v11919_v34 = vpop.f32.mrb[133].mxu0 }
 0x5b6   : > { %13022 = vst.msk [vmem:[%s20092_s17 + $0x200] sm:$0xf] %vm12893_vm8, %v14191_v59  ;;  %v14192_v38 = vpack.c.bf16 %v12342_v55, %v12342_v55  ;;  %v16197_v37 = vadd.f32 %v11919_v34, %v6705_v32  ;;  %v16061_v21 = vpop.f32.mrb[134].mxu0 }
 0x5b7   : > { %13025 = vst.msk [vmem:[%s20092_s17 + $0x20c] sm:$0xf] %vm12893_vm8, %v14194_v56  ;;  %v12211_v17 = vadd.f32 %v20440_v14, %v16196_v43  ;;  %v16198_v36 = vadd.f32 %v16061_v21, %v15509_v29  ;;  %v11922_v35 = vpop.f32.mrb[135].mxu0 }
 0x5b8   : > { %13023 = vst.msk [vmem:[%s20092_s17 + $0x204] sm:$0xf] %vm12893_vm8, %v14192_v38  ;;  %v12209_v24 = vadd.f32 %v20440_v14, %v16197_v37  ;;  %v16199_v47 = vadd.f32 %v11922_v35, %v6708_v23 }
 0x5b9   : > { %v12347_v27 = vmax.f32 %v12211_v17, 0.0  ;;  %v12212_v26 = vadd.f32 %v20440_v14, %v16198_v36 }
 0x5ba   : > { %v12345_v33 = vmax.f32 %v12209_v24, 0.0  ;;  %v12210_v62 = vadd.f32 %v20440_v14, %v16199_v47 }
 0x5bb   : > { %v14197_v10 = vpack.c.bf16 %v12347_v27, %v12347_v27  ;;  %v12348_v7 = vmax.f32 %v12212_v26, 0.0 }
 0x5bc   : > { %v14195_v13 = vpack.c.bf16 %v12345_v33, %v12345_v33  ;;  %v12346_v42 = vmax.f32 %v12210_v62, 0.0 }
 0x5bd   : > { %13028 = vst.msk [vmem:[%s20092_s17 + $0x218] sm:$0xf] %vm12893_vm8, %v14197_v10  ;;  %v14198_v15 = vpack.c.bf16 %v12348_v7, %v12348_v7 }
 0x5be   : > { %13026 = vst.msk [vmem:[%s20092_s17 + $0x210] sm:$0xf] %vm12893_vm8, %v14195_v13  ;;  %v14196_v61 = vpack.c.bf16 %v12346_v42, %v12346_v42 }
 0x5bf   : > { %13029 = vst.msk [vmem:[%s20092_s17 + $0x21c] sm:$0xf] %vm12893_vm8, %v14198_v15 }
 0x5c0   : > { %13027 = vst.msk [vmem:[%s20092_s17 + $0x214] sm:$0xf] %vm12893_vm8, %v14196_v61 }
 0x5c1 PF: > { %s13_s12 = sadd.s32 1, %s17684_s12  }
 0x5c2   : > { %p10_p4 = scmp.ge.s32.totalorder %s13_s12, 4  }
 0x5c4   :  { %12 = sbr.rel (!%p10_p4) target bundleno = 1 (0x1), region = 70 }

// kernel: tpu_custom_call.1
= control target key start
LH: loop header
LB: loop body
LE: loop exit
PB: predicated region body
PF: predicated region fallthrough
CT: control target
= control target key end

     0   :  { %8 = vsyncpa [#allocation3], 0  ;;  %s2011_s0 = inlined_call_operand.hbm [shape: bf16[2048,128], index: 0, kind: input, shape index: {}]   ;;  %s2012_s1 = inlined_call_operand.hbm [shape: bf16[128,128], index: 1, kind: input, shape index: {}]   ;;  %s2013_s2 = inlined_call_operand.vmem [shape: f32[1,128], index: 2, kind: input, shape index: {}]   ;;  %s2014_s3 = inlined_call_operand.hbm [shape: f32[2048,128], index: 3, kind: output, shape index: {}]  }
   0x1   :  { %10 = vsyncpa [#allocation3 + $0x1], 0 }
   0x2   :  { %11 = vsyncpa [#allocation6], 0 }
   0x3   :  { %12 = vsyncpa [#allocation4], 0 }
   0x4   :  { %14 = vsyncpa [#allocation4 + $0x1], 0  ;;  %s1617_s12 = smov 0   ;;  %s1619_s13 = smov 0  }
   0x5   :  { %s1621_s14 = smov 0   ;;  %s1623_s15 = smov 0  }
   0x6   :  { %s1625_s16 = smov 0   ;;  %s1627_s17 = smov 0  }
   0x7 LB: > { %s1130_s18 = sadd.s32 4294967295, %s1588_s17   ;;  %s1131_s19 = sadd.s32 4294967294, %s1588_s17   ;;  %s1588_s17 = sphi %s1627_s17, %s20_s17   ;;  %s1584_s16 = sphi %s1625_s16, %s2037_s16   ;;  %s1580_s15 = sphi %s1623_s15, %s2036_s15   ;;  %s1576_s14 = sphi %s1621_s14, %s2035_s14   ;;  %s1572_s13 = sphi %s1619_s13, %s2034_s13   ;;  %s1568_s12 = sphi %s1617_s12, %s2033_s12  }
   0x8   : > { %p61_p0 = scmp.ne.s32.totalorder %s1572_s13, %s1568_s12  ;;  %p1651_p1 = scmp.eq.s32.totalorder %s1130_s18, 0 }
   0x9   : > { %p1655_p2 = scmp.eq.s32.totalorder %s1130_s18, 3  ;;  %p147_p3 = scmp.eq.s32.totalorder %s1131_s19, 3 }
   0xa   : > { %s2019_s20 = scalar_select %p1651_p1, 1, 0 }
   0xb   : > { %s2020_s21 = scalar_select %p1655_p2, 1, 0 }
   0xc   : > { %p1661_p4 = por %p1651_p1, %p61_p0  ;;  %p1132_p5 = scmp.ge.s32.totalorder %s1588_s17, 1 }
   0xd   : > { %p1666_p6 = por %p147_p3, %p61_p0  ;;  %p154_p7 = scmp.lt.s32.totalorder %s1588_s17, 5 }
   0xe   : > { %s2021_s22 = scalar_select %p1661_p4, 1, 0 }
   0xf   : > { %s2022_s23 = scalar_select %p1666_p6, 1, 0 }
  0x10   : > { %p1671_p8 = pnand %p1132_p5, %p154_p7  ;;  %s1590_s25 = smov [#allocation5]  }
  0x11   : > { %s170_s26 = sshll.u32 %s1590_s25, 4  ;;  %s39_s28 = sadd.s32 1, %s1584_s16  ;;  %s171_s26 = int_to_ptr.vmem [resolvable:$true] %s170_s26 }
  0x12   : > { %s2023_s24 = scalar_select %p1671_p8, 1, 0 }
  0x13   : > { %p1335_p9 = pneg %p1671_p8  ;;  %s1444_s4 = scalar_lea.hbm %s2012_s1, 1024 }
  0x14   : > { %p1445_p11 = scmp.ne.s32.totalorder %s2012_s1, %s1444_s4  ;;  %p1451_p3 = scmp.lt.u32.totalorder %s1444_s4, %s2012_s1 }
  0x15   : > { %p1679_p10 = pnand %p1335_p9, %p1651_p1 }
  0x17   : > { %p1446_p12 = pneg %p1679_p10 }
  0x19   : > { %p1447_p13 = pnand %p1446_p12, %p1445_p11 }
  0x1b   : > { %p1448_p0 = pneg %p1447_p13 }
  0x1d   : > { %p1453_p5 = pnand %p1451_p3, %p1448_p0 }
  0x1f   : > { %1456 = shalt.err (!%p1453_p5)
}
  0x20   : > { %s1457_s9 = scalar_lea.vmem %s171_s26, 1024  ;;  %p1465_p1 = scmp.lt.s32.totalorder %s171_s26, %s171_s26 }
  0x21   : > { %p1458_p7 = scmp.ne.s32.totalorder %s171_s26, %s1457_s9  ;;  %p1466_p4 = scmp.lt.s32.totalorder %s1457_s9, %s1457_s9 }
  0x23   : > { %p1460_p9 = pnand %p1458_p7, %p1446_p12  ;;  %p1467_p8 = por %p1466_p4, %p1465_p1 }
  0x25   : > { %p1461_p6 = pneg %p1460_p9 }
  0x27   : > { %p1468_p2 = pnand %p1467_p8, %p1461_p6 }
  0x29   : > { %1471 = shalt.err (!%p1468_p2)
}
  0x2a   : > { %s1591_s10 = smov 64   ;;  %s1592_s11 = smov 4  }
  0x2b   : > { %1338 = dma.hbm_to_vmem [thread:$0]  (!%p1679_p10), %s2012_s1, 1024, %s171_s26, [#allocation6], %s1591_s10, %s1591_s10, %s1592_s11  }
  0x2c   : > { %p41_p1 = scmp.ge.s32.totalorder %s39_s28, 4  ;;  %s48_s25 = sadd.s32 1, %s1576_s14 }
  0x2d   : > { %p55_p2 = scmp.ne.s32.totalorder %s1576_s14, %s1572_s13  ;;  %p56_p4 = scmp.eq.s32.totalorder %s1588_s17, 0 }
  0x2e   : > { %s2039_s28 = smov (%p41_p1, %s39_s28), 0  ;;  %p2026_p8 = scmp.ne.s32.totalorder %s2020_s21, 0 }
  0x2f   : > { %p1709_p6 = por %p56_p4, %p55_p2  ;;  %s43_s30 = ssub.s32 %s1584_s16, %s2039_s28 }
  0x30   : > { %p1715_p11 = por %p2026_p8, %p55_p2  ;;  %p1348_p12 = scmp.lt.s32.totalorder %s1588_s17, 4 }
  0x31   : > { %p46_p10 = scmp.eq.s32.totalorder %s43_s30, 0  ;;  %s190_s26 = sand.u32 1, %s1576_s14  }
  0x32   : > { %s1136_s4 = sshll.u32 %s190_s26, 8  ;;  %s1189_s6 = sshll.u32 %s1584_s16, 12 }
  0x33   : > { %s1724_s5 = scalar_select %p46_p10, %s1576_s14, %s48_s25  }
  0x34   : > { %s1730_s9 = scalar_lea.hbm %s2011_s0, %s1189_s6  ;;  %s194_s21 = scalar_lea.vmem [#allocation2], %s1136_s4 }
  0x35   : > { %s202_s18 = sshll.u32 %s194_s21, 4  ;;  %p1736_p13 = pnand %p1348_p12, %p1709_p6  ;;  %s1732_s18 = int_to_ptr.vmem [resolvable:$true] %s202_s18 }
  0x36   : > { %s1740_s25 = scalar_lea.sflag [#allocation3], %s190_s26  ;;  %s1472_s30 = scalar_lea.hbm %s1730_s9, 4096 }
  0x37   : > { %p1473_p0 = scmp.ne.s32.totalorder %s1730_s9, %s1472_s30  ;;  %p1474_p3 = pneg %p1736_p13 }
  0x38   : > { %s1477_s29 = scalar_lea.hbm %s2011_s0, 16384  ;;  %p1478_p9 = scmp.lt.u32.totalorder %s1730_s9, %s2011_s0 }
  0x39   : > { %p1475_p5 = pnand %p1474_p3, %p1473_p0  ;;  %p1479_p1 = scmp.lt.u32.totalorder %s1477_s29, %s1472_s30 }
  0x3a   : > { %p1481_p4 = scmp.lt.u32.totalorder %s1472_s30, %s1730_s9 }
  0x3b   : > { %p1476_p7 = pneg %p1475_p5  ;;  %p1480_p2 = por %p1479_p1, %p1478_p9 }
  0x3d   : > { %p1482_p6 = por %p1481_p4, %p1480_p2 }
  0x3f   : > { %p1483_p8 = pnand %p1482_p6, %p1476_p7 }
  0x41   : > { %1486 = shalt.err (!%p1483_p8)
}
  0x42   : > { %s1487_s26 = scalar_lea.vmem %s1732_s18, 4096  ;;  %s1593_s21 = smov [#allocation2]  }
  0x43   : > { %p1488_p12 = scmp.ne.s32.totalorder %s1732_s18, %s1487_s26  ;;  %s1492_s4 = sshll.u32 %s1593_s21, 4  ;;  %s1493_s4 = int_to_ptr.vmem [resolvable:$false] %s1492_s4 }
  0x44   : > { %s1494_s6 = scalar_lea.vmem %s1493_s4, 8192  ;;  %p1495_p5 = scmp.lt.s32.totalorder %s1732_s18, %s1493_s4 }
  0x45   : > { %p1490_p10 = pnand %p1488_p12, %p1474_p3  ;;  %p1496_p9 = scmp.lt.s32.totalorder %s1494_s6, %s1487_s26 }
  0x47   : > { %p1491_p0 = pneg %p1490_p10  ;;  %p1497_p1 = por %p1496_p9, %p1495_p5 }
  0x49   : > { %p1498_p2 = pnand %p1497_p1, %p1491_p0 }
  0x4b   : > { %1501 = shalt.err (!%p1498_p2)
}
  0x4c   : > { %1342 = dma.hbm_to_vmem [thread:$0]  (!%p1736_p13), %s1730_s9, 4096, %s1732_s18, %s1740_s25, %s1591_s10, %s1591_s10, %s1592_s11  }
  0x4d   : > { %p2029_p3 = scmp.ne.s32.totalorder %s2023_s24, 0 }
  0x4e   : > { %s1774_s30 = sand.u32 (!%p2029_p3), 1, %s1572_s13   ;;  %p2030_p7 = scmp.ne.s32.totalorder (!%p2029_p3), %s2021_s22, 0 }
  0x4f   : > { %214 = sbr.rel (%p2029_p3) target bundleno = 413 (0x19d), region = 32  ;;  %s1140_s29 = sshll.u32 (!%p2029_p3), %s1774_s30, 8 }
  0x50   : > { %s217_s7 = scalar_lea.sflag (!%p2029_p3), [#allocation3], %s1774_s30  ;;  %s1778_s8 = scalar_lea.vmem (!%p2029_p3), [#allocation2], %s1140_s29 }
  0x56   : > { %1555 = dma.done.wait (%p2030_p7), %s217_s7, 4096  }
  0x57   : > { %1557 = vsyncadd (%p2030_p7), %s217_s7, 4294963200  ;;  %p2031_p13 = scmp.ne.s32.totalorder %s2019_s20, 0 }
  0x59   : > { %1559 = dma.done.wait (%p2031_p13), [#allocation6], 1024  }
  0x5a   : > { %1561 = vsyncadd (%p2031_p13), [#allocation6], 4294966272  ;;  %v1404_v0 = vld [vmem:[#allocation5] sm:$0xff]   ;;  %v1405_v1 = vld [vmem:[#allocation5 + $0x8] sm:$0xff]   ;;  %s1142_s24 = sshll.u32 %s1774_s30, 9  ;;  %s1190_s11 = sshll.u32 %s1580_s15, 13 }
  0x5b   : > { %1231 = vmatprep.subr.bf16.mxu0 %v1404_v0  ;;  %1311 = vmatprep.subr.bf16.mxu1 %v1404_v0  ;;  %v1406_v2 = vld [vmem:[#allocation5 + $0x10] sm:$0xff]   ;;  %v1407_v3 = vld [vmem:[#allocation5 + $0x18] sm:$0xff]   ;;  %v1412_v4 = vld [vmem:[%s1778_s8] sm:$0xff]   ;;  %s1834_s10 = scalar_lea.vmem [#allocation7], %s1142_s24  ;;  %s1955_s19 = scalar_lea.hbm %s2014_s3, %s1190_s11 }
  0x5c   : > { %1232 = vmatpush3.bf16.msra.mxu0 %v1404_v0  ;;  %1319 = vmatpush3.bf16.msra.mxu1 %v1404_v0  ;;  %v1413_v5 = vld [vmem:[%s1778_s8 + $0x80] sm:$0xff]   ;;  %v1409_v7 = vld [vmem:[#allocation5 + $0x28] sm:$0xff]   ;;  %v1410_v8 = vld [vmem:[#allocation5 + $0x30] sm:$0xff]   ;;  %s1016_s9 = sshll.u32 %s1834_s10, 4  ;;  %s1002_s25 = scalar_lea.sflag [#allocation4], %s1774_s30  ;;  %s1957_s9 = int_to_ptr.vmem [resolvable:$true] %s1016_s9 }
  0x5d   : > { %1233 = vmatprep.subr.bf16.mxu0 %v1405_v1  ;;  %1312 = vmatprep.subr.bf16.mxu1 %v1405_v1  ;;  %v1408_v6 = vld [vmem:[#allocation5 + $0x20] sm:$0xff]   ;;  %v1411_v9 = vld [vmem:[#allocation5 + $0x38] sm:$0xff]   ;;  %v1414_v10 = vld [vmem:[%s1778_s8 + $0x8] sm:$0xff]   ;;  %s1502_s26 = scalar_lea.vmem %s1957_s9, 8192  ;;  %s1594_s21 = smov [#allocation7]  }
  0x5e   : > { %1247 = vmatprep.mubr.bf16.mxu0 %v1412_v4  ;;  %1279 = vmatprep.mubr.bf16.mxu1 %v1413_v5  ;;  %v1415_v11 = vld [vmem:[%s1778_s8 + $0x88] sm:$0xff]   ;;  %v1416_v12 = vld [vmem:[%s1778_s8 + $0x10] sm:$0xff]   ;;  %v1418_v14 = vld [vmem:[%s1778_s8 + $0x18] sm:$0xff]   ;;  %p1503_p4 = scmp.ne.s32.totalorder %s1957_s9, %s1502_s26  ;;  %s1506_s4 = sshll.u32 %s1594_s21, 4  ;;  %s1507_s4 = int_to_ptr.vmem [resolvable:$false] %s1506_s4 }
  0x5f   : > { %v1417_v13 = vld [vmem:[%s1778_s8 + $0x90] sm:$0xff]   ;;  %v1419_v15 = vld [vmem:[%s1778_s8 + $0x98] sm:$0xff]   ;;  %v1420_v16 = vld [vmem:[%s1778_s8 + $0x20] sm:$0xff]   ;;  %s1508_s6 = scalar_lea.vmem %s1507_s4, 16384  ;;  %p1509_p12 = scmp.lt.s32.totalorder %s1957_s9, %s1507_s4 }
  0x60   : > { %1234 = vmatpush3.bf16.msra.mxu0 %v1405_v1  ;;  %1320 = vmatpush3.bf16.msra.mxu1 %v1405_v1  ;;  %v1421_v17 = vld [vmem:[%s1778_s8 + $0xa0] sm:$0xff]   ;;  %v1422_v18 = vld [vmem:[%s1778_s8 + $0x28] sm:$0xff]   ;;  %v1424_v20 = vld [vmem:[%s1778_s8 + $0x30] sm:$0xff]   ;;  %p1504_p6 = pnand %p1503_p4, %p1715_p11  ;;  %p1510_p10 = scmp.lt.s32.totalorder %s1508_s6, %s1502_s26 }
  0x61   : > { %1235 = vmatprep.subr.bf16.mxu0 %v1406_v2  ;;  %1313 = vmatprep.subr.bf16.mxu1 %v1406_v2  ;;  %v1423_v19 = vld [vmem:[%s1778_s8 + $0xa8] sm:$0xff]   ;;  %v1425_v21 = vld [vmem:[%s1778_s8 + $0xb0] sm:$0xff]   ;;  %v1426_v22 = vld [vmem:[%s1778_s8 + $0x38] sm:$0xff]  }
  0x62   : > { %v1427_v23 = vld [vmem:[%s1778_s8 + $0xb8] sm:$0xff]   ;;  %v1428_v24 = vld [vmem:[%s1778_s8 + $0x40] sm:$0xff]   ;;  %v1430_v26 = vld [vmem:[%s1778_s8 + $0x48] sm:$0xff]   ;;  %p1505_p8 = pneg %p1504_p6  ;;  %p1511_p0 = por %p1510_p10, %p1509_p12 }
  0x63   : > { %v1429_v25 = vld [vmem:[%s1778_s8 + $0xc0] sm:$0xff]   ;;  %v1431_v27 = vld [vmem:[%s1778_s8 + $0xc8] sm:$0xff]   ;;  %v1432_v28 = vld [vmem:[%s1778_s8 + $0x50] sm:$0xff]  }
  0x64   : > { %1236 = vmatpush3.bf16.msra.mxu0 %v1406_v2  ;;  %1321 = vmatpush3.bf16.msra.mxu1 %v1406_v2  ;;  %v1433_v29 = vld [vmem:[%s1778_s8 + $0xd0] sm:$0xff]   ;;  %v1434_v30 = vld [vmem:[%s1778_s8 + $0x58] sm:$0xff]   ;;  %v1436_v32 = vld [vmem:[%s1778_s8 + $0x60] sm:$0xff]   ;;  %p1512_p5 = pnand %p1511_p0, %p1505_p8 }
  0x65   : > { %1237 = vmatprep.subr.bf16.mxu0 %v1407_v3  ;;  %1314 = vmatprep.subr.bf16.mxu1 %v1407_v3  ;;  %v1435_v31 = vld [vmem:[%s1778_s8 + $0xd8] sm:$0xff]   ;;  %v1437_v33 = vld [vmem:[%s1778_s8 + $0xe0] sm:$0xff]   ;;  %v1438_v34 = vld [vmem:[%s1778_s8 + $0x68] sm:$0xff]  }
  0x66   : > { %v1439_v35 = vld [vmem:[%s1778_s8 + $0xe8] sm:$0xff]   ;;  %v1440_v36 = vld [vmem:[%s1778_s8 + $0x70] sm:$0xff]   ;;  %v1442_v38 = vld [vmem:[%s1778_s8 + $0x78] sm:$0xff]  }
  0x67   : > { %v1441_v37 = vld [vmem:[%s1778_s8 + $0xf0] sm:$0xff]   ;;  %v1443_v39 = vld [vmem:[%s1778_s8 + $0xf8] sm:$0xff]   ;;  %v1823_v40 = vld [vmem:[%s2013_s2] ss:$0 sm:$0xff] }
  0x68   : > { %1238 = vmatpush3.bf16.msra.mxu0 %v1407_v3  ;;  %1322 = vmatpush3.bf16.msra.mxu1 %v1407_v3 }
  0x69   : > { %1239 = vmatprep.subr.bf16.mxu0 %v1408_v6  ;;  %1315 = vmatprep.subr.bf16.mxu1 %v1408_v6 }
  0x6c   : > { %1240 = vmatpush3.bf16.msra.mxu0 %v1408_v6  ;;  %1323 = vmatpush3.bf16.msra.mxu1 %v1408_v6 }
  0x6d   : > { %1241 = vmatprep.subr.bf16.mxu0 %v1409_v7  ;;  %1316 = vmatprep.subr.bf16.mxu1 %v1409_v7 }
  0x70   : > { %1242 = vmatpush3.bf16.msra.mxu0 %v1409_v7  ;;  %1324 = vmatpush3.bf16.msra.mxu1 %v1409_v7 }
  0x71   : > { %1243 = vmatprep.subr.bf16.mxu0 %v1410_v8  ;;  %1317 = vmatprep.subr.bf16.mxu1 %v1410_v8 }
  0x74   : > { %1244 = vmatpush3.bf16.msra.mxu0 %v1410_v8  ;;  %1325 = vmatpush3.bf16.msra.mxu1 %v1410_v8 }
  0x75   : > { %1245 = vmatprep.subr.bf16.mxu0 %v1411_v9  ;;  %1318 = vmatprep.subr.bf16.mxu1 %v1411_v9 }
  0x78   : > { %1246 = vmatpush3.bf16.msra.mxu0 %v1411_v9  ;;  %1326 = vmatpush3.bf16.msra.mxu1 %v1411_v9 }
  0x7b   : > { %1248 = vmatmul.mubr.bf16.vlgmr.msra.gmra.mrb[0].mxu0 %v1414_v10  ;;  %1280 = vmatmul.mubr.bf16.vlgmr.msra.gmra.mrb[0].mxu1 %v1415_v11 }
  0x7c   : > { %1251 = vmatprep.mubr.bf16.mxu0 %v1416_v12  ;;  %1283 = vmatprep.mubr.bf16.mxu1 %v1417_v13 }
  0x83   : > { %1252 = vmatmul.mubr.bf16.gmra.mrb[4].mxu0 %v1418_v14  ;;  %1284 = vmatmul.mubr.bf16.gmra.mrb[4].mxu1 %v1419_v15 }
  0x84   : > { %1255 = vmatprep.mubr.bf16.mxu0 %v1420_v16  ;;  %1287 = vmatprep.mubr.bf16.mxu1 %v1421_v17 }
  0x8b   : > { %1256 = vmatmul.mubr.bf16.gmra.mrb[8].mxu0 %v1422_v18  ;;  %1288 = vmatmul.mubr.bf16.gmra.mrb[8].mxu1 %v1423_v19 }
  0x8c   : > { %1259 = vmatprep.mubr.bf16.mxu0 %v1424_v20  ;;  %1291 = vmatprep.mubr.bf16.mxu1 %v1425_v21 }
  0x93   : > { %1260 = vmatmul.mubr.bf16.gmra.mrb[12].mxu0 %v1426_v22  ;;  %1292 = vmatmul.mubr.bf16.gmra.mrb[12].mxu1 %v1427_v23 }
  0x94   : > { %1263 = vmatprep.mubr.bf16.mxu0 %v1428_v24  ;;  %1295 = vmatprep.mubr.bf16.mxu1 %v1429_v25 }
  0x9b   : > { %1264 = vmatmul.mubr.bf16.gmra.mrb[16].mxu0 %v1430_v26  ;;  %1296 = vmatmul.mubr.bf16.gmra.mrb[16].mxu1 %v1431_v27 }
  0x9c   : > { %1267 = vmatprep.mubr.bf16.mxu0 %v1432_v28  ;;  %1299 = vmatprep.mubr.bf16.mxu1 %v1433_v29 }
  0xa3   : > { %1268 = vmatmul.mubr.bf16.gmra.mrb[20].mxu0 %v1434_v30  ;;  %1300 = vmatmul.mubr.bf16.gmra.mrb[20].mxu1 %v1435_v31 }
  0xa4   : > { %1271 = vmatprep.mubr.bf16.mxu0 %v1436_v32  ;;  %1303 = vmatprep.mubr.bf16.mxu1 %v1437_v33 }
  0xab   : > { %1272 = vmatmul.mubr.bf16.gmra.mrb[24].mxu0 %v1438_v34  ;;  %1304 = vmatmul.mubr.bf16.gmra.mrb[24].mxu1 %v1439_v35 }
  0xac   : > { %1275 = vmatprep.mubr.bf16.mxu0 %v1440_v36  ;;  %1307 = vmatprep.mubr.bf16.mxu1 %v1441_v37 }
  0xb3   : > { %1276 = vmatmul.mubr.bf16.gmra.mrb[28].mxu0 %v1442_v38  ;;  %1308 = vmatmul.mubr.bf16.gmra.mrb[28].mxu1 %v1443_v39 }
 0x14e   : > { %v1249_v41 = vpop.f32.mrb[0].mxu0  ;;  %v1281_v42 = vpop.f32.mrb[0].mxu1 }
 0x14f   : > { %v627_v43 = vadd.f32 %v1249_v41, %v1823_v40  ;;  %v755_v44 = vadd.f32 %v1281_v42, %v1823_v40  ;;  %v618_v45 = vpop.f32.mrb[1].mxu0  ;;  %v746_v46 = vpop.f32.mrb[1].mxu1 }
 0x150   : > { %v619_v47 = vadd.f32 %v1823_v40, %v618_v45  ;;  %v747_v48 = vadd.f32 %v1823_v40, %v746_v46  ;;  %v1250_v49 = vpop.f32.mrb[2].mxu0  ;;  %v1282_v50 = vpop.f32.mrb[2].mxu1 }
 0x151   : > { %v875_v51 = vmax.f32 %v627_v43, 0.0  ;;  %v907_v52 = vmax.f32 %v755_v44, 0.0  ;;  %v630_v53 = vadd.f32 %v1250_v49, %v1823_v40  ;;  %v758_v54 = vadd.f32 %v1282_v50, %v1823_v40  ;;  %v621_v55 = vpop.f32.mrb[3].mxu0  ;;  %v749_v56 = vpop.f32.mrb[3].mxu1 }
 0x152   : > { %v873_v57 = vmax.f32 %v619_v47, 0.0  ;;  %v905_v58 = vmax.f32 %v747_v48, 0.0  ;;  %v622_v59 = vadd.f32 %v1823_v40, %v621_v55  ;;  %v750_v60 = vadd.f32 %v1823_v40, %v749_v56 }
 0x153   : > { %939 = vst [vmem:[%s1834_s10 + $0x10] sm:$0xff] %v875_v51  ;;  %971 = vst [vmem:[%s1834_s10 + $0x110] sm:$0xff] %v907_v52  ;;  %v876_v61 = vmax.f32 %v630_v53, 0.0  ;;  %v908_v62 = vmax.f32 %v758_v54, 0.0 }
 0x154   : > { %937 = vst [vmem:[%s1834_s10] sm:$0xff] %v873_v57  ;;  %969 = vst [vmem:[%s1834_s10 + $0x100] sm:$0xff] %v905_v58  ;;  %v874_v63 = vmax.f32 %v622_v59, 0.0  ;;  %v906_v0 = vmax.f32 %v750_v60, 0.0 }
 0x155   : > { %940 = vst [vmem:[%s1834_s10 + $0x18] sm:$0xff] %v876_v61  ;;  %972 = vst [vmem:[%s1834_s10 + $0x118] sm:$0xff] %v908_v62 }
 0x156   : > { %938 = vst [vmem:[%s1834_s10 + $0x8] sm:$0xff] %v874_v63  ;;  %970 = vst [vmem:[%s1834_s10 + $0x108] sm:$0xff] %v906_v0  ;;  %v1253_v1 = vpop.f32.mrb[4].mxu0  ;;  %v1285_v2 = vpop.f32.mrb[4].mxu1 }
 0x157   : > { %v643_v3 = vadd.f32 %v1253_v1, %v1823_v40  ;;  %v771_v4 = vadd.f32 %v1285_v2, %v1823_v40  ;;  %v634_v5 = vpop.f32.mrb[5].mxu0  ;;  %v762_v6 = vpop.f32.mrb[5].mxu1 }
 0x158   : > { %v635_v7 = vadd.f32 %v1823_v40, %v634_v5  ;;  %v763_v8 = vadd.f32 %v1823_v40, %v762_v6  ;;  %v1254_v9 = vpop.f32.mrb[6].mxu0  ;;  %v1286_v10 = vpop.f32.mrb[6].mxu1 }
 0x159   : > { %v879_v11 = vmax.f32 %v643_v3, 0.0  ;;  %v911_v12 = vmax.f32 %v771_v4, 0.0  ;;  %v646_v13 = vadd.f32 %v1254_v9, %v1823_v40  ;;  %v774_v14 = vadd.f32 %v1286_v10, %v1823_v40  ;;  %v637_v15 = vpop.f32.mrb[7].mxu0  ;;  %v765_v16 = vpop.f32.mrb[7].mxu1 }
 0x15a   : > { %v877_v17 = vmax.f32 %v635_v7, 0.0  ;;  %v909_v18 = vmax.f32 %v763_v8, 0.0  ;;  %v638_v19 = vadd.f32 %v1823_v40, %v637_v15  ;;  %v766_v20 = vadd.f32 %v1823_v40, %v765_v16 }
 0x15b   : > { %943 = vst [vmem:[%s1834_s10 + $0x30] sm:$0xff] %v879_v11  ;;  %975 = vst [vmem:[%s1834_s10 + $0x130] sm:$0xff] %v911_v12  ;;  %v880_v21 = vmax.f32 %v646_v13, 0.0  ;;  %v912_v22 = vmax.f32 %v774_v14, 0.0 }
 0x15c   : > { %941 = vst [vmem:[%s1834_s10 + $0x20] sm:$0xff] %v877_v17  ;;  %973 = vst [vmem:[%s1834_s10 + $0x120] sm:$0xff] %v909_v18  ;;  %v878_v23 = vmax.f32 %v638_v19, 0.0  ;;  %v910_v24 = vmax.f32 %v766_v20, 0.0 }
 0x15d   : > { %944 = vst [vmem:[%s1834_s10 + $0x38] sm:$0xff] %v880_v21  ;;  %976 = vst [vmem:[%s1834_s10 + $0x138] sm:$0xff] %v912_v22 }
 0x15e   : > { %942 = vst [vmem:[%s1834_s10 + $0x28] sm:$0xff] %v878_v23  ;;  %974 = vst [vmem:[%s1834_s10 + $0x128] sm:$0xff] %v910_v24  ;;  %v1257_v25 = vpop.f32.mrb[8].mxu0  ;;  %v1289_v26 = vpop.f32.mrb[8].mxu1 }
 0x15f   : > { %v659_v27 = vadd.f32 %v1257_v25, %v1823_v40  ;;  %v787_v28 = vadd.f32 %v1289_v26, %v1823_v40  ;;  %v650_v29 = vpop.f32.mrb[9].mxu0  ;;  %v778_v30 = vpop.f32.mrb[9].mxu1 }
 0x160   : > { %v651_v31 = vadd.f32 %v1823_v40, %v650_v29  ;;  %v779_v32 = vadd.f32 %v1823_v40, %v778_v30  ;;  %v1258_v33 = vpop.f32.mrb[10].mxu0  ;;  %v1290_v34 = vpop.f32.mrb[10].mxu1 }
 0x161   : > { %v883_v35 = vmax.f32 %v659_v27, 0.0  ;;  %v915_v36 = vmax.f32 %v787_v28, 0.0  ;;  %v662_v37 = vadd.f32 %v1258_v33, %v1823_v40  ;;  %v790_v38 = vadd.f32 %v1290_v34, %v1823_v40  ;;  %v653_v39 = vpop.f32.mrb[11].mxu0  ;;  %v781_v41 = vpop.f32.mrb[11].mxu1 }
 0x162   : > { %v881_v42 = vmax.f32 %v651_v31, 0.0  ;;  %v913_v43 = vmax.f32 %v779_v32, 0.0  ;;  %v654_v44 = vadd.f32 %v1823_v40, %v653_v39  ;;  %v782_v45 = vadd.f32 %v1823_v40, %v781_v41 }
 0x163   : > { %947 = vst [vmem:[%s1834_s10 + $0x50] sm:$0xff] %v883_v35  ;;  %979 = vst [vmem:[%s1834_s10 + $0x150] sm:$0xff] %v915_v36  ;;  %v884_v46 = vmax.f32 %v662_v37, 0.0  ;;  %v916_v47 = vmax.f32 %v790_v38, 0.0 }
 0x164   : > { %945 = vst [vmem:[%s1834_s10 + $0x40] sm:$0xff] %v881_v42  ;;  %977 = vst [vmem:[%s1834_s10 + $0x140] sm:$0xff] %v913_v43  ;;  %v882_v48 = vmax.f32 %v654_v44, 0.0  ;;  %v914_v49 = vmax.f32 %v782_v45, 0.0 }
 0x165   : > { %948 = vst [vmem:[%s1834_s10 + $0x58] sm:$0xff] %v884_v46  ;;  %980 = vst [vmem:[%s1834_s10 + $0x158] sm:$0xff] %v916_v47 }
 0x166   : > { %946 = vst [vmem:[%s1834_s10 + $0x48] sm:$0xff] %v882_v48  ;;  %978 = vst [vmem:[%s1834_s10 + $0x148] sm:$0xff] %v914_v49  ;;  %v1261_v50 = vpop.f32.mrb[12].mxu0  ;;  %v1293_v51 = vpop.f32.mrb[12].mxu1 }
 0x167   : > { %v675_v52 = vadd.f32 %v1261_v50, %v1823_v40  ;;  %v803_v53 = vadd.f32 %v1293_v51, %v1823_v40  ;;  %v666_v54 = vpop.f32.mrb[13].mxu0  ;;  %v794_v55 = vpop.f32.mrb[13].mxu1 }
 0x168   : > { %v667_v56 = vadd.f32 %v1823_v40, %v666_v54  ;;  %v795_v57 = vadd.f32 %v1823_v40, %v794_v55  ;;  %v1262_v58 = vpop.f32.mrb[14].mxu0  ;;  %v1294_v59 = vpop.f32.mrb[14].mxu1 }
 0x169   : > { %v887_v60 = vmax.f32 %v675_v52, 0.0  ;;  %v919_v61 = vmax.f32 %v803_v53, 0.0  ;;  %v678_v62 = vadd.f32 %v1262_v58, %v1823_v40  ;;  %v806_v63 = vadd.f32 %v1294_v59, %v1823_v40  ;;  %v669_v0 = vpop.f32.mrb[15].mxu0  ;;  %v797_v1 = vpop.f32.mrb[15].mxu1 }
 0x16a   : > { %v885_v2 = vmax.f32 %v667_v56, 0.0  ;;  %v917_v3 = vmax.f32 %v795_v57, 0.0  ;;  %v670_v4 = vadd.f32 %v1823_v40, %v669_v0  ;;  %v798_v5 = vadd.f32 %v1823_v40, %v797_v1 }
 0x16b   : > { %951 = vst [vmem:[%s1834_s10 + $0x70] sm:$0xff] %v887_v60  ;;  %983 = vst [vmem:[%s1834_s10 + $0x170] sm:$0xff] %v919_v61  ;;  %v888_v6 = vmax.f32 %v678_v62, 0.0  ;;  %v920_v7 = vmax.f32 %v806_v63, 0.0 }
 0x16c   : > { %949 = vst [vmem:[%s1834_s10 + $0x60] sm:$0xff] %v885_v2  ;;  %981 = vst [vmem:[%s1834_s10 + $0x160] sm:$0xff] %v917_v3  ;;  %v886_v8 = vmax.f32 %v670_v4, 0.0  ;;  %v918_v9 = vmax.f32 %v798_v5, 0.0 }
 0x16d   : > { %952 = vst [vmem:[%s1834_s10 + $0x78] sm:$0xff] %v888_v6  ;;  %984 = vst [vmem:[%s1834_s10 + $0x178] sm:$0xff] %v920_v7 }
 0x16e   : > { %950 = vst [vmem:[%s1834_s10 + $0x68] sm:$0xff] %v886_v8  ;;  %982 = vst [vmem:[%s1834_s10 + $0x168] sm:$0xff] %v918_v9  ;;  %v1265_v10 = vpop.f32.mrb[16].mxu0  ;;  %v1297_v11 = vpop.f32.mrb[16].mxu1 }
 0x16f   : > { %v691_v12 = vadd.f32 %v1265_v10, %v1823_v40  ;;  %v819_v13 = vadd.f32 %v1297_v11, %v1823_v40  ;;  %v682_v14 = vpop.f32.mrb[17].mxu0  ;;  %v810_v15 = vpop.f32.mrb[17].mxu1 }
 0x170   : > { %v683_v16 = vadd.f32 %v1823_v40, %v682_v14  ;;  %v811_v17 = vadd.f32 %v1823_v40, %v810_v15  ;;  %v1266_v18 = vpop.f32.mrb[18].mxu0  ;;  %v1298_v19 = vpop.f32.mrb[18].mxu1 }
 0x171   : > { %v891_v20 = vmax.f32 %v691_v12, 0.0  ;;  %v923_v21 = vmax.f32 %v819_v13, 0.0  ;;  %v694_v22 = vadd.f32 %v1266_v18, %v1823_v40  ;;  %v822_v23 = vadd.f32 %v1298_v19, %v1823_v40  ;;  %v685_v24 = vpop.f32.mrb[19].mxu0  ;;  %v813_v25 = vpop.f32.mrb[19].mxu1 }
 0x172   : > { %v889_v26 = vmax.f32 %v683_v16, 0.0  ;;  %v921_v27 = vmax.f32 %v811_v17, 0.0  ;;  %v686_v28 = vadd.f32 %v1823_v40, %v685_v24  ;;  %v814_v29 = vadd.f32 %v1823_v40, %v813_v25 }
 0x173   : > { %955 = vst [vmem:[%s1834_s10 + $0x90] sm:$0xff] %v891_v20  ;;  %987 = vst [vmem:[%s1834_s10 + $0x190] sm:$0xff] %v923_v21  ;;  %v892_v30 = vmax.f32 %v694_v22, 0.0  ;;  %v924_v31 = vmax.f32 %v822_v23, 0.0 }
 0x174   : > { %953 = vst [vmem:[%s1834_s10 + $0x80] sm:$0xff] %v889_v26  ;;  %985 = vst [vmem:[%s1834_s10 + $0x180] sm:$0xff] %v921_v27  ;;  %v890_v32 = vmax.f32 %v686_v28, 0.0  ;;  %v922_v33 = vmax.f32 %v814_v29, 0.0 }
 0x175   : > { %956 = vst [vmem:[%s1834_s10 + $0x98] sm:$0xff] %v892_v30  ;;  %988 = vst [vmem:[%s1834_s10 + $0x198] sm:$0xff] %v924_v31 }
 0x176   : > { %954 = vst [vmem:[%s1834_s10 + $0x88] sm:$0xff] %v890_v32  ;;  %986 = vst [vmem:[%s1834_s10 + $0x188] sm:$0xff] %v922_v33  ;;  %v1269_v34 = vpop.f32.mrb[20].mxu0  ;;  %v1301_v35 = vpop.f32.mrb[20].mxu1 }
 0x177   : > { %v707_v36 = vadd.f32 %v1269_v34, %v1823_v40  ;;  %v835_v37 = vadd.f32 %v1301_v35, %v1823_v40  ;;  %v698_v38 = vpop.f32.mrb[21].mxu0  ;;  %v826_v39 = vpop.f32.mrb[21].mxu1 }
 0x178   : > { %v699_v41 = vadd.f32 %v1823_v40, %v698_v38  ;;  %v827_v42 = vadd.f32 %v1823_v40, %v826_v39  ;;  %v1270_v43 = vpop.f32.mrb[22].mxu0  ;;  %v1302_v44 = vpop.f32.mrb[22].mxu1 }
 0x179   : > { %v895_v45 = vmax.f32 %v707_v36, 0.0  ;;  %v927_v46 = vmax.f32 %v835_v37, 0.0  ;;  %v710_v47 = vadd.f32 %v1270_v43, %v1823_v40  ;;  %v838_v48 = vadd.f32 %v1302_v44, %v1823_v40  ;;  %v701_v49 = vpop.f32.mrb[23].mxu0  ;;  %v829_v50 = vpop.f32.mrb[23].mxu1 }
 0x17a   : > { %v893_v51 = vmax.f32 %v699_v41, 0.0  ;;  %v925_v52 = vmax.f32 %v827_v42, 0.0  ;;  %v702_v53 = vadd.f32 %v1823_v40, %v701_v49  ;;  %v830_v54 = vadd.f32 %v1823_v40, %v829_v50 }
 0x17b   : > { %959 = vst [vmem:[%s1834_s10 + $0xb0] sm:$0xff] %v895_v45  ;;  %991 = vst [vmem:[%s1834_s10 + $0x1b0] sm:$0xff] %v927_v46  ;;  %v896_v55 = vmax.f32 %v710_v47, 0.0  ;;  %v928_v56 = vmax.f32 %v838_v48, 0.0 }
 0x17c   : > { %957 = vst [vmem:[%s1834_s10 + $0xa0] sm:$0xff] %v893_v51  ;;  %989 = vst [vmem:[%s1834_s10 + $0x1a0] sm:$0xff] %v925_v52  ;;  %v894_v57 = vmax.f32 %v702_v53, 0.0  ;;  %v926_v58 = vmax.f32 %v830_v54, 0.0 }
 0x17d   : > { %960 = vst [vmem:[%s1834_s10 + $0xb8] sm:$0xff] %v896_v55  ;;  %992 = vst [vmem:[%s1834_s10 + $0x1b8] sm:$0xff] %v928_v56 }
 0x17e   : > { %958 = vst [vmem:[%s1834_s10 + $0xa8] sm:$0xff] %v894_v57  ;;  %990 = vst [vmem:[%s1834_s10 + $0x1a8] sm:$0xff] %v926_v58  ;;  %v1273_v59 = vpop.f32.mrb[24].mxu0  ;;  %v1305_v60 = vpop.f32.mrb[24].mxu1 }
 0x17f   : > { %v723_v61 = vadd.f32 %v1273_v59, %v1823_v40  ;;  %v851_v62 = vadd.f32 %v1305_v60, %v1823_v40  ;;  %v714_v63 = vpop.f32.mrb[25].mxu0  ;;  %v842_v0 = vpop.f32.mrb[25].mxu1 }
 0x180   : > { %v715_v1 = vadd.f32 %v1823_v40, %v714_v63  ;;  %v843_v2 = vadd.f32 %v1823_v40, %v842_v0  ;;  %v1274_v3 = vpop.f32.mrb[26].mxu0  ;;  %v1306_v4 = vpop.f32.mrb[26].mxu1 }
 0x181   : > { %v899_v5 = vmax.f32 %v723_v61, 0.0  ;;  %v931_v6 = vmax.f32 %v851_v62, 0.0  ;;  %v726_v7 = vadd.f32 %v1274_v3, %v1823_v40  ;;  %v854_v8 = vadd.f32 %v1306_v4, %v1823_v40  ;;  %v717_v9 = vpop.f32.mrb[27].mxu0  ;;  %v845_v10 = vpop.f32.mrb[27].mxu1 }
 0x182   : > { %v897_v11 = vmax.f32 %v715_v1, 0.0  ;;  %v929_v12 = vmax.f32 %v843_v2, 0.0  ;;  %v718_v13 = vadd.f32 %v1823_v40, %v717_v9  ;;  %v846_v14 = vadd.f32 %v1823_v40, %v845_v10 }
 0x183   : > { %963 = vst [vmem:[%s1834_s10 + $0xd0] sm:$0xff] %v899_v5  ;;  %995 = vst [vmem:[%s1834_s10 + $0x1d0] sm:$0xff] %v931_v6  ;;  %v900_v15 = vmax.f32 %v726_v7, 0.0  ;;  %v932_v16 = vmax.f32 %v854_v8, 0.0 }
 0x184   : > { %961 = vst [vmem:[%s1834_s10 + $0xc0] sm:$0xff] %v897_v11  ;;  %993 = vst [vmem:[%s1834_s10 + $0x1c0] sm:$0xff] %v929_v12  ;;  %v898_v17 = vmax.f32 %v718_v13, 0.0  ;;  %v930_v18 = vmax.f32 %v846_v14, 0.0 }
 0x185   : > { %964 = vst [vmem:[%s1834_s10 + $0xd8] sm:$0xff] %v900_v15  ;;  %996 = vst [vmem:[%s1834_s10 + $0x1d8] sm:$0xff] %v932_v16 }
 0x186   : > { %962 = vst [vmem:[%s1834_s10 + $0xc8] sm:$0xff] %v898_v17  ;;  %994 = vst [vmem:[%s1834_s10 + $0x1c8] sm:$0xff] %v930_v18  ;;  %v1277_v19 = vpop.f32.mrb[28].mxu0  ;;  %v1309_v20 = vpop.f32.mrb[28].mxu1 }
 0x187   : > { %v739_v21 = vadd.f32 %v1277_v19, %v1823_v40  ;;  %v867_v22 = vadd.f32 %v1309_v20, %v1823_v40  ;;  %v730_v23 = vpop.f32.mrb[29].mxu0  ;;  %v858_v24 = vpop.f32.mrb[29].mxu1 }
 0x188   : > { %v731_v25 = vadd.f32 %v1823_v40, %v730_v23  ;;  %v859_v26 = vadd.f32 %v1823_v40, %v858_v24  ;;  %v1278_v27 = vpop.f32.mrb[30].mxu0  ;;  %v1310_v28 = vpop.f32.mrb[30].mxu1 }
 0x189   : > { %v903_v29 = vmax.f32 %v739_v21, 0.0  ;;  %v935_v30 = vmax.f32 %v867_v22, 0.0  ;;  %v742_v31 = vadd.f32 %v1278_v27, %v1823_v40  ;;  %v870_v32 = vadd.f32 %v1310_v28, %v1823_v40  ;;  %v733_v33 = vpop.f32.mrb[31].mxu0  ;;  %v861_v34 = vpop.f32.mrb[31].mxu1 }
 0x18a   : > { %v901_v35 = vmax.f32 %v731_v25, 0.0  ;;  %v933_v36 = vmax.f32 %v859_v26, 0.0  ;;  %v734_v37 = vadd.f32 %v1823_v40, %v733_v33  ;;  %v862_v38 = vadd.f32 %v1823_v40, %v861_v34 }
 0x18b   : > { %967 = vst [vmem:[%s1834_s10 + $0xf0] sm:$0xff] %v903_v29  ;;  %999 = vst [vmem:[%s1834_s10 + $0x1f0] sm:$0xff] %v935_v30  ;;  %v904_v39 = vmax.f32 %v742_v31, 0.0  ;;  %v936_v41 = vmax.f32 %v870_v32, 0.0 }
 0x18c   : > { %965 = vst [vmem:[%s1834_s10 + $0xe0] sm:$0xff] %v901_v35  ;;  %997 = vst [vmem:[%s1834_s10 + $0x1e0] sm:$0xff] %v933_v36  ;;  %v902_v42 = vmax.f32 %v734_v37, 0.0  ;;  %v934_v43 = vmax.f32 %v862_v38, 0.0 }
 0x18d   : > { %968 = vst [vmem:[%s1834_s10 + $0xf8] sm:$0xff] %v904_v39  ;;  %1000 = vst [vmem:[%s1834_s10 + $0x1f8] sm:$0xff] %v936_v41 }
 0x18e   : > { %966 = vst [vmem:[%s1834_s10 + $0xe8] sm:$0xff] %v902_v42  ;;  %998 = vst [vmem:[%s1834_s10 + $0x1e8] sm:$0xff] %v934_v43 }
 0x18f   : > { %1515 = shalt.err (!%p1512_p5)
}
 0x190   : > { %s1516_s29 = scalar_lea.hbm %s1955_s19, 8192  ;;  %s1520_s20 = scalar_lea.hbm %s2014_s3, 32768 }
 0x191   : > { %p1517_p9 = scmp.ne.s32.totalorder %s1955_s19, %s1516_s29  ;;  %p1521_p3 = scmp.lt.u32.totalorder %s1955_s19, %s2014_s3 }
 0x192   : > { %p1522_p7 = scmp.lt.u32.totalorder %s1520_s20, %s1516_s29  ;;  %p1524_p4 = scmp.lt.u32.totalorder %s1516_s29, %s1955_s19 }
 0x193   : > { %p1518_p1 = pnand %p1517_p9, %p1715_p11 }
 0x194   : > { %p1523_p13 = por %p1522_p7, %p1521_p3 }
 0x195   : > { %p1519_p2 = pneg %p1518_p1 }
 0x196   : > { %p1525_p6 = por %p1524_p4, %p1523_p13 }
 0x198   : > { %p1526_p8 = pnand %p1525_p6, %p1519_p2 }
 0x19a   : > { %1529 = shalt.err (!%p1526_p8)
}
 0x19b   : > { %s1595_s10 = smov 128   ;;  %s1596_s11 = smov 8  }
 0x19c   : > { %1333 = dma.vmem_to_hbm [thread:$0]  (%p1715_p11), %s1957_s9, 8192, %s1955_s19, %s1002_s25, %s1595_s10, %s1595_s10, %s1596_s11  }
 0x19d PF: > { %p1350_p12 = scmp.ge.s32.totalorder %s1588_s17, 2  ;;  %s1031_s15 = sand.u32 1, %s1568_s12  }
 0x19e   : > { %p2032_p10 = scmp.ne.s32.totalorder %s2022_s23, 0  ;;  %s1032_s18 = scalar_lea.sflag [#allocation4], %s1031_s15 }
 0x1a0   : > { %p1344_p0 = pnand %p1350_p12, %p2032_p10 }
 0x1a2   : > { %1563 = dma.done.wait (!%p1344_p0), %s1032_s18, 8192  }
 0x1a3   : > { %1565 = vsyncadd (!%p1344_p0), %s1032_s18, 4294959104  ;;  %s20_s17 = sadd.s32 1, %s1588_s17   ;;  %s2033_s12 = smov %s1572_s13 }
 0x1a4   : > { %p17_p5 = scmp.ge.s32.totalorder %s20_s17, 6   ;;  %s2034_s13 = smov %s1576_s14 }
 0x1a5   : > { %s2035_s14 = smov %s1724_s5  ;;  %s2036_s15 = smov %s1584_s16 }
 0x1a6   : > { %s2037_s16 = smov %s2039_s28  ;;  %19 = sbr.rel (!%p17_p5) target bundleno = 7 (0x7), region = 85 }
 0x1ad   :  { %1037 = vsyncpa [#allocation3], 1 }
 0x1ae   :  { %1039 = vsyncpa [#allocation3 + $0x1], 1 }
 0x1af   :  { %1040 = vsyncpa [#allocation6], 1 }
 0x1b0   :  { %1041 = vsyncpa [#allocation4], 1 }
 0x1b1   :  { %1043 = vsyncpa [#allocation4 + $0x1], 1 }

</bundles_post_ra>
